<compile_context>
chip_gen: v7x
topology: tpu7x:2x2x1
jax: 0.10.0
libtpu: 0.0.40
codegen_flags: <defaults>
</compile_context>

<pallas_src>
import functools

import jax
import jax.numpy as jnp
from jax.experimental import pallas as pl
from jax.experimental.pallas import tpu as pltpu


# ---------- small dot helpers (2-D, f32 accumulation on the MXU) ----------

def _dot(a, b):
    # a @ b : contract a's last dim with b's first dim.
    return jax.lax.dot_general(a, b, (((1,), (0,)), ((), ())),
                               preferred_element_type=jnp.float32)


def _t_dot(a, b):
    # a^T @ b : contract the leading dims (no materialized transpose).
    return jax.lax.dot_general(a, b, (((0,), (0,)), ((), ())),
                               preferred_element_type=jnp.float32)


def _dot_t(a, b):
    # a @ b^T : contract the trailing dims.
    return jax.lax.dot_general(a, b, (((1,), (1,)), ((), ())),
                               preferred_element_type=jnp.float32)


# ------------------------------- kernel -----------------------------------

def _md2d_kernel(x_ref, bases_ref, out_ref, bases_out_ref, *,
                 inv_t, steps, eps):
    x = x_ref[0].astype(jnp.float32)          # (D, N)
    bases = bases_ref[0].astype(jnp.float32)  # (D, R)

    # local_inference init: coef = softmax(INV_T * x^T @ bases, axis=-1)
    logits = inv_t * _t_dot(x, bases)                          # (N, R)
    logits = logits - jnp.max(logits, axis=-1, keepdims=True)
    e = jnp.exp(logits)
    coef = e / jnp.sum(e, axis=-1, keepdims=True)              # (N, R)

    # local_step: NMF multiplicative updates (canonical NMF2D subclass),
    # statically unrolled (steps is 6 or 7).
    for _ in range(steps):
        numer_c = _t_dot(x, bases)                             # (N, R)
        denom_c = _dot(coef, _t_dot(bases, bases))             # (N, R)
        coef = coef * numer_c / (denom_c + eps)

        numer_b = _dot(x, coef)                                # (D, R)
        denom_b = _dot(bases, _t_dot(coef, coef))              # (D, R)
        bases = bases * numer_b / (denom_b + eps)

    # compute_coef: one more multiplicative coef update.
    numer_c = _t_dot(x, bases)
    denom_c = _dot(coef, _t_dot(bases, bases))
    coef = coef * numer_c / (denom_c + eps)

    # Reconstruction: x_hat = bases @ coef^T  -> (D, N)
    out_ref[0] = _dot_t(bases, coef).astype(out_ref.dtype)
    bases_out_ref[0] = bases.astype(bases_out_ref.dtype)


# ------------------------------ wrapper ------------------------------------

def _build_bases(key, bs, d, r):
    # NMF2D._build_bases: uniform random, L2-normalized along D.
    bases = jax.random.uniform(key, (bs, d, r), dtype=jnp.float32)
    return bases / (jnp.linalg.norm(bases, axis=1, keepdims=True) + 1e-12)


def _cost_estimate(bs, d, n, r, steps):
    mm = lambda m, k, q: 2 * m * k * q
    per_step = (mm(n, d, r) + mm(r, d, r) + mm(n, r, r)   # coef update
                + mm(d, n, r) + mm(r, n, r) + mm(d, r, r))  # bases update
    flops = bs * (mm(n, d, r)                              # softmax-init matmul
                  + steps * per_step
                  + mm(n, d, r) + mm(r, d, r) + mm(n, r, r)  # compute_coef
                  + mm(d, r, n))                           # reconstruction
    transcendentals = bs * n * r                           # exp in softmax
    bytes_accessed = 4 * bs * (2 * d * n + 2 * d * r)      # f32 in + out
    return pl.CostEstimate(flops=int(flops),
                           transcendentals=int(transcendentals),
                           bytes_accessed=int(bytes_accessed))


def matrix_decomposition_2d(x, key, *, spatial=True, md_s=1, md_r=64,
                            train_steps=6, eval_steps=7, inv_t=100.0,
                            rand_init=True, return_bases=False,
                            training=True, eps=1e-6):
    """Forward of _MatrixDecomposition2DBase (NMF2D updates). x: (B, C, H, W)."""
    B, C, H, W = x.shape
    if spatial:
        D = C // md_s
        N = H * W
        x3 = x.reshape(B * md_s, D, N)
    else:
        D = H * W
        N = C // md_s
        x3 = jnp.swapaxes(x.reshape(B * md_s, N, D), 1, 2)
    BS, R = B * md_s, md_r

    if rand_init:
        bases = _build_bases(key, BS, D, R)
    else:
        # TODO(synk): RAND_INIT=False uses a stateful registered buffer in
        # PyTorch; emulated here by building one basis set and tiling per batch.
        bases = jnp.tile(_build_bases(key, md_s, D, R), (B, 1, 1))

    steps = train_steps if training else eval_steps

    out3, bases_out = pl.pallas_call(
        functools.partial(_md2d_kernel, inv_t=float(inv_t),
                          steps=int(steps), eps=float(eps)),
        out_shape=(jax.ShapeDtypeStruct((BS, D, N), x.dtype),
                   jax.ShapeDtypeStruct((BS, D, R), jnp.float32)),
        grid_spec=pltpu.PrefetchScalarGridSpec(
            num_scalar_prefetch=0,
            grid=(BS,),
            in_specs=[
                pl.BlockSpec((1, D, N), lambda b: (b, 0, 0)),
                pl.BlockSpec((1, D, R), lambda b: (b, 0, 0)),
            ],
            out_specs=(
                pl.BlockSpec((1, D, N), lambda b: (b, 0, 0)),
                pl.BlockSpec((1, D, R), lambda b: (b, 0, 0)),
            ),
        ),
        compiler_params=pltpu.CompilerParams(
            dimension_semantics=("parallel",)),
        cost_estimate=_cost_estimate(BS, D, N, R, steps),
    )(x3, bases)

    if spatial:
        out = out3.reshape(B, C, H, W)
    else:
        out = jnp.swapaxes(out3, 1, 2).reshape(B, C, H, W)

    if return_bases:
        return out, bases_out.reshape(B, md_s, D, R)
    return out


# --------------------------- pure-JAX reference -----------------------------

def _reference_forward(x, key, *, spatial=True, md_s=1, md_r=64, train_steps=6,
                       eval_steps=7, inv_t=100.0, training=True, eps=1e-6):
    B, C, H, W = x.shape
    if spatial:
        D, N = C // md_s, H * W
        x3 = x.reshape(B * md_s, D, N).astype(jnp.float32)
    else:
        D, N = H * W, C // md_s
        x3 = jnp.swapaxes(x.reshape(B * md_s, N, D), 1, 2).astype(jnp.float32)
    bases = _build_bases(key, B * md_s, D, md_r)
    steps = train_steps if training else eval_steps

    xt = jnp.swapaxes(x3, 1, 2)
    coef = jax.nn.softmax(inv_t * jnp.matmul(xt, bases), axis=-1)
    for _ in range(steps):
        numer = jnp.matmul(xt, bases)
        denom = jnp.matmul(coef, jnp.matmul(jnp.swapaxes(bases, 1, 2), bases))
        coef = coef * numer / (denom + eps)
        numer_b = jnp.matmul(x3, coef)
        denom_b = jnp.matmul(bases, jnp.matmul(jnp.swapaxes(coef, 1, 2), coef))
        bases = bases * numer_b / (denom_b + eps)
    numer = jnp.matmul(xt, bases)
    denom = jnp.matmul(coef, jnp.matmul(jnp.swapaxes(bases, 1, 2), bases))
    coef = coef * numer / (denom + eps)
    out3 = jnp.matmul(bases, jnp.swapaxes(coef, 1, 2))
    if spatial:
        return out3.reshape(B, C, H, W).astype(x.dtype)
    return jnp.swapaxes(out3, 1, 2).reshape(B, C, H, W).astype(x.dtype)


# --------------------------------- test -------------------------------------

if __name__ == "__main__":
    key = jax.random.PRNGKey(0)
    kx, kb = jax.random.split(key)

    B, C, H, W = 2, 4, 16, 16
    # NMF-style decomposition expects non-negative activations (it normally
    # sits after a ReLU), so use uniform [0, 1) inputs.
    x = jax.random.uniform(kx, (B, C, H, W), dtype=jnp.float32)

    out = matrix_decomposition_2d(x, kb, training=True)
    out = jax.block_until_ready(out)

    assert out.shape == x.shape and out.dtype == x.dtype
    assert bool(jnp.all(jnp.isfinite(out))), "non-finite values in output"

    with jax.default_matmul_precision("highest"):
        ref = _reference_forward(x, kb, training=True)
        ref = jax.block_until_ready(ref)

    rel_err = float(jnp.linalg.norm(out - ref) / (jnp.linalg.norm(ref) + 1e-12))
    assert rel_err < 2e-2, f"relative error vs reference too large: {rel_err}"

    # Eval mode (EVAL_STEPS iterations) also runs cleanly.
    out_eval = matrix_decomposition_2d(x, kb, training=False)
    out_eval = jax.block_until_ready(out_eval)
    assert out_eval.shape == x.shape

    print("KERNEL_OK")
</pallas_src>

<mosaic_0001>
module attributes {stable_mosaic.version = 11 : i64} {
  func.func @_md2d_kernel(%arg0: i32, %arg1: memref<1x4x256xf32, #tpu.memory_space<vmem>>, %arg2: memref<1x4x64xf32, #tpu.memory_space<vmem>>, %arg3: memref<1x4x256xf32, #tpu.memory_space<vmem>>, %arg4: memref<1x4x64xf32, #tpu.memory_space<vmem>>) attributes {dimension_semantics = [#tpu.dimension_semantics<parallel>], iteration_bounds = array<i64: 2>, scalar_prefetch = 0 : i64, scratch_operands = 0 : i64, tpu.core_type = #tpu.core_type<tc>, window_params = [{transform_indices = @transform_0, window_bounds = array<i64: 1, 4, 256>}, {transform_indices = @transform_1, window_bounds = array<i64: 1, 4, 64>}, {transform_indices = @transform_2, window_bounds = array<i64: 1, 4, 256>}, {transform_indices = @transform_3, window_bounds = array<i64: 1, 4, 64>}]} {
    %c0 = arith.constant 0 : index
    %c0_0 = arith.constant 0 : index
    %c0_1 = arith.constant 0 : index
    %0 = vector.load %arg1[%c0, %c0_0, %c0_1] : memref<1x4x256xf32, #tpu.memory_space<vmem>>, vector<1x4x256xf32>
    %1 = vector.shape_cast %0 : vector<1x4x256xf32> to vector<4x256xf32>
    %c0_2 = arith.constant 0 : index
    %c0_3 = arith.constant 0 : index
    %c0_4 = arith.constant 0 : index
    %2 = vector.load %arg2[%c0_2, %c0_3, %c0_4] : memref<1x4x64xf32, #tpu.memory_space<vmem>>, vector<1x4x64xf32>
    %3 = vector.shape_cast %2 : vector<1x4x64xf32> to vector<4x64xf32>
    %cst = arith.constant dense<0.000000e+00> : vector<256x64xf32>
    %4 = tpu.matmul %1, %3, %cst {dimension_numbers = #tpu.dot_dimension_numbers<[0], [0], [1], [1], [0, 1, 1, 1], [], []>} : vector<4x256xf32>, vector<4x64xf32>, vector<256x64xf32> -> vector<256x64xf32>
    %cst_5 = arith.constant 1.000000e+02 : f32
    %5 = vector.broadcast %cst_5 : f32 to vector<256x64xf32>
    %6 = arith.mulf %5, %4 : vector<256x64xf32>
    %cst_6 = arith.constant dense<0xFF800000> : vector<256xf32>
    %7 = vector.multi_reduction <maximumf>, %6, %cst_6 [1] : vector<256x64xf32> to vector<256xf32>
    %8 = vector.shape_cast %7 : vector<256xf32> to vector<256x1xf32>
    %9 = vector.broadcast %8 : vector<256x1xf32> to vector<256x64xf32>
    %10 = arith.subf %6, %9 : vector<256x64xf32>
    %11 = math.exp %10 : vector<256x64xf32>
    %cst_7 = arith.constant dense<0.000000e+00> : vector<256xf32>
    %12 = vector.multi_reduction <add>, %11, %cst_7 [1] : vector<256x64xf32> to vector<256xf32>
    %13 = vector.shape_cast %12 : vector<256xf32> to vector<256x1xf32>
    %14 = vector.broadcast %13 : vector<256x1xf32> to vector<256x64xf32>
    %15 = arith.divf %11, %14 : vector<256x64xf32>
    %cst_8 = arith.constant dense<0.000000e+00> : vector<256x64xf32>
    %16 = tpu.matmul %1, %3, %cst_8 {dimension_numbers = #tpu.dot_dimension_numbers<[0], [0], [1], [1], [0, 1, 1, 1], [], []>} : vector<4x256xf32>, vector<4x64xf32>, vector<256x64xf32> -> vector<256x64xf32>
    %cst_9 = arith.constant dense<0.000000e+00> : vector<64x64xf32>
    %17 = tpu.matmul %3, %3, %cst_9 {dimension_numbers = #tpu.dot_dimension_numbers<[0], [0], [1], [1], [0, 1, 1, 1], [], []>} : vector<4x64xf32>, vector<4x64xf32>, vector<64x64xf32> -> vector<64x64xf32>
    %cst_10 = arith.constant dense<0.000000e+00> : vector<256x64xf32>
    %18 = tpu.matmul %15, %17, %cst_10 {dimension_numbers = #tpu.dot_dimension_numbers<[1], [0], [0], [1], [0, 0, 1, 1], [], []>} : vector<256x64xf32>, vector<64x64xf32>, vector<256x64xf32> -> vector<256x64xf32>
    %19 = arith.mulf %15, %16 : vector<256x64xf32>
    %cst_11 = arith.constant 9.99999997E-7 : f32
    %20 = vector.broadcast %cst_11 : f32 to vector<256x64xf32>
    %21 = arith.addf %18, %20 : vector<256x64xf32>
    %22 = arith.divf %19, %21 : vector<256x64xf32>
    %cst_12 = arith.constant dense<0.000000e+00> : vector<4x64xf32>
    %23 = tpu.matmul %1, %22, %cst_12 {dimension_numbers = #tpu.dot_dimension_numbers<[1], [0], [0], [1], [0, 0, 1, 1], [], []>} : vector<4x256xf32>, vector<256x64xf32>, vector<4x64xf32> -> vector<4x64xf32>
    %cst_13 = arith.constant dense<0.000000e+00> : vector<64x64xf32>
    %24 = tpu.matmul %22, %22, %cst_13 {dimension_numbers = #tpu.dot_dimension_numbers<[0], [0], [1], [1], [0, 1, 1, 1], [], []>} : vector<256x64xf32>, vector<256x64xf32>, vector<64x64xf32> -> vector<64x64xf32>
    %cst_14 = arith.constant dense<0.000000e+00> : vector<4x64xf32>
    %25 = tpu.matmul %3, %24, %cst_14 {dimension_numbers = #tpu.dot_dimension_numbers<[1], [0], [0], [1], [0, 0, 1, 1], [], []>} : vector<4x64xf32>, vector<64x64xf32>, vector<4x64xf32> -> vector<4x64xf32>
    %26 = arith.mulf %3, %23 : vector<4x64xf32>
    %cst_15 = arith.constant 9.99999997E-7 : f32
    %27 = vector.broadcast %cst_15 : f32 to vector<4x64xf32>
    %28 = arith.addf %25, %27 : vector<4x64xf32>
    %29 = arith.divf %26, %28 : vector<4x64xf32>
    %cst_16 = arith.constant dense<0.000000e+00> : vector<256x64xf32>
    %30 = tpu.matmul %1, %29, %cst_16 {dimension_numbers = #tpu.dot_dimension_numbers<[0], [0], [1], [1], [0, 1, 1, 1], [], []>} : vector<4x256xf32>, vector<4x64xf32>, vector<256x64xf32> -> vector<256x64xf32>
    %cst_17 = arith.constant dense<0.000000e+00> : vector<64x64xf32>
    %31 = tpu.matmul %29, %29, %cst_17 {dimension_numbers = #tpu.dot_dimension_numbers<[0], [0], [1], [1], [0, 1, 1, 1], [], []>} : vector<4x64xf32>, vector<4x64xf32>, vector<64x64xf32> -> vector<64x64xf32>
    %cst_18 = arith.constant dense<0.000000e+00> : vector<256x64xf32>
    %32 = tpu.matmul %22, %31, %cst_18 {dimension_numbers = #tpu.dot_dimension_numbers<[1], [0], [0], [1], [0, 0, 1, 1], [], []>} : vector<256x64xf32>, vector<64x64xf32>, vector<256x64xf32> -> vector<256x64xf32>
    %33 = arith.mulf %22, %30 : vector<256x64xf32>
    %cst_19 = arith.constant 9.99999997E-7 : f32
    %34 = vector.broadcast %cst_19 : f32 to vector<256x64xf32>
    %35 = arith.addf %32, %34 : vector<256x64xf32>
    %36 = arith.divf %33, %35 : vector<256x64xf32>
    %cst_20 = arith.constant dense<0.000000e+00> : vector<4x64xf32>
    %37 = tpu.matmul %1, %36, %cst_20 {dimension_numbers = #tpu.dot_dimension_numbers<[1], [0], [0], [1], [0, 0, 1, 1], [], []>} : vector<4x256xf32>, vector<256x64xf32>, vector<4x64xf32> -> vector<4x64xf32>
    %cst_21 = arith.constant dense<0.000000e+00> : vector<64x64xf32>
    %38 = tpu.matmul %36, %36, %cst_21 {dimension_numbers = #tpu.dot_dimension_numbers<[0], [0], [1], [1], [0, 1, 1, 1], [], []>} : vector<256x64xf32>, vector<256x64xf32>, vector<64x64xf32> -> vector<64x64xf32>
    %cst_22 = arith.constant dense<0.000000e+00> : vector<4x64xf32>
    %39 = tpu.matmul %29, %38, %cst_22 {dimension_numbers = #tpu.dot_dimension_numbers<[1], [0], [0], [1], [0, 0, 1, 1], [], []>} : vector<4x64xf32>, vector<64x64xf32>, vector<4x64xf32> -> vector<4x64xf32>
    %40 = arith.mulf %29, %37 : vector<4x64xf32>
    %cst_23 = arith.constant 9.99999997E-7 : f32
    %41 = vector.broadcast %cst_23 : f32 to vector<4x64xf32>
    %42 = arith.addf %39, %41 : vector<4x64xf32>
    %43 = arith.divf %40, %42 : vector<4x64xf32>
    %cst_24 = arith.constant dense<0.000000e+00> : vector<256x64xf32>
    %44 = tpu.matmul %1, %43, %cst_24 {dimension_numbers = #tpu.dot_dimension_numbers<[0], [0], [1], [1], [0, 1, 1, 1], [], []>} : vector<4x256xf32>, vector<4x64xf32>, vector<256x64xf32> -> vector<256x64xf32>
    %cst_25 = arith.constant dense<0.000000e+00> : vector<64x64xf32>
    %45 = tpu.matmul %43, %43, %cst_25 {dimension_numbers = #tpu.dot_dimension_numbers<[0], [0], [1], [1], [0, 1, 1, 1], [], []>} : vector<4x64xf32>, vector<4x64xf32>, vector<64x64xf32> -> vector<64x64xf32>
    %cst_26 = arith.constant dense<0.000000e+00> : vector<256x64xf32>
    %46 = tpu.matmul %36, %45, %cst_26 {dimension_numbers = #tpu.dot_dimension_numbers<[1], [0], [0], [1], [0, 0, 1, 1], [], []>} : vector<256x64xf32>, vector<64x64xf32>, vector<256x64xf32> -> vector<256x64xf32>
    %47 = arith.mulf %36, %44 : vector<256x64xf32>
    %cst_27 = arith.constant 9.99999997E-7 : f32
    %48 = vector.broadcast %cst_27 : f32 to vector<256x64xf32>
    %49 = arith.addf %46, %48 : vector<256x64xf32>
    %50 = arith.divf %47, %49 : vector<256x64xf32>
    %cst_28 = arith.constant dense<0.000000e+00> : vector<4x64xf32>
    %51 = tpu.matmul %1, %50, %cst_28 {dimension_numbers = #tpu.dot_dimension_numbers<[1], [0], [0], [1], [0, 0, 1, 1], [], []>} : vector<4x256xf32>, vector<256x64xf32>, vector<4x64xf32> -> vector<4x64xf32>
    %cst_29 = arith.constant dense<0.000000e+00> : vector<64x64xf32>
    %52 = tpu.matmul %50, %50, %cst_29 {dimension_numbers = #tpu.dot_dimension_numbers<[0], [0], [1], [1], [0, 1, 1, 1], [], []>} : vector<256x64xf32>, vector<256x64xf32>, vector<64x64xf32> -> vector<64x64xf32>
    %cst_30 = arith.constant dense<0.000000e+00> : vector<4x64xf32>
    %53 = tpu.matmul %43, %52, %cst_30 {dimension_numbers = #tpu.dot_dimension_numbers<[1], [0], [0], [1], [0, 0, 1, 1], [], []>} : vector<4x64xf32>, vector<64x64xf32>, vector<4x64xf32> -> vector<4x64xf32>
    %54 = arith.mulf %43, %51 : vector<4x64xf32>
    %cst_31 = arith.constant 9.99999997E-7 : f32
    %55 = vector.broadcast %cst_31 : f32 to vector<4x64xf32>
    %56 = arith.addf %53, %55 : vector<4x64xf32>
    %57 = arith.divf %54, %56 : vector<4x64xf32>
    %cst_32 = arith.constant dense<0.000000e+00> : vector<256x64xf32>
    %58 = tpu.matmul %1, %57, %cst_32 {dimension_numbers = #tpu.dot_dimension_numbers<[0], [0], [1], [1], [0, 1, 1, 1], [], []>} : vector<4x256xf32>, vector<4x64xf32>, vector<256x64xf32> -> vector<256x64xf32>
    %cst_33 = arith.constant dense<0.000000e+00> : vector<64x64xf32>
    %59 = tpu.matmul %57, %57, %cst_33 {dimension_numbers = #tpu.dot_dimension_numbers<[0], [0], [1], [1], [0, 1, 1, 1], [], []>} : vector<4x64xf32>, vector<4x64xf32>, vector<64x64xf32> -> vector<64x64xf32>
    %cst_34 = arith.constant dense<0.000000e+00> : vector<256x64xf32>
    %60 = tpu.matmul %50, %59, %cst_34 {dimension_numbers = #tpu.dot_dimension_numbers<[1], [0], [0], [1], [0, 0, 1, 1], [], []>} : vector<256x64xf32>, vector<64x64xf32>, vector<256x64xf32> -> vector<256x64xf32>
    %61 = arith.mulf %50, %58 : vector<256x64xf32>
    %cst_35 = arith.constant 9.99999997E-7 : f32
    %62 = vector.broadcast %cst_35 : f32 to vector<256x64xf32>
    %63 = arith.addf %60, %62 : vector<256x64xf32>
    %64 = arith.divf %61, %63 : vector<256x64xf32>
    %cst_36 = arith.constant dense<0.000000e+00> : vector<4x64xf32>
    %65 = tpu.matmul %1, %64, %cst_36 {dimension_numbers = #tpu.dot_dimension_numbers<[1], [0], [0], [1], [0, 0, 1, 1], [], []>} : vector<4x256xf32>, vector<256x64xf32>, vector<4x64xf32> -> vector<4x64xf32>
    %cst_37 = arith.constant dense<0.000000e+00> : vector<64x64xf32>
    %66 = tpu.matmul %64, %64, %cst_37 {dimension_numbers = #tpu.dot_dimension_numbers<[0], [0], [1], [1], [0, 1, 1, 1], [], []>} : vector<256x64xf32>, vector<256x64xf32>, vector<64x64xf32> -> vector<64x64xf32>
    %cst_38 = arith.constant dense<0.000000e+00> : vector<4x64xf32>
    %67 = tpu.matmul %57, %66, %cst_38 {dimension_numbers = #tpu.dot_dimension_numbers<[1], [0], [0], [1], [0, 0, 1, 1], [], []>} : vector<4x64xf32>, vector<64x64xf32>, vector<4x64xf32> -> vector<4x64xf32>
    %68 = arith.mulf %57, %65 : vector<4x64xf32>
    %cst_39 = arith.constant 9.99999997E-7 : f32
    %69 = vector.broadcast %cst_39 : f32 to vector<4x64xf32>
    %70 = arith.addf %67, %69 : vector<4x64xf32>
    %71 = arith.divf %68, %70 : vector<4x64xf32>
    %cst_40 = arith.constant dense<0.000000e+00> : vector<256x64xf32>
    %72 = tpu.matmul %1, %71, %cst_40 {dimension_numbers = #tpu.dot_dimension_numbers<[0], [0], [1], [1], [0, 1, 1, 1], [], []>} : vector<4x256xf32>, vector<4x64xf32>, vector<256x64xf32> -> vector<256x64xf32>
    %cst_41 = arith.constant dense<0.000000e+00> : vector<64x64xf32>
    %73 = tpu.matmul %71, %71, %cst_41 {dimension_numbers = #tpu.dot_dimension_numbers<[0], [0], [1], [1], [0, 1, 1, 1], [], []>} : vector<4x64xf32>, vector<4x64xf32>, vector<64x64xf32> -> vector<64x64xf32>
    %cst_42 = arith.constant dense<0.000000e+00> : vector<256x64xf32>
    %74 = tpu.matmul %64, %73, %cst_42 {dimension_numbers = #tpu.dot_dimension_numbers<[1], [0], [0], [1], [0, 0, 1, 1], [], []>} : vector<256x64xf32>, vector<64x64xf32>, vector<256x64xf32> -> vector<256x64xf32>
    %75 = arith.mulf %64, %72 : vector<256x64xf32>
    %cst_43 = arith.constant 9.99999997E-7 : f32
    %76 = vector.broadcast %cst_43 : f32 to vector<256x64xf32>
    %77 = arith.addf %74, %76 : vector<256x64xf32>
    %78 = arith.divf %75, %77 : vector<256x64xf32>
    %cst_44 = arith.constant dense<0.000000e+00> : vector<4x64xf32>
    %79 = tpu.matmul %1, %78, %cst_44 {dimension_numbers = #tpu.dot_dimension_numbers<[1], [0], [0], [1], [0, 0, 1, 1], [], []>} : vector<4x256xf32>, vector<256x64xf32>, vector<4x64xf32> -> vector<4x64xf32>
    %cst_45 = arith.constant dense<0.000000e+00> : vector<64x64xf32>
    %80 = tpu.matmul %78, %78, %cst_45 {dimension_numbers = #tpu.dot_dimension_numbers<[0], [0], [1], [1], [0, 1, 1, 1], [], []>} : vector<256x64xf32>, vector<256x64xf32>, vector<64x64xf32> -> vector<64x64xf32>
    %cst_46 = arith.constant dense<0.000000e+00> : vector<4x64xf32>
    %81 = tpu.matmul %71, %80, %cst_46 {dimension_numbers = #tpu.dot_dimension_numbers<[1], [0], [0], [1], [0, 0, 1, 1], [], []>} : vector<4x64xf32>, vector<64x64xf32>, vector<4x64xf32> -> vector<4x64xf32>
    %82 = arith.mulf %71, %79 : vector<4x64xf32>
    %cst_47 = arith.constant 9.99999997E-7 : f32
    %83 = vector.broadcast %cst_47 : f32 to vector<4x64xf32>
    %84 = arith.addf %81, %83 : vector<4x64xf32>
    %85 = arith.divf %82, %84 : vector<4x64xf32>
    %cst_48 = arith.constant dense<0.000000e+00> : vector<256x64xf32>
    %86 = tpu.matmul %1, %85, %cst_48 {dimension_numbers = #tpu.dot_dimension_numbers<[0], [0], [1], [1], [0, 1, 1, 1], [], []>} : vector<4x256xf32>, vector<4x64xf32>, vector<256x64xf32> -> vector<256x64xf32>
    %cst_49 = arith.constant dense<0.000000e+00> : vector<64x64xf32>
    %87 = tpu.matmul %85, %85, %cst_49 {dimension_numbers = #tpu.dot_dimension_numbers<[0], [0], [1], [1], [0, 1, 1, 1], [], []>} : vector<4x64xf32>, vector<4x64xf32>, vector<64x64xf32> -> vector<64x64xf32>
    %cst_50 = arith.constant dense<0.000000e+00> : vector<256x64xf32>
    %88 = tpu.matmul %78, %87, %cst_50 {dimension_numbers = #tpu.dot_dimension_numbers<[1], [0], [0], [1], [0, 0, 1, 1], [], []>} : vector<256x64xf32>, vector<64x64xf32>, vector<256x64xf32> -> vector<256x64xf32>
    %89 = arith.mulf %78, %86 : vector<256x64xf32>
    %cst_51 = arith.constant 9.99999997E-7 : f32
    %90 = vector.broadcast %cst_51 : f32 to vector<256x64xf32>
    %91 = arith.addf %88, %90 : vector<256x64xf32>
    %92 = arith.divf %89, %91 : vector<256x64xf32>
    %cst_52 = arith.constant dense<0.000000e+00> : vector<4x64xf32>
    %93 = tpu.matmul %1, %92, %cst_52 {dimension_numbers = #tpu.dot_dimension_numbers<[1], [0], [0], [1], [0, 0, 1, 1], [], []>} : vector<4x256xf32>, vector<256x64xf32>, vector<4x64xf32> -> vector<4x64xf32>
    %cst_53 = arith.constant dense<0.000000e+00> : vector<64x64xf32>
    %94 = tpu.matmul %92, %92, %cst_53 {dimension_numbers = #tpu.dot_dimension_numbers<[0], [0], [1], [1], [0, 1, 1, 1], [], []>} : vector<256x64xf32>, vector<256x64xf32>, vector<64x64xf32> -> vector<64x64xf32>
    %cst_54 = arith.constant dense<0.000000e+00> : vector<4x64xf32>
    %95 = tpu.matmul %85, %94, %cst_54 {dimension_numbers = #tpu.dot_dimension_numbers<[1], [0], [0], [1], [0, 0, 1, 1], [], []>} : vector<4x64xf32>, vector<64x64xf32>, vector<4x64xf32> -> vector<4x64xf32>
    %96 = arith.mulf %85, %93 : vector<4x64xf32>
    %cst_55 = arith.constant 9.99999997E-7 : f32
    %97 = vector.broadcast %cst_55 : f32 to vector<4x64xf32>
    %98 = arith.addf %95, %97 : vector<4x64xf32>
    %99 = arith.divf %96, %98 : vector<4x64xf32>
    %cst_56 = arith.constant dense<0.000000e+00> : vector<256x64xf32>
    %100 = tpu.matmul %1, %99, %cst_56 {dimension_numbers = #tpu.dot_dimension_numbers<[0], [0], [1], [1], [0, 1, 1, 1], [], []>} : vector<4x256xf32>, vector<4x64xf32>, vector<256x64xf32> -> vector<256x64xf32>
    %cst_57 = arith.constant dense<0.000000e+00> : vector<64x64xf32>
    %101 = tpu.matmul %99, %99, %cst_57 {dimension_numbers = #tpu.dot_dimension_numbers<[0], [0], [1], [1], [0, 1, 1, 1], [], []>} : vector<4x64xf32>, vector<4x64xf32>, vector<64x64xf32> -> vector<64x64xf32>
    %cst_58 = arith.constant dense<0.000000e+00> : vector<256x64xf32>
    %102 = tpu.matmul %92, %101, %cst_58 {dimension_numbers = #tpu.dot_dimension_numbers<[1], [0], [0], [1], [0, 0, 1, 1], [], []>} : vector<256x64xf32>, vector<64x64xf32>, vector<256x64xf32> -> vector<256x64xf32>
    %103 = arith.mulf %92, %100 : vector<256x64xf32>
    %cst_59 = arith.constant 9.99999997E-7 : f32
    %104 = vector.broadcast %cst_59 : f32 to vector<256x64xf32>
    %105 = arith.addf %102, %104 : vector<256x64xf32>
    %106 = arith.divf %103, %105 : vector<256x64xf32>
    %cst_60 = arith.constant dense<0.000000e+00> : vector<4x256xf32>
    %107 = tpu.matmul %99, %106, %cst_60 {dimension_numbers = #tpu.dot_dimension_numbers<[1], [1], [0], [0], [0, 0, 1, 0], [], []>} : vector<4x64xf32>, vector<256x64xf32>, vector<4x256xf32> -> vector<4x256xf32>
    %c0_61 = arith.constant 0 : index
    %c0_62 = arith.constant 0 : index
    %c0_63 = arith.constant 0 : index
    %108 = vector.load %arg3[%c0_61, %c0_62, %c0_63] : memref<1x4x256xf32, #tpu.memory_space<vmem>>, vector<1x4x256xf32>
    %109 = vector.shape_cast %108 : vector<1x4x256xf32> to vector<4x256xf32>
    %110 = vector.shape_cast %107 : vector<4x256xf32> to vector<1x4x256xf32>
    tpu.vector_store %arg3[%c0_61, %c0_62, %c0_63], %110 {strides = array<i32>} : memref<1x4x256xf32, #tpu.memory_space<vmem>>, vector<1x4x256xf32>,
    %c0_64 = arith.constant 0 : index
    %c0_65 = arith.constant 0 : index
    %c0_66 = arith.constant 0 : index
    %111 = vector.load %arg4[%c0_64, %c0_65, %c0_66] : memref<1x4x64xf32, #tpu.memory_space<vmem>>, vector<1x4x64xf32>
    %112 = vector.shape_cast %111 : vector<1x4x64xf32> to vector<4x64xf32>
    %113 = vector.shape_cast %99 : vector<4x64xf32> to vector<1x4x64xf32>
    tpu.vector_store %arg4[%c0_64, %c0_65, %c0_66], %113 {strides = array<i32>} : memref<1x4x64xf32, #tpu.memory_space<vmem>>, vector<1x4x64xf32>,
    return
  }
  func.func @transform_0(%arg0: i32) -> (i32, i32, i32) {
    %c0_i32 = arith.constant 0 : i32
    %c0_i32_0 = arith.constant 0 : i32
    %c0_i32_1 = arith.constant 0 : i32
    return %arg0, %c0_i32, %c0_i32_0 : i32, i32, i32
  }
  func.func @transform_1(%arg0: i32) -> (i32, i32, i32) {
    %c0_i32 = arith.constant 0 : i32
    %c0_i32_0 = arith.constant 0 : i32
    %c0_i32_1 = arith.constant 0 : i32
    return %arg0, %c0_i32, %c0_i32_0 : i32, i32, i32
  }
  func.func @transform_2(%arg0: i32) -> (i32, i32, i32) {
    %c0_i32 = arith.constant 0 : i32
    %c0_i32_0 = arith.constant 0 : i32
    %c0_i32_1 = arith.constant 0 : i32
    return %arg0, %c0_i32, %c0_i32_0 : i32, i32, i32
  }
  func.func @transform_3(%arg0: i32) -> (i32, i32, i32) {
    %c0_i32 = arith.constant 0 : i32
    %c0_i32_0 = arith.constant 0 : i32
    %c0_i32_1 = arith.constant 0 : i32
    return %arg0, %c0_i32, %c0_i32_0 : i32, i32, i32
  }
}

</mosaic_0001>

<bundles_post_ra>
// kernel: tpu_custom_call.1
= control target key start
LH: loop header
LB: loop body
LE: loop exit
PB: predicated region body
PF: predicated region fallthrough
CT: control target
= control target key end

     0   :  { %9 = vsyncpa [#allocation3], 0  ;;  %s17016_s0 = inlined_call_operand.hbm [shape: f32[2,4,256], index: 0, kind: input, shape index: {}]   ;;  %s17017_s1 = inlined_call_operand.hbm [shape: f32[2,4,64], index: 1, kind: input, shape index: {}]   ;;  %s17018_s2 = inlined_call_operand.hbm [shape: f32[2,4,256], index: 2, kind: output, shape index: {0}]   ;;  %s17019_s3 = inlined_call_operand.hbm [shape: f32[2,4,64], index: 3, kind: output, shape index: {1}]  }
   0x1   :  { %11 = vsyncpa [#allocation3 + $0x1], 0 }
   0x2   :  { %12 = vsyncpa [#allocation6], 0 }
   0x3   :  { %14 = vsyncpa [#allocation6 + $0x1], 0 }
   0x4   :  { %15 = vsyncpa [#allocation4], 0 }
   0x5   :  { %17 = vsyncpa [#allocation4 + $0x1], 0 }
   0x6   :  { %18 = vsyncpa [#allocation9], 0 }
   0x7   :  { %20 = vsyncpa [#allocation9 + $0x1], 0  ;;  %s13337_s12 = smov 0   ;;  %s13339_s13 = smov 0  }
   0x8   :  { %s13341_s14 = smov 0   ;;  %s13343_s15 = smov 0  }
   0x9 LB: > { %s13358_s16 = sadd.s32 4294967295, %s13308_s15   ;;  %s8647_s17 = sadd.s32 4294967294, %s13308_s15   ;;  %s13308_s15 = sphi %s13343_s15, %s17603_s15   ;;  %s13304_s14 = sphi %s13341_s14, %s17602_s14   ;;  %s13300_s13 = sphi %s13339_s13, %s17601_s13   ;;  %s13296_s12 = sphi %s13337_s12, %s17600_s12  }
   0xa   : > { %s13362_s18 = sadd.s32 1, %s13308_s15   ;;  %s33_s19 = sadd.s32 1, %s13304_s14 }
   0xb   : > { %s30_s20 = ssub.s32 %s13308_s15, %s13362_s18  ;;  %p40_p0 = scmp.ne.s32.totalorder %s13304_s14, %s13300_s13 }
   0xc   : > { %p31_p1 = scmp.eq.s32.totalorder %s30_s20, 0  ;;  %p41_p2 = scmp.eq.s32.totalorder %s13308_s15, 0 }
   0xd   : > { %p46_p3 = scmp.ne.s32.totalorder %s13300_s13, %s13296_s12  ;;  %p47_p4 = scmp.eq.s32.totalorder %s13358_s16, 0 }
   0xe   : > { %s13374_s21 = scalar_select %p31_p1, %s13304_s14, %s33_s19  }
   0xf   : > { %p13376_p5 = por %p41_p2, %p40_p0  ;;  %p13380_p6 = por %p47_p4, %p46_p3 }
  0x10   : > { %p96_p7 = scmp.eq.s32.totalorder %s13358_s16, 1  ;;  %p102_p8 = scmp.eq.s32.totalorder %s8647_s17, 1 }
  0x11   : > { %s17131_s23 = scalar_select %p13380_p6, 1, 0 }
  0x12   : > { %p12084_p10 = scmp.lt.s32.totalorder %s13308_s15, 2  ;;  %p13387_p11 = por %p96_p7, %p40_p0 }
  0x13   : > { %p13391_p12 = por %p102_p8, %p46_p3  ;;  %s13396_s26 = sand.u32 1, %s13304_s14  }
  0x14   : > { %s17132_s24 = scalar_select %p13387_p11, 1, 0 }
  0x15   : > { %s17133_s25 = scalar_select %p13391_p12, 1, 0 }
  0x16   : > { %s9224_s27 = sshll.u32 %s13308_s15, 7  ;;  %s8650_s28 = sshll.u32 %s13396_s26, 3 }
  0x17   : > { %s13403_s4 = scalar_lea.hbm %s17016_s0, %s9224_s27  ;;  %s152_s5 = scalar_lea.vmem [#allocation2], %s8650_s28 }
  0x18   : > { %s160_s6 = sshll.u32 %s152_s5, 4  ;;  %p13407_p13 = pnand %p12084_p10, %p13376_p5  ;;  %s13411_s6 = int_to_ptr.vmem [resolvable:$true] %s160_s6 }
  0x19   : > { %s149_s8 = scalar_lea.sflag [#allocation3], %s13396_s26  ;;  %s13146_s9 = scalar_lea.hbm %s13403_s4, 128 }
  0x1a   : > { %p13147_p2 = scmp.ne.s32.totalorder %s13403_s4, %s13146_s9  ;;  %p13148_p3 = pneg %p13407_p13 }
  0x1b   : > { %s13151_s17 = scalar_lea.hbm %s17016_s0, 256  ;;  %p13152_p5 = scmp.lt.u32.totalorder %s13403_s4, %s17016_s0 }
  0x1c   : > { %p13149_p4 = pnand %p13148_p3, %p13147_p2  ;;  %p13153_p8 = scmp.lt.u32.totalorder %s13151_s17, %s13146_s9 }
  0x1d   : > { %p13155_p9 = scmp.lt.u32.totalorder %s13146_s9, %s13403_s4 }
  0x1e   : > { %p13150_p7 = pneg %p13149_p4  ;;  %p13154_p10 = por %p13153_p8, %p13152_p5 }
  0x20   : > { %p13156_p0 = por %p13155_p9, %p13154_p10 }
  0x22   : > { %p13157_p1 = pnand %p13156_p0, %p13150_p7 }
  0x24   : > { %13160 = shalt.err (!%p13157_p1)
}
  0x25   : > { %s13161_s22 = scalar_lea.vmem %s13411_s6, 128  ;;  %s13310_s27 = smov [#allocation2]  }
  0x26   : > { %p13162_p2 = scmp.ne.s32.totalorder %s13411_s6, %s13161_s22  ;;  %s13166_s28 = sshll.u32 %s13310_s27, 4  ;;  %s13167_s28 = int_to_ptr.vmem [resolvable:$false] %s13166_s28 }
  0x27   : > { %s13168_s29 = scalar_lea.vmem %s13167_s28, 256  ;;  %p13169_p11 = scmp.lt.s32.totalorder %s13411_s6, %s13167_s28 }
  0x28   : > { %p13164_p4 = pnand %p13162_p2, %p13148_p3  ;;  %p13170_p5 = scmp.lt.s32.totalorder %s13168_s29, %s13161_s22 }
  0x2a   : > { %p13165_p12 = pneg %p13164_p4  ;;  %p13171_p8 = por %p13170_p5, %p13169_p11 }
  0x2c   : > { %p13172_p9 = pnand %p13171_p8, %p13165_p12 }
  0x2e   : > { %13175 = shalt.err (!%p13172_p9)
}
  0x2f   : > { %12073 = dma.hbm_to_vmem [thread:$0]  (!%p13407_p13), %s13403_s4, 128, %s13411_s6, %s149_s8  }
  0x30   : > { %p17135_p0 = scmp.lt.s32.totalorder %s13308_s15, 3  ;;  %p17136_p1 = scmp.ge.s32.totalorder %s13308_s15, 1 }
  0x31   : > { %s8653_s5 = sshll.u32 %s13396_s26, 2  ;;  %s8654_s9 = sshll.u32 %s13308_s15, 6 }
  0x32   : > { %p13445_p7 = pnand %p17136_p1, %p17135_p0  ;;  %s13454_s17 = scalar_lea.hbm %s17017_s1, %s8654_s9 }
  0x33   : > { %s171_s19 = scalar_lea.vmem [#allocation5], %s8653_s5  ;;  %s168_s4 = scalar_lea.sflag [#allocation6], %s13396_s26 }
  0x34   : > { %s17137_s30 = scalar_select %p13445_p7, 1, 0 }
  0x35   : > { %s178_s20 = sshll.u32 %s171_s19, 4  ;;  %s13176_s6 = scalar_lea.hbm %s13454_s17, 64  ;;  %s179_s20 = int_to_ptr.vmem [resolvable:$true] %s178_s20 }
  0x36   : > { %p13177_p11 = scmp.ne.s32.totalorder %s13454_s17, %s13176_s6  ;;  %s13181_s27 = scalar_lea.hbm %s17017_s1, 128 }
  0x37   : > { %p13182_p2 = scmp.lt.u32.totalorder %s13454_s17, %s17017_s1  ;;  %p13183_p4 = scmp.lt.u32.totalorder %s13181_s27, %s13176_s6 }
  0x38   : > { %p13179_p12 = pnand %p13177_p11, %p13148_p3  ;;  %p13185_p8 = scmp.lt.u32.totalorder %s13176_s6, %s13454_s17 }
  0x39   : > { %p13184_p5 = por %p13183_p4, %p13182_p2 }
  0x3a   : > { %p13180_p10 = pneg %p13179_p12 }
  0x3b   : > { %p13186_p9 = por %p13185_p8, %p13184_p5 }
  0x3d   : > { %p13187_p0 = pnand %p13186_p9, %p13180_p10 }
  0x3f   : > { %13190 = shalt.err (!%p13187_p0)
}
  0x40   : > { %s13191_s26 = scalar_lea.vmem %s179_s20, 64  ;;  %s13311_s5 = smov [#allocation5]  }
  0x41   : > { %p13192_p1 = scmp.ne.s32.totalorder %s179_s20, %s13191_s26  ;;  %s13196_s9 = sshll.u32 %s13311_s5, 4  ;;  %s13197_s9 = int_to_ptr.vmem [resolvable:$false] %s13196_s9 }
  0x42   : > { %s13198_s10 = scalar_lea.vmem %s13197_s9, 128  ;;  %p13199_p6 = scmp.lt.s32.totalorder %s179_s20, %s13197_s9 }
  0x43   : > { %p13194_p11 = pnand %p13192_p1, %p13148_p3  ;;  %p13200_p7 = scmp.lt.s32.totalorder %s13198_s10, %s13191_s26 }
  0x45   : > { %p13195_p12 = pneg %p13194_p11  ;;  %p13201_p2 = por %p13200_p7, %p13199_p6 }
  0x47   : > { %p13202_p4 = pnand %p13201_p2, %p13195_p12 }
  0x49   : > { %13205 = shalt.err (!%p13202_p4)
}
  0x4a   : > { %12076 = dma.hbm_to_vmem [thread:$0]  (!%p13407_p13), %s13454_s17, 64, %s179_s20, %s168_s4  }
  0x4b   : > { %p17138_p10 = scmp.ne.s32.totalorder %s17137_s30, 0 }
  0x4d   : > { %187 = sbr.rel (%p17138_p10) target bundleno = 8815 (0x226f), region = 28 }
  0x54   : > { %s13479_s11 = sand.u32 1, %s13300_s13   ;;  %p17139_p6 = scmp.ne.s32.totalorder %s17131_s23, 0 }
  0x55   : > { %s8656_s19 = sshll.u32 %s13479_s11, 3  ;;  %s190_s6 = scalar_lea.sflag [#allocation3], %s13479_s11 }
  0x56   : > { %s13485_s8 = scalar_lea.vmem [#allocation2], %s8656_s19 }
  0x57   : > { %13279 = dma.done.wait (%p17139_p6), %s190_s6, 128  }
  0x58   : > { %13281 = vsyncadd (%p17139_p6), %s190_s6, 4294967168  ;;  %s8657_s7 = sshll.u32 %s13479_s11, 2  ;;  %s199_s30 = scalar_lea.sflag [#allocation6], %s13479_s11 }
  0x59   : > { %s13495_s17 = scalar_lea.vmem [#allocation5], %s8657_s7 }
  0x5a   : > { %13283 = dma.done.wait (%p17139_p6), %s199_s30, 64  }
  0x5b   : > { %13285 = vsyncadd (%p17139_p6), %s199_s30, 4294967232  ;;  %v235_v0 = vld [vmem:[%s13485_s8] sm:$0xff]  ;;  %v13503_v1 = vld [vmem:[%s13495_s17] sm:$0xf]  ;;  %vm401_vm0 = vcmask 1043456   ;;  %vm304_vm1 = vcmask 31744  }
  0x5c   : > { %240 = vxpose.xlu0.b32.start.end [1/1] (short) %v235_v0, 128  ;;  %10434 = vmatprep.subr.msk.mxu0 %vm401_vm0, %v13503_v1  ;;  %v13516_v2 = vcombine.high %v235_v0, %v235_v0  ;;  %vm662_vm2 = vcmask 523264   ;;  %vm13313_vm3 = vmmov 0   ;;  %vm8487_vm4 = vcmask 519168   ;;  %s16555_s23 = scalar_lea.vmem [#allocation8], %s8657_s7  ;;  %s9221_s20 = sshll.u32 %s13358_s16, 6 }
  0x5d   : > { %12060 = vmatprep.subr.msk.mxu1 %vm401_vm0, %v13503_v1  ;;  %10435 = vmatpush3.msk.msra.mxu0 %vm401_vm0, %v13503_v1  ;;  %vm16853_vm5 = vmpackc.low %vm662_vm2, %vm662_vm2  ;;  %s8522_s4 = sshll.u32 %s16555_s23, 4  ;;  %s16946_s28 = scalar_lea.hbm %s17019_s3, %s9221_s20  ;;  %s8523_s4 = int_to_ptr.vmem [resolvable:$true] %s8522_s4 }
  0x5e   : > { %12061 = vmatpush3.msk.msra.mxu1 %vm401_vm0, %v13503_v1  ;;  %1015 = vxpose.xlu1.b32.start.end [1/1] (short) (narrow) %v13503_v1, 64  ;;  %17140 = vst [vmem:[#allocation14_spill] sm:$0xff] %v13516_v2  ;;  %s8495_s29 = scalar_lea.sflag [#allocation9], %s13479_s11  ;;  %s13206_s26 = scalar_lea.vmem %s8523_s4, 64 }
  0x5f   : > { %10484 = vmatprep.subr.msk.mxu1 %vm401_vm0, %v13503_v1  ;;  %p13207_p13 = scmp.ne.s32.totalorder %s8523_s4, %s13206_s26  ;;  %p17597_p3 = scmp.ne.s32.totalorder %s17132_s24, 0 }
  0x60   : > { %s13315_s5 = smov [#allocation8]  }
  0x61   : > { %p13208_p7 = pnand %p13207_p13, %p17597_p3  ;;  %s13210_s9 = sshll.u32 %s13315_s5, 4  ;;  %s13211_s9 = int_to_ptr.vmem [resolvable:$false] %s13210_s9 }
  0x62   : > { %s13212_s10 = scalar_lea.vmem %s13211_s9, 128  ;;  %p13213_p8 = scmp.lt.s32.totalorder %s8523_s4, %s13211_s9 }
  0x63   : > { %p13209_p5 = pneg %p13208_p7  ;;  %p13214_p9 = scmp.lt.s32.totalorder %s13212_s10, %s13206_s26 }
  0x65   : > { %p13215_p0 = por %p13214_p9, %p13213_p8 }
  0x67   : > { %p13216_p1 = pnand %p13215_p0, %p13209_p5 }
  0x99   : > { %272 = vxpose.xlu0.b32.start.end [1/1] (short) %v13516_v2, 128 }
  0xdc   : > { %v13519_v3 = vpop.trf.xlu0 }
  0xdd   : > { %17141 = vst [vmem:[#allocation15_spill] sm:$0xff] %v13519_v3  ;;  %10436 = vmatprep.mubr.msk.f32.mxu0 %vm304_vm1, %v13519_v3 }
  0xde   : > { %v1031_v35 = vpop.trf.xlu1 }
  0xe0   : > { %v13523_v4 = vpop.trf.xlu0 }
  0xe1   : > { %17142 = vst [vmem:[#allocation16_spill] sm:$0xff] %v13523_v4  ;;  %10437 = vmatmul.mubr.msk.f32.vlgmr.msra.gmra.mrb[0].mxu0 %vm304_vm1, %v13523_v4 }
  0xe2   : > { %v1032_v36 = vpop.trf.xlu1 }
  0xe4   : > { %v13527_v5 = vpop.trf.xlu0 }
  0xe5   : > { %17143 = vst [vmem:[#allocation17_spill] sm:$0xff] %v13527_v5  ;;  %10439 = vmatprep.mubr.msk.f32.mxu0 %vm304_vm1, %v13527_v5 }
  0xe6   : > { %v1033_v37 = vpop.trf.xlu1 }
  0xe8   : > { %v13531_v6 = vpop.trf.xlu0 }
  0xe9   : > { %17144 = vst [vmem:[#allocation18_spill] sm:$0xff] %v13531_v6  ;;  %10440 = vmatmul.mubr.msk.f32.gmra.mrb[2].mxu0 %vm304_vm1, %v13531_v6 }
  0xea   : > { %v1034_v38 = vpop.trf.xlu1 }
  0xec   : > { %v13535_v7 = vpop.trf.xlu0 }
  0xed   : > { %17145 = vst [vmem:[#allocation19_spill] sm:$0xff] %v13535_v7  ;;  %10442 = vmatprep.mubr.msk.f32.mxu0 %vm304_vm1, %v13535_v7 }
  0xee   : > { %v1035_v39 = vpop.trf.xlu1 }
  0xf0   : > { %v13539_v8 = vpop.trf.xlu0 }
  0xf1   : > { %17146 = vst [vmem:[#allocation20_spill] sm:$0xff] %v13539_v8  ;;  %10443 = vmatmul.mubr.msk.f32.gmra.mrb[4].mxu0 %vm304_vm1, %v13539_v8 }
  0xf2   : > { %v1036_v40 = vpop.trf.xlu1 }
  0xf4   : > { %v13543_v9 = vpop.trf.xlu0 }
  0xf5   : > { %17147 = vst [vmem:[#allocation21_spill] sm:$0xff] %v13543_v9  ;;  %10445 = vmatprep.mubr.msk.f32.mxu0 %vm304_vm1, %v13543_v9 }
  0xf6   : > { %v1037_v41 = vpop.trf.xlu1 }
  0xf8   : > { %v13547_v10 = vpop.trf.xlu0 }
  0xf9   : > { %17148 = vst [vmem:[#allocation22_spill] sm:$0xff] %v13547_v10  ;;  %10446 = vmatmul.mubr.msk.f32.gmra.mrb[6].mxu0 %vm304_vm1, %v13547_v10 }
  0xfa   : > { %v1038_v42 = vpop.trf.xlu1 }
  0xfc   : > { %v13551_v11 = vpop.trf.xlu0 }
  0xfd   : > { %17149 = vst [vmem:[#allocation23_spill] sm:$0xff] %v13551_v11  ;;  %10448 = vmatprep.mubr.msk.f32.mxu0 %vm304_vm1, %v13551_v11 }
 0x100   : > { %v13555_v12 = vpop.trf.xlu0 }
 0x101   : > { %17150 = vst [vmem:[#allocation24_spill] sm:$0xff] %v13555_v12  ;;  %10449 = vmatmul.mubr.msk.f32.gmra.mrb[8].mxu0 %vm304_vm1, %v13555_v12 }
 0x104   : > { %v13559_v13 = vpop.trf.xlu0 }
 0x105   : > { %17151 = vst [vmem:[#allocation25_spill] sm:$0xff] %v13559_v13  ;;  %10451 = vmatprep.mubr.msk.f32.mxu0 %vm304_vm1, %v13559_v13 }
 0x108   : > { %v13563_v14 = vpop.trf.xlu0 }
 0x109   : > { %17152 = vst [vmem:[#allocation26_spill] sm:$0xff] %v13563_v14  ;;  %10452 = vmatmul.mubr.msk.f32.gmra.mrb[10].mxu0 %vm304_vm1, %v13563_v14 }
 0x10c   : > { %v13567_v15 = vpop.trf.xlu0 }
 0x10d   : > { %17153 = vst [vmem:[#allocation27_spill] sm:$0xff] %v13567_v15  ;;  %10454 = vmatprep.mubr.msk.f32.mxu0 %vm304_vm1, %v13567_v15 }
 0x110   : > { %v13571_v16 = vpop.trf.xlu0 }
 0x111   : > { %17154 = vst [vmem:[#allocation28_spill] sm:$0xff] %v13571_v16  ;;  %10455 = vmatmul.mubr.msk.f32.gmra.mrb[12].mxu0 %vm304_vm1, %v13571_v16 }
 0x114   : > { %v13575_v17 = vpop.trf.xlu0 }
 0x115   : > { %17155 = vst [vmem:[#allocation29_spill] sm:$0xff] %v13575_v17  ;;  %10457 = vmatprep.mubr.msk.f32.mxu0 %vm304_vm1, %v13575_v17 }
 0x118   : > { %v13579_v18 = vpop.trf.xlu0 }
 0x119   : > { %17156 = vst [vmem:[#allocation30_spill] sm:$0xff] %v13579_v18  ;;  %10458 = vmatmul.mubr.msk.f32.gmra.mrb[14].mxu0 %vm304_vm1, %v13579_v18 }
 0x11c   : > { %v13583_v19 = vpop.trf.xlu0 }
 0x11d   : > { %17157 = vst [vmem:[#allocation31_spill] sm:$0xff] %v13583_v19  ;;  %10460 = vmatprep.mubr.msk.f32.mxu0 %vm304_vm1, %v13583_v19 }
 0x120   : > { %v13587_v20 = vpop.trf.xlu0 }
 0x121   : > { %17158 = vst [vmem:[#allocation32_spill] sm:$0xff] %v13587_v20  ;;  %10461 = vmatmul.mubr.msk.f32.gmra.mrb[16].mxu0 %vm304_vm1, %v13587_v20 }
 0x124   : > { %v13591_v21 = vpop.trf.xlu0 }
 0x125   : > { %17159 = vst [vmem:[#allocation33_spill] sm:$0xff] %v13591_v21  ;;  %10463 = vmatprep.mubr.msk.f32.mxu0 %vm304_vm1, %v13591_v21 }
 0x128   : > { %v13595_v22 = vpop.trf.xlu0 }
 0x129   : > { %17160 = vst [vmem:[#allocation34_spill] sm:$0xff] %v13595_v22  ;;  %10464 = vmatmul.mubr.msk.f32.gmra.mrb[18].mxu0 %vm304_vm1, %v13595_v22 }
 0x12c   : > { %v13599_v23 = vpop.trf.xlu0 }
 0x12d   : > { %17161 = vst [vmem:[#allocation35_spill] sm:$0xff] %v13599_v23  ;;  %10466 = vmatprep.mubr.msk.f32.mxu0 %vm304_vm1, %v13599_v23 }
 0x130   : > { %v13603_v24 = vpop.trf.xlu0 }
 0x131   : > { %17162 = vst [vmem:[#allocation36_spill] sm:$0xff] %v13603_v24  ;;  %10467 = vmatmul.mubr.msk.f32.gmra.mrb[20].mxu0 %vm304_vm1, %v13603_v24 }
 0x134   : > { %v13607_v25 = vpop.trf.xlu0 }
 0x135   : > { %17163 = vst [vmem:[#allocation37_spill] sm:$0xff] %v13607_v25  ;;  %10469 = vmatprep.mubr.msk.f32.mxu0 %vm304_vm1, %v13607_v25 }
 0x138   : > { %v13611_v26 = vpop.trf.xlu0 }
 0x139   : > { %17164 = vst [vmem:[#allocation38_spill] sm:$0xff] %v13611_v26  ;;  %10470 = vmatmul.mubr.msk.f32.gmra.mrb[22].mxu0 %vm304_vm1, %v13611_v26 }
 0x13c   : > { %v13615_v27 = vpop.trf.xlu0 }
 0x13d   : > { %17165 = vst [vmem:[#allocation39_spill] sm:$0xff] %v13615_v27  ;;  %10472 = vmatprep.mubr.msk.f32.mxu0 %vm304_vm1, %v13615_v27 }
 0x140   : > { %v13619_v28 = vpop.trf.xlu0 }
 0x141   : > { %17166 = vst [vmem:[#allocation40_spill] sm:$0xff] %v13619_v28  ;;  %10473 = vmatmul.mubr.msk.f32.gmra.mrb[24].mxu0 %vm304_vm1, %v13619_v28 }
 0x144   : > { %v13623_v29 = vpop.trf.xlu0 }
 0x145   : > { %17167 = vst [vmem:[#allocation41_spill] sm:$0xff] %v13623_v29  ;;  %10475 = vmatprep.mubr.msk.f32.mxu0 %vm304_vm1, %v13623_v29 }
 0x148   : > { %v13627_v30 = vpop.trf.xlu0 }
 0x149   : > { %17168 = vst [vmem:[#allocation42_spill] sm:$0xff] %v13627_v30  ;;  %10476 = vmatmul.mubr.msk.f32.gmra.mrb[26].mxu0 %vm304_vm1, %v13627_v30 }
 0x14c   : > { %v13631_v31 = vpop.trf.xlu0 }
 0x14d   : > { %17169 = vst [vmem:[#allocation43_spill] sm:$0xff] %v13631_v31  ;;  %10478 = vmatprep.mubr.msk.f32.mxu0 %vm304_vm1, %v13631_v31 }
 0x150   : > { %v13635_v32 = vpop.trf.xlu0 }
 0x151   : > { %17170 = vst [vmem:[#allocation44_spill] sm:$0xff] %v13635_v32  ;;  %10479 = vmatmul.mubr.msk.f32.gmra.mrb[28].mxu0 %vm304_vm1, %v13635_v32 }
 0x152   : > { %1657 = vmatprep.mubr.f32.mxu0 %v13516_v2 }
 0x154   : > { %v13640_v33 = vpop.trf.xlu0 }
 0x155   : > { %17171 = vst [vmem:[#allocation45_spill] sm:$0xff] %v13640_v33  ;;  %10481 = vmatprep.mubr.msk.f32.mxu1 %vm304_vm1, %v13640_v33 }
 0x158   : > { %v13644_v34 = vpop.trf.xlu0 }
 0x159   : > { %17172 = vst [vmem:[#allocation46_spill] sm:$0xff] %v13644_v34  ;;  %10482 = vmatmul.mubr.msk.f32.vlgmr.msra.gmra.mrb[0].mxu1 %vm304_vm1, %v13644_v34 }
 0x15a   : > { %10485 = vmatpush3.msk.msra.mxu1 %vm401_vm0, %v13503_v1  ;;  %10486 = vmatprep.mubr.msk.f32.mxu1 %vm304_vm1, %v1031_v35 }
 0x15d   : > { %10487 = vmatmul.mubr.msk.f32.vlgmr.msra.gmra.mrb[2].mxu1 %vm304_vm1, %v1032_v36 }
 0x15e   : > { %10489 = vmatprep.mubr.msk.f32.mxu1 %vm304_vm1, %v1033_v37 }
 0x161   : > { %10490 = vmatmul.mubr.msk.f32.gmra.mrb[4].mxu1 %vm304_vm1, %v1034_v38 }
 0x162   : > { %10492 = vmatprep.mubr.msk.f32.mxu1 %vm304_vm1, %v1035_v39 }
 0x165   : > { %10493 = vmatmul.mubr.msk.f32.gmra.mrb[6].mxu1 %vm304_vm1, %v1036_v40 }
 0x166   : > { %10495 = vmatprep.mubr.msk.f32.mxu1 %vm304_vm1, %v1037_v41 }
 0x169   : > { %10496 = vmatmul.mubr.msk.f32.gmra.mrb[8].mxu1 %vm304_vm1, %v1038_v42 }
 0x1b4   : > { %v13658_v43 = vpop.f32.mrb[0].mxu0 }
 0x1b5   : > { %v13660_v44 = vpop.f32.mrb[1].mxu0  ;;  %v13663_v45 = vmul.f32 100.0, %v13658_v43 }
 0x1b6   : > { %v13666_v46 = vmul.f32 100.0, %v13660_v44 }
 0x1b7   : > { %v666_v47 = vsel %vm662_vm2, %v13663_v45, -inf }
 0x1b8   : > { %667 = vmax.xlane.f32.xlu0 %v666_v47  ;;  %v663_v48 = vsel %vm662_vm2, %v13666_v46, -inf }
 0x1b9   : > { %664 = vmax.xlane.f32.xlu1 %v663_v48 }
 0x1bc   : > { %v13672_v49 = vpop.f32.mrb[2].mxu0 }
 0x1bd   : > { %v13674_v50 = vpop.f32.mrb[3].mxu0  ;;  %v13677_v51 = vmul.f32 100.0, %v13672_v49 }
 0x1be   : > { %v13682_v53 = vmul.f32 100.0, %v13674_v50 }
 0x1bf   : > { %v672_v52 = vsel %vm662_vm2, %v13677_v51, -inf }
 0x1c0   : > { %673 = vmax.xlane.f32.xlu1 %v672_v52  ;;  %v669_v54 = vsel %vm662_vm2, %v13682_v53, -inf }
 0x1c4   : > { %670 = vmax.xlane.f32.xlu1 %v669_v54  ;;  %v13686_v55 = vpop.f32.mrb[4].mxu0 }
 0x1c5   : > { %v13688_v56 = vpop.f32.mrb[5].mxu0  ;;  %v13691_v57 = vmul.f32 100.0, %v13686_v55 }
 0x1c6   : > { %v13696_v59 = vmul.f32 100.0, %v13688_v56 }
 0x1c7   : > { %v678_v58 = vsel %vm662_vm2, %v13691_v57, -inf }
 0x1c8   : > { %679 = vmax.xlane.f32.xlu1 %v678_v58  ;;  %v675_v60 = vsel %vm662_vm2, %v13696_v59, -inf }
 0x1cc   : > { %676 = vmax.xlane.f32.xlu1 %v675_v60  ;;  %v13700_v61 = vpop.f32.mrb[6].mxu0 }
 0x1cd   : > { %v13702_v62 = vpop.f32.mrb[7].mxu0  ;;  %v13705_v63 = vmul.f32 100.0, %v13700_v61 }
 0x1ce   : > { %v13710_v1 = vmul.f32 100.0, %v13702_v62 }
 0x1cf   : > { %v684_v0 = vsel %vm662_vm2, %v13705_v63, -inf }
 0x1d0   : > { %685 = vmax.xlane.f32.xlu1 %v684_v0  ;;  %v681_v35 = vsel %vm662_vm2, %v13710_v1, -inf }
 0x1d4   : > { %682 = vmax.xlane.f32.xlu1 %v681_v35  ;;  %v13714_v36 = vpop.f32.mrb[8].mxu0 }
 0x1d5   : > { %v13716_v37 = vpop.f32.mrb[9].mxu0  ;;  %v13719_v38 = vmul.f32 100.0, %v13714_v36 }
 0x1d6   : > { %v13724_v40 = vmul.f32 100.0, %v13716_v37 }
 0x1d7   : > { %v690_v39 = vsel %vm662_vm2, %v13719_v38, -inf }
 0x1d8   : > { %691 = vmax.xlane.f32.xlu1 %v690_v39  ;;  %v687_v41 = vsel %vm662_vm2, %v13724_v40, -inf }
 0x1dc   : > { %688 = vmax.xlane.f32.xlu1 %v687_v41  ;;  %v13728_v42 = vpop.f32.mrb[10].mxu0 }
 0x1dd   : > { %v13730_v47 = vpop.f32.mrb[11].mxu0  ;;  %v13733_v48 = vmul.f32 100.0, %v13728_v42 }
 0x1de   : > { %v13738_v54 = vmul.f32 100.0, %v13730_v47 }
 0x1df   : > { %v696_v52 = vsel %vm662_vm2, %v13733_v48, -inf }
 0x1e0   : > { %697 = vmax.xlane.f32.xlu1 %v696_v52  ;;  %v693_v58 = vsel %vm662_vm2, %v13738_v54, -inf }
 0x1e4   : > { %694 = vmax.xlane.f32.xlu1 %v693_v58  ;;  %v13742_v60 = vpop.f32.mrb[12].mxu0 }
 0x1e5   : > { %v13744_v0 = vpop.f32.mrb[13].mxu0  ;;  %v13747_v35 = vmul.f32 100.0, %v13742_v60 }
 0x1e6   : > { %v13752_v41 = vmul.f32 100.0, %v13744_v0 }
 0x1e7   : > { %v702_v39 = vsel %vm662_vm2, %v13747_v35, -inf }
 0x1e8   : > { %703 = vmax.xlane.f32.xlu1 %v702_v39  ;;  %v699_v52 = vsel %vm662_vm2, %v13752_v41, -inf }
 0x1ec   : > { %700 = vmax.xlane.f32.xlu1 %v699_v52  ;;  %v13756_v2 = vpop.f32.mrb[14].mxu0 }
 0x1ed   : > { %v13758_v58 = vpop.f32.mrb[15].mxu0  ;;  %v13761_v34 = vmul.f32 100.0, %v13756_v2 }
 0x1ee   : > { %v13766_v32 = vmul.f32 100.0, %v13758_v58 }
 0x1ef   : > { %v708_v33 = vsel %vm662_vm2, %v13761_v34, -inf }
 0x1f0   : > { %709 = vmax.xlane.f32.xlu1 %v708_v33  ;;  %v705_v39 = vsel %vm662_vm2, %v13766_v32, -inf }
 0x1f4   : > { %706 = vmax.xlane.f32.xlu1 %v705_v39  ;;  %v13770_v31 = vpop.f32.mrb[16].mxu0 }
 0x1f5   : > { %v13772_v52 = vpop.f32.mrb[17].mxu0  ;;  %v13775_v30 = vmul.f32 100.0, %v13770_v31 }
 0x1f6   : > { %17173 = vst [vmem:[#allocation47_spill] sm:$0xff] %v13772_v52  ;;  %v13780_v28 = vmul.f32 100.0, %v13772_v52 }
 0x1f7   : > { %v714_v29 = vsel %vm662_vm2, %v13775_v30, -inf }
 0x1f8   : > { %715 = vmax.xlane.f32.xlu1 %v714_v29  ;;  %v711_v33 = vsel %vm662_vm2, %v13780_v28, -inf }
 0x1fc   : > { %712 = vmax.xlane.f32.xlu1 %v711_v33  ;;  %v13784_v27 = vpop.f32.mrb[18].mxu0 }
 0x1fd   : > { %17174 = vst [vmem:[#allocation48_spill] sm:$0xff] %v13784_v27  ;;  %v13786_v39 = vpop.f32.mrb[19].mxu0  ;;  %v13789_v26 = vmul.f32 100.0, %v13784_v27 }
 0x1fe   : > { %17175 = vst [vmem:[#allocation49_spill] sm:$0xff] %v13786_v39  ;;  %v13794_v24 = vmul.f32 100.0, %v13786_v39 }
 0x1ff   : > { %v720_v25 = vsel %vm662_vm2, %v13789_v26, -inf }
 0x200   : > { %721 = vmax.xlane.f32.xlu1 %v720_v25  ;;  %v717_v29 = vsel %vm662_vm2, %v13794_v24, -inf }
 0x204   : > { %718 = vmax.xlane.f32.xlu1 %v717_v29  ;;  %v13798_v23 = vpop.f32.mrb[20].mxu0 }
 0x205   : > { %17176 = vst [vmem:[#allocation50_spill] sm:$0xff] %v13798_v23  ;;  %v13800_v33 = vpop.f32.mrb[21].mxu0  ;;  %v13803_v22 = vmul.f32 100.0, %v13798_v23 }
 0x206   : > { %17177 = vst [vmem:[#allocation51_spill] sm:$0xff] %v13800_v33  ;;  %v13808_v20 = vmul.f32 100.0, %v13800_v33 }
 0x207   : > { %v726_v21 = vsel %vm662_vm2, %v13803_v22, -inf }
 0x208   : > { %727 = vmax.xlane.f32.xlu1 %v726_v21  ;;  %v723_v25 = vsel %vm662_vm2, %v13808_v20, -inf }
 0x20c   : > { %724 = vmax.xlane.f32.xlu1 %v723_v25  ;;  %v13812_v19 = vpop.f32.mrb[22].mxu0 }
 0x20d   : > { %17178 = vst [vmem:[#allocation52_spill] sm:$0xff] %v13812_v19  ;;  %v13814_v29 = vpop.f32.mrb[23].mxu0  ;;  %v13817_v18 = vmul.f32 100.0, %v13812_v19 }
 0x20e   : > { %17179 = vst [vmem:[#allocation53_spill] sm:$0xff] %v13814_v29  ;;  %v13822_v16 = vmul.f32 100.0, %v13814_v29 }
 0x20f   : > { %v732_v17 = vsel %vm662_vm2, %v13817_v18, -inf }
 0x210   : > { %733 = vmax.xlane.f32.xlu1 %v732_v17  ;;  %v729_v21 = vsel %vm662_vm2, %v13822_v16, -inf }
 0x214   : > { %730 = vmax.xlane.f32.xlu1 %v729_v21  ;;  %v13826_v15 = vpop.f32.mrb[24].mxu0 }
 0x215   : > { %17180 = vst [vmem:[#allocation54_spill] sm:$0xff] %v13826_v15  ;;  %v13828_v25 = vpop.f32.mrb[25].mxu0  ;;  %v13831_v14 = vmul.f32 100.0, %v13826_v15 }
 0x216   : > { %17181 = vst [vmem:[#allocation55_spill] sm:$0xff] %v13828_v25  ;;  %v13836_v12 = vmul.f32 100.0, %v13828_v25 }
 0x217   : > { %v738_v13 = vsel %vm662_vm2, %v13831_v14, -inf }
 0x218   : > { %739 = vmax.xlane.f32.xlu1 %v738_v13  ;;  %v735_v17 = vsel %vm662_vm2, %v13836_v12, -inf }
 0x21c   : > { %736 = vmax.xlane.f32.xlu1 %v735_v17  ;;  %v13840_v11 = vpop.f32.mrb[26].mxu0 }
 0x21d   : > { %17182 = vst [vmem:[#allocation56_spill] sm:$0xff] %v13840_v11  ;;  %v13842_v21 = vpop.f32.mrb[27].mxu0  ;;  %v13845_v10 = vmul.f32 100.0, %v13840_v11 }
 0x21e   : > { %17183 = vst [vmem:[#allocation57_spill] sm:$0xff] %v13842_v21  ;;  %v13848_v9 = vmul.f32 100.0, %v13842_v21 }
 0x21f   : > { %v744_v8 = vsel %vm662_vm2, %v13845_v10, -inf }
 0x220   : > { %745 = vmax.xlane.f32.xlu0 %v744_v8  ;;  %v741_v13 = vsel %vm662_vm2, %v13848_v9, -inf }
 0x221   : > { %742 = vmax.xlane.f32.xlu1 %v741_v13 }
 0x224   : > { %v13854_v7 = vpop.f32.mrb[28].mxu0 }
 0x225   : > { %17184 = vst [vmem:[#allocation58_spill] sm:$0xff] %v13854_v7  ;;  %v13856_v17 = vpop.f32.mrb[29].mxu0  ;;  %v13859_v6 = vmul.f32 100.0, %v13854_v7 }
 0x226   : > { %17185 = vst [vmem:[#allocation59_spill] sm:$0xff] %v13856_v17  ;;  %v13862_v5 = vmul.f32 100.0, %v13856_v17 }
 0x227   : > { %v750_v4 = vsel %vm662_vm2, %v13859_v6, -inf }
 0x228   : > { %751 = vmax.xlane.f32.xlu0 %v750_v4  ;;  %v747_v8 = vsel %vm662_vm2, %v13862_v5, -inf }
 0x229   : > { %748 = vmax.xlane.f32.xlu1 %v747_v8 }
 0x22c   : > { %v13868_v3 = vpop.f32.mrb[0].mxu1 }
 0x22d   : > { %17186 = vst [vmem:[#allocation60_spill] sm:$0xff] %v13868_v3  ;;  %v13870_v13 = vpop.f32.mrb[1].mxu1  ;;  %v13873_v21 = vmul.f32 100.0, %v13868_v3 }
 0x22e   : > { %17187 = vst [vmem:[#allocation61_spill] sm:$0xff] %v13870_v13  ;;  %v13876_v7 = vmul.f32 100.0, %v13870_v13 }
 0x22f   : > { %v756_v17 = vsel %vm662_vm2, %v13873_v21, -inf }
 0x230   : > { %757 = vmax.xlane.f32.xlu0 %v756_v17  ;;  %v753_v4 = vsel %vm662_vm2, %v13876_v7, -inf  ;;  %v10488_v17 = vpop.f32.mrb[2].mxu1 }
 0x231   : > { %754 = vmax.xlane.f32.xlu1 %v753_v4  ;;  %v1137_v4 = vpop.f32.mrb[3].mxu1 }
 0x232   : > { %v11444_v27 = vpack.c.bf16 %v10488_v17, %v1137_v4 }
 0x234   : > { %11445 = vmatprep.subr.bf16.mxu1 %v11444_v27 }
 0x235   : > { %11447 = vmatpush3.bf16.msra.mxu1 %v11444_v27 }
 0x245   : > { %v668_v11 = vpop.xlane.xlu0 %667 }
 0x246   : > { %v760_v8 = vsub.f32 %v13663_v45, %v668_v11  ;;  %v665_v25 = vpop.xlane.xlu1 %664 }
 0x247   : > { %v759_v15 = vsub.f32 %v13666_v46, %v665_v25 }
 0x248   : > { %v793_v29 = vmul.f32 1.442695, %v760_v8 }
 0x249   : > { %v791_v3 = vmul.f32 1.442695, %v759_v15 }
 0x24a   : > { %12554 = vpow2.f32 %v793_v29 }
 0x24b   : > { %12556 = vpow2.f32 %v791_v3 }
 0x24d   : > { %v674_v13 = vpop.xlane.xlu1 %673 }
 0x24e   : > { %v762_v19 = vsub.f32 %v13677_v51, %v674_v13 }
 0x250   : > { %v797_v33 = vmul.f32 1.442695, %v762_v19 }
 0x251   : > { %v671_v23 = vpop.xlane.xlu1 %670 }
 0x252   : > { %12558 = vpow2.f32 %v797_v33  ;;  %v761_v39 = vsub.f32 %v13682_v53, %v671_v23  ;;  %v10491_v53 = vpop.f32.mrb[4].mxu1 }
 0x254   : > { %v13886_v52 = vpop.eup %12554  ;;  %v795_v11 = vmul.f32 1.442695, %v761_v39 }
 0x255   : > { %v13888_v45 = vpop.eup %12556  ;;  %v680_v46 = vpop.xlane.xlu1 %679  ;;  %v858_v3 = vsel %vm662_vm2, %v13886_v52, 0.0 }
 0x256   : > { %12560 = vpow2.f32 %v795_v11  ;;  %v764_v15 = vsub.f32 %v13691_v57, %v680_v46  ;;  %859 = vadd.xlane.f32.xlu0 %v858_v3  ;;  %v855_v19 = vsel %vm662_vm2, %v13888_v45, 0.0  ;;  %v1147_v3 = vpop.f32.mrb[5].mxu1 }
 0x257   : > { %856 = vadd.xlane.f32.xlu1 %v855_v19  ;;  %v11448_v19 = vpack.c.bf16 %v10491_v53, %v1147_v3 }
 0x258   : > { %v801_v23 = vmul.f32 1.442695, %v764_v15 }
 0x259   : > { %v677_v51 = vpop.xlane.xlu1 %676  ;;  %11449 = vmatprep.subr.bf16.mxu1 %v11448_v19 }
 0x25a   : > { %12562 = vpow2.f32 %v801_v23  ;;  %v763_v39 = vsub.f32 %v13696_v59, %v677_v51  ;;  %v10494_v51 = vpop.f32.mrb[6].mxu1  ;;  %11451 = vmatpush3.bf16.msra.mxu1 %v11448_v19 }
 0x25c   : > { %v13896_v33 = vpop.eup %12558  ;;  %v799_v29 = vmul.f32 1.442695, %v763_v39 }
 0x25d   : > { %v686_v25 = vpop.xlane.xlu1 %685  ;;  %v864_v13 = vsel %vm662_vm2, %v13896_v33, 0.0 }
 0x25e   : > { %12564 = vpow2.f32 %v799_v29  ;;  %v766_v57 = vsub.f32 %v13705_v63, %v686_v25  ;;  %865 = vadd.xlane.f32.xlu0 %v864_v13 }
 0x260   : > { %v13901_v8 = vpop.eup %12560  ;;  %v805_v27 = vmul.f32 1.442695, %v766_v57 }
 0x261   : > { %v683_v17 = vpop.xlane.xlu1 %682  ;;  %v861_v4 = vsel %vm662_vm2, %v13901_v8, 0.0 }
 0x262   : > { %12566 = vpow2.f32 %v805_v27  ;;  %v765_v59 = vsub.f32 %v13710_v1, %v683_v17  ;;  %862 = vadd.xlane.f32.xlu1 %v861_v4  ;;  %v1157_v1 = vpop.f32.mrb[7].mxu1 }
 0x263   : > { %v11452_v57 = vpack.c.bf16 %v10494_v51, %v1157_v1  ;;  %v10497_v53 = vpop.f32.mrb[8].mxu1 }
 0x264   : > { %v13906_v11 = vpop.eup %12562  ;;  %v803_v46 = vmul.f32 1.442695, %v765_v59  ;;  %v1167_v4 = vpop.f32.mrb[9].mxu1 }
 0x265   : > { %v692_v15 = vpop.xlane.xlu1 %691  ;;  %v870_v63 = vsel %vm662_vm2, %v13906_v11, 0.0  ;;  %11453 = vmatprep.subr.bf16.mxu1 %v11452_v57  ;;  %v11456_v3 = vpack.c.bf16 %v10497_v53, %v1167_v4 }
 0x266   : > { %12568 = vpow2.f32 %v803_v46  ;;  %v768_v23 = vsub.f32 %v13719_v38, %v692_v15  ;;  %871 = vadd.xlane.f32.xlu0 %v870_v63  ;;  %11455 = vmatpush3.bf16.msra.mxu1 %v11452_v57 }
 0x267   : > { %11457 = vmatprep.subr.bf16.mxu1 %v11456_v3 }
 0x268   : > { %v13911_v39 = vpop.eup %12564  ;;  %v809_v29 = vmul.f32 1.442695, %v768_v23 }
 0x269   : > { %v689_v25 = vpop.xlane.xlu1 %688  ;;  %v867_v13 = vsel %vm662_vm2, %v13911_v39, 0.0 }
 0x26a   : > { %12570 = vpow2.f32 %v809_v29  ;;  %v767_v27 = vsub.f32 %v13724_v40, %v689_v25  ;;  %868 = vadd.xlane.f32.xlu1 %v867_v13  ;;  %11459 = vmatpush3.bf16.msra.mxu1 %v11456_v3 }
 0x26c   : > { %v13916_v38 = vpop.eup %12566  ;;  %v807_v17 = vmul.f32 1.442695, %v767_v27 }
 0x26d   : > { %v698_v59 = vpop.xlane.xlu1 %697  ;;  %v876_v46 = vsel %vm662_vm2, %v13916_v38, 0.0 }
 0x26e   : > { %12572 = vpow2.f32 %v807_v17  ;;  %v770_v15 = vsub.f32 %v13733_v48, %v698_v59  ;;  %877 = vadd.xlane.f32.xlu0 %v876_v46 }
 0x270   : > { %v13921_v63 = vpop.eup %12568  ;;  %v813_v40 = vmul.f32 1.442695, %v770_v15 }
 0x271   : > { %v695_v19 = vpop.xlane.xlu1 %694  ;;  %v873_v23 = vsel %vm662_vm2, %v13921_v63, 0.0 }
 0x272   : > { %12574 = vpow2.f32 %v813_v40  ;;  %v769_v51 = vsub.f32 %v13738_v54, %v695_v19  ;;  %874 = vadd.xlane.f32.xlu1 %v873_v23 }
 0x274   : > { %v13926_v29 = vpop.eup %12570  ;;  %v811_v1 = vmul.f32 1.442695, %v769_v51 }
 0x275   : > { %v704_v25 = vpop.xlane.xlu1 %703  ;;  %v882_v48 = vsel %vm662_vm2, %v13926_v29, 0.0 }
 0x276   : > { %12576 = vpow2.f32 %v811_v1  ;;  %v772_v13 = vsub.f32 %v13747_v35, %v704_v25  ;;  %883 = vadd.xlane.f32.xlu0 %v882_v48 }
 0x278   : > { %v13931_v57 = vpop.eup %12572  ;;  %v817_v27 = vmul.f32 1.442695, %v772_v13 }
 0x279   : > { %v701_v53 = vpop.xlane.xlu1 %700  ;;  %v879_v17 = vsel %vm662_vm2, %v13931_v57, 0.0 }
 0x27a   : > { %12578 = vpow2.f32 %v817_v27  ;;  %v771_v54 = vsub.f32 %v13752_v41, %v701_v53  ;;  %880 = vadd.xlane.f32.xlu1 %v879_v17 }
 0x27c   : > { %v13936_v4 = vpop.eup %12574  ;;  %v815_v59 = vmul.f32 1.442695, %v771_v54 }
 0x27d   : > { %v710_v46 = vpop.xlane.xlu1 %709  ;;  %v888_v3 = vsel %vm662_vm2, %v13936_v4, 0.0 }
 0x27e   : > { %12580 = vpow2.f32 %v815_v59  ;;  %v774_v35 = vsub.f32 %v13761_v34, %v710_v46  ;;  %889 = vadd.xlane.f32.xlu0 %v888_v3 }
 0x280   : > { %v13941_v15 = vpop.eup %12576  ;;  %v821_v40 = vmul.f32 1.442695, %v774_v35 }
 0x281   : > { %v707_v19 = vpop.xlane.xlu1 %706  ;;  %v885_v23 = vsel %vm662_vm2, %v13941_v15, 0.0 }
 0x282   : > { %12582 = vpow2.f32 %v821_v40  ;;  %v773_v41 = vsub.f32 %v13766_v32, %v707_v19  ;;  %886 = vadd.xlane.f32.xlu1 %v885_v23 }
 0x284   : > { %v13946_v51 = vpop.eup %12578  ;;  %v819_v1 = vmul.f32 1.442695, %v773_v41 }
 0x285   : > { %v716_v25 = vpop.xlane.xlu1 %715  ;;  %v894_v48 = vsel %vm662_vm2, %v13946_v51, 0.0 }
 0x286   : > { %12584 = vpow2.f32 %v819_v1  ;;  %v776_v34 = vsub.f32 %v13775_v30, %v716_v25  ;;  %895 = vadd.xlane.f32.xlu0 %v894_v48 }
 0x288   : > { %v13951_v13 = vpop.eup %12580  ;;  %v825_v27 = vmul.f32 1.442695, %v776_v34 }
 0x289   : > { %v713_v53 = vpop.xlane.xlu1 %712  ;;  %v891_v17 = vsel %vm662_vm2, %v13951_v13, 0.0 }
 0x28a   : > { %12586 = vpow2.f32 %v825_v27  ;;  %v775_v32 = vsub.f32 %v13780_v28, %v713_v53  ;;  %892 = vadd.xlane.f32.xlu1 %v891_v17 }
 0x28c   : > { %v13956_v54 = vpop.eup %12582  ;;  %v823_v59 = vmul.f32 1.442695, %v775_v32 }
 0x28d   : > { %v722_v46 = vpop.xlane.xlu1 %721  ;;  %v900_v3 = vsel %vm662_vm2, %v13956_v54, 0.0 }
 0x28e   : > { %12588 = vpow2.f32 %v823_v59  ;;  %v778_v30 = vsub.f32 %v13789_v26, %v722_v46  ;;  %901 = vadd.xlane.f32.xlu0 %v900_v3 }
 0x290   : > { %v13961_v35 = vpop.eup %12584  ;;  %v829_v40 = vmul.f32 1.442695, %v778_v30 }
 0x291   : > { %v719_v19 = vpop.xlane.xlu1 %718  ;;  %v897_v23 = vsel %vm662_vm2, %v13961_v35, 0.0 }
 0x292   : > { %12590 = vpow2.f32 %v829_v40  ;;  %v777_v28 = vsub.f32 %v13794_v24, %v719_v19  ;;  %898 = vadd.xlane.f32.xlu1 %v897_v23 }
 0x294   : > { %v13966_v41 = vpop.eup %12586  ;;  %v827_v1 = vmul.f32 1.442695, %v777_v28 }
 0x295   : > { %v728_v25 = vpop.xlane.xlu1 %727  ;;  %v906_v48 = vsel %vm662_vm2, %v13966_v41, 0.0 }
 0x296   : > { %12592 = vpow2.f32 %v827_v1  ;;  %v780_v26 = vsub.f32 %v13803_v22, %v728_v25  ;;  %907 = vadd.xlane.f32.xlu0 %v906_v48 }
 0x298   : > { %v13971_v34 = vpop.eup %12588  ;;  %v833_v27 = vmul.f32 1.442695, %v780_v26 }
 0x299   : > { %v725_v53 = vpop.xlane.xlu1 %724  ;;  %v903_v17 = vsel %vm662_vm2, %v13971_v34, 0.0 }
 0x29a   : > { %12594 = vpow2.f32 %v833_v27  ;;  %v779_v24 = vsub.f32 %v13808_v20, %v725_v53  ;;  %904 = vadd.xlane.f32.xlu1 %v903_v17 }
 0x29c   : > { %v13976_v32 = vpop.eup %12590  ;;  %v831_v59 = vmul.f32 1.442695, %v779_v24 }
 0x29d   : > { %v734_v46 = vpop.xlane.xlu1 %733  ;;  %v912_v3 = vsel %vm662_vm2, %v13976_v32, 0.0 }
 0x29e   : > { %12596 = vpow2.f32 %v831_v59  ;;  %v782_v22 = vsub.f32 %v13817_v18, %v734_v46  ;;  %913 = vadd.xlane.f32.xlu0 %v912_v3 }
 0x2a0   : > { %v13981_v30 = vpop.eup %12592  ;;  %v837_v40 = vmul.f32 1.442695, %v782_v22 }
 0x2a1   : > { %v731_v19 = vpop.xlane.xlu1 %730  ;;  %v909_v23 = vsel %vm662_vm2, %v13981_v30, 0.0 }
 0x2a2   : > { %12598 = vpow2.f32 %v837_v40  ;;  %v781_v20 = vsub.f32 %v13822_v16, %v731_v19  ;;  %910 = vadd.xlane.f32.xlu1 %v909_v23 }
 0x2a4   : > { %v13986_v28 = vpop.eup %12594  ;;  %v835_v1 = vmul.f32 1.442695, %v781_v20 }
 0x2a5   : > { %v740_v25 = vpop.xlane.xlu1 %739  ;;  %v918_v48 = vsel %vm662_vm2, %v13986_v28, 0.0 }
 0x2a6   : > { %12600 = vpow2.f32 %v835_v1  ;;  %v784_v18 = vsub.f32 %v13831_v14, %v740_v25  ;;  %919 = vadd.xlane.f32.xlu0 %v918_v48 }
 0x2a8   : > { %v13991_v26 = vpop.eup %12596  ;;  %v841_v27 = vmul.f32 1.442695, %v784_v18 }
 0x2a9   : > { %v737_v53 = vpop.xlane.xlu1 %736  ;;  %v915_v17 = vsel %vm662_vm2, %v13991_v26, 0.0 }
 0x2aa   : > { %12602 = vpow2.f32 %v841_v27  ;;  %v783_v16 = vsub.f32 %v13836_v12, %v737_v53  ;;  %916 = vadd.xlane.f32.xlu1 %v915_v17 }
 0x2ac   : > { %v13996_v24 = vpop.eup %12598  ;;  %v839_v59 = vmul.f32 1.442695, %v783_v16 }
 0x2ad   : > { %v746_v46 = vpop.xlane.xlu0 %745  ;;  %v924_v3 = vsel %vm662_vm2, %v13996_v24, 0.0 }
 0x2ae   : > { %12604 = vpow2.f32 %v839_v59  ;;  %v786_v14 = vsub.f32 %v13845_v10, %v746_v46  ;;  %v743_v22 = vpop.xlane.xlu1 %742  ;;  %925 = vadd.xlane.f32.xlu0 %v924_v3 }
 0x2af   : > { %v785_v40 = vsub.f32 %v13848_v9, %v743_v22 }
 0x2b0   : > { %v14002_v19 = vpop.eup %12600  ;;  %v845_v23 = vmul.f32 1.442695, %v786_v14 }
 0x2b1   : > { %v843_v20 = vmul.f32 1.442695, %v785_v40  ;;  %v921_v12 = vsel %vm662_vm2, %v14002_v19, 0.0 }
 0x2b2   : > { %12606 = vpow2.f32 %v845_v23  ;;  %922 = vadd.xlane.f32.xlu1 %v921_v12 }
 0x2b3   : > { %12608 = vpow2.f32 %v843_v20 }
 0x2b4   : > { %v14006_v1 = vpop.eup %12602 }
 0x2b5   : > { %v752_v25 = vpop.xlane.xlu0 %751  ;;  %v930_v10 = vsel %vm662_vm2, %v14006_v1, 0.0 }
 0x2b6   : > { %v788_v48 = vsub.f32 %v13859_v6, %v752_v25  ;;  %v749_v18 = vpop.xlane.xlu1 %748  ;;  %931 = vadd.xlane.f32.xlu0 %v930_v10 }
 0x2b7   : > { %v787_v9 = vsub.f32 %v13862_v5, %v749_v18 }
 0x2b8   : > { %v14012_v27 = vpop.eup %12604  ;;  %v849_v53 = vmul.f32 1.442695, %v788_v48 }
 0x2b9   : > { %v847_v17 = vmul.f32 1.442695, %v787_v9  ;;  %v927_v16 = vsel %vm662_vm2, %v14012_v27, 0.0 }
 0x2ba   : > { %12610 = vpow2.f32 %v849_v53  ;;  %928 = vadd.xlane.f32.xlu1 %v927_v16 }
 0x2bb   : > { %12612 = vpow2.f32 %v847_v17 }
 0x2bc   : > { %v14016_v59 = vpop.eup %12606 }
 0x2bd   : > { %v14018_v46 = vpop.eup %12608  ;;  %v758_v3 = vpop.xlane.xlu0 %757  ;;  %v936_v6 = vsel %vm662_vm2, %v14016_v59, 0.0 }
 0x2be   : > { %v790_v5 = vsub.f32 %v13873_v21, %v758_v3  ;;  %v755_v14 = vpop.xlane.xlu1 %754  ;;  %937 = vadd.xlane.f32.xlu0 %v936_v6  ;;  %v933_v22 = vsel %vm662_vm2, %v14018_v46, 0.0 }
 0x2bf   : > { %v789_v40 = vsub.f32 %v13876_v7, %v755_v14  ;;  %934 = vadd.xlane.f32.xlu1 %v933_v22 }
 0x2c0   : > { %v853_v23 = vmul.f32 1.442695, %v790_v5 }
 0x2c1   : > { %v851_v20 = vmul.f32 1.442695, %v789_v40 }
 0x2c2   : > { %12614 = vpow2.f32 %v853_v23 }
 0x2c3   : > { %12616 = vpow2.f32 %v851_v20 }
 0x2c4   : > { %v14026_v12 = vpop.eup %12610 }
 0x2c5   : > { %v14028_v25 = vpop.eup %12612  ;;  %v942_v10 = vsel %vm662_vm2, %v14026_v12, 0.0 }
 0x2c6   : > { %943 = vadd.xlane.f32.xlu0 %v942_v10  ;;  %v939_v21 = vsel %vm662_vm2, %v14028_v25, 0.0 }
 0x2c7   : > { %940 = vadd.xlane.f32.xlu1 %v939_v21 }
 0x2cc   : > { %v14034_v48 = vpop.eup %12614 }
 0x2cd   : > { %v14036_v7 = vpop.eup %12616  ;;  %v948_v18 = vsel %vm662_vm2, %v14034_v48, 0.0 }
 0x2ce   : > { %949 = vadd.xlane.f32.xlu0 %v948_v18  ;;  %v945_v9 = vsel %vm662_vm2, %v14036_v7, 0.0 }
 0x2cf   : > { %946 = vadd.xlane.f32.xlu1 %v945_v9 }
 0x2e3   : > { %v860_v53 = vpop.xlane.xlu0 %859 }
 0x2e4   : > { %12618 = vrcp.f32 %v860_v53  ;;  %v857_v17 = vpop.xlane.xlu1 %856 }
 0x2e5   : > { %12620 = vrcp.f32 %v857_v17 }
 0x2eb   : > { %v866_v16 = vpop.xlane.xlu0 %865 }
 0x2ec   : > { %12622 = vrcp.f32 %v866_v16 }
 0x2ee   : > { %v12619_v3 = vpop.eup %12618 }
 0x2ef   : > { %v12621_v6 = vpop.eup %12620  ;;  %v954_v5 = vmul.f32 %v12619_v3, %v13886_v52  ;;  %v863_v14 = vpop.xlane.xlu1 %862 }
 0x2f0   : > { %12624 = vrcp.f32 %v863_v14  ;;  %v952_v22 = vmul.f32 %v12621_v6, %v13888_v45 }
 0x2f1   : > { %v14045_v40 = vmul.f32 %v13658_v43, %v954_v5 }
 0x2f2   : > { %v14048_v23 = vmul.f32 %v952_v22, %v13660_v44  ;;  %10514 = vmatprep.mubr.msk.f32.mxu1 %vm662_vm2, %v952_v22 }
 0x2f3   : > { %10515 = vmatmul.mubr.msk.f32.vlgmr.msra.gmra.mrb[10].mxu1 %vm662_vm2, %v954_v5  ;;  %v872_v20 = vpop.xlane.xlu0 %871 }
 0x2f4   : > { %12626 = vrcp.f32 %v872_v20 }
 0x2f6   : > { %v12623_v10 = vpop.eup %12622 }
 0x2f7   : > { %v869_v21 = vpop.xlane.xlu1 %868  ;;  %v958_v52 = vmul.f32 %v12623_v10, %v13896_v33 }
 0x2f8   : > { %12628 = vrcp.f32 %v869_v21 }
 0x2f9   : > { %v14054_v18 = vmul.f32 %v13672_v49, %v958_v52 }
 0x2fa   : > { %v12625_v45 = vpop.eup %12624 }
 0x2fb   : > { %v878_v43 = vpop.xlane.xlu0 %877  ;;  %v956_v9 = vmul.f32 %v12625_v45, %v13901_v8 }
 0x2fc   : > { %12630 = vrcp.f32 %v878_v43 }
 0x2fd   : > { %v14058_v44 = vmul.f32 %v956_v9, %v13674_v50  ;;  %10517 = vmatprep.mubr.msk.f32.mxu1 %vm662_vm2, %v956_v9 }
 0x2fe   : > { %v12627_v53 = vpop.eup %12626  ;;  %10518 = vmatmul.mubr.msk.f32.gmra.mrb[12].mxu1 %vm662_vm2, %v958_v52 }
 0x2ff   : > { %v875_v17 = vpop.xlane.xlu1 %874  ;;  %v962_v33 = vmul.f32 %v12627_v53, %v13906_v11 }
 0x300   : > { %12632 = vrcp.f32 %v875_v17 }
 0x301   : > { %v14064_v49 = vmul.f32 %v13686_v55, %v962_v33 }
 0x302   : > { %v12629_v16 = vpop.eup %12628 }
 0x303   : > { %v884_v3 = vpop.xlane.xlu0 %883  ;;  %v960_v8 = vmul.f32 %v12629_v16, %v13911_v39 }
 0x304   : > { %12634 = vrcp.f32 %v884_v3 }
 0x305   : > { %v14068_v50 = vmul.f32 %v960_v8, %v13688_v56  ;;  %10520 = vmatprep.mubr.msk.f32.mxu1 %vm662_vm2, %v960_v8 }
 0x306   : > { %v12631_v6 = vpop.eup %12630  ;;  %10521 = vmatmul.mubr.msk.f32.gmra.mrb[14].mxu1 %vm662_vm2, %v962_v33 }
 0x307   : > { %v881_v5 = vpop.xlane.xlu1 %880  ;;  %v966_v11 = vmul.f32 %v12631_v6, %v13916_v38 }
 0x308   : > { %12636 = vrcp.f32 %v881_v5 }
 0x309   : > { %v14074_v55 = vmul.f32 %v13700_v61, %v966_v11 }
 0x30a   : > { %v12633_v14 = vpop.eup %12632 }
 0x30b   : > { %v890_v22 = vpop.xlane.xlu0 %889  ;;  %v964_v39 = vmul.f32 %v12633_v14, %v13921_v63 }
 0x30c   : > { %12638 = vrcp.f32 %v890_v22 }
 0x30d   : > { %v14078_v56 = vmul.f32 %v964_v39, %v13702_v62  ;;  %10523 = vmatprep.mubr.msk.f32.mxu1 %vm662_vm2, %v964_v39 }
 0x30e   : > { %v12635_v20 = vpop.eup %12634  ;;  %10524 = vmatmul.mubr.msk.f32.gmra.mrb[16].mxu1 %vm662_vm2, %v966_v11 }
 0x30f   : > { %v887_v10 = vpop.xlane.xlu1 %886  ;;  %v970_v38 = vmul.f32 %v12635_v20, %v13926_v29 }
 0x310   : > { %12640 = vrcp.f32 %v887_v10  ;;  %v17188_v10 = vld [vmem:[#allocation47_spill] sm:$0xff] }
 0x311   : > { %v14084_v61 = vmul.f32 %v13714_v36, %v970_v38 }
 0x312   : > { %v12637_v21 = vpop.eup %12636 }
 0x313   : > { %v896_v52 = vpop.xlane.xlu0 %895  ;;  %v968_v63 = vmul.f32 %v12637_v21, %v13931_v57 }
 0x314   : > { %12642 = vrcp.f32 %v896_v52  ;;  %v17189_v52 = vld [vmem:[#allocation48_spill] sm:$0xff] }
 0x315   : > { %v14088_v62 = vmul.f32 %v968_v63, %v13716_v37  ;;  %10526 = vmatprep.mubr.msk.f32.mxu1 %vm662_vm2, %v968_v63 }
 0x316   : > { %v12639_v45 = vpop.eup %12638  ;;  %10527 = vmatmul.mubr.msk.f32.gmra.mrb[18].mxu1 %vm662_vm2, %v970_v38 }
 0x317   : > { %v893_v43 = vpop.xlane.xlu1 %892  ;;  %v974_v29 = vmul.f32 %v12639_v45, %v13936_v4 }
 0x318   : > { %12644 = vrcp.f32 %v893_v43  ;;  %v17190_v43 = vld [vmem:[#allocation49_spill] sm:$0xff] }
 0x319   : > { %v14094_v36 = vmul.f32 %v13728_v42, %v974_v29 }
 0x31a   : > { %v12641_v9 = vpop.eup %12640 }
 0x31b   : > { %v902_v53 = vpop.xlane.xlu0 %901  ;;  %v972_v57 = vmul.f32 %v12641_v9, %v13941_v15 }
 0x31c   : > { %12646 = vrcp.f32 %v902_v53 }
 0x31d   : > { %v14098_v37 = vmul.f32 %v972_v57, %v13730_v47  ;;  %10529 = vmatprep.mubr.msk.f32.mxu1 %vm662_vm2, %v972_v57  ;;  %v17191_v57 = vld [vmem:[#allocation50_spill] sm:$0xff] }
 0x31e   : > { %v12643_v17 = vpop.eup %12642  ;;  %10530 = vmatmul.mubr.msk.f32.gmra.mrb[20].mxu1 %vm662_vm2, %v974_v29 }
 0x31f   : > { %v899_v33 = vpop.xlane.xlu1 %898  ;;  %v978_v4 = vmul.f32 %v12643_v17, %v13946_v51 }
 0x320   : > { %12648 = vrcp.f32 %v899_v33 }
 0x321   : > { %v14104_v42 = vmul.f32 %v13742_v60, %v978_v4 }
 0x322   : > { %v12645_v16 = vpop.eup %12644 }
 0x323   : > { %v908_v3 = vpop.xlane.xlu0 %907  ;;  %v976_v15 = vmul.f32 %v12645_v16, %v13951_v13  ;;  %v17192_v16 = vld [vmem:[#allocation51_spill] sm:$0xff] }
 0x324   : > { %12650 = vrcp.f32 %v908_v3 }
 0x325   : > { %v14108_v47 = vmul.f32 %v976_v15, %v13744_v0  ;;  %10532 = vmatprep.mubr.msk.f32.mxu1 %vm662_vm2, %v976_v15 }
 0x326   : > { %v12647_v8 = vpop.eup %12646  ;;  %10533 = vmatmul.mubr.msk.f32.gmra.mrb[22].mxu1 %vm662_vm2, %v978_v4 }
 0x327   : > { %v905_v6 = vpop.xlane.xlu1 %904  ;;  %v982_v51 = vmul.f32 %v12647_v8, %v13956_v54 }
 0x328   : > { %12652 = vrcp.f32 %v905_v6  ;;  %v17193_v6 = vld [vmem:[#allocation52_spill] sm:$0xff] }
 0x329   : > { %v14114_v60 = vmul.f32 %v13756_v2, %v982_v51 }
 0x32a   : > { %v12649_v5 = vpop.eup %12648 }
 0x32b   : > { %v914_v11 = vpop.xlane.xlu0 %913  ;;  %v980_v13 = vmul.f32 %v12649_v5, %v13961_v35 }
 0x32c   : > { %12654 = vrcp.f32 %v914_v11 }
 0x32d   : > { %v14118_v0 = vmul.f32 %v980_v13, %v13758_v58  ;;  %10535 = vmatprep.mubr.msk.f32.mxu1 %vm662_vm2, %v980_v13 }
 0x32e   : > { %v12651_v14 = vpop.eup %12650  ;;  %10536 = vmatmul.mubr.msk.f32.gmra.mrb[24].mxu1 %vm662_vm2, %v982_v51 }
 0x32f   : > { %v911_v22 = vpop.xlane.xlu1 %910  ;;  %v986_v54 = vmul.f32 %v12651_v14, %v13966_v41  ;;  %v17194_v14 = vld [vmem:[#allocation53_spill] sm:$0xff] }
 0x330   : > { %12656 = vrcp.f32 %v911_v22 }
 0x331   : > { %v14124_v2 = vmul.f32 %v13770_v31, %v986_v54 }
 0x332   : > { %v12653_v39 = vpop.eup %12652 }
 0x333   : > { %v920_v20 = vpop.xlane.xlu0 %919  ;;  %v984_v35 = vmul.f32 %v12653_v39, %v13971_v34  ;;  %v17195_v39 = vld [vmem:[#allocation54_spill] sm:$0xff] }
 0x334   : > { %12658 = vrcp.f32 %v920_v20 }
 0x335   : > { %v14128_v58 = vmul.f32 %v984_v35, %v17188_v10  ;;  %10538 = vmatprep.mubr.msk.f32.mxu1 %vm662_vm2, %v984_v35 }
 0x336   : > { %v12655_v38 = vpop.eup %12654  ;;  %10539 = vmatmul.mubr.msk.f32.gmra.mrb[26].mxu1 %vm662_vm2, %v986_v54 }
 0x337   : > { %v917_v21 = vpop.xlane.xlu1 %916  ;;  %v990_v41 = vmul.f32 %v12655_v38, %v13976_v32 }
 0x338   : > { %12660 = vrcp.f32 %v917_v21  ;;  %v17196_v21 = vld [vmem:[#allocation55_spill] sm:$0xff] }
 0x339   : > { %v14134_v31 = vmul.f32 %v17189_v52, %v990_v41 }
 0x33a   : > { %v12657_v63 = vpop.eup %12656 }
 0x33b   : > { %v926_v45 = vpop.xlane.xlu0 %925  ;;  %v988_v34 = vmul.f32 %v12657_v63, %v13981_v30 }
 0x33c   : > { %12662 = vrcp.f32 %v926_v45 }
 0x33d   : > { %v14138_v29 = vmul.f32 %v988_v34, %v17190_v43  ;;  %10541 = vmatprep.mubr.msk.f32.mxu1 %vm662_vm2, %v988_v34  ;;  %v17197_v34 = vld [vmem:[#allocation56_spill] sm:$0xff] }
 0x33e   : > { %v12659_v9 = vpop.eup %12658  ;;  %10542 = vmatmul.mubr.msk.f32.gmra.mrb[28].mxu1 %vm662_vm2, %v990_v41 }
 0x33f   : > { %v923_v53 = vpop.xlane.xlu1 %922  ;;  %v994_v32 = vmul.f32 %v12659_v9, %v13986_v28 }
 0x340   : > { %12664 = vrcp.f32 %v923_v53 }
 0x341   : > { %v14144_v17 = vmul.f32 %v17191_v57, %v994_v32 }
 0x342   : > { %v12661_v33 = vpop.eup %12660 }
 0x343   : > { %v932_v4 = vpop.xlane.xlu0 %931  ;;  %v992_v30 = vmul.f32 %v12661_v33, %v13991_v26 }
 0x344   : > { %12666 = vrcp.f32 %v932_v4  ;;  %v17199_v4 = vld [vmem:[#allocation58_spill] sm:$0xff] }
 0x345   : > { %v14148_v3 = vmul.f32 %v992_v30, %v17192_v16  ;;  %10544 = vmatprep.mubr.msk.f32.mxu1 %vm662_vm2, %v992_v30  ;;  %v17200_v16 = vld [vmem:[#allocation59_spill] sm:$0xff] }
 0x346   : > { %v12663_v15 = vpop.eup %12662  ;;  %10545 = vmatmul.mubr.msk.f32.gmra.mrb[30].mxu1 %vm662_vm2, %v994_v32 }
 0x347   : > { %v929_v8 = vpop.xlane.xlu1 %928  ;;  %v998_v28 = vmul.f32 %v12663_v15, %v13996_v24 }
 0x348   : > { %12668 = vrcp.f32 %v929_v8 }
 0x349   : > { %v14154_v51 = vmul.f32 %v17193_v6, %v998_v28 }
 0x34a   : > { %v12665_v5 = vpop.eup %12664 }
 0x34b   : > { %v938_v11 = vpop.xlane.xlu0 %937  ;;  %v996_v26 = vmul.f32 %v12665_v5, %v14002_v19 }
 0x34c   : > { %12670 = vrcp.f32 %v938_v11  ;;  %v935_v13 = vpop.xlane.xlu1 %934  ;;  %v17201_v11 = vld [vmem:[#allocation60_spill] sm:$0xff] }
 0x34d   : > { %12672 = vrcp.f32 %v935_v13  ;;  %v14158_v22 = vmul.f32 %v996_v26, %v17194_v14  ;;  %10547 = vmatprep.mubr.msk.f32.mxu1 %vm662_vm2, %v996_v26 }
 0x34e   : > { %v12667_v54 = vpop.eup %12666  ;;  %10548 = vmatmul.mubr.msk.f32.gmra.mrb[32].mxu1 %vm662_vm2, %v998_v28 }
 0x34f   : > { %v1002_v24 = vmul.f32 %v12667_v54, %v14006_v1 }
 0x351   : > { %v14164_v20 = vmul.f32 %v17195_v39, %v1002_v24 }
 0x352   : > { %v12669_v35 = vpop.eup %12668 }
 0x353   : > { %v944_v10 = vpop.xlane.xlu0 %943  ;;  %v1000_v19 = vmul.f32 %v12669_v35, %v14012_v27  ;;  %v17198_v27 = vld [vmem:[#allocation57_spill] sm:$0xff] }
 0x354   : > { %12674 = vrcp.f32 %v944_v10  ;;  %v941_v38 = vpop.xlane.xlu1 %940 }
 0x355   : > { %12676 = vrcp.f32 %v941_v38  ;;  %v14168_v41 = vmul.f32 %v1000_v19, %v17196_v21  ;;  %10550 = vmatprep.mubr.msk.f32.mxu1 %vm662_vm2, %v1000_v19 }
 0x356   : > { %v12671_v52 = vpop.eup %12670  ;;  %10551 = vmatmul.mubr.msk.f32.gmra.mrb[34].mxu1 %vm662_vm2, %v1002_v24 }
 0x357   : > { %v12673_v63 = vpop.eup %12672  ;;  %v1006_v1 = vmul.f32 %v12671_v52, %v14016_v59 }
 0x358   : > { %v1004_v45 = vmul.f32 %v12673_v63, %v14018_v46 }
 0x359   : > { %v14175_v43 = vmul.f32 %v17197_v34, %v1006_v1 }
 0x35a   : > { %v14178_v9 = vmul.f32 %v1004_v45, %v17198_v27  ;;  %10553 = vmatprep.mubr.msk.f32.mxu1 %vm662_vm2, %v1004_v45 }
 0x35b   : > { %10554 = vmatmul.mubr.msk.f32.gmra.mrb[36].mxu1 %vm662_vm2, %v1006_v1  ;;  %v950_v53 = vpop.xlane.xlu0 %949 }
 0x35c   : > { %12678 = vrcp.f32 %v950_v53  ;;  %v947_v32 = vpop.xlane.xlu1 %946 }
 0x35d   : > { %12680 = vrcp.f32 %v947_v32 }
 0x35e   : > { %v12675_v57 = vpop.eup %12674 }
 0x35f   : > { %v12677_v33 = vpop.eup %12676  ;;  %v1010_v59 = vmul.f32 %v12675_v57, %v14026_v12 }
 0x360   : > { %v1008_v46 = vmul.f32 %v12677_v33, %v14028_v25  ;;  %v17202_v25 = vld [vmem:[#allocation61_spill] sm:$0xff] }
 0x361   : > { %v14185_v30 = vmul.f32 %v17199_v4, %v1010_v59 }
 0x362   : > { %v14188_v15 = vmul.f32 %v1008_v46, %v17200_v16  ;;  %10556 = vmatprep.mubr.msk.f32.mxu1 %vm662_vm2, %v1008_v46 }
 0x363   : > { %10557 = vmatmul.mubr.msk.f32.gmra.mrb[38].mxu1 %vm662_vm2, %v1010_v59 }
 0x366   : > { %v12679_v8 = vpop.eup %12678 }
 0x367   : > { %v12681_v28 = vpop.eup %12680  ;;  %v1014_v6 = vmul.f32 %v12679_v8, %v14034_v48 }
 0x368   : > { %v1012_v5 = vmul.f32 %v12681_v28, %v14036_v7 }
 0x369   : > { %v14195_v12 = vmul.f32 %v17201_v11, %v1014_v6 }
 0x36a   : > { %v14198_v26 = vmul.f32 %v1012_v5, %v17202_v25  ;;  %10559 = vmatprep.mubr.msk.f32.mxu1 %vm662_vm2, %v1012_v5 }
 0x36b   : > { %10560 = vmatmul.mubr.msk.f32.gmra.mrb[40].mxu1 %vm662_vm2, %v1014_v6 }
 0x3c6   : > { %v10516_v13 = vpop.f32.mrb[10].mxu1 }
 0x3c7   : > { %v1376_v14 = vadd.f32 1e-06, %v10516_v13  ;;  %v1370_v54 = vpop.f32.mrb[11].mxu1 }
 0x3c8   : > { %v1371_v24 = vadd.f32 1e-06, %v1370_v54 }
 0x3c9   : > { %12682 = vrcp.f32 %v1376_v14 }
 0x3ca   : > { %12684 = vrcp.f32 %v1371_v24 }
 0x3d1   : > { %v10519_v39 = vpop.f32.mrb[12].mxu1 }
 0x3d2   : > { %v1386_v48 = vadd.f32 1e-06, %v10519_v39  ;;  %v1380_v35 = vpop.f32.mrb[13].mxu1 }
 0x3d3   : > { %v12683_v7 = vpop.eup %12682  ;;  %v1381_v10 = vadd.f32 1e-06, %v1380_v35 }
 0x3d4   : > { %v12685_v19 = vpop.eup %12684  ;;  %v14203_v38 = vmul.f32 %v12683_v7, %v14045_v40  ;;  %12686 = vrcp.f32 %v1386_v48 }
 0x3d5   : > { %v14206_v21 = vmul.f32 %v12685_v19, %v14048_v23  ;;  %12688 = vrcp.f32 %v1381_v10 }
 0x3d9   : > { %v10522_v52 = vpop.f32.mrb[14].mxu1 }
 0x3da   : > { %v1396_v63 = vadd.f32 1e-06, %v10522_v52  ;;  %v1390_v1 = vpop.f32.mrb[15].mxu1 }
 0x3db   : > { %v1391_v45 = vadd.f32 1e-06, %v1390_v1 }
 0x3dc   : > { %12690 = vrcp.f32 %v1396_v63 }
 0x3dd   : > { %12692 = vrcp.f32 %v1391_v45 }
 0x3de   : > { %v12687_v34 = vpop.eup %12686 }
 0x3df   : > { %v12689_v27 = vpop.eup %12688  ;;  %v14209_v53 = vmul.f32 %v12687_v34, %v14054_v18 }
 0x3e0   : > { %v14212_v32 = vmul.f32 %v12689_v27, %v14058_v44 }
 0x3e1   : > { %v10525_v40 = vpop.f32.mrb[16].mxu1 }
 0x3e2   : > { %v1406_v57 = vadd.f32 1e-06, %v10525_v40  ;;  %v1400_v33 = vpop.f32.mrb[17].mxu1 }
 0x3e3   : > { %v1401_v23 = vadd.f32 1e-06, %v1400_v33 }
 0x3e4   : > { %12694 = vrcp.f32 %v1406_v57 }
 0x3e5   : > { %12696 = vrcp.f32 %v1401_v23 }
 0x3e6   : > { %v12691_v59 = vpop.eup %12690 }
 0x3e7   : > { %v12693_v46 = vpop.eup %12692  ;;  %v14215_v4 = vmul.f32 %v12691_v59, %v14064_v49 }
 0x3e8   : > { %v14218_v16 = vmul.f32 %v12693_v46, %v14068_v50 }
 0x3e9   : > { %v10528_v8 = vpop.f32.mrb[18].mxu1 }
 0x3ea   : > { %v1416_v18 = vadd.f32 1e-06, %v10528_v8  ;;  %v1410_v28 = vpop.f32.mrb[19].mxu1 }
 0x3eb   : > { %v1411_v6 = vadd.f32 1e-06, %v1410_v28 }
 0x3ec   : > { %12698 = vrcp.f32 %v1416_v18 }
 0x3ed   : > { %12700 = vrcp.f32 %v1411_v6 }
 0x3ee   : > { %v12695_v44 = vpop.eup %12694 }
 0x3ef   : > { %v12697_v5 = vpop.eup %12696  ;;  %v14221_v11 = vmul.f32 %v12695_v44, %v14074_v55 }
 0x3f0   : > { %v14224_v25 = vmul.f32 %v12697_v5, %v14078_v56 }
 0x3f1   : > { %v10531_v13 = vpop.f32.mrb[20].mxu1 }
 0x3f2   : > { %v1426_v49 = vadd.f32 1e-06, %v10531_v13  ;;  %v1420_v14 = vpop.f32.mrb[21].mxu1 }
 0x3f3   : > { %v1421_v54 = vadd.f32 1e-06, %v1420_v14 }
 0x3f4   : > { %12702 = vrcp.f32 %v1426_v49 }
 0x3f5   : > { %12704 = vrcp.f32 %v1421_v54 }
 0x3f6   : > { %v12699_v50 = vpop.eup %12698 }
 0x3f7   : > { %v12701_v24 = vpop.eup %12700  ;;  %v14227_v39 = vmul.f32 %v12699_v50, %v14084_v61 }
 0x3f8   : > { %v14230_v48 = vmul.f32 %v12701_v24, %v14088_v62 }
 0x3f9   : > { %v10534_v35 = vpop.f32.mrb[22].mxu1 }
 0x3fa   : > { %v1436_v55 = vadd.f32 1e-06, %v10534_v35  ;;  %v1430_v7 = vpop.f32.mrb[23].mxu1  ;;  %v11462_v35 = vpack.c.bf16 %v14203_v38, %v14206_v21 }
 0x3fb   : > { %v1431_v10 = vadd.f32 1e-06, %v1430_v7 }
 0x3fc   : > { %12706 = vrcp.f32 %v1436_v55 }
 0x3fd   : > { %12708 = vrcp.f32 %v1431_v10 }
 0x3fe   : > { %v12703_v56 = vpop.eup %12702 }
 0x3ff   : > { %v12705_v19 = vpop.eup %12704  ;;  %v14233_v52 = vmul.f32 %v12703_v56, %v14094_v36 }
 0x400   : > { %v14236_v63 = vmul.f32 %v12705_v19, %v14098_v37 }
 0x401   : > { %v10537_v1 = vpop.f32.mrb[24].mxu1 }
 0x402   : > { %v1446_v61 = vadd.f32 1e-06, %v10537_v1  ;;  %v1440_v45 = vpop.f32.mrb[25].mxu1 }
 0x403   : > { %v1441_v34 = vadd.f32 1e-06, %v1440_v45 }
 0x404   : > { %12710 = vrcp.f32 %v1446_v61 }
 0x405   : > { %12712 = vrcp.f32 %v1441_v34 }
 0x406   : > { %v12707_v62 = vpop.eup %12706 }
 0x407   : > { %v12709_v27 = vpop.eup %12708  ;;  %v14239_v40 = vmul.f32 %v12707_v62, %v14104_v42  ;;  %v11466_v62 = vpack.c.bf16 %v14209_v53, %v14212_v32 }
 0x408   : > { %v14242_v57 = vmul.f32 %v12709_v27, %v14108_v47 }
 0x409   : > { %v10540_v33 = vpop.f32.mrb[26].mxu1 }
 0x40a   : > { %v1456_v36 = vadd.f32 1e-06, %v10540_v33  ;;  %v1450_v23 = vpop.f32.mrb[27].mxu1 }
 0x40b   : > { %v1451_v59 = vadd.f32 1e-06, %v1450_v23 }
 0x40c   : > { %12714 = vrcp.f32 %v1456_v36 }
 0x40d   : > { %12716 = vrcp.f32 %v1451_v59 }
 0x40e   : > { %v12711_v37 = vpop.eup %12710 }
 0x40f   : > { %v12713_v46 = vpop.eup %12712  ;;  %v14245_v8 = vmul.f32 %v12711_v37, %v14114_v60 }
 0x410   : > { %v14248_v18 = vmul.f32 %v12713_v46, %v14118_v0 }
 0x411   : > { %v10543_v28 = vpop.f32.mrb[28].mxu1 }
 0x412   : > { %v1466_v42 = vadd.f32 1e-06, %v10543_v28  ;;  %v1460_v6 = vpop.f32.mrb[29].mxu1 }
 0x413   : > { %v1461_v44 = vadd.f32 1e-06, %v1460_v6  ;;  %v11470_v6 = vpack.c.bf16 %v14215_v4, %v14218_v16 }
 0x414   : > { %12718 = vrcp.f32 %v1466_v42 }
 0x415   : > { %12720 = vrcp.f32 %v1461_v44 }
 0x416   : > { %v12715_v47 = vpop.eup %12714 }
 0x417   : > { %v12717_v5 = vpop.eup %12716  ;;  %v14251_v13 = vmul.f32 %v12715_v47, %v14124_v2 }
 0x418   : > { %v14254_v49 = vmul.f32 %v12717_v5, %v14128_v58 }
 0x419   : > { %v10546_v14 = vpop.f32.mrb[30].mxu1  ;;  %v12123_v58 = vpack.i.bf16 %v14203_v38, %v14251_v13 }
 0x41a   : > { %v1476_v60 = vadd.f32 1e-06, %v10546_v14  ;;  %v1470_v54 = vpop.f32.mrb[31].mxu1  ;;  %v12121_v0 = vpack.i.bf16 %v14206_v21, %v14254_v49  ;;  %v11460_v50 = vpack.c.bf16 %v14251_v13, %v14254_v49 }
 0x41b   : > { %v1471_v24 = vadd.f32 1e-06, %v1470_v54 }
 0x41c   : > { %12722 = vrcp.f32 %v1476_v60  ;;  %12122 = vxpose.xlu1.b32.start [1/16] (narrow) %v12121_v0, 64  ;;  %11461 = vmatprep.subr.bf16.mxu0 %v11460_v50 }
 0x41d   : > { %12724 = vrcp.f32 %v1471_v24  ;;  %11493 = vmatprep.subr.bf16.mxu1 %v11460_v50  ;;  %11463 = vmatpush3.bf16.msra.mxu0 %v11462_v35 }
 0x41e   : > { %v12719_v2 = vpop.eup %12718  ;;  %11495 = vmatpush3.bf16.msra.mxu1 %v11462_v35  ;;  %v11474_v35 = vpack.c.bf16 %v14221_v11, %v14224_v25 }
 0x41f   : > { %v12721_v55 = vpop.eup %12720  ;;  %v14265_v7 = vmul.f32 %v12719_v2, %v14134_v31 }
 0x420   : > { %v14268_v10 = vmul.f32 %v12721_v55, %v14138_v29  ;;  %12124 = vxpose.xlu1.b32.cont [2/16] (narrow) %v12123_v58, 64 }
 0x421   : > { %v10549_v56 = vpop.f32.mrb[32].mxu1  ;;  %v12127_v29 = vpack.i.bf16 %v14209_v53, %v14265_v7 }
 0x422   : > { %v1486_v19 = vadd.f32 1e-06, %v10549_v56  ;;  %v1480_v1 = vpop.f32.mrb[33].mxu1  ;;  %v12125_v61 = vpack.i.bf16 %v14212_v32, %v14268_v10  ;;  %v11464_v45 = vpack.c.bf16 %v14265_v7, %v14268_v10 }
 0x423   : > { %v1481_v34 = vadd.f32 1e-06, %v1480_v1 }
 0x424   : > { %12726 = vrcp.f32 %v1486_v19  ;;  %12126 = vxpose.xlu1.b32.cont [3/16] (narrow) %v12125_v61, 64  ;;  %11465 = vmatprep.subr.bf16.mxu0 %v11464_v45 }
 0x425   : > { %12728 = vrcp.f32 %v1481_v34  ;;  %11497 = vmatprep.subr.bf16.mxu1 %v11464_v45  ;;  %11467 = vmatpush3.bf16.msra.mxu0 %v11466_v62 }
 0x426   : > { %v12723_v31 = vpop.eup %12722  ;;  %11499 = vmatpush3.bf16.msra.mxu1 %v11466_v62 }
 0x427   : > { %v12725_v27 = vpop.eup %12724  ;;  %v14279_v33 = vmul.f32 %v12723_v31, %v14144_v17  ;;  %v11478_v31 = vpack.c.bf16 %v14227_v39, %v14230_v48 }
 0x428   : > { %v14282_v36 = vmul.f32 %v12725_v27, %v14148_v3  ;;  %12128 = vxpose.xlu1.b32.cont [4/16] (narrow) %v12127_v29, 64 }
 0x429   : > { %v10552_v23 = vpop.f32.mrb[34].mxu1  ;;  %v12131_v44 = vpack.i.bf16 %v14215_v4, %v14279_v33 }
 0x42a   : > { %v1496_v59 = vadd.f32 1e-06, %v10552_v23  ;;  %v1490_v37 = vpop.f32.mrb[35].mxu1  ;;  %v12129_v46 = vpack.i.bf16 %v14218_v16, %v14282_v36  ;;  %v11468_v28 = vpack.c.bf16 %v14279_v33, %v14282_v36 }
 0x42b   : > { %v1491_v42 = vadd.f32 1e-06, %v1490_v37 }
 0x42c   : > { %12730 = vrcp.f32 %v1496_v59  ;;  %12130 = vxpose.xlu1.b32.cont [5/16] (narrow) %v12129_v46, 64  ;;  %11469 = vmatprep.subr.bf16.mxu0 %v11468_v28 }
 0x42d   : > { %12732 = vrcp.f32 %v1491_v42  ;;  %11501 = vmatprep.subr.bf16.mxu1 %v11468_v28  ;;  %11471 = vmatpush3.bf16.msra.mxu0 %v11470_v6 }
 0x42e   : > { %v12727_v17 = vpop.eup %12726  ;;  %11503 = vmatpush3.bf16.msra.mxu1 %v11470_v6  ;;  %v10555_v3 = vpop.f32.mrb[36].mxu1 }
 0x42f   : > { %v12729_v47 = vpop.eup %12728  ;;  %v1506_v5 = vadd.f32 1e-06, %v10555_v3  ;;  %v1500_v14 = vpop.f32.mrb[37].mxu1  ;;  %v14293_v60 = vmul.f32 %v12727_v17, %v14154_v51 }
 0x430   : > { %v14296_v54 = vmul.f32 %v12729_v47, %v14158_v22  ;;  %v1501_v0 = vadd.f32 1e-06, %v1500_v14  ;;  %12132 = vxpose.xlu1.b32.cont [6/16] (narrow) %v12131_v44, 64 }
 0x431   : > { %12734 = vrcp.f32 %v1506_v5  ;;  %v12135_v2 = vpack.i.bf16 %v14221_v11, %v14293_v60  ;;  %v11486_v5 = vpack.c.bf16 %v14239_v40, %v14242_v57 }
 0x432   : > { %12736 = vrcp.f32 %v1501_v0  ;;  %v12133_v50 = vpack.i.bf16 %v14224_v25, %v14296_v54  ;;  %v11472_v24 = vpack.c.bf16 %v14293_v60, %v14296_v54 }
 0x434   : > { %12134 = vxpose.xlu1.b32.cont [7/16] (narrow) %v12133_v50, 64  ;;  %11473 = vmatprep.subr.bf16.mxu0 %v11472_v24 }
 0x435   : > { %11505 = vmatprep.subr.bf16.mxu1 %v11472_v24  ;;  %11475 = vmatpush3.bf16.msra.mxu0 %v11474_v35 }
 0x436   : > { %v12731_v51 = vpop.eup %12730  ;;  %11507 = vmatpush3.bf16.msra.mxu1 %v11474_v35  ;;  %v10558_v22 = vpop.f32.mrb[38].mxu1 }
 0x437   : > { %v12733_v58 = vpop.eup %12732  ;;  %v1516_v55 = vadd.f32 1e-06, %v10558_v22  ;;  %v1510_v56 = vpop.f32.mrb[39].mxu1  ;;  %v14307_v19 = vmul.f32 %v12731_v51, %v14164_v20  ;;  %v11490_v51 = vpack.c.bf16 %v14245_v8, %v14248_v18  ;;  %v17205_v22 = vld [vmem:[#allocation15_spill] sm:$0xff] }
 0x438   : > { %v14310_v1 = vmul.f32 %v12733_v58, %v14168_v41  ;;  %v1511_v61 = vadd.f32 1e-06, %v1510_v56  ;;  %12136 = vxpose.xlu1.b32.cont [8/16] (narrow) %v12135_v2, 64 }
 0x439   : > { %12738 = vrcp.f32 %v1516_v55  ;;  %v12139_v23 = vpack.i.bf16 %v14227_v39, %v14307_v19 }
 0x43a   : > { %12740 = vrcp.f32 %v1511_v61  ;;  %v12137_v45 = vpack.i.bf16 %v14230_v48, %v14310_v1  ;;  %v11476_v34 = vpack.c.bf16 %v14307_v19, %v14310_v1 }
 0x43b   : > { %v12735_v62 = vpop.eup %12734 }
 0x43c   : > { %v12737_v29 = vpop.eup %12736  ;;  %12138 = vxpose.xlu1.b32.cont [9/16] (narrow) %v12137_v45, 64  ;;  %11477 = vmatprep.subr.bf16.mxu0 %v11476_v34  ;;  %v14319_v20 = vmul.f32 %v12735_v62, %v14175_v43  ;;  %v11482_v43 = vpack.c.bf16 %v14233_v52, %v14236_v63 }
 0x43d   : > { %11509 = vmatprep.subr.bf16.mxu1 %v11476_v34  ;;  %11479 = vmatpush3.bf16.msra.mxu0 %v11478_v31  ;;  %v14322_v41 = vmul.f32 %v12737_v29, %v14178_v9 }
 0x43e   : > { %11511 = vmatpush3.bf16.msra.mxu1 %v11478_v31  ;;  %v10561_v27 = vpop.f32.mrb[40].mxu1  ;;  %v12143_v44 = vpack.i.bf16 %v14233_v52, %v14319_v20 }
 0x43f   : > { %v1526_v59 = vadd.f32 1e-06, %v10561_v27  ;;  %v1520_v37 = vpop.f32.mrb[41].mxu1  ;;  %v11480_v46 = vpack.c.bf16 %v14319_v20, %v14322_v41  ;;  %v12141_v9 = vpack.i.bf16 %v14236_v63, %v14322_v41 }
 0x440   : > { %v1521_v28 = vadd.f32 1e-06, %v1520_v37  ;;  %12140 = vxpose.xlu1.b32.cont [10/16] (narrow) %v12139_v23, 64 }
 0x441   : > { %12742 = vrcp.f32 %v1526_v59  ;;  %11481 = vmatprep.subr.bf16.mxu0 %v11480_v46  ;;  %11513 = vmatprep.subr.bf16.mxu1 %v11480_v46 }
 0x442   : > { %12744 = vrcp.f32 %v1521_v28  ;;  %11483 = vmatpush3.bf16.msra.mxu0 %v11482_v43  ;;  %11515 = vmatpush3.bf16.msra.mxu1 %v11482_v43 }
 0x443   : > { %v12739_v42 = vpop.eup %12738 }
 0x444   : > { %v12741_v6 = vpop.eup %12740  ;;  %12142 = vxpose.xlu1.b32.cont [11/16] (narrow) %v12141_v9, 64  ;;  %v14333_v17 = vmul.f32 %v12739_v42, %v14185_v30 }
 0x445   : > { %v14336_v3 = vmul.f32 %v12741_v6, %v14188_v15 }
 0x446   : > { %v12147_v24 = vpack.i.bf16 %v14239_v40, %v14333_v17 }
 0x447   : > { %v11484_v47 = vpack.c.bf16 %v14333_v17, %v14336_v3  ;;  %v12145_v30 = vpack.i.bf16 %v14242_v57, %v14336_v3 }
 0x448   : > { %12144 = vxpose.xlu1.b32.cont [12/16] (narrow) %v12143_v44, 64 }
 0x449   : > { %11485 = vmatprep.subr.bf16.mxu0 %v11484_v47  ;;  %11517 = vmatprep.subr.bf16.mxu1 %v11484_v47 }
 0x44a   : > { %11487 = vmatpush3.bf16.msra.mxu0 %v11486_v5  ;;  %11519 = vmatpush3.bf16.msra.mxu1 %v11486_v5 }
 0x44b   : > { %v12743_v15 = vpop.eup %12742 }
 0x44c   : > { %v12745_v14 = vpop.eup %12744  ;;  %12146 = vxpose.xlu1.b32.cont [13/16] (narrow) %v12145_v30, 64  ;;  %v14347_v0 = vmul.f32 %v12743_v15, %v14195_v12 }
 0x44d   : > { %v14350_v50 = vmul.f32 %v12745_v14, %v14198_v26  ;;  %v14361_v26 = vld [vmem:[%s13485_s8] sm:$0xff]  ;;  %v17105_v14 = vmov 0.0|0.0  }
 0x44e   : > { %17204 = vst [vmem:[#allocation48_spill] sm:$0xff] %v14361_v26  ;;  %v12151_v2 = vpack.i.bf16 %v14245_v8, %v14347_v0 }
 0x44f   : > { %17203 = vst [vmem:[#allocation47_spill] sm:$0xff] %v14350_v50  ;;  %v11488_v35 = vpack.c.bf16 %v14347_v0, %v14350_v50  ;;  %v12149_v12 = vpack.i.bf16 %v14248_v18, %v14350_v50 }
 0x450   : > { %12148 = vxpose.xlu1.b32.cont [14/16] (narrow) %v12147_v24, 64  ;;  %v17103_v24 = vmov 0.0  }
 0x451   : > { %11489 = vmatprep.subr.bf16.mxu0 %v11488_v35  ;;  %11521 = vmatprep.subr.bf16.mxu1 %v11488_v35 }
 0x452   : > { %11491 = vmatpush3.bf16.msra.mxu0 %v11490_v51  ;;  %11523 = vmatpush3.bf16.msra.mxu1 %v11490_v51 }
 0x453   : > { %11524 = vmatprep.subr.bf16.mxu1 %v17105_v14 }
 0x454   : > { %12150 = vxpose.xlu1.b32.cont [15/16] (narrow) %v12149_v12, 64 }
 0x455   : > { %1658 = vmatmul.mubr.f32.vlgmr.msra.gmra.mrb[30].mxu0 %v14361_v26 }
 0x456   : > { %10583 = vmatprep.mubr.msk.f32.mxu0 %vm304_vm1, %v17205_v22 }
 0x458   : > { %12152 = vxpose.xlu1.b32.end [16/16] (narrow) %v12151_v2, 64 }
 0x49c   : > { %v12153_v58 = vpop.trf.xlu1 }
 0x49d   : > { %v12157_v55 = vunpack.i.h.bf16 %v12153_v58  ;;  %v12154_v56 = vunpack.i.l.bf16 %v12153_v58 }
 0x49f   : > { %1791 = vmatprep.mubr.f32.mxu1 %v12154_v56 }
 0x4a0   : > { %v12158_v61 = vpop.trf.xlu1  ;;  %1792 = vmatmul.mubr.f32.vlgmr.msra.gmra.mrb[42].mxu1 %v12157_v55 }
 0x4a1   : > { %v12159_v45 = vunpack.i.l.bf16 %v12158_v61  ;;  %v12162_v34 = vunpack.i.h.bf16 %v12158_v61 }
 0x4a3   : > { %1796 = vmatprep.mubr.f32.mxu1 %v12159_v45 }
 0x4a4   : > { %v12163_v62 = vpop.trf.xlu1  ;;  %1797 = vmatmul.mubr.f32.gmra.mrb[44].mxu1 %v12162_v34 }
 0x4a5   : > { %v12164_v31 = vunpack.i.l.bf16 %v12163_v62  ;;  %v12167_v29 = vunpack.i.h.bf16 %v12163_v62 }
 0x4a7   : > { %1801 = vmatprep.mubr.f32.mxu1 %v12164_v31 }
 0x4a8   : > { %v12168_v27 = vpop.trf.xlu1  ;;  %1802 = vmatmul.mubr.f32.gmra.mrb[46].mxu1 %v12167_v29 }
 0x4a9   : > { %v12169_v23 = vunpack.i.l.bf16 %v12168_v27  ;;  %v12172_v59 = vunpack.i.h.bf16 %v12168_v27 }
 0x4ab   : > { %1806 = vmatprep.mubr.f32.mxu1 %v12169_v23 }
 0x4ac   : > { %v12173_v37 = vpop.trf.xlu1  ;;  %1807 = vmatmul.mubr.f32.gmra.mrb[48].mxu1 %v12172_v59 }
 0x4ad   : > { %v12174_v46 = vunpack.i.l.bf16 %v12173_v37  ;;  %v12177_v28 = vunpack.i.h.bf16 %v12173_v37 }
 0x4af   : > { %1811 = vmatprep.mubr.f32.mxu1 %v12174_v46 }
 0x4b0   : > { %v12178_v43 = vpop.trf.xlu1  ;;  %1812 = vmatmul.mubr.f32.gmra.mrb[50].mxu1 %v12177_v28 }
 0x4b1   : > { %v12179_v9 = vunpack.i.l.bf16 %v12178_v43  ;;  %v12182_v42 = vunpack.i.h.bf16 %v12178_v43 }
 0x4b3   : > { %1816 = vmatprep.mubr.f32.mxu1 %v12179_v9 }
 0x4b4   : > { %v12183_v6 = vpop.trf.xlu1  ;;  %1817 = vmatmul.mubr.f32.gmra.mrb[52].mxu1 %v12182_v42 }
 0x4b5   : > { %v12184_v44 = vunpack.i.l.bf16 %v12183_v6  ;;  %v12187_v47 = vunpack.i.h.bf16 %v12183_v6 }
 0x4b7   : > { %1821 = vmatprep.mubr.f32.mxu1 %v12184_v44 }
 0x4b8   : > { %v12188_v5 = vpop.trf.xlu1  ;;  %1822 = vmatmul.mubr.f32.gmra.mrb[54].mxu1 %v12187_v47 }
 0x4b9   : > { %v12189_v30 = vunpack.i.l.bf16 %v12188_v5  ;;  %v12192_v15 = vunpack.i.h.bf16 %v12188_v5 }
 0x4bb   : > { %1826 = vmatprep.mubr.f32.mxu1 %v12189_v30 }
 0x4bc   : > { %1827 = vmatmul.mubr.f32.gmra.mrb[56].mxu1 %v12192_v15 }
 0x4bd   : > { %10578 = vmatprep.mubr.msk.f32.mxu1 %vm13313_vm3, %v17103_v24  ;;  %v17234_v24 = vld [vmem:[#allocation43_spill] sm:$0xff] }
 0x573   : > { %v9375_v35 = vpop.f32.mrb[42].mxu1 }
 0x574   : > { %v9376_v51 = vpop.f32.mrb[43].mxu1 }
 0x575   : > { %v9377_v12 = vadd.f32 %v9376_v51, %v9375_v35  ;;  %v13143_v35 = vld [vmem:[%s13495_s17] sm:$0xf]  ;;  %v9340_v51 = vpop.f32.mrb[30].mxu0 }
 0x577   : > { %v9378_v2 = vpop.f32.mrb[44].mxu1 }
 0x578   : > { %v9379_v58 = vpop.f32.mrb[45].mxu1 }
 0x579   : > { %v9380_v55 = vadd.f32 %v9379_v58, %v9378_v2 }
 0x57b   : > { %v11525_v56 = vpack.c.bf16 %v9380_v55, %v9377_v12  ;;  %v9381_v61 = vpop.f32.mrb[46].mxu1  ;;  %v9341_v12 = vpop.f32.mrb[31].mxu0 }
 0x57c   : > { %v9382_v45 = vpop.f32.mrb[47].mxu1  ;;  %v9342_v2 = vadd.f32 %v9341_v12, %v9340_v51  ;;  %v17226_v51 = vld [vmem:[#allocation35_spill] sm:$0xff]  ;;  %v17227_v12 = vld [vmem:[#allocation36_spill] sm:$0xff] }
 0x57d   : > { %v9383_v34 = vadd.f32 %v9382_v45, %v9381_v61  ;;  %11526 = vmatpush3.bf16.msra.mxu1 %v11525_v56 }
 0x57e   : > { %11527 = vmatprep.subr.bf16.mxu1 %v17105_v14  ;;  %v1832_v61 = vmul.f32 %v13143_v35, %v9342_v2  ;;  %v17228_v2 = vld [vmem:[#allocation37_spill] sm:$0xff] }
 0x57f   : > { %v9384_v62 = vpop.f32.mrb[48].mxu1 }
 0x580   : > { %v9385_v31 = vpop.f32.mrb[49].mxu1 }
 0x581   : > { %v9386_v29 = vadd.f32 %v9385_v31, %v9384_v62  ;;  %v17207_v62 = vld [vmem:[#allocation16_spill] sm:$0xff]  ;;  %v17208_v31 = vld [vmem:[#allocation17_spill] sm:$0xff] }
 0x583   : > { %v11528_v27 = vpack.c.bf16 %v9386_v29, %v9383_v34  ;;  %v9387_v23 = vpop.f32.mrb[50].mxu1  ;;  %v17209_v29 = vld [vmem:[#allocation18_spill] sm:$0xff] }
 0x584   : > { %v9388_v59 = vpop.f32.mrb[51].mxu1 }
 0x585   : > { %v9389_v37 = vadd.f32 %v9388_v59, %v9387_v23  ;;  %11529 = vmatpush3.bf16.msra.mxu1 %v11528_v27  ;;  %v17210_v27 = vld [vmem:[#allocation19_spill] sm:$0xff]  ;;  %v17211_v23 = vld [vmem:[#allocation20_spill] sm:$0xff]  ;;  %v17212_v59 = vld [vmem:[#allocation21_spill] sm:$0xff] }
 0x586   : > { %11530 = vmatprep.subr.bf16.mxu1 %v17105_v14 }
 0x587   : > { %v9390_v46 = vpop.f32.mrb[52].mxu1 }
 0x588   : > { %v9391_v28 = vpop.f32.mrb[53].mxu1 }
 0x589   : > { %v9392_v43 = vadd.f32 %v9391_v28, %v9390_v46  ;;  %v17214_v46 = vld [vmem:[#allocation23_spill] sm:$0xff]  ;;  %v17215_v28 = vld [vmem:[#allocation24_spill] sm:$0xff] }
 0x58b   : > { %v11531_v9 = vpack.c.bf16 %v9392_v43, %v9389_v37  ;;  %v9393_v42 = vpop.f32.mrb[54].mxu1  ;;  %v17213_v37 = vld [vmem:[#allocation22_spill] sm:$0xff]  ;;  %v17216_v43 = vld [vmem:[#allocation25_spill] sm:$0xff] }
 0x58c   : > { %v9394_v6 = vpop.f32.mrb[55].mxu1 }
 0x58d   : > { %v9395_v44 = vadd.f32 %v9394_v6, %v9393_v42  ;;  %11532 = vmatpush3.bf16.msra.mxu1 %v11531_v9  ;;  %v17217_v9 = vld [vmem:[#allocation26_spill] sm:$0xff]  ;;  %v17218_v42 = vld [vmem:[#allocation27_spill] sm:$0xff]  ;;  %v17219_v6 = vld [vmem:[#allocation28_spill] sm:$0xff] }
 0x58e   : > { %11533 = vmatprep.subr.bf16.mxu1 %v17105_v14  ;;  %v17235_v14 = vld [vmem:[#allocation44_spill] sm:$0xff] }
 0x58f   : > { %v9396_v47 = vpop.f32.mrb[56].mxu1 }
 0x590   : > { %v9397_v5 = vpop.f32.mrb[57].mxu1 }
 0x591   : > { %v9398_v30 = vadd.f32 %v9397_v5, %v9396_v47  ;;  %v17221_v47 = vld [vmem:[#allocation30_spill] sm:$0xff]  ;;  %v17222_v5 = vld [vmem:[#allocation31_spill] sm:$0xff] }
 0x593   : > { %v11534_v15 = vpack.c.bf16 %v9398_v30, %v9395_v44  ;;  %v17220_v44 = vld [vmem:[#allocation29_spill] sm:$0xff]  ;;  %v17223_v30 = vld [vmem:[#allocation32_spill] sm:$0xff] }
 0x595   : > { %11535 = vmatpush3.bf16.msra.mxu1 %v11534_v15  ;;  %v17224_v15 = vld [vmem:[#allocation33_spill] sm:$0xff] }
 0x598   : > { %10579 = vmatmul.mubr.msk.f32.vlgmr.msra.gmra.mrb[58].mxu1 %vm662_vm2, %v13143_v35  ;;  %v17225_v35 = vld [vmem:[#allocation34_spill] sm:$0xff] }
 0x66b   : > { %v1901_v58 = vpop.f32.mrb[58].mxu1 }
 0x66c   : > { %v1902_v55 = vadd.f32 1e-06, %v1901_v58  ;;  %v10580_v56 = vpop.f32.mrb[59].mxu1  ;;  %v17229_v58 = vld [vmem:[#allocation38_spill] sm:$0xff] }
 0x66d   : > { %v17231_v56 = vld [vmem:[#allocation40_spill] sm:$0xff] }
 0x66e   : > { %12746 = vrcp.f32 %v1902_v55  ;;  %v17230_v55 = vld [vmem:[#allocation39_spill] sm:$0xff] }
 0x678   : > { %v12747_v45 = vpop.eup %12746 }
 0x679   : > { %v14376_v34 = vmul.f32 %v12747_v45, %v1832_v61  ;;  %v17232_v61 = vld [vmem:[#allocation41_spill] sm:$0xff]  ;;  %v17233_v45 = vld [vmem:[#allocation42_spill] sm:$0xff] }
 0x67b   : > { %17206 = vst [vmem:[#allocation49_spill] sm:$0xff] %v14376_v34  ;;  %2135 = vxpose.xlu0.b32.start.end [1/1] (short) (narrow) %v14376_v34, 64  ;;  %10581 = vmatprep.subr.msk.mxu0 %vm401_vm0, %v14376_v34 }
 0x67c   : > { %10631 = vmatprep.subr.msk.mxu1 %vm401_vm0, %v14376_v34  ;;  %10582 = vmatpush3.msk.msra.mxu0 %vm401_vm0, %v14376_v34 }
 0x67d   : > { %10632 = vmatpush3.msk.msra.mxu1 %vm401_vm0, %v14376_v34  ;;  %10584 = vmatmul.mubr.msk.f32.vlgmr.msra.gmra.mrb[32].mxu0 %vm304_vm1, %v17207_v62 }
 0x67e   : > { %10586 = vmatprep.mubr.msk.f32.mxu0 %vm304_vm1, %v17208_v31 }
 0x681   : > { %10587 = vmatmul.mubr.msk.f32.gmra.mrb[34].mxu0 %vm304_vm1, %v17209_v29 }
 0x682   : > { %10589 = vmatprep.mubr.msk.f32.mxu0 %vm304_vm1, %v17210_v27 }
 0x685   : > { %10590 = vmatmul.mubr.msk.f32.gmra.mrb[36].mxu0 %vm304_vm1, %v17211_v23 }
 0x686   : > { %10592 = vmatprep.mubr.msk.f32.mxu0 %vm304_vm1, %v17212_v59 }
 0x689   : > { %10593 = vmatmul.mubr.msk.f32.gmra.mrb[38].mxu0 %vm304_vm1, %v17213_v37 }
 0x68a   : > { %10595 = vmatprep.mubr.msk.f32.mxu0 %vm304_vm1, %v17214_v46 }
 0x68d   : > { %10596 = vmatmul.mubr.msk.f32.gmra.mrb[40].mxu0 %vm304_vm1, %v17215_v28 }
 0x68e   : > { %10598 = vmatprep.mubr.msk.f32.mxu0 %vm304_vm1, %v17216_v43 }
 0x691   : > { %10599 = vmatmul.mubr.msk.f32.gmra.mrb[42].mxu0 %vm304_vm1, %v17217_v9 }
 0x692   : > { %10601 = vmatprep.mubr.msk.f32.mxu0 %vm304_vm1, %v17218_v42 }
 0x695   : > { %10602 = vmatmul.mubr.msk.f32.gmra.mrb[44].mxu0 %vm304_vm1, %v17219_v6 }
 0x696   : > { %10604 = vmatprep.mubr.msk.f32.mxu0 %vm304_vm1, %v17220_v44 }
 0x699   : > { %10605 = vmatmul.mubr.msk.f32.gmra.mrb[46].mxu0 %vm304_vm1, %v17221_v47 }
 0x69a   : > { %10607 = vmatprep.mubr.msk.f32.mxu0 %vm304_vm1, %v17222_v5 }
 0x69d   : > { %10608 = vmatmul.mubr.msk.f32.gmra.mrb[48].mxu0 %vm304_vm1, %v17223_v30 }
 0x69e   : > { %10610 = vmatprep.mubr.msk.f32.mxu0 %vm304_vm1, %v17224_v15 }
 0x6a1   : > { %10611 = vmatmul.mubr.msk.f32.gmra.mrb[50].mxu0 %vm304_vm1, %v17225_v35 }
 0x6a2   : > { %10613 = vmatprep.mubr.msk.f32.mxu0 %vm304_vm1, %v17226_v51 }
 0x6a5   : > { %10614 = vmatmul.mubr.msk.f32.gmra.mrb[52].mxu0 %vm304_vm1, %v17227_v12 }
 0x6a6   : > { %10616 = vmatprep.mubr.msk.f32.mxu0 %vm304_vm1, %v17228_v2  ;;  %v17236_v2 = vld [vmem:[#allocation45_spill] sm:$0xff] }
 0x6a9   : > { %10617 = vmatmul.mubr.msk.f32.gmra.mrb[54].mxu0 %vm304_vm1, %v17229_v58  ;;  %v17237_v58 = vld [vmem:[#allocation46_spill] sm:$0xff] }
 0x6aa   : > { %10619 = vmatprep.mubr.msk.f32.mxu0 %vm304_vm1, %v17230_v55  ;;  %v17238_v55 = vld [vmem:[#allocation14_spill] sm:$0xff] }
 0x6ad   : > { %10620 = vmatmul.mubr.msk.f32.gmra.mrb[56].mxu0 %vm304_vm1, %v17231_v56 }
 0x6ae   : > { %10622 = vmatprep.mubr.msk.f32.mxu0 %vm304_vm1, %v17232_v61 }
 0x6b1   : > { %10623 = vmatmul.mubr.msk.f32.gmra.mrb[58].mxu0 %vm304_vm1, %v17233_v45 }
 0x6b2   : > { %10625 = vmatprep.mubr.msk.f32.mxu0 %vm304_vm1, %v17234_v24 }
 0x6b5   : > { %10626 = vmatmul.mubr.msk.f32.gmra.mrb[60].mxu0 %vm304_vm1, %v17235_v14 }
 0x6b6   : > { %10628 = vmatprep.mubr.msk.f32.mxu0 %vm304_vm1, %v17236_v2 }
 0x6b9   : > { %10629 = vmatmul.mubr.msk.f32.gmra.mrb[62].mxu0 %vm304_vm1, %v17237_v58 }
 0x6ba   : > { %2777 = vmatprep.mubr.f32.mxu0 %v17238_v55 }
 0x6fb   : > { %v2151_v56 = vpop.trf.xlu0 }
 0x6fc   : > { %10633 = vmatprep.mubr.msk.f32.mxu1 %vm304_vm1, %v2151_v56 }
 0x6ff   : > { %v2152_v61 = vpop.trf.xlu0 }
 0x700   : > { %10634 = vmatmul.mubr.msk.f32.vlgmr.msra.gmra.mrb[60].mxu1 %vm304_vm1, %v2152_v61 }
 0x703   : > { %v2153_v45 = vpop.trf.xlu0 }
 0x704   : > { %10636 = vmatprep.mubr.msk.f32.mxu1 %vm304_vm1, %v2153_v45 }
 0x707   : > { %v2154_v24 = vpop.trf.xlu0 }
 0x708   : > { %10637 = vmatmul.mubr.msk.f32.gmra.mrb[62].mxu1 %vm304_vm1, %v2154_v24 }
 0x70b   : > { %v2155_v14 = vpop.trf.xlu0 }
 0x70c   : > { %10639 = vmatprep.mubr.msk.f32.mxu1 %vm304_vm1, %v2155_v14 }
 0x70f   : > { %v2156_v2 = vpop.trf.xlu0 }
 0x710   : > { %10640 = vmatmul.mubr.msk.f32.gmra.mrb[64].mxu1 %vm304_vm1, %v2156_v2 }
 0x713   : > { %v2157_v58 = vpop.trf.xlu0 }
 0x714   : > { %10642 = vmatprep.mubr.msk.f32.mxu1 %vm304_vm1, %v2157_v58 }
 0x717   : > { %v2158_v55 = vpop.trf.xlu0 }
 0x718   : > { %10643 = vmatmul.mubr.msk.f32.gmra.mrb[66].mxu1 %vm304_vm1, %v2158_v55 }
 0x719   : > { %10661 = vmatprep.mubr.msk.f32.mxu1 %vm662_vm2, %v14206_v21 }
 0x750   : > { %v14460_v56 = vpop.f32.mrb[32].mxu0 }
 0x751   : > { %v14462_v61 = vpop.f32.mrb[33].mxu0 }
 0x754   : > { %v14464_v24 = vpop.f32.mrb[34].mxu0 }
 0x755   : > { %v14466_v45 = vpop.f32.mrb[35].mxu0 }
 0x758   : > { %v14468_v14 = vpop.f32.mrb[36].mxu0 }
 0x759   : > { %v14470_v2 = vpop.f32.mrb[37].mxu0 }
 0x75c   : > { %v14472_v12 = vpop.f32.mrb[38].mxu0 }
 0x75d   : > { %v14474_v58 = vpop.f32.mrb[39].mxu0 }
 0x760   : > { %v14476_v55 = vpop.f32.mrb[40].mxu0 }
 0x761   : > { %v14478_v51 = vpop.f32.mrb[41].mxu0 }
 0x764   : > { %v14480_v35 = vpop.f32.mrb[42].mxu0 }
 0x765   : > { %v14482_v15 = vpop.f32.mrb[43].mxu0 }
 0x768   : > { %v14484_v30 = vpop.f32.mrb[44].mxu0 }
 0x769   : > { %v14486_v5 = vpop.f32.mrb[45].mxu0 }
 0x76c   : > { %v14488_v47 = vpop.f32.mrb[46].mxu0 }
 0x76d   : > { %v14490_v44 = vpop.f32.mrb[47].mxu0 }
 0x770   : > { %v14492_v6 = vpop.f32.mrb[48].mxu0 }
 0x771   : > { %v14494_v42 = vpop.f32.mrb[49].mxu0 }
 0x774   : > { %v14496_v9 = vpop.f32.mrb[50].mxu0 }
 0x775   : > { %v14498_v43 = vpop.f32.mrb[51].mxu0 }
 0x776   : > { %17239 = vst [vmem:[#allocation50_spill] sm:$0xff] %v14498_v43 }
 0x778   : > { %v14500_v28 = vpop.f32.mrb[52].mxu0 }
 0x779   : > { %17240 = vst [vmem:[#allocation51_spill] sm:$0xff] %v14500_v28  ;;  %v14502_v46 = vpop.f32.mrb[53].mxu0 }
 0x77a   : > { %17241 = vst [vmem:[#allocation52_spill] sm:$0xff] %v14502_v46 }
 0x77c   : > { %v14504_v37 = vpop.f32.mrb[54].mxu0 }
 0x77d   : > { %17242 = vst [vmem:[#allocation53_spill] sm:$0xff] %v14504_v37  ;;  %v14506_v59 = vpop.f32.mrb[55].mxu0 }
 0x77e   : > { %17243 = vst [vmem:[#allocation54_spill] sm:$0xff] %v14506_v59 }
 0x780   : > { %v14508_v23 = vpop.f32.mrb[56].mxu0 }
 0x781   : > { %17244 = vst [vmem:[#allocation55_spill] sm:$0xff] %v14508_v23  ;;  %v14510_v27 = vpop.f32.mrb[57].mxu0 }
 0x782   : > { %17245 = vst [vmem:[#allocation56_spill] sm:$0xff] %v14510_v27 }
 0x784   : > { %v14512_v29 = vpop.f32.mrb[58].mxu0 }
 0x785   : > { %17246 = vst [vmem:[#allocation57_spill] sm:$0xff] %v14512_v29  ;;  %v14514_v31 = vpop.f32.mrb[59].mxu0 }
 0x786   : > { %17247 = vst [vmem:[#allocation58_spill] sm:$0xff] %v14514_v31 }
 0x788   : > { %v14516_v62 = vpop.f32.mrb[60].mxu0 }
 0x789   : > { %17248 = vst [vmem:[#allocation59_spill] sm:$0xff] %v14516_v62  ;;  %v14518_v22 = vpop.f32.mrb[61].mxu0 }
 0x78a   : > { %17249 = vst [vmem:[#allocation60_spill] sm:$0xff] %v14518_v22 }
 0x78c   : > { %v14520_v34 = vpop.f32.mrb[62].mxu0 }
 0x78d   : > { %17250 = vst [vmem:[#allocation61_spill] sm:$0xff] %v14520_v34  ;;  %v14522_v26 = vpop.f32.mrb[63].mxu0 }
 0x78e   : > { %17251 = vst [vmem:[#allocation62_spill] sm:$0xff] %v14522_v26  ;;  %v17252_v26 = vmov 0.0|0.0  }
 0x7d3   : > { %v10635_v46 = vpop.f32.mrb[60].mxu1 }
 0x7d4   : > { %v2257_v37 = vpop.f32.mrb[61].mxu1 }
 0x7d5   : > { %v11536_v28 = vpack.c.bf16 %v10635_v46, %v2257_v37 }
 0x7d7   : > { %11537 = vmatprep.subr.bf16.mxu1 %v11536_v28 }
 0x7d8   : > { %11539 = vmatpush3.bf16.msra.mxu1 %v11536_v28 }
 0x7db   : > { %v10638_v23 = vpop.f32.mrb[62].mxu1 }
 0x7dc   : > { %v2267_v59 = vpop.f32.mrb[63].mxu1 }
 0x7dd   : > { %v11540_v27 = vpack.c.bf16 %v10638_v23, %v2267_v59 }
 0x7df   : > { %11541 = vmatprep.subr.bf16.mxu1 %v11540_v27 }
 0x7e0   : > { %11543 = vmatpush3.bf16.msra.mxu1 %v11540_v27 }
 0x7e3   : > { %v10641_v29 = vpop.f32.mrb[64].mxu1 }
 0x7e4   : > { %v2277_v31 = vpop.f32.mrb[65].mxu1 }
 0x7e5   : > { %v11544_v43 = vpack.c.bf16 %v10641_v29, %v2277_v31 }
 0x7e7   : > { %11545 = vmatprep.subr.bf16.mxu1 %v11544_v43 }
 0x7e8   : > { %11547 = vmatpush3.bf16.msra.mxu1 %v11544_v43 }
 0x7eb   : > { %v10644_v22 = vpop.f32.mrb[66].mxu1 }
 0x7ec   : > { %v2287_v62 = vpop.f32.mrb[67].mxu1 }
 0x7ed   : > { %v11548_v34 = vpack.c.bf16 %v10644_v22, %v2287_v62  ;;  %v17253_v22 = vmov 0.0  }
 0x7ef   : > { %11549 = vmatprep.subr.bf16.mxu1 %v11548_v34 }
 0x7f0   : > { %11551 = vmatpush3.bf16.msra.mxu1 %v11548_v34 }
 0x7f1   : > { %11616 = vmatprep.subr.bf16.mxu1 %v17252_v26 }
 0x7f3   : > { %10662 = vmatmul.mubr.msk.f32.vlgmr.msra.gmra.mrb[68].mxu1 %vm662_vm2, %v14203_v38 }
 0x7f4   : > { %10664 = vmatprep.mubr.msk.f32.mxu1 %vm662_vm2, %v14212_v32 }
 0x7f7   : > { %10665 = vmatmul.mubr.msk.f32.gmra.mrb[70].mxu1 %vm662_vm2, %v14209_v53 }
 0x7f8   : > { %10667 = vmatprep.mubr.msk.f32.mxu1 %vm662_vm2, %v14218_v16 }
 0x7fb   : > { %10668 = vmatmul.mubr.msk.f32.gmra.mrb[72].mxu1 %vm662_vm2, %v14215_v4 }
 0x7fc   : > { %10670 = vmatprep.mubr.msk.f32.mxu1 %vm662_vm2, %v14224_v25 }
 0x7ff   : > { %10671 = vmatmul.mubr.msk.f32.gmra.mrb[74].mxu1 %vm662_vm2, %v14221_v11 }
 0x800   : > { %10673 = vmatprep.mubr.msk.f32.mxu1 %vm662_vm2, %v14230_v48 }
 0x803   : > { %10674 = vmatmul.mubr.msk.f32.gmra.mrb[76].mxu1 %vm662_vm2, %v14227_v39 }
 0x804   : > { %10676 = vmatprep.mubr.msk.f32.mxu1 %vm662_vm2, %v14236_v63 }
 0x807   : > { %10677 = vmatmul.mubr.msk.f32.gmra.mrb[78].mxu1 %vm662_vm2, %v14233_v52 }
 0x808   : > { %10679 = vmatprep.mubr.msk.f32.mxu1 %vm662_vm2, %v14242_v57 }
 0x80b   : > { %10680 = vmatmul.mubr.msk.f32.gmra.mrb[80].mxu1 %vm662_vm2, %v14239_v40 }
 0x80c   : > { %10682 = vmatprep.mubr.msk.f32.mxu1 %vm662_vm2, %v14248_v18 }
 0x80f   : > { %10683 = vmatmul.mubr.msk.f32.gmra.mrb[82].mxu1 %vm662_vm2, %v14245_v8 }
 0x810   : > { %10685 = vmatprep.mubr.msk.f32.mxu1 %vm662_vm2, %v14254_v49 }
 0x813   : > { %10686 = vmatmul.mubr.msk.f32.gmra.mrb[84].mxu1 %vm662_vm2, %v14251_v13 }
 0x814   : > { %10688 = vmatprep.mubr.msk.f32.mxu1 %vm662_vm2, %v14268_v10 }
 0x817   : > { %10689 = vmatmul.mubr.msk.f32.gmra.mrb[86].mxu1 %vm662_vm2, %v14265_v7 }
 0x818   : > { %10691 = vmatprep.mubr.msk.f32.mxu1 %vm662_vm2, %v14282_v36 }
 0x81b   : > { %10692 = vmatmul.mubr.msk.f32.gmra.mrb[88].mxu1 %vm662_vm2, %v14279_v33 }
 0x81c   : > { %10694 = vmatprep.mubr.msk.f32.mxu1 %vm662_vm2, %v14296_v54 }
 0x81f   : > { %10695 = vmatmul.mubr.msk.f32.gmra.mrb[90].mxu1 %vm662_vm2, %v14293_v60 }
 0x820   : > { %10697 = vmatprep.mubr.msk.f32.mxu1 %vm662_vm2, %v14310_v1 }
 0x823   : > { %10698 = vmatmul.mubr.msk.f32.gmra.mrb[92].mxu1 %vm662_vm2, %v14307_v19 }
 0x824   : > { %10700 = vmatprep.mubr.msk.f32.mxu1 %vm662_vm2, %v14322_v41 }
 0x827   : > { %10701 = vmatmul.mubr.msk.f32.gmra.mrb[94].mxu1 %vm662_vm2, %v14319_v20 }
 0x828   : > { %10703 = vmatprep.mubr.msk.f32.mxu1 %vm662_vm2, %v14336_v3 }
 0x82b   : > { %10704 = vmatmul.mubr.msk.f32.gmra.mrb[96].mxu1 %vm662_vm2, %v14333_v17 }
 0x82c   : > { %10706 = vmatprep.mubr.msk.f32.mxu1 %vm662_vm2, %v14350_v50 }
 0x82f   : > { %10707 = vmatmul.mubr.msk.f32.gmra.mrb[98].mxu1 %vm662_vm2, %v14347_v0 }
 0x830   : > { %10725 = vmatprep.mubr.msk.f32.mxu1 %vm13313_vm3, %v17253_v22  ;;  %v2297_v22 = vmul.f32 %v14460_v56, %v14203_v38  ;;  %v2298_v56 = vmul.f32 %v14466_v45, %v14212_v32 }
 0x8c6   : > { %v10663_v34 = vpop.f32.mrb[68].mxu1 }
 0x8c7   : > { %v2496_v62 = vadd.f32 1e-06, %v10663_v34  ;;  %v2490_v31 = vpop.f32.mrb[69].mxu1 }
 0x8c8   : > { %v2491_v29 = vadd.f32 1e-06, %v2490_v31 }
 0x8c9   : > { %12748 = vrcp.f32 %v2496_v62  ;;  %v2296_v62 = vmul.f32 %v14462_v61, %v14206_v21 }
 0x8ca   : > { %12750 = vrcp.f32 %v2491_v29  ;;  %v10666_v27 = vpop.f32.mrb[70].mxu1 }
 0x8cb   : > { %v2506_v23 = vadd.f32 1e-06, %v10666_v27  ;;  %v2500_v59 = vpop.f32.mrb[71].mxu1 }
 0x8cc   : > { %v2501_v37 = vadd.f32 1e-06, %v2500_v59 }
 0x8cd   : > { %12752 = vrcp.f32 %v2506_v23 }
 0x8ce   : > { %12754 = vrcp.f32 %v2501_v37  ;;  %v10669_v46 = vpop.f32.mrb[72].mxu1 }
 0x8cf   : > { %v2516_v28 = vadd.f32 1e-06, %v10669_v46  ;;  %v2510_v43 = vpop.f32.mrb[73].mxu1  ;;  %v2299_v46 = vmul.f32 %v14464_v24, %v14209_v53 }
 0x8d0   : > { %v2511_v26 = vadd.f32 1e-06, %v2510_v43 }
 0x8d1   : > { %12756 = vrcp.f32 %v2516_v28 }
 0x8d2   : > { %12758 = vrcp.f32 %v2511_v26  ;;  %v10672_v34 = vpop.f32.mrb[74].mxu1 }
 0x8d3   : > { %v12749_v50 = vpop.eup %12748  ;;  %v2526_v31 = vadd.f32 1e-06, %v10672_v34  ;;  %v2520_v29 = vpop.f32.mrb[75].mxu1  ;;  %v2301_v34 = vmul.f32 %v14468_v14, %v14215_v4 }
 0x8d4   : > { %v12751_v27 = vpop.eup %12750  ;;  %v14593_v59 = vmul.f32 %v12749_v50, %v2297_v22  ;;  %v2521_v23 = vadd.f32 1e-06, %v2520_v29 }
 0x8d5   : > { %12760 = vrcp.f32 %v2526_v31  ;;  %v14595_v37 = vmul.f32 %v12751_v27, %v2296_v62  ;;  %v2300_v62 = vmul.f32 %v14470_v2, %v14218_v16 }
 0x8d6   : > { %12762 = vrcp.f32 %v2521_v23  ;;  %v10675_v38 = vpop.f32.mrb[76].mxu1 }
 0x8d7   : > { %v12753_v26 = vpop.eup %12752  ;;  %v2536_v28 = vadd.f32 1e-06, %v10675_v38  ;;  %v2530_v21 = vpop.f32.mrb[77].mxu1  ;;  %v2302_v38 = vmul.f32 %v14474_v58, %v14224_v25 }
 0x8d8   : > { %v12755_v61 = vpop.eup %12754  ;;  %v14601_v43 = vmul.f32 %v12753_v26, %v2299_v46  ;;  %v2531_v50 = vadd.f32 1e-06, %v2530_v21  ;;  %v2303_v46 = vmul.f32 %v14472_v12, %v14221_v11 }
 0x8d9   : > { %v14603_v22 = vmul.f32 %v12755_v61, %v2298_v56  ;;  %12764 = vrcp.f32 %v2536_v28  ;;  %v2305_v61 = vmul.f32 %v14476_v55, %v14227_v39 }
 0x8da   : > { %12766 = vrcp.f32 %v2531_v50  ;;  %v10678_v53 = vpop.f32.mrb[78].mxu1  ;;  %v2304_v50 = vmul.f32 %v14478_v51, %v14230_v48 }
 0x8db   : > { %v12757_v24 = vpop.eup %12756  ;;  %v2546_v31 = vadd.f32 1e-06, %v10678_v53  ;;  %v2540_v32 = vpop.f32.mrb[79].mxu1 }
 0x8dc   : > { %v12759_v45 = vpop.eup %12758  ;;  %v14609_v29 = vmul.f32 %v12757_v24, %v2301_v34  ;;  %v2541_v27 = vadd.f32 1e-06, %v2540_v32  ;;  %v2306_v32 = vmul.f32 %v14482_v15, %v14236_v63 }
 0x8dd   : > { %v14611_v23 = vmul.f32 %v12759_v45, %v2300_v62  ;;  %12768 = vrcp.f32 %v2546_v31  ;;  %v2307_v31 = vmul.f32 %v14480_v35, %v14233_v52 }
 0x8de   : > { %12770 = vrcp.f32 %v2541_v27  ;;  %v10681_v4 = vpop.f32.mrb[80].mxu1 }
 0x8df   : > { %v12761_v14 = vpop.eup %12760  ;;  %v2556_v26 = vadd.f32 1e-06, %v10681_v4  ;;  %v2550_v16 = vpop.f32.mrb[81].mxu1 }
 0x8e0   : > { %v12763_v2 = vpop.eup %12762  ;;  %v14617_v56 = vmul.f32 %v12761_v14, %v2303_v46  ;;  %v2551_v28 = vadd.f32 1e-06, %v2550_v16  ;;  %v2309_v14 = vmul.f32 %v14484_v30, %v14239_v40 }
 0x8e1   : > { %v14619_v21 = vmul.f32 %v12763_v2, %v2302_v38  ;;  %12772 = vrcp.f32 %v2556_v26  ;;  %v2308_v38 = vmul.f32 %v14486_v5, %v14242_v57 }
 0x8e2   : > { %12774 = vrcp.f32 %v2551_v28  ;;  %v10684_v11 = vpop.f32.mrb[82].mxu1 }
 0x8e3   : > { %v12765_v12 = vpop.eup %12764  ;;  %v2566_v34 = vadd.f32 1e-06, %v10684_v11  ;;  %v2560_v25 = vpop.f32.mrb[83].mxu1  ;;  %v2310_v11 = vmul.f32 %v14490_v44, %v14248_v18 }
 0x8e4   : > { %v12767_v58 = vpop.eup %12766  ;;  %v14625_v53 = vmul.f32 %v12765_v12, %v2305_v61  ;;  %v2561_v24 = vadd.f32 1e-06, %v2560_v25  ;;  %v2311_v61 = vmul.f32 %v14488_v47, %v14245_v8 }
 0x8e5   : > { %v14627_v62 = vmul.f32 %v12767_v58, %v2304_v50  ;;  %12776 = vrcp.f32 %v2566_v34  ;;  %v2313_v58 = vmul.f32 %v14492_v6, %v14251_v13 }
 0x8e6   : > { %12778 = vrcp.f32 %v2561_v24  ;;  %v10687_v39 = vpop.f32.mrb[84].mxu1  ;;  %v2312_v24 = vmul.f32 %v14494_v42, %v14254_v49 }
 0x8e7   : > { %v12769_v55 = vpop.eup %12768  ;;  %v2576_v45 = vadd.f32 1e-06, %v10687_v39  ;;  %v2570_v48 = vpop.f32.mrb[85].mxu1 }
 0x8e8   : > { %v12771_v51 = vpop.eup %12770  ;;  %v14633_v27 = vmul.f32 %v12769_v55, %v2307_v31  ;;  %v2571_v46 = vadd.f32 1e-06, %v2570_v48  ;;  %v17254_v48 = vld [vmem:[#allocation50_spill] sm:$0xff] }
 0x8e9   : > { %v14635_v4 = vmul.f32 %v12771_v51, %v2306_v32  ;;  %12780 = vrcp.f32 %v2576_v45  ;;  %v2315_v45 = vmul.f32 %v14496_v9, %v14265_v7  ;;  %v2314_v51 = vmul.f32 %v17254_v48, %v14268_v10 }
 0x8ea   : > { %12782 = vrcp.f32 %v2571_v46  ;;  %v10690_v52 = vpop.f32.mrb[86].mxu1  ;;  %v14673_v7 = vpack.c.bf16 %v14593_v59, %v14595_v37 }
 0x8eb   : > { %v12773_v35 = vpop.eup %12772  ;;  %v2586_v26 = vadd.f32 1e-06, %v10690_v52  ;;  %v2580_v63 = vpop.f32.mrb[87].mxu1 }
 0x8ec   : > { %v12775_v15 = vpop.eup %12774  ;;  %v14641_v16 = vmul.f32 %v12773_v35, %v2309_v14  ;;  %v2581_v2 = vadd.f32 1e-06, %v2580_v63 }
 0x8ed   : > { %v14643_v28 = vmul.f32 %v12775_v15, %v2308_v38  ;;  %12784 = vrcp.f32 %v2586_v26  ;;  %v17255_v38 = vld [vmem:[#allocation51_spill] sm:$0xff] }
 0x8ee   : > { %12786 = vrcp.f32 %v2581_v2  ;;  %v10693_v40 = vpop.f32.mrb[88].mxu1  ;;  %v2317_v26 = vmul.f32 %v17255_v38, %v14279_v33  ;;  %v17256_v2 = vld [vmem:[#allocation52_spill] sm:$0xff]  ;;  %v14693_v33 = vpack.c.bf16 %v14601_v43, %v14603_v22 }
 0x8ef   : > { %v12777_v30 = vpop.eup %12776  ;;  %v2596_v12 = vadd.f32 1e-06, %v10693_v40  ;;  %v2590_v57 = vpop.f32.mrb[89].mxu1 }
 0x8f0   : > { %v12779_v5 = vpop.eup %12778  ;;  %v14649_v50 = vmul.f32 %v12777_v30, %v2311_v61  ;;  %v2591_v34 = vadd.f32 1e-06, %v2590_v57  ;;  %v2316_v61 = vmul.f32 %v17256_v2, %v14282_v36 }
 0x8f1   : > { %v14651_v25 = vmul.f32 %v12779_v5, %v2310_v11  ;;  %12788 = vrcp.f32 %v2596_v12 }
 0x8f2   : > { %12790 = vrcp.f32 %v2591_v34  ;;  %v10696_v8 = vpop.f32.mrb[90].mxu1 }
 0x8f3   : > { %v12781_v47 = vpop.eup %12780  ;;  %v2606_v31 = vadd.f32 1e-06, %v10696_v8  ;;  %v2600_v18 = vpop.f32.mrb[91].mxu1 }
 0x8f4   : > { %v12783_v44 = vpop.eup %12782  ;;  %v2601_v39 = vadd.f32 1e-06, %v2600_v18  ;;  %v14657_v55 = vmul.f32 %v12781_v47, %v2313_v58  ;;  %v17257_v58 = vld [vmem:[#allocation53_spill] sm:$0xff] }
 0x8f5   : > { %12792 = vrcp.f32 %v2606_v31  ;;  %v14659_v32 = vmul.f32 %v12783_v44, %v2312_v24  ;;  %v2319_v8 = vmul.f32 %v17257_v58, %v14293_v60  ;;  %v17258_v31 = vld [vmem:[#allocation54_spill] sm:$0xff]  ;;  %v14713_v60 = vpack.c.bf16 %v14609_v29, %v14611_v23 }
 0x8f6   : > { %12794 = vrcp.f32 %v2601_v39  ;;  %v10699_v13 = vpop.f32.mrb[92].mxu1  ;;  %v12195_v11 = vpack.i.bf16 %v14593_v59, %v14657_v55  ;;  %v2318_v18 = vmul.f32 %v17258_v31, %v14296_v54  ;;  %v17262_v58 = vld [vmem:[#allocation58_spill] sm:$0xff] }
 0x8f7   : > { %v12785_v6 = vpop.eup %12784  ;;  %v2616_v46 = vadd.f32 1e-06, %v10699_v13  ;;  %v2610_v49 = vpop.f32.mrb[93].mxu1  ;;  %v12193_v42 = vpack.i.bf16 %v14595_v37, %v14659_v32  ;;  %v14669_v14 = vpack.c.bf16 %v14657_v55, %v14659_v32 }
 0x8f8   : > { %v12787_v52 = vpop.eup %12786  ;;  %v2611_v35 = vadd.f32 1e-06, %v2610_v49  ;;  %v14675_v9 = vmul.f32 %v12785_v6, %v2315_v45 }
 0x8f9   : > { %12796 = vrcp.f32 %v2616_v46  ;;  %12194 = vxpose.xlu0.b32.start [1/16] (narrow) %v12193_v42, 64  ;;  %11553 = vmatprep.subr.bf16.mxu0 %v14669_v14  ;;  %v14678_v10 = vmul.f32 %v12787_v52, %v2314_v51  ;;  %v17259_v46 = vld [vmem:[#allocation55_spill] sm:$0xff] }
 0x8fa   : > { %12798 = vrcp.f32 %v2611_v35  ;;  %v10702_v63 = vpop.f32.mrb[94].mxu1  ;;  %11555 = vmatpush3.bf16.msra.mxu0 %v14673_v7  ;;  %v2321_v49 = vmul.f32 %v17259_v46, %v14307_v19  ;;  %v17260_v35 = vld [vmem:[#allocation56_spill] sm:$0xff]  ;;  %v14733_v19 = vpack.c.bf16 %v14617_v56, %v14619_v21 }
 0x8fb   : > { %v12789_v15 = vpop.eup %12788  ;;  %v2626_v40 = vadd.f32 1e-06, %v10702_v63  ;;  %v2620_v30 = vpop.f32.mrb[95].mxu1  ;;  %v14689_v12 = vpack.c.bf16 %v14675_v9, %v14678_v10  ;;  %v12197_v45 = vpack.i.bf16 %v14603_v22, %v14678_v10  ;;  %v2320_v38 = vmul.f32 %v17260_v35, %v14310_v1 }
 0x8fc   : > { %v12791_v57 = vpop.eup %12790  ;;  %v2621_v5 = vadd.f32 1e-06, %v2620_v30  ;;  %v14695_v34 = vmul.f32 %v12789_v15, %v2317_v26  ;;  %v12199_v15 = vpack.i.bf16 %v14601_v43, %v14675_v9 }
 0x8fd   : > { %12800 = vrcp.f32 %v2626_v40  ;;  %12196 = vxpose.xlu0.b32.cont [2/16] (narrow) %v12195_v11, 64  ;;  %11557 = vmatprep.subr.bf16.mxu0 %v14689_v12  ;;  %v14698_v36 = vmul.f32 %v12791_v57, %v2316_v61  ;;  %v17261_v11 = vld [vmem:[#allocation57_spill] sm:$0xff] }
 0x8fe   : > { %12802 = vrcp.f32 %v2621_v5  ;;  %v10705_v47 = vpop.f32.mrb[96].mxu1  ;;  %11559 = vmatpush3.bf16.msra.mxu0 %v14693_v33  ;;  %v2323_v57 = vmul.f32 %v17261_v11, %v14319_v20  ;;  %v12203_v46 = vpack.i.bf16 %v14609_v29, %v14695_v34 }
 0x8ff   : > { %v12793_v24 = vpop.eup %12792  ;;  %v2636_v44 = vadd.f32 1e-06, %v10705_v47  ;;  %v2630_v39 = vpop.f32.mrb[97].mxu1  ;;  %v14709_v13 = vpack.c.bf16 %v14695_v34, %v14698_v36  ;;  %v12201_v47 = vpack.i.bf16 %v14611_v23, %v14698_v36 }
 0x900   : > { %v12795_v6 = vpop.eup %12794  ;;  %v2631_v48 = vadd.f32 1e-06, %v2630_v39  ;;  %v14715_v51 = vmul.f32 %v12793_v24, %v2319_v8  ;;  %v2322_v8 = vmul.f32 %v17262_v58, %v14322_v41  ;;  %v17263_v39 = vld [vmem:[#allocation59_spill] sm:$0xff] }
 0x901   : > { %12804 = vrcp.f32 %v2636_v44  ;;  %12198 = vxpose.xlu0.b32.cont [3/16] (narrow) %v12197_v45, 64  ;;  %11561 = vmatprep.subr.bf16.mxu0 %v14709_v13  ;;  %v14718_v54 = vmul.f32 %v12795_v6, %v2318_v18  ;;  %v11570_v18 = vpack.c.bf16 %v14625_v53, %v14627_v62  ;;  %v2325_v45 = vmul.f32 %v17263_v39, %v14333_v17  ;;  %v17264_v6 = vld [vmem:[#allocation60_spill] sm:$0xff] }
 0x902   : > { %12806 = vrcp.f32 %v2631_v48  ;;  %v10708_v42 = vpop.f32.mrb[98].mxu1  ;;  %11563 = vmatpush3.bf16.msra.mxu0 %v14713_v60  ;;  %v2324_v48 = vmul.f32 %v17264_v6, %v14336_v3 }
 0x903   : > { %v12797_v52 = vpop.eup %12796  ;;  %v2646_v26 = vadd.f32 1e-06, %v10708_v42  ;;  %v2640_v63 = vpop.f32.mrb[99].mxu1  ;;  %v14729_v2 = vpack.c.bf16 %v14715_v51, %v14718_v54 }
 0x904   : > { %v12799_v61 = vpop.eup %12798  ;;  %v2641_v40 = vadd.f32 1e-06, %v2640_v63  ;;  %v14735_v30 = vmul.f32 %v12797_v52, %v2321_v49  ;;  %v11574_v52 = vpack.c.bf16 %v14633_v27, %v14635_v4  ;;  %v17266_v63 = vld [vmem:[#allocation47_spill] sm:$0xff] }
 0x905   : > { %12808 = vrcp.f32 %v2646_v26  ;;  %12200 = vxpose.xlu0.b32.cont [4/16] (narrow) %v12199_v15, 64  ;;  %11565 = vmatprep.subr.bf16.mxu0 %v14729_v2  ;;  %v14738_v1 = vmul.f32 %v12799_v61, %v2320_v38  ;;  %v17265_v38 = vld [vmem:[#allocation61_spill] sm:$0xff]  ;;  %v17267_v15 = vld [vmem:[#allocation62_spill] sm:$0xff] }
 0x906   : > { %12810 = vrcp.f32 %v2641_v40  ;;  %11567 = vmatpush3.bf16.msra.mxu0 %v14733_v19  ;;  %v2327_v26 = vmul.f32 %v17265_v38, %v14347_v0  ;;  %v2326_v61 = vmul.f32 %v17267_v15, %v17266_v63  ;;  %v12205_v40 = vpack.i.bf16 %v14619_v21, %v14718_v54 }
 0x907   : > { %v12801_v5 = vpop.eup %12800  ;;  %v11568_v24 = vpack.c.bf16 %v14735_v30, %v14738_v1  ;;  %v12209_v39 = vpack.i.bf16 %v14627_v62, %v14738_v1 }
 0x908   : > { %v12803_v31 = vpop.eup %12802  ;;  %v14751_v44 = vmul.f32 %v12801_v5, %v2323_v57  ;;  %v11578_v5 = vpack.c.bf16 %v14641_v16, %v14643_v28 }
 0x909   : > { %12202 = vxpose.xlu0.b32.cont [5/16] (narrow) %v12201_v47, 64  ;;  %11569 = vmatprep.subr.bf16.mxu0 %v11568_v24  ;;  %v14753_v20 = vmul.f32 %v12803_v31, %v2322_v8  ;;  %v12207_v8 = vpack.i.bf16 %v14617_v56, %v14715_v51  ;;  %v11582_v31 = vpack.c.bf16 %v14649_v50, %v14651_v25 }
 0x90a   : > { %11571 = vmatpush3.bf16.msra.mxu0 %v11570_v18 }
 0x90b   : > { %v12805_v41 = vpop.eup %12804  ;;  %v11572_v49 = vpack.c.bf16 %v14751_v44, %v14753_v20 }
 0x90c   : > { %v12807_v42 = vpop.eup %12806  ;;  %v14765_v35 = vmul.f32 %v12805_v41, %v2325_v45  ;;  %v17269_v45 = vld [vmem:[#allocation48_spill] sm:$0xff]  ;;  %v12211_v41 = vpack.i.bf16 %v14625_v53, %v14735_v30 }
 0x90d   : > { %12204 = vxpose.xlu0.b32.cont [6/16] (narrow) %v12203_v46, 64  ;;  %11573 = vmatprep.subr.bf16.mxu0 %v11572_v49  ;;  %v14767_v17 = vmul.f32 %v12807_v42, %v2324_v48 }
 0x90e   : > { %11575 = vmatpush3.bf16.msra.mxu0 %v11574_v52 }
 0x90f   : > { %v12809_v3 = vpop.eup %12808  ;;  %v11576_v11 = vpack.c.bf16 %v14765_v35, %v14767_v17 }
 0x910   : > { %v12811_v57 = vpop.eup %12810  ;;  %v14779_v58 = vmul.f32 %v12809_v3, %v2327_v26 }
 0x911   : > { %12206 = vxpose.xlu0.b32.cont [7/16] (narrow) %v12205_v40, 64  ;;  %11577 = vmatprep.subr.bf16.mxu0 %v11576_v11  ;;  %v14781_v0 = vmul.f32 %v12811_v57, %v2326_v61 }
 0x912   : > { %11579 = vmatpush3.bf16.msra.mxu0 %v11578_v5 }
 0x913   : > { %17268 = vst [vmem:[#allocation50_spill] sm:$0xff] %v14781_v0  ;;  %v11580_v47 = vpack.c.bf16 %v14779_v58, %v14781_v0 }
 0x915   : > { %12208 = vxpose.xlu0.b32.cont [8/16] (narrow) %v12207_v8, 64  ;;  %11581 = vmatprep.subr.bf16.mxu0 %v11580_v47 }
 0x916   : > { %11583 = vmatpush3.bf16.msra.mxu0 %v11582_v31 }
 0x917   : > { %11585 = vmatprep.subr.bf16.mxu0 %v14669_v14  ;;  %v12213_v14 = vpack.i.bf16 %v14635_v4, %v14753_v20 }
 0x919   : > { %12210 = vxpose.xlu0.b32.cont [9/16] (narrow) %v12209_v39, 64  ;;  %2778 = vmatmul.mubr.f32.vlgmr.msra.gmra.mrb[64].mxu0 %v17269_v45 }
 0x91a   : > { %11587 = vmatpush3.bf16.msra.mxu0 %v14673_v7  ;;  %v12215_v7 = vpack.i.bf16 %v14633_v27, %v14751_v44 }
 0x91b   : > { %11589 = vmatprep.subr.bf16.mxu0 %v14689_v12  ;;  %v12217_v12 = vpack.i.bf16 %v14643_v28, %v14767_v17 }
 0x91d   : > { %12212 = vxpose.xlu0.b32.cont [10/16] (narrow) %v12211_v41, 64 }
 0x91e   : > { %11591 = vmatpush3.bf16.msra.mxu0 %v14693_v33  ;;  %v12219_v33 = vpack.i.bf16 %v14641_v16, %v14765_v35 }
 0x91f   : > { %11593 = vmatprep.subr.bf16.mxu0 %v14709_v13  ;;  %v12221_v13 = vpack.i.bf16 %v14651_v25, %v14781_v0 }
 0x921   : > { %12214 = vxpose.xlu0.b32.cont [11/16] (narrow) %v12213_v14, 64 }
 0x922   : > { %11595 = vmatpush3.bf16.msra.mxu0 %v14713_v60  ;;  %v12223_v60 = vpack.i.bf16 %v14649_v50, %v14779_v58 }
 0x923   : > { %11597 = vmatprep.subr.bf16.mxu0 %v14729_v2 }
 0x925   : > { %12216 = vxpose.xlu0.b32.cont [12/16] (narrow) %v12215_v7, 64 }
 0x926   : > { %11599 = vmatpush3.bf16.msra.mxu0 %v14733_v19 }
 0x927   : > { %11601 = vmatprep.subr.bf16.mxu0 %v11568_v24 }
 0x929   : > { %12218 = vxpose.xlu0.b32.cont [13/16] (narrow) %v12217_v12, 64 }
 0x92a   : > { %11603 = vmatpush3.bf16.msra.mxu0 %v11570_v18 }
 0x92b   : > { %11605 = vmatprep.subr.bf16.mxu0 %v11572_v49 }
 0x92d   : > { %12220 = vxpose.xlu0.b32.cont [14/16] (narrow) %v12219_v33, 64 }
 0x92e   : > { %11607 = vmatpush3.bf16.msra.mxu0 %v11574_v52 }
 0x92f   : > { %11609 = vmatprep.subr.bf16.mxu0 %v11576_v11 }
 0x931   : > { %12222 = vxpose.xlu0.b32.cont [15/16] (narrow) %v12221_v13, 64 }
 0x932   : > { %11611 = vmatpush3.bf16.msra.mxu0 %v11578_v5 }
 0x933   : > { %11613 = vmatprep.subr.bf16.mxu0 %v11580_v47 }
 0x935   : > { %12224 = vxpose.xlu0.b32.end [16/16] (narrow) %v12223_v60, 64 }
 0x936   : > { %11615 = vmatpush3.bf16.msra.mxu0 %v11582_v31 }
 0x979   : > { %v12225_v2 = vpop.trf.xlu0 }
 0x97a   : > { %v12229_v19 = vunpack.i.h.bf16 %v12225_v2  ;;  %v12226_v24 = vunpack.i.l.bf16 %v12225_v2 }
 0x97c   : > { %2911 = vmatprep.mubr.f32.mxu0 %v12226_v24 }
 0x97d   : > { %v12230_v18 = vpop.trf.xlu0  ;;  %2912 = vmatmul.mubr.f32.vlgmr.msra.gmra.mrb[66].mxu0 %v12229_v19 }
 0x97e   : > { %v12231_v6 = vunpack.i.l.bf16 %v12230_v18  ;;  %v12234_v48 = vunpack.i.h.bf16 %v12230_v18 }
 0x980   : > { %2916 = vmatprep.mubr.f32.mxu0 %v12231_v6 }
 0x981   : > { %v12235_v46 = vpop.trf.xlu0  ;;  %2917 = vmatmul.mubr.f32.gmra.mrb[68].mxu0 %v12234_v48  ;;  %v17270_v48 = vmov 0.0|0.0  }
 0x982   : > { %v12236_v49 = vunpack.i.l.bf16 %v12235_v46  ;;  %v12239_v42 = vunpack.i.h.bf16 %v12235_v46 }
 0x984   : > { %2921 = vmatprep.mubr.f32.mxu0 %v12236_v49 }
 0x985   : > { %v12240_v52 = vpop.trf.xlu0  ;;  %2922 = vmatmul.mubr.f32.gmra.mrb[70].mxu0 %v12239_v42 }
 0x986   : > { %v12241_v38 = vunpack.i.l.bf16 %v12240_v52  ;;  %v12244_v26 = vunpack.i.h.bf16 %v12240_v52 }
 0x988   : > { %2926 = vmatprep.mubr.f32.mxu0 %v12241_v38 }
 0x989   : > { %v12245_v3 = vpop.trf.xlu0  ;;  %2927 = vmatmul.mubr.f32.gmra.mrb[72].mxu0 %v12244_v26 }
 0x98a   : > { %v12246_v63 = vunpack.i.l.bf16 %v12245_v3  ;;  %v12249_v15 = vunpack.i.h.bf16 %v12245_v3 }
 0x98c   : > { %2931 = vmatprep.mubr.f32.mxu0 %v12246_v63 }
 0x98d   : > { %v12250_v61 = vpop.trf.xlu0  ;;  %2932 = vmatmul.mubr.f32.gmra.mrb[74].mxu0 %v12249_v15 }
 0x98e   : > { %v12251_v40 = vunpack.i.l.bf16 %v12250_v61  ;;  %v12254_v11 = vunpack.i.h.bf16 %v12250_v61 }
 0x990   : > { %2936 = vmatprep.mubr.f32.mxu0 %v12251_v40 }
 0x991   : > { %v12255_v57 = vpop.trf.xlu0  ;;  %2937 = vmatmul.mubr.f32.gmra.mrb[76].mxu0 %v12254_v11 }
 0x992   : > { %v12256_v5 = vunpack.i.l.bf16 %v12255_v57  ;;  %v12259_v8 = vunpack.i.h.bf16 %v12255_v57 }
 0x994   : > { %2941 = vmatprep.mubr.f32.mxu0 %v12256_v5 }
 0x995   : > { %v12260_v47 = vpop.trf.xlu0  ;;  %2942 = vmatmul.mubr.f32.gmra.mrb[78].mxu0 %v12259_v8 }
 0x996   : > { %v12261_v31 = vunpack.i.l.bf16 %v12260_v47  ;;  %v12264_v39 = vunpack.i.h.bf16 %v12260_v47 }
 0x998   : > { %2946 = vmatprep.mubr.f32.mxu0 %v12261_v31 }
 0x999   : > { %2947 = vmatmul.mubr.f32.gmra.mrb[80].mxu0 %v12264_v39 }
 0x9ec   : > { %v9522_v45 = vpop.f32.mrb[64].mxu0 }
 0x9ed   : > { %v9523_v41 = vpop.f32.mrb[65].mxu0 }
 0x9ee   : > { %v9524_v14 = vadd.f32 %v9523_v41, %v9522_v45  ;;  %v17271_v45 = vld [vmem:[#allocation49_spill] sm:$0xff]  ;;  %v17272_v41 = vld [vmem:[#allocation15_spill] sm:$0xff] }
 0xa50   : > { %v9557_v7 = vpop.f32.mrb[66].mxu0 }
 0xa51   : > { %v9558_v12 = vpop.f32.mrb[67].mxu0 }
 0xa52   : > { %v9559_v33 = vadd.f32 %v9558_v12, %v9557_v7 }
 0xa54   : > { %v9560_v13 = vpop.f32.mrb[68].mxu0 }
 0xa55   : > { %v9561_v60 = vpop.f32.mrb[69].mxu0 }
 0xa56   : > { %v9562_v2 = vadd.f32 %v9561_v60, %v9560_v13  ;;  %v2952_v13 = vmul.f32 %v9524_v14, %v17271_v45  ;;  %v17275_v14 = vld [vmem:[#allocation17_spill] sm:$0xff] }
 0xa58   : > { %v11617_v19 = vpack.c.bf16 %v9562_v2, %v9559_v33  ;;  %v9563_v24 = vpop.f32.mrb[70].mxu0 }
 0xa59   : > { %v9564_v18 = vpop.f32.mrb[71].mxu0 }
 0xa5a   : > { %v9565_v6 = vadd.f32 %v9564_v18, %v9563_v24  ;;  %11618 = vmatpush3.bf16.msra.mxu1 %v11617_v19  ;;  %v17274_v19 = vld [vmem:[#allocation16_spill] sm:$0xff]  ;;  %v17276_v24 = vld [vmem:[#allocation18_spill] sm:$0xff]  ;;  %v17277_v18 = vld [vmem:[#allocation19_spill] sm:$0xff] }
 0xa5b   : > { %11619 = vmatprep.subr.bf16.mxu1 %v17270_v48 }
 0xa5c   : > { %v9566_v46 = vpop.f32.mrb[72].mxu0 }
 0xa5d   : > { %v9567_v49 = vpop.f32.mrb[73].mxu0 }
 0xa5e   : > { %v9568_v42 = vadd.f32 %v9567_v49, %v9566_v46  ;;  %v17279_v46 = vld [vmem:[#allocation21_spill] sm:$0xff]  ;;  %v17280_v49 = vld [vmem:[#allocation22_spill] sm:$0xff] }
 0xa60   : > { %v11620_v52 = vpack.c.bf16 %v9568_v42, %v9565_v6  ;;  %v9569_v38 = vpop.f32.mrb[74].mxu0  ;;  %v17278_v6 = vld [vmem:[#allocation20_spill] sm:$0xff]  ;;  %v17281_v42 = vld [vmem:[#allocation23_spill] sm:$0xff] }
 0xa61   : > { %v9570_v26 = vpop.f32.mrb[75].mxu0 }
 0xa62   : > { %v9571_v3 = vadd.f32 %v9570_v26, %v9569_v38  ;;  %11621 = vmatpush3.bf16.msra.mxu1 %v11620_v52  ;;  %v17282_v52 = vld [vmem:[#allocation24_spill] sm:$0xff]  ;;  %v17283_v38 = vld [vmem:[#allocation25_spill] sm:$0xff]  ;;  %v17284_v26 = vld [vmem:[#allocation26_spill] sm:$0xff] }
 0xa63   : > { %11622 = vmatprep.subr.bf16.mxu1 %v17270_v48 }
 0xa64   : > { %v9572_v63 = vpop.f32.mrb[76].mxu0 }
 0xa65   : > { %v9573_v15 = vpop.f32.mrb[77].mxu0 }
 0xa66   : > { %v9574_v61 = vadd.f32 %v9573_v15, %v9572_v63  ;;  %v17286_v63 = vld [vmem:[#allocation28_spill] sm:$0xff]  ;;  %v17287_v15 = vld [vmem:[#allocation29_spill] sm:$0xff] }
 0xa68   : > { %v11623_v40 = vpack.c.bf16 %v9574_v61, %v9571_v3  ;;  %v9575_v11 = vpop.f32.mrb[78].mxu0  ;;  %v17285_v3 = vld [vmem:[#allocation27_spill] sm:$0xff]  ;;  %v17288_v61 = vld [vmem:[#allocation30_spill] sm:$0xff] }
 0xa69   : > { %v9576_v57 = vpop.f32.mrb[79].mxu0 }
 0xa6a   : > { %v9577_v5 = vadd.f32 %v9576_v57, %v9575_v11  ;;  %11624 = vmatpush3.bf16.msra.mxu1 %v11623_v40  ;;  %v17289_v40 = vld [vmem:[#allocation31_spill] sm:$0xff]  ;;  %v17290_v11 = vld [vmem:[#allocation32_spill] sm:$0xff]  ;;  %v17291_v57 = vld [vmem:[#allocation33_spill] sm:$0xff] }
 0xa6b   : > { %11625 = vmatprep.subr.bf16.mxu1 %v17270_v48 }
 0xa6c   : > { %v9578_v8 = vpop.f32.mrb[80].mxu0 }
 0xa6d   : > { %v9579_v47 = vpop.f32.mrb[81].mxu0 }
 0xa6e   : > { %v9580_v31 = vadd.f32 %v9579_v47, %v9578_v8  ;;  %v17293_v8 = vld [vmem:[#allocation35_spill] sm:$0xff]  ;;  %v17294_v47 = vld [vmem:[#allocation36_spill] sm:$0xff] }
 0xa70   : > { %v11626_v39 = vpack.c.bf16 %v9580_v31, %v9577_v5  ;;  %v17292_v5 = vld [vmem:[#allocation34_spill] sm:$0xff]  ;;  %v17295_v31 = vld [vmem:[#allocation37_spill] sm:$0xff] }
 0xa72   : > { %11627 = vmatpush3.bf16.msra.mxu1 %v11626_v39  ;;  %v17296_v39 = vld [vmem:[#allocation38_spill] sm:$0xff] }
 0xa75   : > { %10726 = vmatmul.mubr.msk.f32.vlgmr.msra.gmra.mrb[100].mxu1 %vm662_vm2, %v17271_v45  ;;  %v17297_v45 = vld [vmem:[#allocation39_spill] sm:$0xff] }
 0xa76   : > { %10730 = vmatprep.mubr.msk.f32.mxu1 %vm304_vm1, %v17272_v41 }
 0xb48   : > { %v3021_v7 = vpop.f32.mrb[100].mxu1 }
 0xb49   : > { %v3022_v12 = vadd.f32 1e-06, %v3021_v7  ;;  %v10727_v33 = vpop.f32.mrb[101].mxu1  ;;  %v17298_v7 = vld [vmem:[#allocation40_spill] sm:$0xff] }
 0xb4a   : > { %v17300_v33 = vld [vmem:[#allocation42_spill] sm:$0xff] }
 0xb4b   : > { %12812 = vrcp.f32 %v3022_v12  ;;  %v17299_v12 = vld [vmem:[#allocation41_spill] sm:$0xff] }
 0xb55   : > { %v12813_v60 = vpop.eup %12812 }
 0xb56   : > { %v14822_v2 = vmul.f32 %v12813_v60, %v2952_v13  ;;  %v17301_v13 = vld [vmem:[#allocation43_spill] sm:$0xff]  ;;  %v17302_v60 = vld [vmem:[#allocation44_spill] sm:$0xff] }
 0xb58   : > { %17273 = vst [vmem:[#allocation51_spill] sm:$0xff] %v14822_v2  ;;  %3255 = vxpose.xlu1.b32.start.end [1/1] (short) (narrow) %v14822_v2, 64  ;;  %10728 = vmatprep.subr.msk.mxu1 %vm401_vm0, %v14822_v2 }
 0xb59   : > { %10778 = vmatprep.subr.msk.mxu0 %vm401_vm0, %v14822_v2  ;;  %10729 = vmatpush3.msk.msra.mxu1 %vm401_vm0, %v14822_v2 }
 0xb5a   : > { %10779 = vmatpush3.msk.msra.mxu0 %vm401_vm0, %v14822_v2  ;;  %10731 = vmatmul.mubr.msk.f32.vlgmr.msra.gmra.mrb[102].mxu1 %vm304_vm1, %v17274_v19 }
 0xb5b   : > { %10733 = vmatprep.mubr.msk.f32.mxu1 %vm304_vm1, %v17275_v14 }
 0xb5e   : > { %10734 = vmatmul.mubr.msk.f32.gmra.mrb[104].mxu1 %vm304_vm1, %v17276_v24 }
 0xb5f   : > { %10736 = vmatprep.mubr.msk.f32.mxu1 %vm304_vm1, %v17277_v18 }
 0xb62   : > { %10737 = vmatmul.mubr.msk.f32.gmra.mrb[106].mxu1 %vm304_vm1, %v17278_v6 }
 0xb63   : > { %10739 = vmatprep.mubr.msk.f32.mxu1 %vm304_vm1, %v17279_v46 }
 0xb66   : > { %10740 = vmatmul.mubr.msk.f32.gmra.mrb[108].mxu1 %vm304_vm1, %v17280_v49 }
 0xb67   : > { %10742 = vmatprep.mubr.msk.f32.mxu1 %vm304_vm1, %v17281_v42 }
 0xb6a   : > { %10743 = vmatmul.mubr.msk.f32.gmra.mrb[110].mxu1 %vm304_vm1, %v17282_v52 }
 0xb6b   : > { %10745 = vmatprep.mubr.msk.f32.mxu1 %vm304_vm1, %v17283_v38 }
 0xb6e   : > { %10746 = vmatmul.mubr.msk.f32.gmra.mrb[112].mxu1 %vm304_vm1, %v17284_v26 }
 0xb6f   : > { %10748 = vmatprep.mubr.msk.f32.mxu1 %vm304_vm1, %v17285_v3 }
 0xb72   : > { %10749 = vmatmul.mubr.msk.f32.gmra.mrb[114].mxu1 %vm304_vm1, %v17286_v63 }
 0xb73   : > { %10751 = vmatprep.mubr.msk.f32.mxu1 %vm304_vm1, %v17287_v15 }
 0xb76   : > { %10752 = vmatmul.mubr.msk.f32.gmra.mrb[116].mxu1 %vm304_vm1, %v17288_v61 }
 0xb77   : > { %10754 = vmatprep.mubr.msk.f32.mxu1 %vm304_vm1, %v17289_v40 }
 0xb7a   : > { %10755 = vmatmul.mubr.msk.f32.gmra.mrb[118].mxu1 %vm304_vm1, %v17290_v11 }
 0xb7b   : > { %10757 = vmatprep.mubr.msk.f32.mxu1 %vm304_vm1, %v17291_v57 }
 0xb7e   : > { %10758 = vmatmul.mubr.msk.f32.gmra.mrb[120].mxu1 %vm304_vm1, %v17292_v5 }
 0xb7f   : > { %10760 = vmatprep.mubr.msk.f32.mxu1 %vm304_vm1, %v17293_v8 }
 0xb82   : > { %10761 = vmatmul.mubr.msk.f32.gmra.mrb[122].mxu1 %vm304_vm1, %v17294_v47 }
 0xb83   : > { %10763 = vmatprep.mubr.msk.f32.mxu1 %vm304_vm1, %v17295_v31  ;;  %v17303_v31 = vld [vmem:[#allocation45_spill] sm:$0xff] }
 0xb86   : > { %10764 = vmatmul.mubr.msk.f32.gmra.mrb[124].mxu1 %vm304_vm1, %v17296_v39  ;;  %v17304_v39 = vld [vmem:[#allocation46_spill] sm:$0xff] }
 0xb87   : > { %10766 = vmatprep.mubr.msk.f32.mxu1 %vm304_vm1, %v17297_v45  ;;  %v17305_v45 = vld [vmem:[#allocation14_spill] sm:$0xff] }
 0xb8a   : > { %10767 = vmatmul.mubr.msk.f32.gmra.mrb[126].mxu1 %vm304_vm1, %v17298_v7 }
 0xb8b   : > { %10769 = vmatprep.mubr.msk.f32.mxu1 %vm304_vm1, %v17299_v12 }
 0xb8e   : > { %10770 = vmatmul.mubr.msk.f32.gmra.mrb[128].mxu1 %vm304_vm1, %v17300_v33 }
 0xb8f   : > { %10772 = vmatprep.mubr.msk.f32.mxu1 %vm304_vm1, %v17301_v13 }
 0xb92   : > { %10773 = vmatmul.mubr.msk.f32.gmra.mrb[130].mxu1 %vm304_vm1, %v17302_v60 }
 0xb93   : > { %10775 = vmatprep.mubr.msk.f32.mxu1 %vm304_vm1, %v17303_v31 }
 0xb96   : > { %10776 = vmatmul.mubr.msk.f32.gmra.mrb[132].mxu1 %vm304_vm1, %v17304_v39 }
 0xb97   : > { %3897 = vmatprep.mubr.f32.mxu1 %v17305_v45 }
 0xbd8   : > { %v3271_v7 = vpop.trf.xlu1 }
 0xbd9   : > { %10780 = vmatprep.mubr.msk.f32.mxu0 %vm304_vm1, %v3271_v7 }
 0xbdc   : > { %v3272_v12 = vpop.trf.xlu1 }
 0xbdd   : > { %10781 = vmatmul.mubr.msk.f32.vlgmr.msra.gmra.mrb[82].mxu0 %vm304_vm1, %v3272_v12 }
 0xbe0   : > { %v3273_v33 = vpop.trf.xlu1 }
 0xbe1   : > { %10783 = vmatprep.mubr.msk.f32.mxu0 %vm304_vm1, %v3273_v33 }
 0xbe4   : > { %v3274_v13 = vpop.trf.xlu1 }
 0xbe5   : > { %10784 = vmatmul.mubr.msk.f32.gmra.mrb[84].mxu0 %vm304_vm1, %v3274_v13 }
 0xbe8   : > { %v3275_v60 = vpop.trf.xlu1 }
 0xbe9   : > { %10786 = vmatprep.mubr.msk.f32.mxu0 %vm304_vm1, %v3275_v60 }
 0xbec   : > { %v3276_v31 = vpop.trf.xlu1 }
 0xbed   : > { %10787 = vmatmul.mubr.msk.f32.gmra.mrb[86].mxu0 %vm304_vm1, %v3276_v31 }
 0xbf0   : > { %v3277_v39 = vpop.trf.xlu1 }
 0xbf1   : > { %10789 = vmatprep.mubr.msk.f32.mxu0 %vm304_vm1, %v3277_v39 }
 0xbf4   : > { %v3278_v45 = vpop.trf.xlu1 }
 0xbf5   : > { %10790 = vmatmul.mubr.msk.f32.gmra.mrb[88].mxu0 %vm304_vm1, %v3278_v45 }
 0xbf6   : > { %10808 = vmatprep.mubr.msk.f32.mxu0 %vm662_vm2, %v14595_v37 }
 0xc2d   : > { %v14906_v7 = vpop.f32.mrb[102].mxu1 }
 0xc2e   : > { %v14908_v12 = vpop.f32.mrb[103].mxu1 }
 0xc31   : > { %v14910_v33 = vpop.f32.mrb[104].mxu1 }
 0xc32   : > { %v14912_v13 = vpop.f32.mrb[105].mxu1 }
 0xc35   : > { %v14914_v60 = vpop.f32.mrb[106].mxu1 }
 0xc36   : > { %v14916_v31 = vpop.f32.mrb[107].mxu1 }
 0xc39   : > { %v14918_v47 = vpop.f32.mrb[108].mxu1 }
 0xc3a   : > { %v14920_v39 = vpop.f32.mrb[109].mxu1 }
 0xc3d   : > { %v14922_v45 = vpop.f32.mrb[110].mxu1 }
 0xc3e   : > { %v14924_v8 = vpop.f32.mrb[111].mxu1 }
 0xc41   : > { %v14926_v5 = vpop.f32.mrb[112].mxu1 }
 0xc42   : > { %v14928_v57 = vpop.f32.mrb[113].mxu1 }
 0xc45   : > { %v14930_v11 = vpop.f32.mrb[114].mxu1 }
 0xc46   : > { %v14932_v40 = vpop.f32.mrb[115].mxu1 }
 0xc49   : > { %v14934_v61 = vpop.f32.mrb[116].mxu1 }
 0xc4a   : > { %v14936_v15 = vpop.f32.mrb[117].mxu1 }
 0xc4d   : > { %v14938_v63 = vpop.f32.mrb[118].mxu1 }
 0xc4e   : > { %v14940_v3 = vpop.f32.mrb[119].mxu1 }
 0xc51   : > { %v14942_v26 = vpop.f32.mrb[120].mxu1 }
 0xc52   : > { %v14944_v38 = vpop.f32.mrb[121].mxu1 }
 0xc53   : > { %17306 = vst [vmem:[#allocation52_spill] sm:$0xff] %v14944_v38 }
 0xc55   : > { %v14946_v52 = vpop.f32.mrb[122].mxu1 }
 0xc56   : > { %17307 = vst [vmem:[#allocation53_spill] sm:$0xff] %v14946_v52  ;;  %v14948_v42 = vpop.f32.mrb[123].mxu1 }
 0xc57   : > { %17308 = vst [vmem:[#allocation54_spill] sm:$0xff] %v14948_v42 }
 0xc59   : > { %v14950_v49 = vpop.f32.mrb[124].mxu1 }
 0xc5a   : > { %17309 = vst [vmem:[#allocation55_spill] sm:$0xff] %v14950_v49  ;;  %v14952_v46 = vpop.f32.mrb[125].mxu1 }
 0xc5b   : > { %17310 = vst [vmem:[#allocation56_spill] sm:$0xff] %v14952_v46 }
 0xc5d   : > { %v14954_v6 = vpop.f32.mrb[126].mxu1 }
 0xc5e   : > { %17311 = vst [vmem:[#allocation57_spill] sm:$0xff] %v14954_v6  ;;  %v14956_v18 = vpop.f32.mrb[127].mxu1 }
 0xc5f   : > { %17312 = vst [vmem:[#allocation58_spill] sm:$0xff] %v14956_v18 }
 0xc61   : > { %v14958_v24 = vpop.f32.mrb[128].mxu1 }
 0xc62   : > { %17313 = vst [vmem:[#allocation59_spill] sm:$0xff] %v14958_v24  ;;  %v14960_v14 = vpop.f32.mrb[129].mxu1 }
 0xc63   : > { %17314 = vst [vmem:[#allocation60_spill] sm:$0xff] %v14960_v14 }
 0xc65   : > { %v14962_v19 = vpop.f32.mrb[130].mxu1 }
 0xc66   : > { %17315 = vst [vmem:[#allocation61_spill] sm:$0xff] %v14962_v19  ;;  %v14964_v41 = vpop.f32.mrb[131].mxu1 }
 0xc67   : > { %17316 = vst [vmem:[#allocation47_spill] sm:$0xff] %v14964_v41 }
 0xc69   : > { %v14966_v2 = vpop.f32.mrb[132].mxu1 }
 0xc6a   : > { %17317 = vst [vmem:[#allocation62_spill] sm:$0xff] %v14966_v2  ;;  %v14968_v48 = vpop.f32.mrb[133].mxu1 }
 0xc6b   : > { %17318 = vst [vmem:[#allocation48_spill] sm:$0xff] %v14968_v48  ;;  %v3417_v48 = vmul.f32 %v14906_v7, %v14593_v59 }
 0xcb0   : > { %v10782_v42 = vpop.f32.mrb[82].mxu0 }
 0xcb1   : > { %v3377_v49 = vpop.f32.mrb[83].mxu0 }
 0xcb2   : > { %v11628_v52 = vpack.c.bf16 %v10782_v42, %v3377_v49 }
 0xcb4   : > { %11629 = vmatprep.subr.bf16.mxu0 %v11628_v52 }
 0xcb5   : > { %11631 = vmatpush3.bf16.msra.mxu0 %v11628_v52 }
 0xcb8   : > { %v10785_v6 = vpop.f32.mrb[84].mxu0 }
 0xcb9   : > { %v3387_v46 = vpop.f32.mrb[85].mxu0 }
 0xcba   : > { %v11632_v18 = vpack.c.bf16 %v10785_v6, %v3387_v46 }
 0xcbc   : > { %11633 = vmatprep.subr.bf16.mxu0 %v11632_v18 }
 0xcbd   : > { %11635 = vmatpush3.bf16.msra.mxu0 %v11632_v18 }
 0xcc0   : > { %v10788_v24 = vpop.f32.mrb[86].mxu0 }
 0xcc1   : > { %v3397_v14 = vpop.f32.mrb[87].mxu0 }
 0xcc2   : > { %v11636_v38 = vpack.c.bf16 %v10788_v24, %v3397_v14 }
 0xcc4   : > { %11637 = vmatprep.subr.bf16.mxu0 %v11636_v38 }
 0xcc5   : > { %11639 = vmatpush3.bf16.msra.mxu0 %v11636_v38 }
 0xcc8   : > { %v10791_v41 = vpop.f32.mrb[88].mxu0 }
 0xcc9   : > { %v3407_v19 = vpop.f32.mrb[89].mxu0 }
 0xcca   : > { %v11640_v2 = vpack.c.bf16 %v10791_v41, %v3407_v19 }
 0xccc   : > { %11641 = vmatprep.subr.bf16.mxu0 %v11640_v2 }
 0xccd   : > { %11643 = vmatpush3.bf16.msra.mxu0 %v11640_v2 }
 0xcd0   : > { %10809 = vmatmul.mubr.msk.f32.vlgmr.msra.gmra.mrb[90].mxu0 %vm662_vm2, %v14593_v59 }
 0xcd1   : > { %10811 = vmatprep.mubr.msk.f32.mxu0 %vm662_vm2, %v14603_v22 }
 0xcd4   : > { %10812 = vmatmul.mubr.msk.f32.gmra.mrb[92].mxu0 %vm662_vm2, %v14601_v43 }
 0xcd5   : > { %10814 = vmatprep.mubr.msk.f32.mxu0 %vm662_vm2, %v14611_v23 }
 0xcd8   : > { %10815 = vmatmul.mubr.msk.f32.gmra.mrb[94].mxu0 %vm662_vm2, %v14609_v29 }
 0xcd9   : > { %10817 = vmatprep.mubr.msk.f32.mxu0 %vm662_vm2, %v14619_v21 }
 0xcdc   : > { %10818 = vmatmul.mubr.msk.f32.gmra.mrb[96].mxu0 %vm662_vm2, %v14617_v56 }
 0xcdd   : > { %10820 = vmatprep.mubr.msk.f32.mxu0 %vm662_vm2, %v14627_v62 }
 0xce0   : > { %10821 = vmatmul.mubr.msk.f32.gmra.mrb[98].mxu0 %vm662_vm2, %v14625_v53 }
 0xce1   : > { %10823 = vmatprep.mubr.msk.f32.mxu0 %vm662_vm2, %v14635_v4 }
 0xce4   : > { %10824 = vmatmul.mubr.msk.f32.gmra.mrb[100].mxu0 %vm662_vm2, %v14633_v27 }
 0xce5   : > { %10826 = vmatprep.mubr.msk.f32.mxu0 %vm662_vm2, %v14643_v28 }
 0xce8   : > { %10827 = vmatmul.mubr.msk.f32.gmra.mrb[102].mxu0 %vm662_vm2, %v14641_v16 }
 0xce9   : > { %10829 = vmatprep.mubr.msk.f32.mxu0 %vm662_vm2, %v14651_v25 }
 0xcec   : > { %10830 = vmatmul.mubr.msk.f32.gmra.mrb[104].mxu0 %vm662_vm2, %v14649_v50 }
 0xced   : > { %10832 = vmatprep.mubr.msk.f32.mxu0 %vm662_vm2, %v14659_v32 }
 0xcf0   : > { %10833 = vmatmul.mubr.msk.f32.gmra.mrb[106].mxu0 %vm662_vm2, %v14657_v55 }
 0xcf1   : > { %10835 = vmatprep.mubr.msk.f32.mxu0 %vm662_vm2, %v14678_v10 }
 0xcf4   : > { %10836 = vmatmul.mubr.msk.f32.gmra.mrb[108].mxu0 %vm662_vm2, %v14675_v9 }
 0xcf5   : > { %10838 = vmatprep.mubr.msk.f32.mxu0 %vm662_vm2, %v14698_v36 }
 0xcf8   : > { %10839 = vmatmul.mubr.msk.f32.gmra.mrb[110].mxu0 %vm662_vm2, %v14695_v34 }
 0xcf9   : > { %10841 = vmatprep.mubr.msk.f32.mxu0 %vm662_vm2, %v14718_v54 }
 0xcfc   : > { %10842 = vmatmul.mubr.msk.f32.gmra.mrb[112].mxu0 %vm662_vm2, %v14715_v51 }
 0xcfd   : > { %10844 = vmatprep.mubr.msk.f32.mxu0 %vm662_vm2, %v14738_v1 }
 0xd00   : > { %10845 = vmatmul.mubr.msk.f32.gmra.mrb[114].mxu0 %vm662_vm2, %v14735_v30 }
 0xd01   : > { %10847 = vmatprep.mubr.msk.f32.mxu0 %vm662_vm2, %v14753_v20 }
 0xd04   : > { %10848 = vmatmul.mubr.msk.f32.gmra.mrb[116].mxu0 %vm662_vm2, %v14751_v44 }
 0xd05   : > { %10850 = vmatprep.mubr.msk.f32.mxu0 %vm662_vm2, %v14767_v17 }
 0xd08   : > { %10851 = vmatmul.mubr.msk.f32.gmra.mrb[118].mxu0 %vm662_vm2, %v14765_v35 }
 0xd09   : > { %10853 = vmatprep.mubr.msk.f32.mxu0 %vm662_vm2, %v14781_v0 }
 0xd0c   : > { %10854 = vmatmul.mubr.msk.f32.gmra.mrb[120].mxu0 %vm662_vm2, %v14779_v58 }
 0xda3   : > { %v10810_v41 = vpop.f32.mrb[90].mxu0 }
 0xda4   : > { %v3616_v2 = vadd.f32 1e-06, %v10810_v41  ;;  %v3610_v19 = vpop.f32.mrb[91].mxu0 }
 0xda5   : > { %v3611_v14 = vadd.f32 1e-06, %v3610_v19 }
 0xda6   : > { %12814 = vrcp.f32 %v3616_v2  ;;  %v3416_v2 = vmul.f32 %v14908_v12, %v14595_v37 }
 0xda7   : > { %12816 = vrcp.f32 %v3611_v14  ;;  %v10813_v24 = vpop.f32.mrb[92].mxu0 }
 0xda8   : > { %v3626_v18 = vadd.f32 1e-06, %v10813_v24  ;;  %v3620_v6 = vpop.f32.mrb[93].mxu0 }
 0xda9   : > { %v3621_v46 = vadd.f32 1e-06, %v3620_v6 }
 0xdaa   : > { %12818 = vrcp.f32 %v3626_v18 }
 0xdab   : > { %12820 = vrcp.f32 %v3621_v46  ;;  %v10816_v49 = vpop.f32.mrb[94].mxu0 }
 0xdac   : > { %v3636_v42 = vadd.f32 1e-06, %v10816_v49  ;;  %v3630_v52 = vpop.f32.mrb[95].mxu0  ;;  %v3419_v49 = vmul.f32 %v14910_v33, %v14601_v43 }
 0xdad   : > { %v3631_v38 = vadd.f32 1e-06, %v3630_v52 }
 0xdae   : > { %12822 = vrcp.f32 %v3636_v42  ;;  %v3418_v42 = vmul.f32 %v14912_v13, %v14603_v22 }
 0xdaf   : > { %12824 = vrcp.f32 %v3631_v38  ;;  %v10819_v41 = vpop.f32.mrb[96].mxu0 }
 0xdb0   : > { %v12815_v0 = vpop.eup %12814  ;;  %v3646_v19 = vadd.f32 1e-06, %v10819_v41  ;;  %v3640_v14 = vpop.f32.mrb[97].mxu0  ;;  %v3421_v41 = vmul.f32 %v14914_v60, %v14609_v29 }
 0xdb1   : > { %v12817_v24 = vpop.eup %12816  ;;  %v15036_v6 = vmul.f32 %v12815_v0, %v3417_v48  ;;  %v3641_v18 = vadd.f32 1e-06, %v3640_v14 }
 0xdb2   : > { %12826 = vrcp.f32 %v3646_v19  ;;  %v15038_v46 = vmul.f32 %v12817_v24, %v3416_v2  ;;  %v3420_v2 = vmul.f32 %v14916_v31, %v14611_v23 }
 0xdb3   : > { %12828 = vrcp.f32 %v3641_v18  ;;  %v10822_v59 = vpop.f32.mrb[98].mxu0 }
 0xdb4   : > { %v12819_v7 = vpop.eup %12818  ;;  %v3656_v52 = vadd.f32 1e-06, %v10822_v59  ;;  %v3650_v37 = vpop.f32.mrb[99].mxu0  ;;  %v3422_v59 = vmul.f32 %v14920_v39, %v14619_v21 }
 0xdb5   : > { %v12821_v12 = vpop.eup %12820  ;;  %v15044_v38 = vmul.f32 %v12819_v7, %v3419_v49  ;;  %v3651_v0 = vadd.f32 1e-06, %v3650_v37  ;;  %v3423_v49 = vmul.f32 %v14918_v47, %v14617_v56 }
 0xdb6   : > { %v15046_v48 = vmul.f32 %v12821_v12, %v3418_v42  ;;  %12830 = vrcp.f32 %v3656_v52  ;;  %v3425_v12 = vmul.f32 %v14922_v45, %v14625_v53 }
 0xdb7   : > { %12832 = vrcp.f32 %v3651_v0  ;;  %v10825_v43 = vpop.f32.mrb[100].mxu0  ;;  %v3424_v0 = vmul.f32 %v14924_v8, %v14627_v62 }
 0xdb8   : > { %v12823_v33 = vpop.eup %12822  ;;  %v3666_v19 = vadd.f32 1e-06, %v10825_v43  ;;  %v3660_v22 = vpop.f32.mrb[101].mxu0 }
 0xdb9   : > { %v12825_v13 = vpop.eup %12824  ;;  %v15052_v14 = vmul.f32 %v12823_v33, %v3421_v41  ;;  %v3661_v24 = vadd.f32 1e-06, %v3660_v22  ;;  %v3426_v22 = vmul.f32 %v14928_v57, %v14635_v4 }
 0xdba   : > { %v15054_v18 = vmul.f32 %v12825_v13, %v3420_v2  ;;  %12834 = vrcp.f32 %v3666_v19  ;;  %v3427_v19 = vmul.f32 %v14926_v5, %v14633_v27 }
 0xdbb   : > { %12836 = vrcp.f32 %v3661_v24  ;;  %v10828_v29 = vpop.f32.mrb[102].mxu0 }
 0xdbc   : > { %v12827_v60 = vpop.eup %12826  ;;  %v3676_v7 = vadd.f32 1e-06, %v10828_v29  ;;  %v3670_v23 = vpop.f32.mrb[103].mxu0 }
 0xdbd   : > { %v12829_v31 = vpop.eup %12828  ;;  %v15060_v42 = vmul.f32 %v12827_v60, %v3423_v49  ;;  %v3671_v52 = vadd.f32 1e-06, %v3670_v23  ;;  %v3429_v60 = vmul.f32 %v14930_v11, %v14641_v16 }
 0xdbe   : > { %v15062_v37 = vmul.f32 %v12829_v31, %v3422_v59  ;;  %12838 = vrcp.f32 %v3676_v7  ;;  %v3428_v59 = vmul.f32 %v14932_v40, %v14643_v28 }
 0xdbf   : > { %12840 = vrcp.f32 %v3671_v52  ;;  %v10831_v56 = vpop.f32.mrb[104].mxu0 }
 0xdc0   : > { %v12831_v47 = vpop.eup %12830  ;;  %v3686_v41 = vadd.f32 1e-06, %v10831_v56  ;;  %v3680_v21 = vpop.f32.mrb[105].mxu0  ;;  %v3430_v56 = vmul.f32 %v14936_v15, %v14651_v25 }
 0xdc1   : > { %v12833_v39 = vpop.eup %12832  ;;  %v15068_v43 = vmul.f32 %v12831_v47, %v3425_v12  ;;  %v3681_v33 = vadd.f32 1e-06, %v3680_v21  ;;  %v3431_v12 = vmul.f32 %v14934_v61, %v14649_v50 }
 0xdc2   : > { %v15070_v2 = vmul.f32 %v12833_v39, %v3424_v0  ;;  %12842 = vrcp.f32 %v3686_v41  ;;  %v3433_v39 = vmul.f32 %v14938_v63, %v14657_v55 }
 0xdc3   : > { %12844 = vrcp.f32 %v3681_v33  ;;  %v10834_v53 = vpop.f32.mrb[106].mxu0  ;;  %v3432_v33 = vmul.f32 %v14940_v3, %v14659_v32 }
 0xdc4   : > { %v12835_v45 = vpop.eup %12834  ;;  %v3696_v13 = vadd.f32 1e-06, %v10834_v53  ;;  %v3690_v62 = vpop.f32.mrb[107].mxu0 }
 0xdc5   : > { %v12837_v8 = vpop.eup %12836  ;;  %v15076_v24 = vmul.f32 %v12835_v45, %v3427_v19  ;;  %v3691_v49 = vadd.f32 1e-06, %v3690_v62  ;;  %v17319_v62 = vld [vmem:[#allocation52_spill] sm:$0xff] }
 0xdc6   : > { %v15078_v29 = vmul.f32 %v12837_v8, %v3426_v22  ;;  %12846 = vrcp.f32 %v3696_v13  ;;  %v3435_v13 = vmul.f32 %v14942_v26, %v14675_v9  ;;  %v3434_v8 = vmul.f32 %v17319_v62, %v14678_v10  ;;  %v17320_v10 = vld [vmem:[#allocation53_spill] sm:$0xff] }
 0xdc7   : > { %12848 = vrcp.f32 %v3691_v49  ;;  %v10837_v27 = vpop.f32.mrb[108].mxu0 }
 0xdc8   : > { %v12839_v5 = vpop.eup %12838  ;;  %v3706_v7 = vadd.f32 1e-06, %v10837_v27  ;;  %v3700_v4 = vpop.f32.mrb[109].mxu0 }
 0xdc9   : > { %v12841_v57 = vpop.eup %12840  ;;  %v15084_v23 = vmul.f32 %v12839_v5, %v3429_v60  ;;  %v3701_v31 = vadd.f32 1e-06, %v3700_v4 }
 0xdca   : > { %v15086_v52 = vmul.f32 %v12841_v57, %v3428_v59  ;;  %12850 = vrcp.f32 %v3706_v7  ;;  %v11646_v59 = vpack.c.bf16 %v15036_v6, %v15038_v46  ;;  %v3437_v7 = vmul.f32 %v17320_v10, %v14695_v34 }
 0xdcb   : > { %12852 = vrcp.f32 %v3701_v31  ;;  %v10840_v16 = vpop.f32.mrb[110].mxu0  ;;  %v17321_v31 = vld [vmem:[#allocation54_spill] sm:$0xff]  ;;  %v11650_v34 = vpack.c.bf16 %v15044_v38, %v15046_v48 }
 0xdcc   : > { %v12843_v11 = vpop.eup %12842  ;;  %v3716_v47 = vadd.f32 1e-06, %v10840_v16  ;;  %v3710_v28 = vpop.f32.mrb[111].mxu0 }
 0xdcd   : > { %v12845_v40 = vpop.eup %12844  ;;  %v15092_v0 = vmul.f32 %v12843_v11, %v3431_v12  ;;  %v3711_v41 = vadd.f32 1e-06, %v3710_v28  ;;  %v3436_v12 = vmul.f32 %v17321_v31, %v14698_v36 }
 0xdce   : > { %v15094_v21 = vmul.f32 %v12845_v40, %v3430_v56  ;;  %12854 = vrcp.f32 %v3716_v47 }
 0xdcf   : > { %12856 = vrcp.f32 %v3711_v41  ;;  %v10843_v50 = vpop.f32.mrb[112].mxu0 }
 0xdd0   : > { %v12847_v61 = vpop.eup %12846  ;;  %v3726_v19 = vadd.f32 1e-06, %v10843_v50  ;;  %v3720_v25 = vpop.f32.mrb[113].mxu0 }
 0xdd1   : > { %v12849_v15 = vpop.eup %12848  ;;  %v3721_v53 = vadd.f32 1e-06, %v3720_v25  ;;  %v15100_v45 = vmul.f32 %v12847_v61, %v3433_v39  ;;  %v17322_v39 = vld [vmem:[#allocation55_spill] sm:$0xff] }
 0xdd2   : > { %12858 = vrcp.f32 %v3726_v19  ;;  %v15102_v22 = vmul.f32 %v12849_v15, %v3432_v33  ;;  %v3439_v50 = vmul.f32 %v17322_v39, %v14715_v51  ;;  %v17323_v19 = vld [vmem:[#allocation56_spill] sm:$0xff]  ;;  %v11654_v51 = vpack.c.bf16 %v15052_v14, %v15054_v18 }
 0xdd3   : > { %12860 = vrcp.f32 %v3721_v53  ;;  %v10846_v55 = vpop.f32.mrb[114].mxu0  ;;  %v12267_v56 = vpack.i.bf16 %v15036_v6, %v15100_v45  ;;  %v3438_v25 = vmul.f32 %v17323_v19, %v14718_v54 }
 0xdd4   : > { %v12851_v63 = vpop.eup %12850  ;;  %v3736_v49 = vadd.f32 1e-06, %v10846_v55  ;;  %v3730_v32 = vpop.f32.mrb[115].mxu0  ;;  %v12265_v3 = vpack.i.bf16 %v15038_v46, %v15102_v22  ;;  %v11644_v60 = vpack.c.bf16 %v15100_v45, %v15102_v22 }
 0xdd5   : > { %v12853_v27 = vpop.eup %12852  ;;  %v3731_v5 = vadd.f32 1e-06, %v3730_v32  ;;  %v15114_v9 = vmul.f32 %v12851_v63, %v3435_v13 }
 0xdd6   : > { %12862 = vrcp.f32 %v3736_v49  ;;  %12266 = vxpose.xlu1.b32.start [1/16] (narrow) %v12265_v3, 64  ;;  %11645 = vmatprep.subr.bf16.mxu1 %v11644_v60  ;;  %v15116_v26 = vmul.f32 %v12853_v27, %v3434_v8  ;;  %v17324_v49 = vld [vmem:[#allocation57_spill] sm:$0xff]  ;;  %v17325_v27 = vld [vmem:[#allocation58_spill] sm:$0xff] }
 0xdd7   : > { %12864 = vrcp.f32 %v3731_v5  ;;  %11677 = vmatprep.subr.bf16.mxu0 %v11644_v60  ;;  %v10849_v4 = vpop.f32.mrb[116].mxu0  ;;  %11647 = vmatpush3.bf16.msra.mxu1 %v11646_v59  ;;  %v3441_v32 = vmul.f32 %v17324_v49, %v14735_v30  ;;  %v3440_v5 = vmul.f32 %v17325_v27, %v14738_v1  ;;  %v11658_v30 = vpack.c.bf16 %v15060_v42, %v15062_v37 }
 0xdd8   : > { %v12855_v57 = vpop.eup %12854  ;;  %v3746_v16 = vadd.f32 1e-06, %v10849_v4  ;;  %11679 = vmatpush3.bf16.msra.mxu0 %v11646_v59  ;;  %v3740_v11 = vpop.f32.mrb[117].mxu0  ;;  %v11648_v47 = vpack.c.bf16 %v15114_v9, %v15116_v26  ;;  %v12269_v13 = vpack.i.bf16 %v15046_v48, %v15116_v26 }
 0xdd9   : > { %v12857_v28 = vpop.eup %12856  ;;  %v3741_v40 = vadd.f32 1e-06, %v3740_v11  ;;  %v15128_v41 = vmul.f32 %v12855_v57, %v3437_v7  ;;  %v12271_v7 = vpack.i.bf16 %v15044_v38, %v15114_v9 }
 0xdda   : > { %12866 = vrcp.f32 %v3746_v16  ;;  %12268 = vxpose.xlu1.b32.cont [2/16] (narrow) %v12267_v56, 64  ;;  %11649 = vmatprep.subr.bf16.mxu1 %v11648_v47  ;;  %v15130_v36 = vmul.f32 %v12857_v28, %v3436_v12  ;;  %v17326_v16 = vld [vmem:[#allocation59_spill] sm:$0xff] }
 0xddb   : > { %12868 = vrcp.f32 %v3741_v40  ;;  %11681 = vmatprep.subr.bf16.mxu0 %v11648_v47  ;;  %v10852_v61 = vpop.f32.mrb[118].mxu0  ;;  %11651 = vmatpush3.bf16.msra.mxu1 %v11650_v34  ;;  %v3443_v11 = vmul.f32 %v17326_v16, %v14751_v44  ;;  %v17327_v47 = vld [vmem:[#allocation60_spill] sm:$0xff]  ;;  %v17333_v16 = vmov 0.0|0.0  }
 0xddc   : > { %v12859_v33 = vpop.eup %12858  ;;  %v3756_v15 = vadd.f32 1e-06, %v10852_v61  ;;  %11683 = vmatpush3.bf16.msra.mxu0 %v11650_v34  ;;  %v3750_v53 = vpop.f32.mrb[119].mxu0  ;;  %v11652_v55 = vpack.c.bf16 %v15128_v41, %v15130_v36  ;;  %v3442_v28 = vmul.f32 %v17327_v47, %v14753_v20  ;;  %v12273_v40 = vpack.i.bf16 %v15054_v18, %v15130_v36 }
 0xddd   : > { %v12861_v63 = vpop.eup %12860  ;;  %v3751_v62 = vadd.f32 1e-06, %v3750_v53  ;;  %v15142_v8 = vmul.f32 %v12859_v33, %v3439_v50  ;;  %v11662_v50 = vpack.c.bf16 %v15068_v43, %v15070_v2  ;;  %v17328_v33 = vld [vmem:[#allocation61_spill] sm:$0xff]  ;;  %v12275_v53 = vpack.i.bf16 %v15052_v14, %v15128_v41 }
 0xdde   : > { %12870 = vrcp.f32 %v3756_v15  ;;  %12270 = vxpose.xlu1.b32.cont [3/16] (narrow) %v12269_v13, 64  ;;  %11653 = vmatprep.subr.bf16.mxu1 %v11652_v55  ;;  %v15144_v54 = vmul.f32 %v12861_v63, %v3438_v25  ;;  %v3445_v20 = vmul.f32 %v17328_v33, %v14765_v35  ;;  %v17329_v25 = vld [vmem:[#allocation47_spill] sm:$0xff]  ;;  %v11666_v63 = vpack.c.bf16 %v15076_v24, %v15078_v29 }
 0xddf   : > { %12872 = vrcp.f32 %v3751_v62  ;;  %11685 = vmatprep.subr.bf16.mxu0 %v11652_v55  ;;  %v10855_v3 = vpop.f32.mrb[120].mxu0  ;;  %11655 = vmatpush3.bf16.msra.mxu1 %v11654_v51  ;;  %v3444_v15 = vmul.f32 %v17329_v25, %v14767_v17 }
 0xde0   : > { %v12863_v60 = vpop.eup %12862  ;;  %v3766_v59 = vadd.f32 1e-06, %v10855_v3  ;;  %11687 = vmatpush3.bf16.msra.mxu0 %v11654_v51  ;;  %v3760_v10 = vpop.f32.mrb[121].mxu0  ;;  %v11656_v4 = vpack.c.bf16 %v15142_v8, %v15144_v54  ;;  %v17330_v51 = vld [vmem:[#allocation62_spill] sm:$0xff]  ;;  %v17332_v3 = vld [vmem:[#allocation48_spill] sm:$0xff]  ;;  %v12277_v27 = vpack.i.bf16 %v15062_v37, %v15144_v54 }
 0xde1   : > { %v12865_v57 = vpop.eup %12864  ;;  %v3761_v31 = vadd.f32 1e-06, %v3760_v10  ;;  %v15156_v12 = vmul.f32 %v12863_v60, %v3441_v32  ;;  %v3447_v17 = vmul.f32 %v17330_v51, %v14779_v58  ;;  %v17331_v32 = vld [vmem:[#allocation50_spill] sm:$0xff]  ;;  %v11670_v10 = vpack.c.bf16 %v15084_v23, %v15086_v52 }
 0xde2   : > { %12874 = vrcp.f32 %v3766_v59  ;;  %12272 = vxpose.xlu1.b32.cont [4/16] (narrow) %v12271_v7, 64  ;;  %11657 = vmatprep.subr.bf16.mxu1 %v11656_v4  ;;  %v15158_v1 = vmul.f32 %v12865_v57, %v3440_v5  ;;  %v3446_v60 = vmul.f32 %v17332_v3, %v17331_v32 }
 0xde3   : > { %12876 = vrcp.f32 %v3761_v31  ;;  %11689 = vmatprep.subr.bf16.mxu0 %v11656_v4  ;;  %11659 = vmatpush3.bf16.msra.mxu1 %v11658_v30  ;;  %v12279_v4 = vpack.i.bf16 %v15060_v42, %v15142_v8  ;;  %v11674_v31 = vpack.c.bf16 %v15092_v0, %v15094_v21  ;;  %v12283_v47 = vpack.i.bf16 %v15068_v43, %v15156_v12 }
 0xde4   : > { %v12867_v56 = vpop.eup %12866  ;;  %11691 = vmatpush3.bf16.msra.mxu0 %v11658_v30  ;;  %v11660_v34 = vpack.c.bf16 %v15156_v12, %v15158_v1  ;;  %v12281_v30 = vpack.i.bf16 %v15070_v2, %v15158_v1 }
 0xde5   : > { %v12869_v39 = vpop.eup %12868  ;;  %v15170_v61 = vmul.f32 %v12867_v56, %v3443_v11  ;;  %v15212_v11 = vld [vmem:[%s13485_s8] sm:$0xff]  ;;  %v17335_v56 = vmov 0.0  }
 0xde6   : > { %12274 = vxpose.xlu1.b32.cont [5/16] (narrow) %v12273_v40, 64  ;;  %11661 = vmatprep.subr.bf16.mxu1 %v11660_v34  ;;  %v15172_v44 = vmul.f32 %v12869_v39, %v3442_v28  ;;  %17334 = vst [vmem:[#allocation49_spill] sm:$0xff] %v15212_v11 }
 0xde7   : > { %11693 = vmatprep.subr.bf16.mxu0 %v11660_v34  ;;  %11663 = vmatpush3.bf16.msra.mxu1 %v11662_v50  ;;  %v12287_v40 = vpack.i.bf16 %v15076_v24, %v15170_v61 }
 0xde8   : > { %v12871_v19 = vpop.eup %12870  ;;  %11695 = vmatpush3.bf16.msra.mxu0 %v11662_v50  ;;  %v11664_v13 = vpack.c.bf16 %v15170_v61, %v15172_v44  ;;  %v12285_v28 = vpack.i.bf16 %v15078_v29, %v15172_v44 }
 0xde9   : > { %v12873_v55 = vpop.eup %12872  ;;  %v15184_v62 = vmul.f32 %v12871_v19, %v3445_v20 }
 0xdea   : > { %12276 = vxpose.xlu1.b32.cont [6/16] (narrow) %v12275_v53, 64  ;;  %11665 = vmatprep.subr.bf16.mxu1 %v11664_v13  ;;  %v15186_v35 = vmul.f32 %v12873_v55, %v3444_v15 }
 0xdeb   : > { %11697 = vmatprep.subr.bf16.mxu0 %v11664_v13  ;;  %11667 = vmatpush3.bf16.msra.mxu1 %v11666_v63  ;;  %v12291_v39 = vpack.i.bf16 %v15084_v23, %v15184_v62 }
 0xdec   : > { %v12875_v49 = vpop.eup %12874  ;;  %11699 = vmatpush3.bf16.msra.mxu0 %v11666_v63  ;;  %v11668_v5 = vpack.c.bf16 %v15184_v62, %v15186_v35  ;;  %v12289_v34 = vpack.i.bf16 %v15086_v52, %v15186_v35 }
 0xded   : > { %v12877_v59 = vpop.eup %12876  ;;  %v15198_v7 = vmul.f32 %v12875_v49, %v3447_v17 }
 0xdee   : > { %12278 = vxpose.xlu1.b32.cont [7/16] (narrow) %v12277_v27, 64  ;;  %11669 = vmatprep.subr.bf16.mxu1 %v11668_v5  ;;  %v15200_v58 = vmul.f32 %v12877_v59, %v3446_v60 }
 0xdef   : > { %11701 = vmatprep.subr.bf16.mxu0 %v11668_v5  ;;  %11671 = vmatpush3.bf16.msra.mxu1 %v11670_v10  ;;  %v12295_v33 = vpack.i.bf16 %v15092_v0, %v15198_v7 }
 0xdf0   : > { %11703 = vmatpush3.bf16.msra.mxu0 %v11670_v10  ;;  %v11672_v57 = vpack.c.bf16 %v15198_v7, %v15200_v58  ;;  %v12293_v50 = vpack.i.bf16 %v15094_v21, %v15200_v58 }
 0xdf2   : > { %12280 = vxpose.xlu1.b32.cont [8/16] (narrow) %v12279_v4, 64  ;;  %11673 = vmatprep.subr.bf16.mxu1 %v11672_v57 }
 0xdf3   : > { %11705 = vmatprep.subr.bf16.mxu0 %v11672_v57  ;;  %11675 = vmatpush3.bf16.msra.mxu1 %v11674_v31 }
 0xdf4   : > { %11707 = vmatpush3.bf16.msra.mxu0 %v11674_v31  ;;  %11708 = vmatprep.subr.bf16.mxu1 %v17333_v16 }
 0xdf6   : > { %12282 = vxpose.xlu1.b32.cont [9/16] (narrow) %v12281_v30, 64  ;;  %3898 = vmatmul.mubr.f32.vlgmr.msra.gmra.mrb[134].mxu1 %v15212_v11 }
 0xdf7   : > { %10872 = vmatprep.mubr.msk.f32.mxu1 %vm13313_vm3, %v17335_v56 }
 0xdfa   : > { %12284 = vxpose.xlu1.b32.cont [10/16] (narrow) %v12283_v47, 64 }
 0xdfe   : > { %12286 = vxpose.xlu1.b32.cont [11/16] (narrow) %v12285_v28, 64 }
 0xe02   : > { %12288 = vxpose.xlu1.b32.cont [12/16] (narrow) %v12287_v40, 64 }
 0xe06   : > { %12290 = vxpose.xlu1.b32.cont [13/16] (narrow) %v12289_v34, 64 }
 0xe0a   : > { %12292 = vxpose.xlu1.b32.cont [14/16] (narrow) %v12291_v39, 64 }
 0xe0e   : > { %12294 = vxpose.xlu1.b32.cont [15/16] (narrow) %v12293_v50, 64 }
 0xe12   : > { %12296 = vxpose.xlu1.b32.end [16/16] (narrow) %v12295_v33, 64 }
 0xe56   : > { %v12297_v20 = vpop.trf.xlu1 }
 0xe57   : > { %v12301_v19 = vunpack.i.h.bf16 %v12297_v20  ;;  %v12298_v25 = vunpack.i.l.bf16 %v12297_v20 }
 0xe59   : > { %4031 = vmatprep.mubr.f32.mxu0 %v12298_v25 }
 0xe5a   : > { %v12302_v15 = vpop.trf.xlu1  ;;  %4032 = vmatmul.mubr.f32.vlgmr.msra.gmra.mrb[122].mxu0 %v12301_v19 }
 0xe5b   : > { %v12303_v53 = vunpack.i.l.bf16 %v12302_v15  ;;  %v12306_v13 = vunpack.i.h.bf16 %v12302_v15 }
 0xe5d   : > { %4036 = vmatprep.mubr.f32.mxu0 %v12303_v53 }
 0xe5e   : > { %v12307_v55 = vpop.trf.xlu1  ;;  %4037 = vmatmul.mubr.f32.gmra.mrb[124].mxu0 %v12306_v13 }
 0xe5f   : > { %v12308_v63 = vunpack.i.l.bf16 %v12307_v55  ;;  %v12311_v51 = vunpack.i.h.bf16 %v12307_v55 }
 0xe61   : > { %4041 = vmatprep.mubr.f32.mxu0 %v12308_v63 }
 0xe62   : > { %v12312_v17 = vpop.trf.xlu1  ;;  %4042 = vmatmul.mubr.f32.gmra.mrb[126].mxu0 %v12311_v51 }
 0xe63   : > { %v12313_v49 = vunpack.i.l.bf16 %v12312_v17  ;;  %v12316_v32 = vunpack.i.h.bf16 %v12312_v17 }
 0xe65   : > { %4046 = vmatprep.mubr.f32.mxu0 %v12313_v49 }
 0xe66   : > { %v12317_v3 = vpop.trf.xlu1  ;;  %4047 = vmatmul.mubr.f32.gmra.mrb[128].mxu0 %v12316_v32 }
 0xe67   : > { %v12318_v60 = vunpack.i.l.bf16 %v12317_v3  ;;  %v12321_v27 = vunpack.i.h.bf16 %v12317_v3 }
 0xe69   : > { %4051 = vmatprep.mubr.f32.mxu0 %v12318_v60 }
 0xe6a   : > { %v12322_v5 = vpop.trf.xlu1  ;;  %4052 = vmatmul.mubr.f32.gmra.mrb[130].mxu0 %v12321_v27 }
 0xe6b   : > { %v12323_v59 = vunpack.i.l.bf16 %v12322_v5  ;;  %v12326_v10 = vunpack.i.h.bf16 %v12322_v5 }
 0xe6d   : > { %4056 = vmatprep.mubr.f32.mxu0 %v12323_v59 }
 0xe6e   : > { %v12327_v4 = vpop.trf.xlu1  ;;  %4057 = vmatmul.mubr.f32.gmra.mrb[132].mxu0 %v12326_v10 }
 0xe6f   : > { %v12328_v57 = vunpack.i.l.bf16 %v12327_v4  ;;  %v12331_v31 = vunpack.i.h.bf16 %v12327_v4 }
 0xe71   : > { %4061 = vmatprep.mubr.f32.mxu0 %v12328_v57 }
 0xe72   : > { %v12332_v30 = vpop.trf.xlu1  ;;  %4062 = vmatmul.mubr.f32.gmra.mrb[134].mxu0 %v12331_v31 }
 0xe73   : > { %v12333_v47 = vunpack.i.l.bf16 %v12332_v30  ;;  %v12336_v28 = vunpack.i.h.bf16 %v12332_v30 }
 0xe75   : > { %4066 = vmatprep.mubr.f32.mxu0 %v12333_v47 }
 0xe76   : > { %4067 = vmatmul.mubr.f32.gmra.mrb[136].mxu0 %v12336_v28 }
 0xec9   : > { %v9704_v40 = vpop.f32.mrb[134].mxu1 }
 0xeca   : > { %v9705_v34 = vpop.f32.mrb[135].mxu1 }
 0xecb   : > { %v9706_v39 = vadd.f32 %v9705_v34, %v9704_v40 }
 0xf2d   : > { %v9739_v50 = vpop.f32.mrb[122].mxu0 }
 0xf2e   : > { %v9740_v33 = vpop.f32.mrb[123].mxu0 }
 0xf2f   : > { %v9741_v20 = vadd.f32 %v9740_v33, %v9739_v50  ;;  %v17336_v50 = vld [vmem:[#allocation51_spill] sm:$0xff] }
 0xf30   : > { %v17337_v33 = vld [vmem:[#allocation15_spill] sm:$0xff] }
 0xf31   : > { %v9742_v19 = vpop.f32.mrb[124].mxu0 }
 0xf32   : > { %v9743_v25 = vpop.f32.mrb[125].mxu0 }
 0xf33   : > { %v9744_v15 = vadd.f32 %v9743_v25, %v9742_v19 }
 0xf35   : > { %v11709_v53 = vpack.c.bf16 %v9744_v15, %v9741_v20  ;;  %v9745_v13 = vpop.f32.mrb[126].mxu0  ;;  %v4072_v15 = vmul.f32 %v9706_v39, %v17336_v50  ;;  %v17340_v39 = vld [vmem:[#allocation17_spill] sm:$0xff] }
 0xf36   : > { %v9746_v55 = vpop.f32.mrb[127].mxu0 }
 0xf37   : > { %v9747_v63 = vadd.f32 %v9746_v55, %v9745_v13  ;;  %11710 = vmatpush3.bf16.msra.mxu1 %v11709_v53  ;;  %v17339_v55 = vld [vmem:[#allocation16_spill] sm:$0xff] }
 0xf38   : > { %11711 = vmatprep.subr.bf16.mxu1 %v17333_v16 }
 0xf39   : > { %v9748_v51 = vpop.f32.mrb[128].mxu0 }
 0xf3a   : > { %v9749_v17 = vpop.f32.mrb[129].mxu0 }
 0xf3b   : > { %v9750_v49 = vadd.f32 %v9749_v17, %v9748_v51  ;;  %v17342_v51 = vld [vmem:[#allocation19_spill] sm:$0xff]  ;;  %v17343_v17 = vld [vmem:[#allocation20_spill] sm:$0xff] }
 0xf3d   : > { %v11712_v32 = vpack.c.bf16 %v9750_v49, %v9747_v63  ;;  %v9751_v3 = vpop.f32.mrb[130].mxu0  ;;  %v17341_v63 = vld [vmem:[#allocation18_spill] sm:$0xff]  ;;  %v17344_v49 = vld [vmem:[#allocation21_spill] sm:$0xff] }
 0xf3e   : > { %v9752_v60 = vpop.f32.mrb[131].mxu0 }
 0xf3f   : > { %v9753_v27 = vadd.f32 %v9752_v60, %v9751_v3  ;;  %11713 = vmatpush3.bf16.msra.mxu1 %v11712_v32  ;;  %v17345_v32 = vld [vmem:[#allocation22_spill] sm:$0xff]  ;;  %v17346_v3 = vld [vmem:[#allocation23_spill] sm:$0xff]  ;;  %v17347_v60 = vld [vmem:[#allocation24_spill] sm:$0xff] }
 0xf40   : > { %11714 = vmatprep.subr.bf16.mxu1 %v17333_v16 }
 0xf41   : > { %v9754_v5 = vpop.f32.mrb[132].mxu0 }
 0xf42   : > { %v9755_v59 = vpop.f32.mrb[133].mxu0 }
 0xf43   : > { %v9756_v10 = vadd.f32 %v9755_v59, %v9754_v5  ;;  %v17349_v5 = vld [vmem:[#allocation26_spill] sm:$0xff]  ;;  %v17350_v59 = vld [vmem:[#allocation27_spill] sm:$0xff] }
 0xf45   : > { %v11715_v4 = vpack.c.bf16 %v9756_v10, %v9753_v27  ;;  %v9757_v57 = vpop.f32.mrb[134].mxu0  ;;  %v17348_v27 = vld [vmem:[#allocation25_spill] sm:$0xff]  ;;  %v17351_v10 = vld [vmem:[#allocation28_spill] sm:$0xff] }
 0xf46   : > { %v9758_v31 = vpop.f32.mrb[135].mxu0 }
 0xf47   : > { %v9759_v30 = vadd.f32 %v9758_v31, %v9757_v57  ;;  %11716 = vmatpush3.bf16.msra.mxu1 %v11715_v4  ;;  %v17352_v4 = vld [vmem:[#allocation29_spill] sm:$0xff]  ;;  %v17353_v57 = vld [vmem:[#allocation30_spill] sm:$0xff]  ;;  %v17354_v31 = vld [vmem:[#allocation31_spill] sm:$0xff] }
 0xf48   : > { %11717 = vmatprep.subr.bf16.mxu1 %v17333_v16 }
 0xf49   : > { %v9760_v47 = vpop.f32.mrb[136].mxu0 }
 0xf4a   : > { %v9761_v28 = vpop.f32.mrb[137].mxu0 }
 0xf4b   : > { %v9762_v40 = vadd.f32 %v9761_v28, %v9760_v47  ;;  %v17356_v47 = vld [vmem:[#allocation33_spill] sm:$0xff]  ;;  %v17357_v28 = vld [vmem:[#allocation34_spill] sm:$0xff] }
 0xf4d   : > { %v11718_v34 = vpack.c.bf16 %v9762_v40, %v9759_v30  ;;  %v17355_v30 = vld [vmem:[#allocation32_spill] sm:$0xff]  ;;  %v17358_v40 = vld [vmem:[#allocation35_spill] sm:$0xff] }
 0xf4f   : > { %11719 = vmatpush3.bf16.msra.mxu1 %v11718_v34  ;;  %v17359_v34 = vld [vmem:[#allocation36_spill] sm:$0xff] }
 0xf52   : > { %10873 = vmatmul.mubr.msk.f32.vlgmr.msra.gmra.mrb[136].mxu1 %vm662_vm2, %v17336_v50  ;;  %v17360_v50 = vld [vmem:[#allocation37_spill] sm:$0xff] }
 0xf53   : > { %10877 = vmatprep.mubr.msk.f32.mxu1 %vm304_vm1, %v17337_v33 }
0x1025   : > { %v4141_v20 = vpop.f32.mrb[136].mxu1 }
0x1026   : > { %v4142_v19 = vadd.f32 1e-06, %v4141_v20  ;;  %v10874_v25 = vpop.f32.mrb[137].mxu1  ;;  %v17361_v20 = vld [vmem:[#allocation38_spill] sm:$0xff] }
0x1027   : > { %v17363_v25 = vld [vmem:[#allocation40_spill] sm:$0xff] }
0x1028   : > { %12878 = vrcp.f32 %v4142_v19  ;;  %v17362_v19 = vld [vmem:[#allocation39_spill] sm:$0xff] }
0x1032   : > { %v12879_v53 = vpop.eup %12878 }
0x1033   : > { %v15239_v13 = vmul.f32 %v12879_v53, %v4072_v15  ;;  %v17364_v15 = vld [vmem:[#allocation41_spill] sm:$0xff]  ;;  %v17365_v53 = vld [vmem:[#allocation42_spill] sm:$0xff] }
0x1035   : > { %17338 = vst [vmem:[#allocation52_spill] sm:$0xff] %v15239_v13  ;;  %4375 = vxpose.xlu0.b32.start.end [1/1] (short) (narrow) %v15239_v13, 64  ;;  %10875 = vmatprep.subr.msk.mxu1 %vm401_vm0, %v15239_v13 }
0x1036   : > { %10925 = vmatprep.subr.msk.mxu0 %vm401_vm0, %v15239_v13  ;;  %10876 = vmatpush3.msk.msra.mxu1 %vm401_vm0, %v15239_v13 }
0x1037   : > { %10926 = vmatpush3.msk.msra.mxu0 %vm401_vm0, %v15239_v13  ;;  %10878 = vmatmul.mubr.msk.f32.vlgmr.msra.gmra.mrb[138].mxu1 %vm304_vm1, %v17339_v55 }
0x1038   : > { %10880 = vmatprep.mubr.msk.f32.mxu1 %vm304_vm1, %v17340_v39 }
0x103b   : > { %10881 = vmatmul.mubr.msk.f32.gmra.mrb[140].mxu1 %vm304_vm1, %v17341_v63 }
0x103c   : > { %10883 = vmatprep.mubr.msk.f32.mxu1 %vm304_vm1, %v17342_v51 }
0x103f   : > { %10884 = vmatmul.mubr.msk.f32.gmra.mrb[142].mxu1 %vm304_vm1, %v17343_v17 }
0x1040   : > { %10886 = vmatprep.mubr.msk.f32.mxu1 %vm304_vm1, %v17344_v49 }
0x1043   : > { %10887 = vmatmul.mubr.msk.f32.gmra.mrb[144].mxu1 %vm304_vm1, %v17345_v32 }
0x1044   : > { %10889 = vmatprep.mubr.msk.f32.mxu1 %vm304_vm1, %v17346_v3 }
0x1047   : > { %10890 = vmatmul.mubr.msk.f32.gmra.mrb[146].mxu1 %vm304_vm1, %v17347_v60 }
0x1048   : > { %10892 = vmatprep.mubr.msk.f32.mxu1 %vm304_vm1, %v17348_v27 }
0x104b   : > { %10893 = vmatmul.mubr.msk.f32.gmra.mrb[148].mxu1 %vm304_vm1, %v17349_v5 }
0x104c   : > { %10895 = vmatprep.mubr.msk.f32.mxu1 %vm304_vm1, %v17350_v59 }
0x104f   : > { %10896 = vmatmul.mubr.msk.f32.gmra.mrb[150].mxu1 %vm304_vm1, %v17351_v10 }
0x1050   : > { %10898 = vmatprep.mubr.msk.f32.mxu1 %vm304_vm1, %v17352_v4 }
0x1053   : > { %10899 = vmatmul.mubr.msk.f32.gmra.mrb[152].mxu1 %vm304_vm1, %v17353_v57 }
0x1054   : > { %10901 = vmatprep.mubr.msk.f32.mxu1 %vm304_vm1, %v17354_v31 }
0x1057   : > { %10902 = vmatmul.mubr.msk.f32.gmra.mrb[154].mxu1 %vm304_vm1, %v17355_v30 }
0x1058   : > { %10904 = vmatprep.mubr.msk.f32.mxu1 %vm304_vm1, %v17356_v47 }
0x105b   : > { %10905 = vmatmul.mubr.msk.f32.gmra.mrb[156].mxu1 %vm304_vm1, %v17357_v28 }
0x105c   : > { %10907 = vmatprep.mubr.msk.f32.mxu1 %vm304_vm1, %v17358_v40  ;;  %v17366_v40 = vld [vmem:[#allocation43_spill] sm:$0xff] }
0x105f   : > { %10908 = vmatmul.mubr.msk.f32.gmra.mrb[158].mxu1 %vm304_vm1, %v17359_v34  ;;  %v17367_v34 = vld [vmem:[#allocation44_spill] sm:$0xff] }
0x1060   : > { %10910 = vmatprep.mubr.msk.f32.mxu1 %vm304_vm1, %v17360_v50  ;;  %v17368_v50 = vld [vmem:[#allocation45_spill] sm:$0xff] }
0x1063   : > { %10911 = vmatmul.mubr.msk.f32.gmra.mrb[160].mxu1 %vm304_vm1, %v17361_v20  ;;  %v17369_v20 = vld [vmem:[#allocation46_spill] sm:$0xff] }
0x1064   : > { %10913 = vmatprep.mubr.msk.f32.mxu1 %vm304_vm1, %v17362_v19  ;;  %v17370_v19 = vld [vmem:[#allocation14_spill] sm:$0xff] }
0x1067   : > { %10914 = vmatmul.mubr.msk.f32.gmra.mrb[162].mxu1 %vm304_vm1, %v17363_v25 }
0x1068   : > { %10916 = vmatprep.mubr.msk.f32.mxu1 %vm304_vm1, %v17364_v15 }
0x106b   : > { %10917 = vmatmul.mubr.msk.f32.gmra.mrb[164].mxu1 %vm304_vm1, %v17365_v53 }
0x106c   : > { %10919 = vmatprep.mubr.msk.f32.mxu1 %vm304_vm1, %v17366_v40 }
0x106f   : > { %10920 = vmatmul.mubr.msk.f32.gmra.mrb[166].mxu1 %vm304_vm1, %v17367_v34 }
0x1070   : > { %10922 = vmatprep.mubr.msk.f32.mxu1 %vm304_vm1, %v17368_v50 }
0x1073   : > { %10923 = vmatmul.mubr.msk.f32.gmra.mrb[168].mxu1 %vm304_vm1, %v17369_v20 }
0x1074   : > { %5017 = vmatprep.mubr.f32.mxu1 %v17370_v19 }
0x10b5   : > { %v4391_v25 = vpop.trf.xlu0 }
0x10b6   : > { %10927 = vmatprep.mubr.msk.f32.mxu0 %vm304_vm1, %v4391_v25 }
0x10b9   : > { %v4392_v15 = vpop.trf.xlu0 }
0x10ba   : > { %10928 = vmatmul.mubr.msk.f32.vlgmr.msra.gmra.mrb[138].mxu0 %vm304_vm1, %v4392_v15 }
0x10bd   : > { %v4393_v53 = vpop.trf.xlu0 }
0x10be   : > { %10930 = vmatprep.mubr.msk.f32.mxu0 %vm304_vm1, %v4393_v53 }
0x10c1   : > { %v4394_v40 = vpop.trf.xlu0 }
0x10c2   : > { %10931 = vmatmul.mubr.msk.f32.gmra.mrb[140].mxu0 %vm304_vm1, %v4394_v40 }
0x10c5   : > { %v4395_v34 = vpop.trf.xlu0 }
0x10c6   : > { %10933 = vmatprep.mubr.msk.f32.mxu0 %vm304_vm1, %v4395_v34 }
0x10c9   : > { %v4396_v50 = vpop.trf.xlu0 }
0x10ca   : > { %10934 = vmatmul.mubr.msk.f32.gmra.mrb[142].mxu0 %vm304_vm1, %v4396_v50 }
0x10cd   : > { %v4397_v20 = vpop.trf.xlu0 }
0x10ce   : > { %10936 = vmatprep.mubr.msk.f32.mxu0 %vm304_vm1, %v4397_v20 }
0x10d1   : > { %v4398_v19 = vpop.trf.xlu0 }
0x10d2   : > { %10937 = vmatmul.mubr.msk.f32.gmra.mrb[144].mxu0 %vm304_vm1, %v4398_v19 }
0x10d3   : > { %10955 = vmatprep.mubr.msk.f32.mxu0 %vm662_vm2, %v15038_v46 }
0x110a   : > { %v15323_v25 = vpop.f32.mrb[138].mxu1 }
0x110b   : > { %v15325_v15 = vpop.f32.mrb[139].mxu1 }
0x110e   : > { %v15327_v40 = vpop.f32.mrb[140].mxu1 }
0x110f   : > { %v15329_v53 = vpop.f32.mrb[141].mxu1 }
0x1112   : > { %v15331_v34 = vpop.f32.mrb[142].mxu1 }
0x1113   : > { %v15333_v50 = vpop.f32.mrb[143].mxu1 }
0x1116   : > { %v15335_v28 = vpop.f32.mrb[144].mxu1 }
0x1117   : > { %v15337_v20 = vpop.f32.mrb[145].mxu1 }
0x111a   : > { %v15339_v19 = vpop.f32.mrb[146].mxu1 }
0x111b   : > { %v15341_v47 = vpop.f32.mrb[147].mxu1 }
0x111e   : > { %v15343_v30 = vpop.f32.mrb[148].mxu1 }
0x111f   : > { %v15345_v31 = vpop.f32.mrb[149].mxu1 }
0x1122   : > { %v15347_v57 = vpop.f32.mrb[150].mxu1 }
0x1123   : > { %v15349_v4 = vpop.f32.mrb[151].mxu1 }
0x1126   : > { %v15351_v10 = vpop.f32.mrb[152].mxu1 }
0x1127   : > { %v15353_v59 = vpop.f32.mrb[153].mxu1 }
0x112a   : > { %v15355_v5 = vpop.f32.mrb[154].mxu1 }
0x112b   : > { %v15357_v27 = vpop.f32.mrb[155].mxu1 }
0x112c   : > { %17371 = vst [vmem:[#allocation53_spill] sm:$0xff] %v15357_v27 }
0x112e   : > { %v15359_v60 = vpop.f32.mrb[156].mxu1 }
0x112f   : > { %17372 = vst [vmem:[#allocation54_spill] sm:$0xff] %v15359_v60  ;;  %v15361_v3 = vpop.f32.mrb[157].mxu1 }
0x1130   : > { %17373 = vst [vmem:[#allocation55_spill] sm:$0xff] %v15361_v3 }
0x1132   : > { %v15363_v32 = vpop.f32.mrb[158].mxu1 }
0x1133   : > { %17374 = vst [vmem:[#allocation56_spill] sm:$0xff] %v15363_v32  ;;  %v15365_v49 = vpop.f32.mrb[159].mxu1 }
0x1134   : > { %17375 = vst [vmem:[#allocation57_spill] sm:$0xff] %v15365_v49 }
0x1136   : > { %v15367_v17 = vpop.f32.mrb[160].mxu1 }
0x1137   : > { %17376 = vst [vmem:[#allocation58_spill] sm:$0xff] %v15367_v17  ;;  %v15369_v51 = vpop.f32.mrb[161].mxu1 }
0x1138   : > { %17377 = vst [vmem:[#allocation59_spill] sm:$0xff] %v15369_v51 }
0x113a   : > { %v15371_v63 = vpop.f32.mrb[162].mxu1 }
0x113b   : > { %17378 = vst [vmem:[#allocation60_spill] sm:$0xff] %v15371_v63  ;;  %v15373_v39 = vpop.f32.mrb[163].mxu1 }
0x113c   : > { %17379 = vst [vmem:[#allocation61_spill] sm:$0xff] %v15373_v39 }
0x113e   : > { %v15375_v55 = vpop.f32.mrb[164].mxu1 }
0x113f   : > { %17380 = vst [vmem:[#allocation47_spill] sm:$0xff] %v15375_v55  ;;  %v15377_v33 = vpop.f32.mrb[165].mxu1 }
0x1140   : > { %17381 = vst [vmem:[#allocation62_spill] sm:$0xff] %v15377_v33 }
0x1142   : > { %v15379_v13 = vpop.f32.mrb[166].mxu1 }
0x1143   : > { %17382 = vst [vmem:[#allocation50_spill] sm:$0xff] %v15379_v13  ;;  %v15381_v11 = vpop.f32.mrb[167].mxu1 }
0x1144   : > { %17383 = vst [vmem:[#allocation48_spill] sm:$0xff] %v15381_v11 }
0x1146   : > { %v15383_v3 = vpop.f32.mrb[168].mxu1 }
0x1147   : > { %17384 = vst [vmem:[#allocation51_spill] sm:$0xff] %v15383_v3  ;;  %v15385_v32 = vpop.f32.mrb[169].mxu1 }
0x118d   : > { %v10929_v49 = vpop.f32.mrb[138].mxu0 }
0x118e   : > { %v4497_v17 = vpop.f32.mrb[139].mxu0 }
0x118f   : > { %v11720_v60 = vpack.c.bf16 %v10929_v49, %v4497_v17 }
0x1191   : > { %11721 = vmatprep.subr.bf16.mxu0 %v11720_v60 }
0x1192   : > { %11723 = vmatpush3.bf16.msra.mxu0 %v11720_v60 }
0x1195   : > { %v10932_v63 = vpop.f32.mrb[140].mxu0 }
0x1196   : > { %v4507_v51 = vpop.f32.mrb[141].mxu0 }
0x1197   : > { %v11724_v39 = vpack.c.bf16 %v10932_v63, %v4507_v51 }
0x1199   : > { %11725 = vmatprep.subr.bf16.mxu0 %v11724_v39 }
0x119a   : > { %11727 = vmatpush3.bf16.msra.mxu0 %v11724_v39 }
0x119d   : > { %v10935_v55 = vpop.f32.mrb[142].mxu0 }
0x119e   : > { %v4517_v33 = vpop.f32.mrb[143].mxu0 }
0x119f   : > { %v11728_v27 = vpack.c.bf16 %v10935_v55, %v4517_v33 }
0x11a1   : > { %11729 = vmatprep.subr.bf16.mxu0 %v11728_v27 }
0x11a2   : > { %11731 = vmatpush3.bf16.msra.mxu0 %v11728_v27 }
0x11a5   : > { %v10938_v11 = vpop.f32.mrb[144].mxu0 }
0x11a6   : > { %v4527_v13 = vpop.f32.mrb[145].mxu0 }
0x11a7   : > { %v11732_v3 = vpack.c.bf16 %v10938_v11, %v4527_v13 }
0x11a9   : > { %11733 = vmatprep.subr.bf16.mxu0 %v11732_v3 }
0x11aa   : > { %11735 = vmatpush3.bf16.msra.mxu0 %v11732_v3 }
0x11ab   : > { %11800 = vmatprep.subr.bf16.mxu0 %v17333_v16 }
0x11ad   : > { %10956 = vmatmul.mubr.msk.f32.vlgmr.msra.gmra.mrb[146].mxu0 %vm662_vm2, %v15036_v6 }
0x11ae   : > { %10958 = vmatprep.mubr.msk.f32.mxu0 %vm662_vm2, %v15046_v48 }
0x11b1   : > { %10959 = vmatmul.mubr.msk.f32.gmra.mrb[148].mxu0 %vm662_vm2, %v15044_v38 }
0x11b2   : > { %10961 = vmatprep.mubr.msk.f32.mxu0 %vm662_vm2, %v15054_v18 }
0x11b5   : > { %10962 = vmatmul.mubr.msk.f32.gmra.mrb[150].mxu0 %vm662_vm2, %v15052_v14 }
0x11b6   : > { %10964 = vmatprep.mubr.msk.f32.mxu0 %vm662_vm2, %v15062_v37 }
0x11b9   : > { %10965 = vmatmul.mubr.msk.f32.gmra.mrb[152].mxu0 %vm662_vm2, %v15060_v42 }
0x11ba   : > { %10967 = vmatprep.mubr.msk.f32.mxu0 %vm662_vm2, %v15070_v2 }
0x11bd   : > { %10968 = vmatmul.mubr.msk.f32.gmra.mrb[154].mxu0 %vm662_vm2, %v15068_v43 }
0x11be   : > { %10970 = vmatprep.mubr.msk.f32.mxu0 %vm662_vm2, %v15078_v29 }
0x11c1   : > { %10971 = vmatmul.mubr.msk.f32.gmra.mrb[156].mxu0 %vm662_vm2, %v15076_v24 }
0x11c2   : > { %10973 = vmatprep.mubr.msk.f32.mxu0 %vm662_vm2, %v15086_v52 }
0x11c5   : > { %10974 = vmatmul.mubr.msk.f32.gmra.mrb[158].mxu0 %vm662_vm2, %v15084_v23 }
0x11c6   : > { %10976 = vmatprep.mubr.msk.f32.mxu0 %vm662_vm2, %v15094_v21 }
0x11c9   : > { %10977 = vmatmul.mubr.msk.f32.gmra.mrb[160].mxu0 %vm662_vm2, %v15092_v0 }
0x11ca   : > { %10979 = vmatprep.mubr.msk.f32.mxu0 %vm662_vm2, %v15102_v22 }
0x11cd   : > { %10980 = vmatmul.mubr.msk.f32.gmra.mrb[162].mxu0 %vm662_vm2, %v15100_v45 }
0x11ce   : > { %10982 = vmatprep.mubr.msk.f32.mxu0 %vm662_vm2, %v15116_v26 }
0x11d1   : > { %10983 = vmatmul.mubr.msk.f32.gmra.mrb[164].mxu0 %vm662_vm2, %v15114_v9 }
0x11d2   : > { %10985 = vmatprep.mubr.msk.f32.mxu0 %vm662_vm2, %v15130_v36 }
0x11d5   : > { %10986 = vmatmul.mubr.msk.f32.gmra.mrb[166].mxu0 %vm662_vm2, %v15128_v41 }
0x11d6   : > { %10988 = vmatprep.mubr.msk.f32.mxu0 %vm662_vm2, %v15144_v54 }
0x11d9   : > { %10989 = vmatmul.mubr.msk.f32.gmra.mrb[168].mxu0 %vm662_vm2, %v15142_v8 }
0x11da   : > { %10991 = vmatprep.mubr.msk.f32.mxu0 %vm662_vm2, %v15158_v1 }
0x11dd   : > { %10992 = vmatmul.mubr.msk.f32.gmra.mrb[170].mxu0 %vm662_vm2, %v15156_v12 }
0x11de   : > { %10994 = vmatprep.mubr.msk.f32.mxu0 %vm662_vm2, %v15172_v44 }
0x11e1   : > { %10995 = vmatmul.mubr.msk.f32.gmra.mrb[172].mxu0 %vm662_vm2, %v15170_v61 }
0x11e2   : > { %10997 = vmatprep.mubr.msk.f32.mxu0 %vm662_vm2, %v15186_v35 }
0x11e5   : > { %10998 = vmatmul.mubr.msk.f32.gmra.mrb[174].mxu0 %vm662_vm2, %v15184_v62 }
0x11e6   : > { %11000 = vmatprep.mubr.msk.f32.mxu0 %vm662_vm2, %v15200_v58 }
0x11e9   : > { %11001 = vmatmul.mubr.msk.f32.gmra.mrb[176].mxu0 %vm662_vm2, %v15198_v7 }
0x11ea   : > { %11019 = vmatprep.mubr.msk.f32.mxu0 %vm13313_vm3, %v17335_v56  ;;  %v4537_v56 = vmul.f32 %v15323_v25, %v15036_v6 }
0x1280   : > { %v10957_v11 = vpop.f32.mrb[146].mxu0 }
0x1281   : > { %v4736_v33 = vadd.f32 1e-06, %v10957_v11  ;;  %v4730_v13 = vpop.f32.mrb[147].mxu0 }
0x1282   : > { %v4731_v55 = vadd.f32 1e-06, %v4730_v13 }
0x1283   : > { %12880 = vrcp.f32 %v4736_v33  ;;  %v4536_v33 = vmul.f32 %v15325_v15, %v15038_v46 }
0x1284   : > { %12882 = vrcp.f32 %v4731_v55  ;;  %v10960_v39 = vpop.f32.mrb[148].mxu0 }
0x1285   : > { %v4746_v63 = vadd.f32 1e-06, %v10960_v39  ;;  %v4740_v51 = vpop.f32.mrb[149].mxu0 }
0x1286   : > { %v4741_v17 = vadd.f32 1e-06, %v4740_v51 }
0x1287   : > { %12884 = vrcp.f32 %v4746_v63 }
0x1288   : > { %12886 = vrcp.f32 %v4741_v17  ;;  %v10963_v49 = vpop.f32.mrb[150].mxu0 }
0x1289   : > { %v4756_v3 = vadd.f32 1e-06, %v10963_v49  ;;  %v4750_v60 = vpop.f32.mrb[151].mxu0  ;;  %v4539_v49 = vmul.f32 %v15327_v40, %v15044_v38 }
0x128a   : > { %v4751_v27 = vadd.f32 1e-06, %v4750_v60 }
0x128b   : > { %12888 = vrcp.f32 %v4756_v3  ;;  %v4538_v3 = vmul.f32 %v15329_v53, %v15046_v48 }
0x128c   : > { %12890 = vrcp.f32 %v4751_v27  ;;  %v10966_v11 = vpop.f32.mrb[152].mxu0 }
0x128d   : > { %v12881_v16 = vpop.eup %12880  ;;  %v4766_v13 = vadd.f32 1e-06, %v10966_v11  ;;  %v4760_v55 = vpop.f32.mrb[153].mxu0  ;;  %v4541_v11 = vmul.f32 %v15331_v34, %v15052_v14 }
0x128e   : > { %v12883_v39 = vpop.eup %12882  ;;  %v15456_v51 = vmul.f32 %v12881_v16, %v4537_v56  ;;  %v4761_v63 = vadd.f32 1e-06, %v4760_v55 }
0x128f   : > { %12892 = vrcp.f32 %v4766_v13  ;;  %v15458_v17 = vmul.f32 %v12883_v39, %v4536_v33  ;;  %v4540_v33 = vmul.f32 %v15333_v50, %v15054_v18 }
0x1290   : > { %12894 = vrcp.f32 %v4761_v63  ;;  %v10969_v6 = vpop.f32.mrb[154].mxu0 }
0x1291   : > { %v12885_v25 = vpop.eup %12884  ;;  %v4776_v60 = vadd.f32 1e-06, %v10969_v6  ;;  %v4770_v46 = vpop.f32.mrb[155].mxu0  ;;  %v4542_v6 = vmul.f32 %v15337_v20, %v15062_v37 }
0x1292   : > { %v12887_v15 = vpop.eup %12886  ;;  %v15464_v27 = vmul.f32 %v12885_v25, %v4539_v49  ;;  %v4771_v16 = vadd.f32 1e-06, %v4770_v46  ;;  %v4543_v49 = vmul.f32 %v15335_v28, %v15060_v42 }
0x1293   : > { %v15466_v56 = vmul.f32 %v12887_v15, %v4538_v3  ;;  %12896 = vrcp.f32 %v4776_v60  ;;  %v4545_v15 = vmul.f32 %v15339_v19, %v15068_v43 }
0x1294   : > { %12898 = vrcp.f32 %v4771_v16  ;;  %v10972_v38 = vpop.f32.mrb[156].mxu0  ;;  %v4544_v16 = vmul.f32 %v15341_v47, %v15070_v2 }
0x1295   : > { %v12889_v40 = vpop.eup %12888  ;;  %v4786_v13 = vadd.f32 1e-06, %v10972_v38  ;;  %v4780_v48 = vpop.f32.mrb[157].mxu0 }
0x1296   : > { %v12891_v53 = vpop.eup %12890  ;;  %v15472_v55 = vmul.f32 %v12889_v40, %v4541_v11  ;;  %v4781_v39 = vadd.f32 1e-06, %v4780_v48  ;;  %v4546_v48 = vmul.f32 %v15345_v31, %v15078_v29 }
0x1297   : > { %v15474_v63 = vmul.f32 %v12891_v53, %v4540_v33  ;;  %12900 = vrcp.f32 %v4786_v13  ;;  %v4547_v13 = vmul.f32 %v15343_v30, %v15076_v24 }
0x1298   : > { %12902 = vrcp.f32 %v4781_v39  ;;  %v10975_v14 = vpop.f32.mrb[158].mxu0 }
0x1299   : > { %v12893_v34 = vpop.eup %12892  ;;  %v4796_v25 = vadd.f32 1e-06, %v10975_v14  ;;  %v4790_v18 = vpop.f32.mrb[159].mxu0 }
0x129a   : > { %v12895_v50 = vpop.eup %12894  ;;  %v15480_v3 = vmul.f32 %v12893_v34, %v4543_v49  ;;  %v4791_v60 = vadd.f32 1e-06, %v4790_v18  ;;  %v4549_v34 = vmul.f32 %v15347_v57, %v15084_v23 }
0x129b   : > { %v15482_v46 = vmul.f32 %v12895_v50, %v4542_v6  ;;  %12904 = vrcp.f32 %v4796_v25  ;;  %v4548_v6 = vmul.f32 %v15349_v4, %v15086_v52 }
0x129c   : > { %12906 = vrcp.f32 %v4791_v60  ;;  %v10978_v42 = vpop.f32.mrb[160].mxu0 }
0x129d   : > { %v12897_v28 = vpop.eup %12896  ;;  %v4806_v11 = vadd.f32 1e-06, %v10978_v42  ;;  %v4800_v37 = vpop.f32.mrb[161].mxu0  ;;  %v4550_v42 = vmul.f32 %v15353_v59, %v15094_v21 }
0x129e   : > { %v12899_v20 = vpop.eup %12898  ;;  %v15488_v38 = vmul.f32 %v12897_v28, %v4545_v15  ;;  %v4801_v40 = vadd.f32 1e-06, %v4800_v37  ;;  %v4551_v15 = vmul.f32 %v15351_v10, %v15092_v0 }
0x129f   : > { %v15490_v33 = vmul.f32 %v12899_v20, %v4544_v16  ;;  %12908 = vrcp.f32 %v4806_v11  ;;  %v4553_v20 = vmul.f32 %v15355_v5, %v15100_v45 }
0x12a0   : > { %12910 = vrcp.f32 %v4801_v40  ;;  %v10981_v43 = vpop.f32.mrb[162].mxu0  ;;  %v17385_v40 = vld [vmem:[#allocation53_spill] sm:$0xff] }
0x12a1   : > { %v12901_v19 = vpop.eup %12900  ;;  %v4816_v53 = vadd.f32 1e-06, %v10981_v43  ;;  %v4810_v2 = vpop.f32.mrb[163].mxu0 }
0x12a2   : > { %v12903_v47 = vpop.eup %12902  ;;  %v15496_v39 = vmul.f32 %v12901_v19, %v4547_v13  ;;  %v4811_v49 = vadd.f32 1e-06, %v4810_v2  ;;  %v4552_v13 = vmul.f32 %v17385_v40, %v15102_v22  ;;  %v17386_v2 = vld [vmem:[#allocation54_spill] sm:$0xff] }
0x12a3   : > { %v15498_v14 = vmul.f32 %v12903_v47, %v4546_v48  ;;  %12912 = vrcp.f32 %v4816_v53  ;;  %v4555_v47 = vmul.f32 %v17386_v2, %v15114_v9  ;;  %v15536_v9 = vpack.c.bf16 %v15456_v51, %v15458_v17 }
0x12a4   : > { %12914 = vrcp.f32 %v4811_v49  ;;  %v10984_v24 = vpop.f32.mrb[164].mxu0  ;;  %v17387_v49 = vld [vmem:[#allocation55_spill] sm:$0xff] }
0x12a5   : > { %v12905_v30 = vpop.eup %12904  ;;  %v4826_v25 = vadd.f32 1e-06, %v10984_v24  ;;  %v4820_v29 = vpop.f32.mrb[165].mxu0 }
0x12a6   : > { %v12907_v31 = vpop.eup %12906  ;;  %v15504_v18 = vmul.f32 %v12905_v30, %v4549_v34  ;;  %v4821_v50 = vadd.f32 1e-06, %v4820_v29  ;;  %v4554_v34 = vmul.f32 %v17387_v49, %v15116_v26 }
0x12a7   : > { %v15506_v60 = vmul.f32 %v12907_v31, %v4548_v6  ;;  %12916 = vrcp.f32 %v4826_v25 }
0x12a8   : > { %12918 = vrcp.f32 %v4821_v50  ;;  %v10987_v23 = vpop.f32.mrb[166].mxu0  ;;  %v17388_v50 = vld [vmem:[#allocation56_spill] sm:$0xff] }
0x12a9   : > { %v12909_v57 = vpop.eup %12908  ;;  %v4836_v28 = vadd.f32 1e-06, %v10987_v23  ;;  %v4830_v52 = vpop.f32.mrb[167].mxu0 }
0x12aa   : > { %v12911_v4 = vpop.eup %12910  ;;  %v15512_v16 = vmul.f32 %v12909_v57, %v4551_v15  ;;  %v4831_v11 = vadd.f32 1e-06, %v4830_v52  ;;  %v4557_v15 = vmul.f32 %v17388_v50, %v15128_v41  ;;  %v15556_v41 = vpack.c.bf16 %v15464_v27, %v15466_v56 }
0x12ab   : > { %v15514_v37 = vmul.f32 %v12911_v4, %v4550_v42  ;;  %12920 = vrcp.f32 %v4836_v28  ;;  %v17389_v42 = vld [vmem:[#allocation57_spill] sm:$0xff] }
0x12ac   : > { %12922 = vrcp.f32 %v4831_v11  ;;  %v10990_v0 = vpop.f32.mrb[168].mxu0  ;;  %v4556_v28 = vmul.f32 %v17389_v42, %v15130_v36 }
0x12ad   : > { %v12913_v10 = vpop.eup %12912  ;;  %v4846_v43 = vadd.f32 1e-06, %v10990_v0  ;;  %v4840_v21 = vpop.f32.mrb[169].mxu0 }
0x12ae   : > { %v12915_v59 = vpop.eup %12914  ;;  %v4841_v19 = vadd.f32 1e-06, %v4840_v21  ;;  %v15520_v48 = vmul.f32 %v12913_v10, %v4553_v20 }
0x12af   : > { %12924 = vrcp.f32 %v4846_v43  ;;  %v15522_v53 = vmul.f32 %v12915_v59, %v4552_v13  ;;  %v17390_v13 = vld [vmem:[#allocation58_spill] sm:$0xff] }
0x12b0   : > { %12926 = vrcp.f32 %v4841_v19  ;;  %v10993_v45 = vpop.f32.mrb[170].mxu0  ;;  %v12339_v11 = vpack.i.bf16 %v15456_v51, %v15520_v48  ;;  %v4559_v43 = vmul.f32 %v17390_v13, %v15142_v8  ;;  %v17391_v19 = vld [vmem:[#allocation59_spill] sm:$0xff]  ;;  %v15576_v8 = vpack.c.bf16 %v15472_v55, %v15474_v63 }
0x12b1   : > { %v12917_v5 = vpop.eup %12916  ;;  %v4856_v24 = vadd.f32 1e-06, %v10993_v45  ;;  %v4850_v22 = vpop.f32.mrb[171].mxu0  ;;  %v12337_v30 = vpack.i.bf16 %v15458_v17, %v15522_v53  ;;  %v15532_v6 = vpack.c.bf16 %v15520_v48, %v15522_v53  ;;  %v4558_v2 = vmul.f32 %v17391_v19, %v15144_v54 }
0x12b2   : > { %v12919_v25 = vpop.eup %12918  ;;  %v4851_v29 = vadd.f32 1e-06, %v4850_v22  ;;  %v15538_v31 = vmul.f32 %v12917_v5, %v4555_v47 }
0x12b3   : > { %12928 = vrcp.f32 %v4856_v24  ;;  %12338 = vxpose.xlu0.b32.start [1/16] (narrow) %v12337_v30, 64  ;;  %11737 = vmatprep.subr.bf16.mxu1 %v15532_v6  ;;  %v15541_v26 = vmul.f32 %v12919_v25, %v4554_v34  ;;  %v17392_v30 = vld [vmem:[#allocation60_spill] sm:$0xff] }
0x12b4   : > { %12930 = vrcp.f32 %v4851_v29  ;;  %v10996_v23 = vpop.f32.mrb[172].mxu0  ;;  %11739 = vmatpush3.bf16.msra.mxu1 %v15536_v9  ;;  %v4561_v25 = vmul.f32 %v17392_v30, %v15156_v12  ;;  %v15596_v12 = vpack.c.bf16 %v15480_v3, %v15482_v46  ;;  %v17397_v30 = vld [vmem:[#allocation48_spill] sm:$0xff] }
0x12b5   : > { %v12921_v57 = vpop.eup %12920  ;;  %v4866_v52 = vadd.f32 1e-06, %v10996_v23  ;;  %v4860_v4 = vpop.f32.mrb[173].mxu0  ;;  %v15552_v20 = vpack.c.bf16 %v15538_v31, %v15541_v26  ;;  %v12341_v5 = vpack.i.bf16 %v15466_v56, %v15541_v26 }
0x12b6   : > { %v12923_v0 = vpop.eup %12922  ;;  %v4861_v10 = vadd.f32 1e-06, %v4860_v4  ;;  %v15558_v40 = vmul.f32 %v12921_v57, %v4557_v15  ;;  %v17393_v15 = vld [vmem:[#allocation61_spill] sm:$0xff] }
0x12b7   : > { %12932 = vrcp.f32 %v4866_v52  ;;  %12340 = vxpose.xlu0.b32.cont [2/16] (narrow) %v12339_v11, 64  ;;  %11741 = vmatprep.subr.bf16.mxu1 %v15552_v20  ;;  %v15561_v36 = vmul.f32 %v12923_v0, %v4556_v28  ;;  %v4560_v23 = vmul.f32 %v17393_v15, %v15158_v1  ;;  %v12343_v28 = vpack.i.bf16 %v15464_v27, %v15538_v31 }
0x12b8   : > { %12934 = vrcp.f32 %v4861_v10  ;;  %v10999_v21 = vpop.f32.mrb[174].mxu0  ;;  %11743 = vmatpush3.bf16.msra.mxu1 %v15556_v41  ;;  %v17394_v10 = vld [vmem:[#allocation47_spill] sm:$0xff] }
0x12b9   : > { %v12925_v59 = vpop.eup %12924  ;;  %v4876_v47 = vadd.f32 1e-06, %v10999_v21  ;;  %v4870_v45 = vpop.f32.mrb[175].mxu0  ;;  %v15572_v49 = vpack.c.bf16 %v15558_v40, %v15561_v36  ;;  %v4563_v13 = vmul.f32 %v17394_v10, %v15170_v61  ;;  %v17395_v21 = vld [vmem:[#allocation62_spill] sm:$0xff]  ;;  %v12345_v19 = vpack.i.bf16 %v15474_v63, %v15561_v36 }
0x12ba   : > { %v12927_v34 = vpop.eup %12926  ;;  %v4871_v24 = vadd.f32 1e-06, %v4870_v45  ;;  %v15578_v22 = vmul.f32 %v12925_v59, %v4559_v43  ;;  %v4562_v59 = vmul.f32 %v17395_v21, %v15172_v44  ;;  %v11754_v45 = vpack.c.bf16 %v15488_v38, %v15490_v33 }
0x12bb   : > { %12936 = vrcp.f32 %v4876_v47  ;;  %12342 = vxpose.xlu0.b32.cont [3/16] (narrow) %v12341_v5, 64  ;;  %11745 = vmatprep.subr.bf16.mxu1 %v15572_v49  ;;  %v15581_v54 = vmul.f32 %v12927_v34, %v4558_v2  ;;  %v17396_v34 = vld [vmem:[#allocation50_spill] sm:$0xff] }
0x12bc   : > { %12938 = vrcp.f32 %v4871_v24  ;;  %v11002_v29 = vpop.f32.mrb[176].mxu0  ;;  %11747 = vmatpush3.bf16.msra.mxu1 %v15576_v8  ;;  %v4565_v24 = vmul.f32 %v17396_v34, %v15184_v62 }
0x12bd   : > { %v12929_v50 = vpop.eup %12928  ;;  %v4886_v57 = vadd.f32 1e-06, %v11002_v29  ;;  %v4880_v42 = vpop.f32.mrb[177].mxu0  ;;  %v15592_v52 = vpack.c.bf16 %v15578_v22, %v15581_v54  ;;  %v12347_v29 = vpack.i.bf16 %v15472_v55, %v15558_v40 }
0x12be   : > { %v12931_v4 = vpop.eup %12930  ;;  %v4881_v11 = vadd.f32 1e-06, %v4880_v42  ;;  %v15598_v0 = vmul.f32 %v12929_v50, %v4561_v25  ;;  %v4564_v25 = vmul.f32 %v17397_v30, %v15186_v35  ;;  %v17398_v42 = vld [vmem:[#allocation51_spill] sm:$0xff] }
0x12bf   : > { %12940 = vrcp.f32 %v4886_v57  ;;  %12344 = vxpose.xlu0.b32.cont [4/16] (narrow) %v12343_v28, 64  ;;  %11749 = vmatprep.subr.bf16.mxu1 %v15592_v52  ;;  %v15601_v1 = vmul.f32 %v12931_v4, %v4560_v23  ;;  %v11758_v23 = vpack.c.bf16 %v15496_v39, %v15498_v14  ;;  %v4567_v28 = vmul.f32 %v17398_v42, %v15198_v7 }
0x12c0   : > { %12942 = vrcp.f32 %v4881_v11  ;;  %11751 = vmatpush3.bf16.msra.mxu1 %v15596_v12  ;;  %v4566_v4 = vmul.f32 %v15385_v32, %v15200_v58  ;;  %v12349_v11 = vpack.i.bf16 %v15482_v46, %v15581_v54  ;;  %v12351_v58 = vpack.i.bf16 %v15480_v3, %v15578_v22 }
0x12c1   : > { %v12933_v43 = vpop.eup %12932  ;;  %v11752_v2 = vpack.c.bf16 %v15598_v0, %v15601_v1  ;;  %v12355_v34 = vpack.i.bf16 %v15488_v38, %v15598_v0 }
0x12c2   : > { %v12935_v47 = vpop.eup %12934  ;;  %v15614_v5 = vmul.f32 %v12933_v43, %v4563_v13  ;;  %v11762_v43 = vpack.c.bf16 %v15504_v18, %v15506_v60 }
0x12c3   : > { %12346 = vxpose.xlu0.b32.cont [5/16] (narrow) %v12345_v19, 64  ;;  %11753 = vmatprep.subr.bf16.mxu1 %v11752_v2  ;;  %v15616_v61 = vmul.f32 %v12935_v47, %v4562_v59  ;;  %v11766_v59 = vpack.c.bf16 %v15512_v16, %v15514_v37  ;;  %v12353_v19 = vpack.i.bf16 %v15490_v33, %v15601_v1  ;;  %v17400_v47 = vld [vmem:[#allocation49_spill] sm:$0xff] }
0x12c4   : > { %11755 = vmatpush3.bf16.msra.mxu1 %v11754_v45 }
0x12c5   : > { %v12937_v44 = vpop.eup %12936  ;;  %v11756_v50 = vpack.c.bf16 %v15614_v5, %v15616_v61 }
0x12c6   : > { %v12939_v15 = vpop.eup %12938  ;;  %v15628_v57 = vmul.f32 %v12937_v44, %v4565_v24 }
0x12c7   : > { %12348 = vxpose.xlu0.b32.cont [6/16] (narrow) %v12347_v29, 64  ;;  %11757 = vmatprep.subr.bf16.mxu1 %v11756_v50  ;;  %v15630_v62 = vmul.f32 %v12939_v15, %v4564_v25 }
0x12c8   : > { %11759 = vmatpush3.bf16.msra.mxu1 %v11758_v23 }
0x12c9   : > { %v12941_v35 = vpop.eup %12940  ;;  %v11760_v10 = vpack.c.bf16 %v15628_v57, %v15630_v62 }
0x12ca   : > { %v12943_v13 = vpop.eup %12942  ;;  %v15642_v21 = vmul.f32 %v12941_v35, %v4567_v28 }
0x12cb   : > { %12350 = vxpose.xlu0.b32.cont [7/16] (narrow) %v12349_v11, 64  ;;  %11761 = vmatprep.subr.bf16.mxu1 %v11760_v10  ;;  %v15644_v7 = vmul.f32 %v12943_v13, %v4566_v4 }
0x12cc   : > { %11763 = vmatpush3.bf16.msra.mxu1 %v11762_v43 }
0x12cd   : > { %17399 = vst [vmem:[#allocation53_spill] sm:$0xff] %v15644_v7  ;;  %v11764_v32 = vpack.c.bf16 %v15642_v21, %v15644_v7 }
0x12cf   : > { %12352 = vxpose.xlu0.b32.cont [8/16] (narrow) %v12351_v58, 64  ;;  %11765 = vmatprep.subr.bf16.mxu1 %v11764_v32 }
0x12d0   : > { %11767 = vmatpush3.bf16.msra.mxu1 %v11766_v59 }
0x12d1   : > { %11769 = vmatprep.subr.bf16.mxu1 %v15532_v6  ;;  %v12357_v6 = vpack.i.bf16 %v15498_v14, %v15616_v61 }
0x12d3   : > { %12354 = vxpose.xlu0.b32.cont [9/16] (narrow) %v12353_v19, 64  ;;  %5018 = vmatmul.mubr.f32.vlgmr.msra.gmra.mrb[170].mxu1 %v17400_v47 }
0x12d4   : > { %11771 = vmatpush3.bf16.msra.mxu1 %v15536_v9  ;;  %v12359_v9 = vpack.i.bf16 %v15496_v39, %v15614_v5 }
0x12d5   : > { %11773 = vmatprep.subr.bf16.mxu1 %v15552_v20  ;;  %v12361_v20 = vpack.i.bf16 %v15506_v60, %v15630_v62 }
0x12d7   : > { %12356 = vxpose.xlu0.b32.cont [10/16] (narrow) %v12355_v34, 64 }
0x12d8   : > { %11775 = vmatpush3.bf16.msra.mxu1 %v15556_v41  ;;  %v12363_v41 = vpack.i.bf16 %v15504_v18, %v15628_v57 }
0x12d9   : > { %11777 = vmatprep.subr.bf16.mxu1 %v15572_v49  ;;  %v12365_v49 = vpack.i.bf16 %v15514_v37, %v15644_v7 }
0x12db   : > { %12358 = vxpose.xlu0.b32.cont [11/16] (narrow) %v12357_v6, 64 }
0x12dc   : > { %11779 = vmatpush3.bf16.msra.mxu1 %v15576_v8  ;;  %v12367_v8 = vpack.i.bf16 %v15512_v16, %v15642_v21 }
0x12dd   : > { %11781 = vmatprep.subr.bf16.mxu1 %v15592_v52 }
0x12df   : > { %12360 = vxpose.xlu0.b32.cont [12/16] (narrow) %v12359_v9, 64 }
0x12e0   : > { %11783 = vmatpush3.bf16.msra.mxu1 %v15596_v12 }
0x12e1   : > { %11785 = vmatprep.subr.bf16.mxu1 %v11752_v2 }
0x12e3   : > { %12362 = vxpose.xlu0.b32.cont [13/16] (narrow) %v12361_v20, 64 }
0x12e4   : > { %11787 = vmatpush3.bf16.msra.mxu1 %v11754_v45 }
0x12e5   : > { %11789 = vmatprep.subr.bf16.mxu1 %v11756_v50 }
0x12e7   : > { %12364 = vxpose.xlu0.b32.cont [14/16] (narrow) %v12363_v41, 64 }
0x12e8   : > { %11791 = vmatpush3.bf16.msra.mxu1 %v11758_v23 }
0x12e9   : > { %11793 = vmatprep.subr.bf16.mxu1 %v11760_v10 }
0x12eb   : > { %12366 = vxpose.xlu0.b32.cont [15/16] (narrow) %v12365_v49, 64 }
0x12ec   : > { %11795 = vmatpush3.bf16.msra.mxu1 %v11762_v43 }
0x12ed   : > { %11797 = vmatprep.subr.bf16.mxu1 %v11764_v32 }
0x12ef   : > { %12368 = vxpose.xlu0.b32.end [16/16] (narrow) %v12367_v8, 64 }
0x12f0   : > { %11799 = vmatpush3.bf16.msra.mxu1 %v11766_v59 }
0x1333   : > { %v12369_v52 = vpop.trf.xlu0 }
0x1334   : > { %v12373_v12 = vunpack.i.h.bf16 %v12369_v52  ;;  %v12370_v2 = vunpack.i.l.bf16 %v12369_v52 }
0x1336   : > { %5151 = vmatprep.mubr.f32.mxu1 %v12370_v2 }
0x1337   : > { %v12374_v45 = vpop.trf.xlu0  ;;  %5152 = vmatmul.mubr.f32.vlgmr.msra.gmra.mrb[172].mxu1 %v12373_v12 }
0x1338   : > { %v12375_v24 = vunpack.i.l.bf16 %v12374_v45  ;;  %v12378_v44 = vunpack.i.h.bf16 %v12374_v45 }
0x133a   : > { %5156 = vmatprep.mubr.f32.mxu1 %v12375_v24 }
0x133b   : > { %v12379_v30 = vpop.trf.xlu0  ;;  %5157 = vmatmul.mubr.f32.gmra.mrb[174].mxu1 %v12378_v44  ;;  %v17401_v44 = vmov 0.0|0.0  }
0x133c   : > { %v12380_v25 = vunpack.i.l.bf16 %v12379_v30  ;;  %v12383_v29 = vunpack.i.h.bf16 %v12379_v30 }
0x133e   : > { %5161 = vmatprep.mubr.f32.mxu1 %v12380_v25 }
0x133f   : > { %v12384_v50 = vpop.trf.xlu0  ;;  %5162 = vmatmul.mubr.f32.gmra.mrb[176].mxu1 %v12383_v29 }
0x1340   : > { %v12385_v15 = vunpack.i.l.bf16 %v12384_v50  ;;  %v12388_v23 = vunpack.i.h.bf16 %v12384_v50 }
0x1342   : > { %5166 = vmatprep.mubr.f32.mxu1 %v12385_v15 }
0x1343   : > { %v12389_v42 = vpop.trf.xlu0  ;;  %5167 = vmatmul.mubr.f32.gmra.mrb[178].mxu1 %v12388_v23 }
0x1344   : > { %v12390_v28 = vunpack.i.l.bf16 %v12389_v42  ;;  %v12393_v35 = vunpack.i.h.bf16 %v12389_v42 }
0x1346   : > { %5171 = vmatprep.mubr.f32.mxu1 %v12390_v28 }
0x1347   : > { %v12394_v4 = vpop.trf.xlu0  ;;  %5172 = vmatmul.mubr.f32.gmra.mrb[180].mxu1 %v12393_v35 }
0x1348   : > { %v12395_v11 = vunpack.i.l.bf16 %v12394_v4  ;;  %v12398_v10 = vunpack.i.h.bf16 %v12394_v4 }
0x134a   : > { %5176 = vmatprep.mubr.f32.mxu1 %v12395_v11 }
0x134b   : > { %v12399_v13 = vpop.trf.xlu0  ;;  %5177 = vmatmul.mubr.f32.gmra.mrb[182].mxu1 %v12398_v10 }
0x134c   : > { %v12400_v43 = vunpack.i.l.bf16 %v12399_v13  ;;  %v12403_v58 = vunpack.i.h.bf16 %v12399_v13 }
0x134e   : > { %5181 = vmatprep.mubr.f32.mxu1 %v12400_v43 }
0x134f   : > { %v12404_v32 = vpop.trf.xlu0  ;;  %5182 = vmatmul.mubr.f32.gmra.mrb[184].mxu1 %v12403_v58 }
0x1350   : > { %v12405_v59 = vunpack.i.l.bf16 %v12404_v32  ;;  %v12408_v19 = vunpack.i.h.bf16 %v12404_v32 }
0x1352   : > { %5186 = vmatprep.mubr.f32.mxu1 %v12405_v59 }
0x1353   : > { %5187 = vmatmul.mubr.f32.gmra.mrb[186].mxu1 %v12408_v19 }
0x13a6   : > { %v9886_v47 = vpop.f32.mrb[170].mxu1 }
0x13a7   : > { %v9887_v34 = vpop.f32.mrb[171].mxu1 }
0x13a8   : > { %v9888_v6 = vadd.f32 %v9887_v34, %v9886_v47  ;;  %v17402_v47 = vld [vmem:[#allocation52_spill] sm:$0xff]  ;;  %v17403_v34 = vld [vmem:[#allocation15_spill] sm:$0xff] }
0x140a   : > { %v9921_v9 = vpop.f32.mrb[172].mxu1 }
0x140b   : > { %v9922_v20 = vpop.f32.mrb[173].mxu1 }
0x140c   : > { %v9923_v41 = vadd.f32 %v9922_v20, %v9921_v9 }
0x140e   : > { %v9924_v49 = vpop.f32.mrb[174].mxu1 }
0x140f   : > { %v9925_v8 = vpop.f32.mrb[175].mxu1 }
0x1410   : > { %v9926_v52 = vadd.f32 %v9925_v8, %v9924_v49  ;;  %v5192_v49 = vmul.f32 %v9888_v6, %v17402_v47  ;;  %v17406_v6 = vld [vmem:[#allocation17_spill] sm:$0xff] }
0x1412   : > { %v11801_v12 = vpack.c.bf16 %v9926_v52, %v9923_v41  ;;  %v9927_v2 = vpop.f32.mrb[176].mxu1 }
0x1413   : > { %v9928_v45 = vpop.f32.mrb[177].mxu1 }
0x1414   : > { %v9929_v24 = vadd.f32 %v9928_v45, %v9927_v2  ;;  %11802 = vmatpush3.bf16.msra.mxu0 %v11801_v12  ;;  %v17405_v12 = vld [vmem:[#allocation16_spill] sm:$0xff]  ;;  %v17407_v2 = vld [vmem:[#allocation18_spill] sm:$0xff]  ;;  %v17408_v45 = vld [vmem:[#allocation19_spill] sm:$0xff] }
0x1415   : > { %11803 = vmatprep.subr.bf16.mxu0 %v17401_v44 }
0x1416   : > { %v9930_v30 = vpop.f32.mrb[178].mxu1 }
0x1417   : > { %v9931_v25 = vpop.f32.mrb[179].mxu1 }
0x1418   : > { %v9932_v29 = vadd.f32 %v9931_v25, %v9930_v30  ;;  %v17410_v30 = vld [vmem:[#allocation21_spill] sm:$0xff]  ;;  %v17411_v25 = vld [vmem:[#allocation22_spill] sm:$0xff] }
0x141a   : > { %v11804_v50 = vpack.c.bf16 %v9932_v29, %v9929_v24  ;;  %v9933_v15 = vpop.f32.mrb[180].mxu1  ;;  %v17409_v24 = vld [vmem:[#allocation20_spill] sm:$0xff]  ;;  %v17412_v29 = vld [vmem:[#allocation23_spill] sm:$0xff] }
0x141b   : > { %v9934_v23 = vpop.f32.mrb[181].mxu1 }
0x141c   : > { %v9935_v42 = vadd.f32 %v9934_v23, %v9933_v15  ;;  %11805 = vmatpush3.bf16.msra.mxu0 %v11804_v50  ;;  %v17413_v50 = vld [vmem:[#allocation24_spill] sm:$0xff]  ;;  %v17414_v15 = vld [vmem:[#allocation25_spill] sm:$0xff]  ;;  %v17415_v23 = vld [vmem:[#allocation26_spill] sm:$0xff] }
0x141d   : > { %11806 = vmatprep.subr.bf16.mxu0 %v17401_v44 }
0x141e   : > { %v9936_v28 = vpop.f32.mrb[182].mxu1 }
0x141f   : > { %v9937_v35 = vpop.f32.mrb[183].mxu1 }
0x1420   : > { %v9938_v4 = vadd.f32 %v9937_v35, %v9936_v28  ;;  %v17417_v28 = vld [vmem:[#allocation28_spill] sm:$0xff]  ;;  %v17418_v35 = vld [vmem:[#allocation29_spill] sm:$0xff] }
0x1422   : > { %v11807_v11 = vpack.c.bf16 %v9938_v4, %v9935_v42  ;;  %v9939_v10 = vpop.f32.mrb[184].mxu1  ;;  %v17416_v42 = vld [vmem:[#allocation27_spill] sm:$0xff]  ;;  %v17419_v4 = vld [vmem:[#allocation30_spill] sm:$0xff] }
0x1423   : > { %v9940_v13 = vpop.f32.mrb[185].mxu1 }
0x1424   : > { %v9941_v43 = vadd.f32 %v9940_v13, %v9939_v10  ;;  %11808 = vmatpush3.bf16.msra.mxu0 %v11807_v11  ;;  %v17420_v11 = vld [vmem:[#allocation31_spill] sm:$0xff]  ;;  %v17421_v10 = vld [vmem:[#allocation32_spill] sm:$0xff]  ;;  %v17422_v13 = vld [vmem:[#allocation33_spill] sm:$0xff] }
0x1425   : > { %11809 = vmatprep.subr.bf16.mxu0 %v17401_v44 }
0x1426   : > { %v9942_v58 = vpop.f32.mrb[186].mxu1 }
0x1427   : > { %v9943_v32 = vpop.f32.mrb[187].mxu1 }
0x1428   : > { %v9944_v59 = vadd.f32 %v9943_v32, %v9942_v58  ;;  %v17424_v58 = vld [vmem:[#allocation35_spill] sm:$0xff]  ;;  %v17425_v32 = vld [vmem:[#allocation36_spill] sm:$0xff] }
0x142a   : > { %v11810_v19 = vpack.c.bf16 %v9944_v59, %v9941_v43  ;;  %v17423_v43 = vld [vmem:[#allocation34_spill] sm:$0xff]  ;;  %v17426_v59 = vld [vmem:[#allocation37_spill] sm:$0xff] }
0x142c   : > { %11811 = vmatpush3.bf16.msra.mxu0 %v11810_v19  ;;  %v17427_v19 = vld [vmem:[#allocation38_spill] sm:$0xff] }
0x142f   : > { %11020 = vmatmul.mubr.msk.f32.vlgmr.msra.gmra.mrb[178].mxu0 %vm662_vm2, %v17402_v47  ;;  %v17428_v47 = vld [vmem:[#allocation39_spill] sm:$0xff] }
0x1430   : > { %11024 = vmatprep.mubr.msk.f32.mxu0 %vm304_vm1, %v17403_v34 }
0x1502   : > { %v5261_v9 = vpop.f32.mrb[178].mxu0 }
0x1503   : > { %v5262_v20 = vadd.f32 1e-06, %v5261_v9  ;;  %v11021_v41 = vpop.f32.mrb[179].mxu0  ;;  %v17429_v9 = vld [vmem:[#allocation40_spill] sm:$0xff] }
0x1504   : > { %v17431_v41 = vld [vmem:[#allocation42_spill] sm:$0xff] }
0x1505   : > { %12944 = vrcp.f32 %v5262_v20  ;;  %v17430_v20 = vld [vmem:[#allocation41_spill] sm:$0xff] }
0x150f   : > { %v12945_v8 = vpop.eup %12944 }
0x1510   : > { %v15685_v52 = vmul.f32 %v12945_v8, %v5192_v49  ;;  %v17432_v49 = vld [vmem:[#allocation43_spill] sm:$0xff]  ;;  %v17433_v8 = vld [vmem:[#allocation44_spill] sm:$0xff] }
0x1512   : > { %17404 = vst [vmem:[#allocation54_spill] sm:$0xff] %v15685_v52  ;;  %5495 = vxpose.xlu1.b32.start.end [1/1] (short) (narrow) %v15685_v52, 64  ;;  %11022 = vmatprep.subr.msk.mxu0 %vm401_vm0, %v15685_v52 }
0x1513   : > { %11072 = vmatprep.subr.msk.mxu1 %vm401_vm0, %v15685_v52  ;;  %11023 = vmatpush3.msk.msra.mxu0 %vm401_vm0, %v15685_v52 }
0x1514   : > { %11073 = vmatpush3.msk.msra.mxu1 %vm401_vm0, %v15685_v52  ;;  %11025 = vmatmul.mubr.msk.f32.vlgmr.msra.gmra.mrb[180].mxu0 %vm304_vm1, %v17405_v12 }
0x1515   : > { %11027 = vmatprep.mubr.msk.f32.mxu0 %vm304_vm1, %v17406_v6 }
0x1518   : > { %11028 = vmatmul.mubr.msk.f32.gmra.mrb[182].mxu0 %vm304_vm1, %v17407_v2 }
0x1519   : > { %11030 = vmatprep.mubr.msk.f32.mxu0 %vm304_vm1, %v17408_v45 }
0x151c   : > { %11031 = vmatmul.mubr.msk.f32.gmra.mrb[184].mxu0 %vm304_vm1, %v17409_v24 }
0x151d   : > { %11033 = vmatprep.mubr.msk.f32.mxu0 %vm304_vm1, %v17410_v30 }
0x1520   : > { %11034 = vmatmul.mubr.msk.f32.gmra.mrb[186].mxu0 %vm304_vm1, %v17411_v25 }
0x1521   : > { %11036 = vmatprep.mubr.msk.f32.mxu0 %vm304_vm1, %v17412_v29 }
0x1524   : > { %11037 = vmatmul.mubr.msk.f32.gmra.mrb[188].mxu0 %vm304_vm1, %v17413_v50 }
0x1525   : > { %11039 = vmatprep.mubr.msk.f32.mxu0 %vm304_vm1, %v17414_v15 }
0x1528   : > { %11040 = vmatmul.mubr.msk.f32.gmra.mrb[190].mxu0 %vm304_vm1, %v17415_v23 }
0x1529   : > { %11042 = vmatprep.mubr.msk.f32.mxu0 %vm304_vm1, %v17416_v42 }
0x152c   : > { %11043 = vmatmul.mubr.msk.f32.gmra.mrb[192].mxu0 %vm304_vm1, %v17417_v28 }
0x152d   : > { %11045 = vmatprep.mubr.msk.f32.mxu0 %vm304_vm1, %v17418_v35 }
0x1530   : > { %11046 = vmatmul.mubr.msk.f32.gmra.mrb[194].mxu0 %vm304_vm1, %v17419_v4 }
0x1531   : > { %11048 = vmatprep.mubr.msk.f32.mxu0 %vm304_vm1, %v17420_v11 }
0x1534   : > { %11049 = vmatmul.mubr.msk.f32.gmra.mrb[196].mxu0 %vm304_vm1, %v17421_v10 }
0x1535   : > { %11051 = vmatprep.mubr.msk.f32.mxu0 %vm304_vm1, %v17422_v13 }
0x1538   : > { %11052 = vmatmul.mubr.msk.f32.gmra.mrb[198].mxu0 %vm304_vm1, %v17423_v43 }
0x1539   : > { %11054 = vmatprep.mubr.msk.f32.mxu0 %vm304_vm1, %v17424_v58 }
0x153c   : > { %11055 = vmatmul.mubr.msk.f32.gmra.mrb[200].mxu0 %vm304_vm1, %v17425_v32 }
0x153d   : > { %11057 = vmatprep.mubr.msk.f32.mxu0 %vm304_vm1, %v17426_v59  ;;  %v17434_v59 = vld [vmem:[#allocation45_spill] sm:$0xff] }
0x1540   : > { %11058 = vmatmul.mubr.msk.f32.gmra.mrb[202].mxu0 %vm304_vm1, %v17427_v19  ;;  %v17435_v19 = vld [vmem:[#allocation46_spill] sm:$0xff] }
0x1541   : > { %11060 = vmatprep.mubr.msk.f32.mxu0 %vm304_vm1, %v17428_v47  ;;  %v17436_v47 = vld [vmem:[#allocation14_spill] sm:$0xff] }
0x1544   : > { %11061 = vmatmul.mubr.msk.f32.gmra.mrb[204].mxu0 %vm304_vm1, %v17429_v9 }
0x1545   : > { %11063 = vmatprep.mubr.msk.f32.mxu0 %vm304_vm1, %v17430_v20 }
0x1548   : > { %11064 = vmatmul.mubr.msk.f32.gmra.mrb[206].mxu0 %vm304_vm1, %v17431_v41 }
0x1549   : > { %11066 = vmatprep.mubr.msk.f32.mxu0 %vm304_vm1, %v17432_v49 }
0x154c   : > { %11067 = vmatmul.mubr.msk.f32.gmra.mrb[208].mxu0 %vm304_vm1, %v17433_v8 }
0x154d   : > { %11069 = vmatprep.mubr.msk.f32.mxu0 %vm304_vm1, %v17434_v59 }
0x1550   : > { %11070 = vmatmul.mubr.msk.f32.gmra.mrb[210].mxu0 %vm304_vm1, %v17435_v19 }
0x1551   : > { %6137 = vmatprep.mubr.f32.mxu0 %v17436_v47 }
0x1592   : > { %v5511_v9 = vpop.trf.xlu1 }
0x1593   : > { %11074 = vmatprep.mubr.msk.f32.mxu1 %vm304_vm1, %v5511_v9 }
0x1596   : > { %v5512_v20 = vpop.trf.xlu1 }
0x1597   : > { %11075 = vmatmul.mubr.msk.f32.vlgmr.msra.gmra.mrb[188].mxu1 %vm304_vm1, %v5512_v20 }
0x159a   : > { %v5513_v41 = vpop.trf.xlu1 }
0x159b   : > { %11077 = vmatprep.mubr.msk.f32.mxu1 %vm304_vm1, %v5513_v41 }
0x159e   : > { %v5514_v49 = vpop.trf.xlu1 }
0x159f   : > { %11078 = vmatmul.mubr.msk.f32.gmra.mrb[190].mxu1 %vm304_vm1, %v5514_v49 }
0x15a2   : > { %v5515_v8 = vpop.trf.xlu1 }
0x15a3   : > { %11080 = vmatprep.mubr.msk.f32.mxu1 %vm304_vm1, %v5515_v8 }
0x15a6   : > { %v5516_v59 = vpop.trf.xlu1 }
0x15a7   : > { %11081 = vmatmul.mubr.msk.f32.gmra.mrb[192].mxu1 %vm304_vm1, %v5516_v59 }
0x15aa   : > { %v5517_v19 = vpop.trf.xlu1 }
0x15ab   : > { %11083 = vmatprep.mubr.msk.f32.mxu1 %vm304_vm1, %v5517_v19 }
0x15ae   : > { %v5518_v47 = vpop.trf.xlu1 }
0x15af   : > { %11084 = vmatmul.mubr.msk.f32.gmra.mrb[194].mxu1 %vm304_vm1, %v5518_v47 }
0x15b0   : > { %11102 = vmatprep.mubr.msk.f32.mxu1 %vm662_vm2, %v15458_v17 }
0x15e7   : > { %v15769_v9 = vpop.f32.mrb[180].mxu0 }
0x15e8   : > { %v15771_v20 = vpop.f32.mrb[181].mxu0 }
0x15eb   : > { %v15773_v41 = vpop.f32.mrb[182].mxu0 }
0x15ec   : > { %v15775_v49 = vpop.f32.mrb[183].mxu0 }
0x15ef   : > { %v15777_v8 = vpop.f32.mrb[184].mxu0 }
0x15f0   : > { %v15779_v59 = vpop.f32.mrb[185].mxu0 }
0x15f3   : > { %v15781_v32 = vpop.f32.mrb[186].mxu0 }
0x15f4   : > { %v15783_v19 = vpop.f32.mrb[187].mxu0 }
0x15f7   : > { %v15785_v47 = vpop.f32.mrb[188].mxu0 }
0x15f8   : > { %v15787_v58 = vpop.f32.mrb[189].mxu0 }
0x15fb   : > { %v15789_v43 = vpop.f32.mrb[190].mxu0 }
0x15fc   : > { %v15791_v13 = vpop.f32.mrb[191].mxu0 }
0x15ff   : > { %v15793_v10 = vpop.f32.mrb[192].mxu0 }
0x1600   : > { %v15795_v11 = vpop.f32.mrb[193].mxu0 }
0x1603   : > { %v15797_v4 = vpop.f32.mrb[194].mxu0 }
0x1604   : > { %v15799_v35 = vpop.f32.mrb[195].mxu0 }
0x1607   : > { %v15801_v28 = vpop.f32.mrb[196].mxu0 }
0x1608   : > { %v15803_v42 = vpop.f32.mrb[197].mxu0 }
0x160b   : > { %v15805_v23 = vpop.f32.mrb[198].mxu0 }
0x160c   : > { %v15807_v15 = vpop.f32.mrb[199].mxu0 }
0x160d   : > { %17437 = vst [vmem:[#allocation55_spill] sm:$0xff] %v15807_v15 }
0x160f   : > { %v15809_v50 = vpop.f32.mrb[200].mxu0 }
0x1610   : > { %17438 = vst [vmem:[#allocation56_spill] sm:$0xff] %v15809_v50  ;;  %v15811_v29 = vpop.f32.mrb[201].mxu0 }
0x1611   : > { %17439 = vst [vmem:[#allocation57_spill] sm:$0xff] %v15811_v29 }
0x1613   : > { %v15813_v25 = vpop.f32.mrb[202].mxu0 }
0x1614   : > { %17440 = vst [vmem:[#allocation58_spill] sm:$0xff] %v15813_v25  ;;  %v15815_v30 = vpop.f32.mrb[203].mxu0 }
0x1615   : > { %17441 = vst [vmem:[#allocation59_spill] sm:$0xff] %v15815_v30 }
0x1617   : > { %v15817_v24 = vpop.f32.mrb[204].mxu0 }
0x1618   : > { %17442 = vst [vmem:[#allocation60_spill] sm:$0xff] %v15817_v24  ;;  %v15819_v45 = vpop.f32.mrb[205].mxu0 }
0x1619   : > { %17443 = vst [vmem:[#allocation61_spill] sm:$0xff] %v15819_v45 }
0x161b   : > { %v15821_v2 = vpop.f32.mrb[206].mxu0 }
0x161c   : > { %17444 = vst [vmem:[#allocation47_spill] sm:$0xff] %v15821_v2  ;;  %v15823_v6 = vpop.f32.mrb[207].mxu0 }
0x161d   : > { %17445 = vst [vmem:[#allocation62_spill] sm:$0xff] %v15823_v6 }
0x161f   : > { %v15825_v12 = vpop.f32.mrb[208].mxu0 }
0x1620   : > { %17446 = vst [vmem:[#allocation50_spill] sm:$0xff] %v15825_v12  ;;  %v15827_v34 = vpop.f32.mrb[209].mxu0 }
0x1621   : > { %17447 = vst [vmem:[#allocation48_spill] sm:$0xff] %v15827_v34 }
0x1623   : > { %v15829_v52 = vpop.f32.mrb[210].mxu0 }
0x1624   : > { %17448 = vst [vmem:[#allocation51_spill] sm:$0xff] %v15829_v52  ;;  %v15831_v44 = vpop.f32.mrb[211].mxu0 }
0x1625   : > { %17449 = vst [vmem:[#allocation49_spill] sm:$0xff] %v15831_v44  ;;  %v5657_v44 = vmul.f32 %v15769_v9, %v15456_v51 }
0x166a   : > { %v11076_v29 = vpop.f32.mrb[188].mxu1 }
0x166b   : > { %v5617_v25 = vpop.f32.mrb[189].mxu1 }
0x166c   : > { %v11812_v50 = vpack.c.bf16 %v11076_v29, %v5617_v25 }
0x166e   : > { %11813 = vmatprep.subr.bf16.mxu1 %v11812_v50 }
0x166f   : > { %11815 = vmatpush3.bf16.msra.mxu1 %v11812_v50 }
0x1672   : > { %v11079_v24 = vpop.f32.mrb[190].mxu1 }
0x1673   : > { %v5627_v30 = vpop.f32.mrb[191].mxu1 }
0x1674   : > { %v11816_v45 = vpack.c.bf16 %v11079_v24, %v5627_v30 }
0x1676   : > { %11817 = vmatprep.subr.bf16.mxu1 %v11816_v45 }
0x1677   : > { %11819 = vmatpush3.bf16.msra.mxu1 %v11816_v45 }
0x167a   : > { %v11082_v2 = vpop.f32.mrb[192].mxu1 }
0x167b   : > { %v5637_v6 = vpop.f32.mrb[193].mxu1 }
0x167c   : > { %v11820_v15 = vpack.c.bf16 %v11082_v2, %v5637_v6 }
0x167e   : > { %11821 = vmatprep.subr.bf16.mxu1 %v11820_v15 }
0x167f   : > { %11823 = vmatpush3.bf16.msra.mxu1 %v11820_v15 }
0x1682   : > { %v11085_v34 = vpop.f32.mrb[194].mxu1 }
0x1683   : > { %v5647_v12 = vpop.f32.mrb[195].mxu1 }
0x1684   : > { %v11824_v52 = vpack.c.bf16 %v11085_v34, %v5647_v12 }
0x1686   : > { %11825 = vmatprep.subr.bf16.mxu1 %v11824_v52 }
0x1687   : > { %11827 = vmatpush3.bf16.msra.mxu1 %v11824_v52 }
0x168a   : > { %11103 = vmatmul.mubr.msk.f32.vlgmr.msra.gmra.mrb[196].mxu1 %vm662_vm2, %v15456_v51 }
0x168b   : > { %11105 = vmatprep.mubr.msk.f32.mxu1 %vm662_vm2, %v15466_v56 }
0x168e   : > { %11106 = vmatmul.mubr.msk.f32.gmra.mrb[198].mxu1 %vm662_vm2, %v15464_v27 }
0x168f   : > { %11108 = vmatprep.mubr.msk.f32.mxu1 %vm662_vm2, %v15474_v63 }
0x1692   : > { %11109 = vmatmul.mubr.msk.f32.gmra.mrb[200].mxu1 %vm662_vm2, %v15472_v55 }
0x1693   : > { %11111 = vmatprep.mubr.msk.f32.mxu1 %vm662_vm2, %v15482_v46 }
0x1696   : > { %11112 = vmatmul.mubr.msk.f32.gmra.mrb[202].mxu1 %vm662_vm2, %v15480_v3 }
0x1697   : > { %11114 = vmatprep.mubr.msk.f32.mxu1 %vm662_vm2, %v15490_v33 }
0x169a   : > { %11115 = vmatmul.mubr.msk.f32.gmra.mrb[204].mxu1 %vm662_vm2, %v15488_v38 }
0x169b   : > { %11117 = vmatprep.mubr.msk.f32.mxu1 %vm662_vm2, %v15498_v14 }
0x169e   : > { %11118 = vmatmul.mubr.msk.f32.gmra.mrb[206].mxu1 %vm662_vm2, %v15496_v39 }
0x169f   : > { %11120 = vmatprep.mubr.msk.f32.mxu1 %vm662_vm2, %v15506_v60 }
0x16a2   : > { %11121 = vmatmul.mubr.msk.f32.gmra.mrb[208].mxu1 %vm662_vm2, %v15504_v18 }
0x16a3   : > { %11123 = vmatprep.mubr.msk.f32.mxu1 %vm662_vm2, %v15514_v37 }
0x16a6   : > { %11124 = vmatmul.mubr.msk.f32.gmra.mrb[210].mxu1 %vm662_vm2, %v15512_v16 }
0x16a7   : > { %11126 = vmatprep.mubr.msk.f32.mxu1 %vm662_vm2, %v15522_v53 }
0x16aa   : > { %11127 = vmatmul.mubr.msk.f32.gmra.mrb[212].mxu1 %vm662_vm2, %v15520_v48 }
0x16ab   : > { %11129 = vmatprep.mubr.msk.f32.mxu1 %vm662_vm2, %v15541_v26 }
0x16ae   : > { %11130 = vmatmul.mubr.msk.f32.gmra.mrb[214].mxu1 %vm662_vm2, %v15538_v31 }
0x16af   : > { %11132 = vmatprep.mubr.msk.f32.mxu1 %vm662_vm2, %v15561_v36 }
0x16b2   : > { %11133 = vmatmul.mubr.msk.f32.gmra.mrb[216].mxu1 %vm662_vm2, %v15558_v40 }
0x16b3   : > { %11135 = vmatprep.mubr.msk.f32.mxu1 %vm662_vm2, %v15581_v54 }
0x16b6   : > { %11136 = vmatmul.mubr.msk.f32.gmra.mrb[218].mxu1 %vm662_vm2, %v15578_v22 }
0x16b7   : > { %11138 = vmatprep.mubr.msk.f32.mxu1 %vm662_vm2, %v15601_v1 }
0x16ba   : > { %11139 = vmatmul.mubr.msk.f32.gmra.mrb[220].mxu1 %vm662_vm2, %v15598_v0 }
0x16bb   : > { %11141 = vmatprep.mubr.msk.f32.mxu1 %vm662_vm2, %v15616_v61 }
0x16be   : > { %11142 = vmatmul.mubr.msk.f32.gmra.mrb[222].mxu1 %vm662_vm2, %v15614_v5 }
0x16bf   : > { %11144 = vmatprep.mubr.msk.f32.mxu1 %vm662_vm2, %v15630_v62 }
0x16c2   : > { %11145 = vmatmul.mubr.msk.f32.gmra.mrb[224].mxu1 %vm662_vm2, %v15628_v57 }
0x16c3   : > { %11147 = vmatprep.mubr.msk.f32.mxu1 %vm662_vm2, %v15644_v7 }
0x16c6   : > { %11148 = vmatmul.mubr.msk.f32.gmra.mrb[226].mxu1 %vm662_vm2, %v15642_v21 }
0x175d   : > { %v11104_v34 = vpop.f32.mrb[196].mxu1 }
0x175e   : > { %v5856_v52 = vadd.f32 1e-06, %v11104_v34  ;;  %v5850_v12 = vpop.f32.mrb[197].mxu1 }
0x175f   : > { %v5851_v6 = vadd.f32 1e-06, %v5850_v12 }
0x1760   : > { %12946 = vrcp.f32 %v5856_v52  ;;  %v5656_v52 = vmul.f32 %v15771_v20, %v15458_v17 }
0x1761   : > { %12948 = vrcp.f32 %v5851_v6  ;;  %v11107_v2 = vpop.f32.mrb[198].mxu1 }
0x1762   : > { %v5866_v45 = vadd.f32 1e-06, %v11107_v2  ;;  %v5860_v24 = vpop.f32.mrb[199].mxu1 }
0x1763   : > { %v5861_v30 = vadd.f32 1e-06, %v5860_v24 }
0x1764   : > { %12950 = vrcp.f32 %v5866_v45 }
0x1765   : > { %12952 = vrcp.f32 %v5861_v30  ;;  %v11110_v25 = vpop.f32.mrb[200].mxu1 }
0x1766   : > { %v5876_v29 = vadd.f32 1e-06, %v11110_v25  ;;  %v5870_v50 = vpop.f32.mrb[201].mxu1  ;;  %v5659_v25 = vmul.f32 %v15773_v41, %v15464_v27 }
0x1767   : > { %v5871_v15 = vadd.f32 1e-06, %v5870_v50 }
0x1768   : > { %12954 = vrcp.f32 %v5876_v29  ;;  %v5658_v29 = vmul.f32 %v15775_v49, %v15466_v56 }
0x1769   : > { %12956 = vrcp.f32 %v5871_v15  ;;  %v11113_v34 = vpop.f32.mrb[202].mxu1 }
0x176a   : > { %v12947_v7 = vpop.eup %12946  ;;  %v5886_v12 = vadd.f32 1e-06, %v11113_v34  ;;  %v5880_v6 = vpop.f32.mrb[203].mxu1  ;;  %v5661_v34 = vmul.f32 %v15777_v8, %v15472_v55 }
0x176b   : > { %v12949_v2 = vpop.eup %12948  ;;  %v15899_v24 = vmul.f32 %v12947_v7, %v5657_v44  ;;  %v5881_v45 = vadd.f32 1e-06, %v5880_v6 }
0x176c   : > { %12958 = vrcp.f32 %v5886_v12  ;;  %v15901_v30 = vmul.f32 %v12949_v2, %v5656_v52  ;;  %v5660_v52 = vmul.f32 %v15779_v59, %v15474_v63 }
0x176d   : > { %12960 = vrcp.f32 %v5881_v45  ;;  %v11116_v51 = vpop.f32.mrb[204].mxu1 }
0x176e   : > { %v12951_v9 = vpop.eup %12950  ;;  %v5896_v50 = vadd.f32 1e-06, %v11116_v51  ;;  %v5890_v17 = vpop.f32.mrb[205].mxu1  ;;  %v5662_v51 = vmul.f32 %v15783_v19, %v15482_v46 }
0x176f   : > { %v12953_v20 = vpop.eup %12952  ;;  %v15907_v15 = vmul.f32 %v12951_v9, %v5659_v25  ;;  %v5891_v7 = vadd.f32 1e-06, %v5890_v17  ;;  %v5663_v25 = vmul.f32 %v15781_v32, %v15480_v3 }
0x1770   : > { %v15909_v44 = vmul.f32 %v12953_v20, %v5658_v29  ;;  %12962 = vrcp.f32 %v5896_v50  ;;  %v5665_v20 = vmul.f32 %v15785_v47, %v15488_v38 }
0x1771   : > { %12964 = vrcp.f32 %v5891_v7  ;;  %v11119_v27 = vpop.f32.mrb[206].mxu1  ;;  %v5664_v7 = vmul.f32 %v15787_v58, %v15490_v33 }
0x1772   : > { %v12955_v41 = vpop.eup %12954  ;;  %v5906_v12 = vadd.f32 1e-06, %v11119_v27  ;;  %v5900_v56 = vpop.f32.mrb[207].mxu1 }
0x1773   : > { %v12957_v49 = vpop.eup %12956  ;;  %v15915_v6 = vmul.f32 %v12955_v41, %v5661_v34  ;;  %v5901_v2 = vadd.f32 1e-06, %v5900_v56  ;;  %v5666_v56 = vmul.f32 %v15791_v13, %v15498_v14 }
0x1774   : > { %v15917_v45 = vmul.f32 %v12957_v49, %v5660_v52  ;;  %12966 = vrcp.f32 %v5906_v12  ;;  %v5667_v12 = vmul.f32 %v15789_v43, %v15496_v39 }
0x1775   : > { %12968 = vrcp.f32 %v5901_v2  ;;  %v11122_v55 = vpop.f32.mrb[208].mxu1 }
0x1776   : > { %v12959_v8 = vpop.eup %12958  ;;  %v5916_v9 = vadd.f32 1e-06, %v11122_v55  ;;  %v5910_v63 = vpop.f32.mrb[209].mxu1 }
0x1777   : > { %v12961_v59 = vpop.eup %12960  ;;  %v15923_v29 = vmul.f32 %v12959_v8, %v5663_v25  ;;  %v5911_v50 = vadd.f32 1e-06, %v5910_v63  ;;  %v5669_v8 = vmul.f32 %v15793_v10, %v15504_v18 }
0x1778   : > { %v15925_v17 = vmul.f32 %v12961_v59, %v5662_v51  ;;  %12970 = vrcp.f32 %v5916_v9  ;;  %v5668_v51 = vmul.f32 %v15795_v11, %v15506_v60 }
0x1779   : > { %12972 = vrcp.f32 %v5911_v50  ;;  %v11125_v3 = vpop.f32.mrb[210].mxu1 }
0x177a   : > { %v12963_v32 = vpop.eup %12962  ;;  %v5926_v34 = vadd.f32 1e-06, %v11125_v3  ;;  %v5920_v46 = vpop.f32.mrb[211].mxu1  ;;  %v5670_v3 = vmul.f32 %v15799_v35, %v15514_v37 }
0x177b   : > { %v12965_v19 = vpop.eup %12964  ;;  %v15931_v27 = vmul.f32 %v12963_v32, %v5665_v20  ;;  %v5921_v41 = vadd.f32 1e-06, %v5920_v46  ;;  %v5671_v20 = vmul.f32 %v15797_v4, %v15512_v16 }
0x177c   : > { %v15933_v52 = vmul.f32 %v12965_v19, %v5664_v7  ;;  %12974 = vrcp.f32 %v5926_v34  ;;  %v5673_v19 = vmul.f32 %v15801_v28, %v15520_v48 }
0x177d   : > { %12976 = vrcp.f32 %v5921_v41  ;;  %v11128_v38 = vpop.f32.mrb[212].mxu1  ;;  %v5672_v41 = vmul.f32 %v15803_v42, %v15522_v53 }
0x177e   : > { %v12967_v47 = vpop.eup %12966  ;;  %v5936_v49 = vadd.f32 1e-06, %v11128_v38  ;;  %v5930_v33 = vpop.f32.mrb[213].mxu1 }
0x177f   : > { %v12969_v58 = vpop.eup %12968  ;;  %v15939_v2 = vmul.f32 %v12967_v47, %v5667_v12  ;;  %v5931_v25 = vadd.f32 1e-06, %v5930_v33  ;;  %v17450_v33 = vld [vmem:[#allocation55_spill] sm:$0xff] }
0x1780   : > { %v15941_v55 = vmul.f32 %v12969_v58, %v5666_v56  ;;  %12978 = vrcp.f32 %v5936_v49  ;;  %v5675_v49 = vmul.f32 %v15805_v23, %v15538_v31  ;;  %v5674_v58 = vmul.f32 %v17450_v33, %v15541_v26  ;;  %v17451_v26 = vld [vmem:[#allocation56_spill] sm:$0xff] }
0x1781   : > { %12980 = vrcp.f32 %v5931_v25  ;;  %v11131_v39 = vpop.f32.mrb[214].mxu1 }
0x1782   : > { %v12971_v43 = vpop.eup %12970  ;;  %v5946_v9 = vadd.f32 1e-06, %v11131_v39  ;;  %v5940_v14 = vpop.f32.mrb[215].mxu1 }
0x1783   : > { %v12973_v13 = vpop.eup %12972  ;;  %v15947_v63 = vmul.f32 %v12971_v43, %v5669_v8  ;;  %v5941_v59 = vadd.f32 1e-06, %v5940_v14 }
0x1784   : > { %v15949_v50 = vmul.f32 %v12973_v13, %v5668_v51  ;;  %12982 = vrcp.f32 %v5946_v9  ;;  %v11830_v51 = vpack.c.bf16 %v15899_v24, %v15901_v30  ;;  %v5677_v9 = vmul.f32 %v17451_v26, %v15558_v40 }
0x1785   : > { %12984 = vrcp.f32 %v5941_v59  ;;  %v11134_v18 = vpop.f32.mrb[216].mxu1  ;;  %v17452_v59 = vld [vmem:[#allocation57_spill] sm:$0xff]  ;;  %v11834_v40 = vpack.c.bf16 %v15907_v15, %v15909_v44 }
0x1786   : > { %v12975_v10 = vpop.eup %12974  ;;  %v5956_v32 = vadd.f32 1e-06, %v11134_v18  ;;  %v5950_v60 = vpop.f32.mrb[217].mxu1 }
0x1787   : > { %v12977_v11 = vpop.eup %12976  ;;  %v15955_v7 = vmul.f32 %v12975_v10, %v5671_v20  ;;  %v5951_v34 = vadd.f32 1e-06, %v5950_v60  ;;  %v5676_v20 = vmul.f32 %v17452_v59, %v15561_v36 }
0x1788   : > { %v15957_v46 = vmul.f32 %v12977_v11, %v5670_v3  ;;  %12986 = vrcp.f32 %v5956_v32 }
0x1789   : > { %12988 = vrcp.f32 %v5951_v34  ;;  %v11137_v16 = vpop.f32.mrb[218].mxu1 }
0x178a   : > { %v12979_v4 = vpop.eup %12978  ;;  %v5966_v12 = vadd.f32 1e-06, %v11137_v16  ;;  %v5960_v37 = vpop.f32.mrb[219].mxu1 }
0x178b   : > { %v12981_v35 = vpop.eup %12980  ;;  %v5961_v38 = vadd.f32 1e-06, %v5960_v37  ;;  %v15963_v47 = vmul.f32 %v12979_v4, %v5673_v19  ;;  %v17453_v19 = vld [vmem:[#allocation58_spill] sm:$0xff] }
0x178c   : > { %12990 = vrcp.f32 %v5966_v12  ;;  %v15965_v56 = vmul.f32 %v12981_v35, %v5672_v41  ;;  %v5679_v16 = vmul.f32 %v17453_v19, %v15578_v22  ;;  %v17454_v12 = vld [vmem:[#allocation59_spill] sm:$0xff]  ;;  %v11838_v22 = vpack.c.bf16 %v15915_v6, %v15917_v45 }
0x178d   : > { %12992 = vrcp.f32 %v5961_v38  ;;  %v11140_v48 = vpop.f32.mrb[220].mxu1  ;;  %v12411_v3 = vpack.i.bf16 %v15899_v24, %v15963_v47  ;;  %v5678_v37 = vmul.f32 %v17454_v12, %v15581_v54 }
0x178e   : > { %v12983_v28 = vpop.eup %12982  ;;  %v5976_v25 = vadd.f32 1e-06, %v11140_v48  ;;  %v5970_v53 = vpop.f32.mrb[221].mxu1  ;;  %v12409_v42 = vpack.i.bf16 %v15901_v30, %v15965_v56  ;;  %v11828_v8 = vpack.c.bf16 %v15963_v47, %v15965_v56 }
0x178f   : > { %v12985_v39 = vpop.eup %12984  ;;  %v5971_v43 = vadd.f32 1e-06, %v5970_v53  ;;  %v15977_v31 = vmul.f32 %v12983_v28, %v5675_v49 }
0x1790   : > { %12994 = vrcp.f32 %v5976_v25  ;;  %12410 = vxpose.xlu1.b32.start [1/16] (narrow) %v12409_v42, 64  ;;  %11829 = vmatprep.subr.bf16.mxu0 %v11828_v8  ;;  %v15979_v23 = vmul.f32 %v12985_v39, %v5674_v58  ;;  %v17455_v25 = vld [vmem:[#allocation60_spill] sm:$0xff]  ;;  %v17456_v39 = vld [vmem:[#allocation61_spill] sm:$0xff] }
0x1791   : > { %12996 = vrcp.f32 %v5971_v43  ;;  %11861 = vmatprep.subr.bf16.mxu1 %v11828_v8  ;;  %v11143_v14 = vpop.f32.mrb[222].mxu1  ;;  %11831 = vmatpush3.bf16.msra.mxu0 %v11830_v51  ;;  %v5681_v53 = vmul.f32 %v17455_v25, %v15598_v0  ;;  %v5680_v43 = vmul.f32 %v17456_v39, %v15601_v1  ;;  %v11842_v0 = vpack.c.bf16 %v15923_v29, %v15925_v17 }
0x1792   : > { %v12987_v13 = vpop.eup %12986  ;;  %v5986_v18 = vadd.f32 1e-06, %v11143_v14  ;;  %11863 = vmatpush3.bf16.msra.mxu1 %v11830_v51  ;;  %v5980_v10 = vpop.f32.mrb[223].mxu1  ;;  %v11832_v32 = vpack.c.bf16 %v15977_v31, %v15979_v23  ;;  %v12413_v49 = vpack.i.bf16 %v15909_v44, %v15979_v23 }
0x1793   : > { %v12989_v60 = vpop.eup %12988  ;;  %v5981_v11 = vadd.f32 1e-06, %v5980_v10  ;;  %v15991_v34 = vmul.f32 %v12987_v13, %v5677_v9  ;;  %v12415_v9 = vpack.i.bf16 %v15907_v15, %v15977_v31 }
0x1794   : > { %12998 = vrcp.f32 %v5986_v18  ;;  %12412 = vxpose.xlu1.b32.cont [2/16] (narrow) %v12411_v3, 64  ;;  %11833 = vmatprep.subr.bf16.mxu0 %v11832_v32  ;;  %v15993_v36 = vmul.f32 %v12989_v60, %v5676_v20  ;;  %v17457_v18 = vld [vmem:[#allocation47_spill] sm:$0xff] }
0x1795   : > { %13000 = vrcp.f32 %v5981_v11  ;;  %11865 = vmatprep.subr.bf16.mxu1 %v11832_v32  ;;  %v11146_v4 = vpop.f32.mrb[224].mxu1  ;;  %11835 = vmatpush3.bf16.msra.mxu0 %v11834_v40  ;;  %v5683_v10 = vmul.f32 %v17457_v18, %v15614_v5  ;;  %v17458_v32 = vld [vmem:[#allocation62_spill] sm:$0xff]  ;;  %v17464_v18 = vmov 0.0|0.0  }
0x1796   : > { %v12991_v41 = vpop.eup %12990  ;;  %v5996_v35 = vadd.f32 1e-06, %v11146_v4  ;;  %11867 = vmatpush3.bf16.msra.mxu1 %v11834_v40  ;;  %v5990_v38 = vpop.f32.mrb[225].mxu1  ;;  %v11836_v48 = vpack.c.bf16 %v15991_v34, %v15993_v36  ;;  %v5682_v60 = vmul.f32 %v17458_v32, %v15616_v61  ;;  %v12417_v11 = vpack.i.bf16 %v15917_v45, %v15993_v36 }
0x1797   : > { %v12993_v28 = vpop.eup %12992  ;;  %v5991_v33 = vadd.f32 1e-06, %v5990_v38  ;;  %v16005_v58 = vmul.f32 %v12991_v41, %v5679_v16  ;;  %v11846_v16 = vpack.c.bf16 %v15931_v27, %v15933_v52  ;;  %v17459_v41 = vld [vmem:[#allocation50_spill] sm:$0xff]  ;;  %v12419_v38 = vpack.i.bf16 %v15915_v6, %v15991_v34 }
0x1798   : > { %13002 = vrcp.f32 %v5996_v35  ;;  %12414 = vxpose.xlu1.b32.cont [3/16] (narrow) %v12413_v49, 64  ;;  %11837 = vmatprep.subr.bf16.mxu0 %v11836_v48  ;;  %v16007_v54 = vmul.f32 %v12993_v28, %v5678_v37  ;;  %v5685_v61 = vmul.f32 %v17459_v41, %v15628_v57  ;;  %v17460_v37 = vld [vmem:[#allocation48_spill] sm:$0xff]  ;;  %v11850_v28 = vpack.c.bf16 %v15939_v2, %v15941_v55 }
0x1799   : > { %13004 = vrcp.f32 %v5991_v33  ;;  %11869 = vmatprep.subr.bf16.mxu1 %v11836_v48  ;;  %v11149_v42 = vpop.f32.mrb[226].mxu1  ;;  %11839 = vmatpush3.bf16.msra.mxu0 %v11838_v22  ;;  %v5684_v35 = vmul.f32 %v17460_v37, %v15630_v62 }
0x179a   : > { %v12995_v8 = vpop.eup %12994  ;;  %v6006_v51 = vadd.f32 1e-06, %v11149_v42  ;;  %11871 = vmatpush3.bf16.msra.mxu1 %v11838_v22  ;;  %v6000_v26 = vpop.f32.mrb[227].mxu1  ;;  %v11840_v14 = vpack.c.bf16 %v16005_v58, %v16007_v54  ;;  %v17461_v22 = vld [vmem:[#allocation51_spill] sm:$0xff]  ;;  %v17463_v42 = vld [vmem:[#allocation49_spill] sm:$0xff]  ;;  %v12421_v39 = vpack.i.bf16 %v15925_v17, %v16007_v54 }
0x179b   : > { %v12997_v13 = vpop.eup %12996  ;;  %v6001_v59 = vadd.f32 1e-06, %v6000_v26  ;;  %v16019_v20 = vmul.f32 %v12995_v8, %v5681_v53  ;;  %v5687_v62 = vmul.f32 %v17461_v22, %v15642_v21  ;;  %v17462_v53 = vld [vmem:[#allocation53_spill] sm:$0xff]  ;;  %v11854_v26 = vpack.c.bf16 %v15947_v63, %v15949_v50 }
0x179c   : > { %13006 = vrcp.f32 %v6006_v51  ;;  %12416 = vxpose.xlu1.b32.cont [4/16] (narrow) %v12415_v9, 64  ;;  %11841 = vmatprep.subr.bf16.mxu0 %v11840_v14  ;;  %v16021_v1 = vmul.f32 %v12997_v13, %v5680_v43  ;;  %v5686_v8 = vmul.f32 %v17463_v42, %v17462_v53 }
0x179d   : > { %13008 = vrcp.f32 %v6001_v59  ;;  %11873 = vmatprep.subr.bf16.mxu1 %v11840_v14  ;;  %11843 = vmatpush3.bf16.msra.mxu0 %v11842_v0  ;;  %v12423_v14 = vpack.i.bf16 %v15923_v29, %v16005_v58  ;;  %v11858_v59 = vpack.c.bf16 %v15955_v7, %v15957_v46  ;;  %v12427_v32 = vpack.i.bf16 %v15931_v27, %v16019_v20 }
0x179e   : > { %v12999_v3 = vpop.eup %12998  ;;  %11875 = vmatpush3.bf16.msra.mxu1 %v11842_v0  ;;  %v11844_v40 = vpack.c.bf16 %v16019_v20, %v16021_v1  ;;  %v12425_v0 = vpack.i.bf16 %v15933_v52, %v16021_v1 }
0x179f   : > { %v13001_v19 = vpop.eup %13000  ;;  %v16033_v4 = vmul.f32 %v12999_v3, %v5683_v10  ;;  %v16075_v10 = vld [vmem:[%s13485_s8] sm:$0xff]  ;;  %v17466_v3 = vmov 0.0  }
0x17a0   : > { %12418 = vxpose.xlu1.b32.cont [5/16] (narrow) %v12417_v11, 64  ;;  %11845 = vmatprep.subr.bf16.mxu0 %v11844_v40  ;;  %v16035_v5 = vmul.f32 %v13001_v19, %v5682_v60  ;;  %17465 = vst [vmem:[#allocation52_spill] sm:$0xff] %v16075_v10 }
0x17a1   : > { %11877 = vmatprep.subr.bf16.mxu1 %v11844_v40  ;;  %11847 = vmatpush3.bf16.msra.mxu0 %v11846_v16  ;;  %v12431_v11 = vpack.i.bf16 %v15939_v2, %v16033_v4 }
0x17a2   : > { %v13003_v12 = vpop.eup %13002  ;;  %11879 = vmatpush3.bf16.msra.mxu1 %v11846_v16  ;;  %v11848_v49 = vpack.c.bf16 %v16033_v4, %v16035_v5  ;;  %v12429_v60 = vpack.i.bf16 %v15941_v55, %v16035_v5 }
0x17a3   : > { %v13005_v48 = vpop.eup %13004  ;;  %v16047_v33 = vmul.f32 %v13003_v12, %v5685_v61 }
0x17a4   : > { %12420 = vxpose.xlu1.b32.cont [6/16] (narrow) %v12419_v38, 64  ;;  %11849 = vmatprep.subr.bf16.mxu0 %v11848_v49  ;;  %v16049_v57 = vmul.f32 %v13005_v48, %v5684_v35 }
0x17a5   : > { %11881 = vmatprep.subr.bf16.mxu1 %v11848_v49  ;;  %11851 = vmatpush3.bf16.msra.mxu0 %v11850_v28  ;;  %v12435_v19 = vpack.i.bf16 %v15947_v63, %v16047_v33 }
0x17a6   : > { %v13007_v25 = vpop.eup %13006  ;;  %11883 = vmatpush3.bf16.msra.mxu1 %v11850_v28  ;;  %v11852_v43 = vpack.c.bf16 %v16047_v33, %v16049_v57  ;;  %v12433_v40 = vpack.i.bf16 %v15949_v50, %v16049_v57 }
0x17a7   : > { %v13009_v51 = vpop.eup %13008  ;;  %v16061_v9 = vmul.f32 %v13007_v25, %v5687_v62 }
0x17a8   : > { %12422 = vxpose.xlu1.b32.cont [7/16] (narrow) %v12421_v39, 64  ;;  %11853 = vmatprep.subr.bf16.mxu0 %v11852_v43  ;;  %v16063_v21 = vmul.f32 %v13009_v51, %v5686_v8 }
0x17a9   : > { %11885 = vmatprep.subr.bf16.mxu1 %v11852_v43  ;;  %11855 = vmatpush3.bf16.msra.mxu0 %v11854_v26  ;;  %v12439_v41 = vpack.i.bf16 %v15955_v7, %v16061_v9 }
0x17aa   : > { %11887 = vmatpush3.bf16.msra.mxu1 %v11854_v26  ;;  %v11856_v13 = vpack.c.bf16 %v16061_v9, %v16063_v21  ;;  %v12437_v16 = vpack.i.bf16 %v15957_v46, %v16063_v21 }
0x17ac   : > { %12424 = vxpose.xlu1.b32.cont [8/16] (narrow) %v12423_v14, 64  ;;  %11857 = vmatprep.subr.bf16.mxu0 %v11856_v13 }
0x17ad   : > { %11889 = vmatprep.subr.bf16.mxu1 %v11856_v13  ;;  %11859 = vmatpush3.bf16.msra.mxu0 %v11858_v59 }
0x17ae   : > { %11891 = vmatpush3.bf16.msra.mxu1 %v11858_v59  ;;  %11892 = vmatprep.subr.bf16.mxu0 %v17464_v18 }
0x17b0   : > { %12426 = vxpose.xlu1.b32.cont [9/16] (narrow) %v12425_v0, 64  ;;  %6138 = vmatmul.mubr.f32.vlgmr.msra.gmra.mrb[212].mxu0 %v16075_v10 }
0x17b1   : > { %11166 = vmatprep.mubr.msk.f32.mxu0 %vm13313_vm3, %v17466_v3 }
0x17b4   : > { %12428 = vxpose.xlu1.b32.cont [10/16] (narrow) %v12427_v32, 64 }
0x17b8   : > { %12430 = vxpose.xlu1.b32.cont [11/16] (narrow) %v12429_v60, 64 }
0x17bc   : > { %12432 = vxpose.xlu1.b32.cont [12/16] (narrow) %v12431_v11, 64 }
0x17c0   : > { %12434 = vxpose.xlu1.b32.cont [13/16] (narrow) %v12433_v40, 64 }
0x17c4   : > { %12436 = vxpose.xlu1.b32.cont [14/16] (narrow) %v12435_v19, 64 }
0x17c8   : > { %12438 = vxpose.xlu1.b32.cont [15/16] (narrow) %v12437_v16, 64 }
0x17cc   : > { %12440 = vxpose.xlu1.b32.end [16/16] (narrow) %v12439_v41, 64 }
0x1810   : > { %v12441_v61 = vpop.trf.xlu1 }
0x1811   : > { %v12445_v12 = vunpack.i.h.bf16 %v12441_v61  ;;  %v12442_v37 = vunpack.i.l.bf16 %v12441_v61 }
0x1813   : > { %6271 = vmatprep.mubr.f32.mxu1 %v12442_v37 }
0x1814   : > { %v12446_v35 = vpop.trf.xlu1  ;;  %6272 = vmatmul.mubr.f32.vlgmr.msra.gmra.mrb[228].mxu1 %v12445_v12 }
0x1815   : > { %v12447_v38 = vunpack.i.l.bf16 %v12446_v35  ;;  %v12450_v49 = vunpack.i.h.bf16 %v12446_v35 }
0x1817   : > { %6276 = vmatprep.mubr.f32.mxu1 %v12447_v38 }
0x1818   : > { %v12451_v48 = vpop.trf.xlu1  ;;  %6277 = vmatmul.mubr.f32.gmra.mrb[230].mxu1 %v12450_v49 }
0x1819   : > { %v12452_v28 = vunpack.i.l.bf16 %v12451_v48  ;;  %v12455_v22 = vunpack.i.h.bf16 %v12451_v48 }
0x181b   : > { %6281 = vmatprep.mubr.f32.mxu1 %v12452_v28 }
0x181c   : > { %v12456_v62 = vpop.trf.xlu1  ;;  %6282 = vmatmul.mubr.f32.gmra.mrb[232].mxu1 %v12455_v22 }
0x181d   : > { %v12457_v25 = vunpack.i.l.bf16 %v12456_v62  ;;  %v12460_v53 = vunpack.i.h.bf16 %v12456_v62 }
0x181f   : > { %6286 = vmatprep.mubr.f32.mxu1 %v12457_v25 }
0x1820   : > { %v12461_v42 = vpop.trf.xlu1  ;;  %6287 = vmatmul.mubr.f32.gmra.mrb[234].mxu1 %v12460_v53 }
0x1821   : > { %v12462_v8 = vunpack.i.l.bf16 %v12461_v42  ;;  %v12465_v39 = vunpack.i.h.bf16 %v12461_v42 }
0x1823   : > { %6291 = vmatprep.mubr.f32.mxu1 %v12462_v8 }
0x1824   : > { %v12466_v43 = vpop.trf.xlu1  ;;  %6292 = vmatmul.mubr.f32.gmra.mrb[236].mxu1 %v12465_v39 }
0x1825   : > { %v12467_v51 = vunpack.i.l.bf16 %v12466_v43  ;;  %v12470_v26 = vunpack.i.h.bf16 %v12466_v43 }
0x1827   : > { %6296 = vmatprep.mubr.f32.mxu1 %v12467_v51 }
0x1828   : > { %v12471_v14 = vpop.trf.xlu1  ;;  %6297 = vmatmul.mubr.f32.gmra.mrb[238].mxu1 %v12470_v26 }
0x1829   : > { %v12472_v13 = vunpack.i.l.bf16 %v12471_v14  ;;  %v12475_v59 = vunpack.i.h.bf16 %v12471_v14 }
0x182b   : > { %6301 = vmatprep.mubr.f32.mxu1 %v12472_v13 }
0x182c   : > { %v12476_v0 = vpop.trf.xlu1  ;;  %6302 = vmatmul.mubr.f32.gmra.mrb[240].mxu1 %v12475_v59 }
0x182d   : > { %v12477_v32 = vunpack.i.l.bf16 %v12476_v0  ;;  %v12480_v60 = vunpack.i.h.bf16 %v12476_v0 }
0x182f   : > { %6306 = vmatprep.mubr.f32.mxu1 %v12477_v32 }
0x1830   : > { %6307 = vmatmul.mubr.f32.gmra.mrb[242].mxu1 %v12480_v60 }
0x1883   : > { %v10068_v11 = vpop.f32.mrb[212].mxu0 }
0x1884   : > { %v10069_v40 = vpop.f32.mrb[213].mxu0 }
0x1885   : > { %v10070_v19 = vadd.f32 %v10069_v40, %v10068_v11 }
0x18e7   : > { %v10103_v16 = vpop.f32.mrb[228].mxu1 }
0x18e8   : > { %v10104_v41 = vpop.f32.mrb[229].mxu1 }
0x18e9   : > { %v10105_v61 = vadd.f32 %v10104_v41, %v10103_v16  ;;  %v17467_v16 = vld [vmem:[#allocation54_spill] sm:$0xff]  ;;  %v17468_v41 = vld [vmem:[#allocation15_spill] sm:$0xff] }
0x18eb   : > { %v10106_v12 = vpop.f32.mrb[230].mxu1 }
0x18ec   : > { %v10107_v37 = vpop.f32.mrb[231].mxu1 }
0x18ed   : > { %v10108_v35 = vadd.f32 %v10107_v37, %v10106_v12 }
0x18ef   : > { %v11893_v38 = vpack.c.bf16 %v10108_v35, %v10105_v61  ;;  %v10109_v49 = vpop.f32.mrb[232].mxu1  ;;  %v6312_v35 = vmul.f32 %v10070_v19, %v17467_v16  ;;  %v17471_v19 = vld [vmem:[#allocation17_spill] sm:$0xff] }
0x18f0   : > { %v10110_v48 = vpop.f32.mrb[233].mxu1 }
0x18f1   : > { %v10111_v28 = vadd.f32 %v10110_v48, %v10109_v49  ;;  %11894 = vmatpush3.bf16.msra.mxu0 %v11893_v38  ;;  %v17470_v48 = vld [vmem:[#allocation16_spill] sm:$0xff] }
0x18f2   : > { %11895 = vmatprep.subr.bf16.mxu0 %v17464_v18 }
0x18f3   : > { %v10112_v22 = vpop.f32.mrb[234].mxu1 }
0x18f4   : > { %v10113_v62 = vpop.f32.mrb[235].mxu1 }
0x18f5   : > { %v10114_v25 = vadd.f32 %v10113_v62, %v10112_v22  ;;  %v17473_v22 = vld [vmem:[#allocation19_spill] sm:$0xff]  ;;  %v17474_v62 = vld [vmem:[#allocation20_spill] sm:$0xff] }
0x18f7   : > { %v11896_v53 = vpack.c.bf16 %v10114_v25, %v10111_v28  ;;  %v10115_v42 = vpop.f32.mrb[236].mxu1  ;;  %v17472_v28 = vld [vmem:[#allocation18_spill] sm:$0xff]  ;;  %v17475_v25 = vld [vmem:[#allocation21_spill] sm:$0xff] }
0x18f8   : > { %v10116_v8 = vpop.f32.mrb[237].mxu1 }
0x18f9   : > { %v10117_v39 = vadd.f32 %v10116_v8, %v10115_v42  ;;  %11897 = vmatpush3.bf16.msra.mxu0 %v11896_v53  ;;  %v17476_v53 = vld [vmem:[#allocation22_spill] sm:$0xff]  ;;  %v17477_v42 = vld [vmem:[#allocation23_spill] sm:$0xff]  ;;  %v17478_v8 = vld [vmem:[#allocation24_spill] sm:$0xff] }
0x18fa   : > { %11898 = vmatprep.subr.bf16.mxu0 %v17464_v18 }
0x18fb   : > { %v10118_v43 = vpop.f32.mrb[238].mxu1 }
0x18fc   : > { %v10119_v51 = vpop.f32.mrb[239].mxu1 }
0x18fd   : > { %v10120_v26 = vadd.f32 %v10119_v51, %v10118_v43  ;;  %v17480_v43 = vld [vmem:[#allocation26_spill] sm:$0xff]  ;;  %v17481_v51 = vld [vmem:[#allocation27_spill] sm:$0xff] }
0x18ff   : > { %v11899_v14 = vpack.c.bf16 %v10120_v26, %v10117_v39  ;;  %v10121_v13 = vpop.f32.mrb[240].mxu1  ;;  %v17479_v39 = vld [vmem:[#allocation25_spill] sm:$0xff]  ;;  %v17482_v26 = vld [vmem:[#allocation28_spill] sm:$0xff] }
0x1900   : > { %v10122_v59 = vpop.f32.mrb[241].mxu1 }
0x1901   : > { %v10123_v0 = vadd.f32 %v10122_v59, %v10121_v13  ;;  %11900 = vmatpush3.bf16.msra.mxu0 %v11899_v14  ;;  %v17483_v14 = vld [vmem:[#allocation29_spill] sm:$0xff]  ;;  %v17484_v13 = vld [vmem:[#allocation30_spill] sm:$0xff]  ;;  %v17485_v59 = vld [vmem:[#allocation31_spill] sm:$0xff] }
0x1902   : > { %11901 = vmatprep.subr.bf16.mxu0 %v17464_v18 }
0x1903   : > { %v10124_v32 = vpop.f32.mrb[242].mxu1 }
0x1904   : > { %v10125_v60 = vpop.f32.mrb[243].mxu1 }
0x1905   : > { %v10126_v11 = vadd.f32 %v10125_v60, %v10124_v32  ;;  %v17487_v32 = vld [vmem:[#allocation33_spill] sm:$0xff]  ;;  %v17488_v60 = vld [vmem:[#allocation34_spill] sm:$0xff] }
0x1907   : > { %v11902_v40 = vpack.c.bf16 %v10126_v11, %v10123_v0  ;;  %v17486_v0 = vld [vmem:[#allocation32_spill] sm:$0xff]  ;;  %v17489_v11 = vld [vmem:[#allocation35_spill] sm:$0xff] }
0x1909   : > { %11903 = vmatpush3.bf16.msra.mxu0 %v11902_v40  ;;  %v17490_v40 = vld [vmem:[#allocation36_spill] sm:$0xff] }
0x190c   : > { %11167 = vmatmul.mubr.msk.f32.vlgmr.msra.gmra.mrb[214].mxu0 %vm662_vm2, %v17467_v16  ;;  %v17491_v16 = vld [vmem:[#allocation37_spill] sm:$0xff] }
0x190d   : > { %11171 = vmatprep.mubr.msk.f32.mxu0 %vm304_vm1, %v17468_v41 }
0x19df   : > { %v6381_v61 = vpop.f32.mrb[214].mxu0 }
0x19e0   : > { %v6382_v12 = vadd.f32 1e-06, %v6381_v61  ;;  %v11168_v37 = vpop.f32.mrb[215].mxu0  ;;  %v17492_v61 = vld [vmem:[#allocation38_spill] sm:$0xff] }
0x19e1   : > { %v17494_v37 = vld [vmem:[#allocation40_spill] sm:$0xff] }
0x19e2   : > { %13010 = vrcp.f32 %v6382_v12  ;;  %v17493_v12 = vld [vmem:[#allocation39_spill] sm:$0xff] }
0x19ec   : > { %v13011_v38 = vpop.eup %13010 }
0x19ed   : > { %v16102_v49 = vmul.f32 %v13011_v38, %v6312_v35  ;;  %v17495_v35 = vld [vmem:[#allocation41_spill] sm:$0xff]  ;;  %v17496_v38 = vld [vmem:[#allocation42_spill] sm:$0xff] }
0x19ef   : > { %17469 = vst [vmem:[#allocation55_spill] sm:$0xff] %v16102_v49  ;;  %6615 = vxpose.xlu0.b32.start.end [1/1] (short) (narrow) %v16102_v49, 64  ;;  %11169 = vmatprep.subr.msk.mxu0 %vm401_vm0, %v16102_v49 }
0x19f0   : > { %11219 = vmatprep.subr.msk.mxu1 %vm401_vm0, %v16102_v49  ;;  %11170 = vmatpush3.msk.msra.mxu0 %vm401_vm0, %v16102_v49 }
0x19f1   : > { %11220 = vmatpush3.msk.msra.mxu1 %vm401_vm0, %v16102_v49  ;;  %11172 = vmatmul.mubr.msk.f32.vlgmr.msra.gmra.mrb[216].mxu0 %vm304_vm1, %v17470_v48 }
0x19f2   : > { %11174 = vmatprep.mubr.msk.f32.mxu0 %vm304_vm1, %v17471_v19 }
0x19f5   : > { %11175 = vmatmul.mubr.msk.f32.gmra.mrb[218].mxu0 %vm304_vm1, %v17472_v28 }
0x19f6   : > { %11177 = vmatprep.mubr.msk.f32.mxu0 %vm304_vm1, %v17473_v22 }
0x19f9   : > { %11178 = vmatmul.mubr.msk.f32.gmra.mrb[220].mxu0 %vm304_vm1, %v17474_v62 }
0x19fa   : > { %11180 = vmatprep.mubr.msk.f32.mxu0 %vm304_vm1, %v17475_v25 }
0x19fd   : > { %11181 = vmatmul.mubr.msk.f32.gmra.mrb[222].mxu0 %vm304_vm1, %v17476_v53 }
0x19fe   : > { %11183 = vmatprep.mubr.msk.f32.mxu0 %vm304_vm1, %v17477_v42 }
0x1a01   : > { %11184 = vmatmul.mubr.msk.f32.gmra.mrb[224].mxu0 %vm304_vm1, %v17478_v8 }
0x1a02   : > { %11186 = vmatprep.mubr.msk.f32.mxu0 %vm304_vm1, %v17479_v39 }
0x1a05   : > { %11187 = vmatmul.mubr.msk.f32.gmra.mrb[226].mxu0 %vm304_vm1, %v17480_v43 }
0x1a06   : > { %11189 = vmatprep.mubr.msk.f32.mxu0 %vm304_vm1, %v17481_v51 }
0x1a09   : > { %11190 = vmatmul.mubr.msk.f32.gmra.mrb[228].mxu0 %vm304_vm1, %v17482_v26 }
0x1a0a   : > { %11192 = vmatprep.mubr.msk.f32.mxu0 %vm304_vm1, %v17483_v14 }
0x1a0d   : > { %11193 = vmatmul.mubr.msk.f32.gmra.mrb[230].mxu0 %vm304_vm1, %v17484_v13 }
0x1a0e   : > { %11195 = vmatprep.mubr.msk.f32.mxu0 %vm304_vm1, %v17485_v59 }
0x1a11   : > { %11196 = vmatmul.mubr.msk.f32.gmra.mrb[232].mxu0 %vm304_vm1, %v17486_v0 }
0x1a12   : > { %11198 = vmatprep.mubr.msk.f32.mxu0 %vm304_vm1, %v17487_v32 }
0x1a15   : > { %11199 = vmatmul.mubr.msk.f32.gmra.mrb[234].mxu0 %vm304_vm1, %v17488_v60 }
0x1a16   : > { %11201 = vmatprep.mubr.msk.f32.mxu0 %vm304_vm1, %v17489_v11  ;;  %v17497_v11 = vld [vmem:[#allocation43_spill] sm:$0xff] }
0x1a19   : > { %11202 = vmatmul.mubr.msk.f32.gmra.mrb[236].mxu0 %vm304_vm1, %v17490_v40  ;;  %v17498_v40 = vld [vmem:[#allocation44_spill] sm:$0xff] }
0x1a1a   : > { %11204 = vmatprep.mubr.msk.f32.mxu0 %vm304_vm1, %v17491_v16  ;;  %v17499_v16 = vld [vmem:[#allocation45_spill] sm:$0xff] }
0x1a1d   : > { %11205 = vmatmul.mubr.msk.f32.gmra.mrb[238].mxu0 %vm304_vm1, %v17492_v61  ;;  %v17500_v61 = vld [vmem:[#allocation46_spill] sm:$0xff] }
0x1a1e   : > { %11207 = vmatprep.mubr.msk.f32.mxu0 %vm304_vm1, %v17493_v12  ;;  %v17501_v12 = vld [vmem:[#allocation14_spill] sm:$0xff] }
0x1a21   : > { %11208 = vmatmul.mubr.msk.f32.gmra.mrb[240].mxu0 %vm304_vm1, %v17494_v37 }
0x1a22   : > { %11210 = vmatprep.mubr.msk.f32.mxu0 %vm304_vm1, %v17495_v35 }
0x1a25   : > { %11211 = vmatmul.mubr.msk.f32.gmra.mrb[242].mxu0 %vm304_vm1, %v17496_v38 }
0x1a26   : > { %11213 = vmatprep.mubr.msk.f32.mxu0 %vm304_vm1, %v17497_v11 }
0x1a29   : > { %11214 = vmatmul.mubr.msk.f32.gmra.mrb[244].mxu0 %vm304_vm1, %v17498_v40 }
0x1a2a   : > { %11216 = vmatprep.mubr.msk.f32.mxu0 %vm304_vm1, %v17499_v16 }
0x1a2d   : > { %11217 = vmatmul.mubr.msk.f32.gmra.mrb[246].mxu0 %vm304_vm1, %v17500_v61 }
0x1a2e   : > { %7257 = vmatprep.mubr.f32.mxu0 %v17501_v12 }
0x1a6f   : > { %v6631_v37 = vpop.trf.xlu0 }
0x1a70   : > { %11221 = vmatprep.mubr.msk.f32.mxu1 %vm304_vm1, %v6631_v37 }
0x1a73   : > { %v6632_v35 = vpop.trf.xlu0 }
0x1a74   : > { %11222 = vmatmul.mubr.msk.f32.vlgmr.msra.gmra.mrb[244].mxu1 %vm304_vm1, %v6632_v35 }
0x1a77   : > { %v6633_v38 = vpop.trf.xlu0 }
0x1a78   : > { %11224 = vmatprep.mubr.msk.f32.mxu1 %vm304_vm1, %v6633_v38 }
0x1a7b   : > { %v6634_v11 = vpop.trf.xlu0 }
0x1a7c   : > { %11225 = vmatmul.mubr.msk.f32.gmra.mrb[246].mxu1 %vm304_vm1, %v6634_v11 }
0x1a7f   : > { %v6635_v40 = vpop.trf.xlu0 }
0x1a80   : > { %11227 = vmatprep.mubr.msk.f32.mxu1 %vm304_vm1, %v6635_v40 }
0x1a83   : > { %v6636_v16 = vpop.trf.xlu0 }
0x1a84   : > { %11228 = vmatmul.mubr.msk.f32.gmra.mrb[248].mxu1 %vm304_vm1, %v6636_v16 }
0x1a87   : > { %v6637_v61 = vpop.trf.xlu0 }
0x1a88   : > { %11230 = vmatprep.mubr.msk.f32.mxu1 %vm304_vm1, %v6637_v61 }
0x1a8b   : > { %v6638_v12 = vpop.trf.xlu0 }
0x1a8c   : > { %11231 = vmatmul.mubr.msk.f32.gmra.mrb[250].mxu1 %vm304_vm1, %v6638_v12 }
0x1a8d   : > { %11249 = vmatprep.mubr.msk.f32.mxu1 %vm662_vm2, %v15901_v30 }
0x1ac4   : > { %v16186_v37 = vpop.f32.mrb[216].mxu0 }
0x1ac5   : > { %v16188_v35 = vpop.f32.mrb[217].mxu0 }
0x1ac8   : > { %v16190_v11 = vpop.f32.mrb[218].mxu0 }
0x1ac9   : > { %v16192_v38 = vpop.f32.mrb[219].mxu0 }
0x1acc   : > { %v16194_v40 = vpop.f32.mrb[220].mxu0 }
0x1acd   : > { %v16196_v16 = vpop.f32.mrb[221].mxu0 }
0x1ad0   : > { %v16198_v60 = vpop.f32.mrb[222].mxu0 }
0x1ad1   : > { %v16200_v61 = vpop.f32.mrb[223].mxu0 }
0x1ad4   : > { %v16202_v12 = vpop.f32.mrb[224].mxu0 }
0x1ad5   : > { %v16204_v32 = vpop.f32.mrb[225].mxu0 }
0x1ad8   : > { %v16206_v0 = vpop.f32.mrb[226].mxu0 }
0x1ad9   : > { %v16208_v59 = vpop.f32.mrb[227].mxu0 }
0x1adc   : > { %v16210_v13 = vpop.f32.mrb[228].mxu0 }
0x1add   : > { %v16212_v14 = vpop.f32.mrb[229].mxu0 }
0x1ae0   : > { %v16214_v26 = vpop.f32.mrb[230].mxu0 }
0x1ae1   : > { %v16216_v51 = vpop.f32.mrb[231].mxu0 }
0x1ae4   : > { %v16218_v43 = vpop.f32.mrb[232].mxu0 }
0x1ae5   : > { %v16220_v39 = vpop.f32.mrb[233].mxu0 }
0x1ae6   : > { %17502 = vst [vmem:[#allocation56_spill] sm:$0xff] %v16220_v39 }
0x1ae8   : > { %v16222_v8 = vpop.f32.mrb[234].mxu0 }
0x1ae9   : > { %17503 = vst [vmem:[#allocation57_spill] sm:$0xff] %v16222_v8  ;;  %v16224_v42 = vpop.f32.mrb[235].mxu0 }
0x1aea   : > { %17504 = vst [vmem:[#allocation58_spill] sm:$0xff] %v16224_v42 }
0x1aec   : > { %v16226_v53 = vpop.f32.mrb[236].mxu0 }
0x1aed   : > { %17505 = vst [vmem:[#allocation59_spill] sm:$0xff] %v16226_v53  ;;  %v16228_v25 = vpop.f32.mrb[237].mxu0 }
0x1aee   : > { %17506 = vst [vmem:[#allocation60_spill] sm:$0xff] %v16228_v25 }
0x1af0   : > { %v16230_v62 = vpop.f32.mrb[238].mxu0 }
0x1af1   : > { %17507 = vst [vmem:[#allocation61_spill] sm:$0xff] %v16230_v62  ;;  %v16232_v22 = vpop.f32.mrb[239].mxu0 }
0x1af2   : > { %17508 = vst [vmem:[#allocation47_spill] sm:$0xff] %v16232_v22 }
0x1af4   : > { %v16234_v28 = vpop.f32.mrb[240].mxu0 }
0x1af5   : > { %17509 = vst [vmem:[#allocation62_spill] sm:$0xff] %v16234_v28  ;;  %v16236_v19 = vpop.f32.mrb[241].mxu0 }
0x1af6   : > { %17510 = vst [vmem:[#allocation50_spill] sm:$0xff] %v16236_v19 }
0x1af8   : > { %v16238_v48 = vpop.f32.mrb[242].mxu0 }
0x1af9   : > { %17511 = vst [vmem:[#allocation48_spill] sm:$0xff] %v16238_v48  ;;  %v16240_v41 = vpop.f32.mrb[243].mxu0 }
0x1afa   : > { %17512 = vst [vmem:[#allocation51_spill] sm:$0xff] %v16240_v41 }
0x1afc   : > { %v16242_v49 = vpop.f32.mrb[244].mxu0 }
0x1afd   : > { %17513 = vst [vmem:[#allocation53_spill] sm:$0xff] %v16242_v49  ;;  %v16244_v10 = vpop.f32.mrb[245].mxu0 }
0x1afe   : > { %17514 = vst [vmem:[#allocation49_spill] sm:$0xff] %v16244_v10 }
0x1b00   : > { %v16246_v42 = vpop.f32.mrb[246].mxu0 }
0x1b01   : > { %17515 = vst [vmem:[#allocation54_spill] sm:$0xff] %v16246_v42  ;;  %v16248_v53 = vpop.f32.mrb[247].mxu0 }
0x1b47   : > { %v11223_v25 = vpop.f32.mrb[244].mxu1 }
0x1b48   : > { %v6737_v62 = vpop.f32.mrb[245].mxu1 }
0x1b49   : > { %v11904_v8 = vpack.c.bf16 %v11223_v25, %v6737_v62 }
0x1b4b   : > { %11905 = vmatprep.subr.bf16.mxu1 %v11904_v8 }
0x1b4c   : > { %11907 = vmatpush3.bf16.msra.mxu1 %v11904_v8 }
0x1b4f   : > { %v11226_v28 = vpop.f32.mrb[246].mxu1 }
0x1b50   : > { %v6747_v22 = vpop.f32.mrb[247].mxu1 }
0x1b51   : > { %v11908_v19 = vpack.c.bf16 %v11226_v28, %v6747_v22 }
0x1b53   : > { %11909 = vmatprep.subr.bf16.mxu1 %v11908_v19 }
0x1b54   : > { %11911 = vmatpush3.bf16.msra.mxu1 %v11908_v19 }
0x1b57   : > { %v11229_v48 = vpop.f32.mrb[248].mxu1 }
0x1b58   : > { %v6757_v41 = vpop.f32.mrb[249].mxu1 }
0x1b59   : > { %v11912_v39 = vpack.c.bf16 %v11229_v48, %v6757_v41 }
0x1b5b   : > { %11913 = vmatprep.subr.bf16.mxu1 %v11912_v39 }
0x1b5c   : > { %11915 = vmatpush3.bf16.msra.mxu1 %v11912_v39 }
0x1b5f   : > { %v11232_v10 = vpop.f32.mrb[250].mxu1 }
0x1b60   : > { %v6767_v49 = vpop.f32.mrb[251].mxu1 }
0x1b61   : > { %v11916_v42 = vpack.c.bf16 %v11232_v10, %v6767_v49 }
0x1b63   : > { %11917 = vmatprep.subr.bf16.mxu1 %v11916_v42 }
0x1b64   : > { %11919 = vmatpush3.bf16.msra.mxu1 %v11916_v42 }
0x1b65   : > { %11984 = vmatprep.subr.bf16.mxu1 %v17464_v18 }
0x1b67   : > { %11250 = vmatmul.mubr.msk.f32.vlgmr.msra.gmra.mrb[252].mxu1 %vm662_vm2, %v15899_v24 }
0x1b68   : > { %11252 = vmatprep.mubr.msk.f32.mxu1 %vm662_vm2, %v15909_v44 }
0x1b6b   : > { %11253 = vmatmul.mubr.msk.f32.gmra.mrb[254].mxu1 %vm662_vm2, %v15907_v15 }
0x1b6c   : > { %11255 = vmatprep.mubr.msk.f32.mxu1 %vm662_vm2, %v15917_v45 }
0x1b6f   : > { %11256 = vmatmul.mubr.msk.f32.gmra.mrb[0].mxu1 %vm662_vm2, %v15915_v6 }
0x1b70   : > { %11258 = vmatprep.mubr.msk.f32.mxu1 %vm662_vm2, %v15925_v17 }
0x1b73   : > { %11259 = vmatmul.mubr.msk.f32.gmra.mrb[2].mxu1 %vm662_vm2, %v15923_v29 }
0x1b74   : > { %11261 = vmatprep.mubr.msk.f32.mxu1 %vm662_vm2, %v15933_v52 }
0x1b77   : > { %11262 = vmatmul.mubr.msk.f32.gmra.mrb[4].mxu1 %vm662_vm2, %v15931_v27 }
0x1b78   : > { %11264 = vmatprep.mubr.msk.f32.mxu1 %vm662_vm2, %v15941_v55 }
0x1b7b   : > { %11265 = vmatmul.mubr.msk.f32.gmra.mrb[6].mxu1 %vm662_vm2, %v15939_v2 }
0x1b7c   : > { %11267 = vmatprep.mubr.msk.f32.mxu1 %vm662_vm2, %v15949_v50 }
0x1b7f   : > { %11268 = vmatmul.mubr.msk.f32.gmra.mrb[8].mxu1 %vm662_vm2, %v15947_v63 }
0x1b80   : > { %11270 = vmatprep.mubr.msk.f32.mxu1 %vm662_vm2, %v15957_v46 }
0x1b83   : > { %11271 = vmatmul.mubr.msk.f32.gmra.mrb[10].mxu1 %vm662_vm2, %v15955_v7 }
0x1b84   : > { %11273 = vmatprep.mubr.msk.f32.mxu1 %vm662_vm2, %v15965_v56 }
0x1b87   : > { %11274 = vmatmul.mubr.msk.f32.gmra.mrb[12].mxu1 %vm662_vm2, %v15963_v47 }
0x1b88   : > { %11276 = vmatprep.mubr.msk.f32.mxu1 %vm662_vm2, %v15979_v23 }
0x1b8b   : > { %11277 = vmatmul.mubr.msk.f32.gmra.mrb[14].mxu1 %vm662_vm2, %v15977_v31 }
0x1b8c   : > { %11279 = vmatprep.mubr.msk.f32.mxu1 %vm662_vm2, %v15993_v36 }
0x1b8f   : > { %11280 = vmatmul.mubr.msk.f32.gmra.mrb[16].mxu1 %vm662_vm2, %v15991_v34 }
0x1b90   : > { %11282 = vmatprep.mubr.msk.f32.mxu1 %vm662_vm2, %v16007_v54 }
0x1b93   : > { %11283 = vmatmul.mubr.msk.f32.gmra.mrb[18].mxu1 %vm662_vm2, %v16005_v58 }
0x1b94   : > { %11285 = vmatprep.mubr.msk.f32.mxu1 %vm662_vm2, %v16021_v1 }
0x1b97   : > { %11286 = vmatmul.mubr.msk.f32.gmra.mrb[20].mxu1 %vm662_vm2, %v16019_v20 }
0x1b98   : > { %11288 = vmatprep.mubr.msk.f32.mxu1 %vm662_vm2, %v16035_v5 }
0x1b9b   : > { %11289 = vmatmul.mubr.msk.f32.gmra.mrb[22].mxu1 %vm662_vm2, %v16033_v4 }
0x1b9c   : > { %11291 = vmatprep.mubr.msk.f32.mxu1 %vm662_vm2, %v16049_v57 }
0x1b9f   : > { %11292 = vmatmul.mubr.msk.f32.gmra.mrb[24].mxu1 %vm662_vm2, %v16047_v33 }
0x1ba0   : > { %11294 = vmatprep.mubr.msk.f32.mxu1 %vm662_vm2, %v16063_v21 }
0x1ba3   : > { %11295 = vmatmul.mubr.msk.f32.gmra.mrb[26].mxu1 %vm662_vm2, %v16061_v9 }
0x1ba4   : > { %11313 = vmatprep.mubr.msk.f32.mxu1 %vm13313_vm3, %v17466_v3  ;;  %v6777_v3 = vmul.f32 %v16186_v37, %v15899_v24 }
0x1c3a   : > { %v11251_v10 = vpop.f32.mrb[252].mxu1 }
0x1c3b   : > { %v6976_v41 = vadd.f32 1e-06, %v11251_v10  ;;  %v6970_v49 = vpop.f32.mrb[253].mxu1 }
0x1c3c   : > { %v6971_v48 = vadd.f32 1e-06, %v6970_v49 }
0x1c3d   : > { %13012 = vrcp.f32 %v6976_v41  ;;  %v6776_v41 = vmul.f32 %v16188_v35, %v15901_v30 }
0x1c3e   : > { %13014 = vrcp.f32 %v6971_v48  ;;  %v11254_v19 = vpop.f32.mrb[254].mxu1 }
0x1c3f   : > { %v6986_v28 = vadd.f32 1e-06, %v11254_v19  ;;  %v6980_v22 = vpop.f32.mrb[255].mxu1 }
0x1c40   : > { %v6981_v62 = vadd.f32 1e-06, %v6980_v22 }
0x1c41   : > { %13016 = vrcp.f32 %v6986_v28 }
0x1c42   : > { %13018 = vrcp.f32 %v6981_v62  ;;  %v11257_v25 = vpop.f32.mrb[0].mxu1 }
0x1c43   : > { %v6996_v42 = vadd.f32 1e-06, %v11257_v25  ;;  %v6990_v8 = vpop.f32.mrb[1].mxu1  ;;  %v6779_v25 = vmul.f32 %v16190_v11, %v15907_v15 }
0x1c44   : > { %v6991_v39 = vadd.f32 1e-06, %v6990_v8 }
0x1c45   : > { %13020 = vrcp.f32 %v6996_v42  ;;  %v6778_v42 = vmul.f32 %v16192_v38, %v15909_v44 }
0x1c46   : > { %13022 = vrcp.f32 %v6991_v39  ;;  %v11260_v10 = vpop.f32.mrb[2].mxu1 }
0x1c47   : > { %v13013_v18 = vpop.eup %13012  ;;  %v7006_v49 = vadd.f32 1e-06, %v11260_v10  ;;  %v7000_v48 = vpop.f32.mrb[3].mxu1  ;;  %v6781_v10 = vmul.f32 %v16194_v40, %v15915_v6 }
0x1c48   : > { %v13015_v19 = vpop.eup %13014  ;;  %v16319_v22 = vmul.f32 %v13013_v18, %v6777_v3  ;;  %v7001_v28 = vadd.f32 1e-06, %v7000_v48 }
0x1c49   : > { %13024 = vrcp.f32 %v7006_v49  ;;  %v16321_v62 = vmul.f32 %v13015_v19, %v6776_v41  ;;  %v6780_v41 = vmul.f32 %v16196_v16, %v15917_v45 }
0x1c4a   : > { %13026 = vrcp.f32 %v7001_v28  ;;  %v11263_v24 = vpop.f32.mrb[4].mxu1 }
0x1c4b   : > { %v13017_v37 = vpop.eup %13016  ;;  %v7016_v8 = vadd.f32 1e-06, %v11263_v24  ;;  %v7010_v30 = vpop.f32.mrb[5].mxu1  ;;  %v6782_v24 = vmul.f32 %v16200_v61, %v15925_v17 }
0x1c4c   : > { %v13019_v35 = vpop.eup %13018  ;;  %v16327_v39 = vmul.f32 %v13017_v37, %v6779_v25  ;;  %v7011_v18 = vadd.f32 1e-06, %v7010_v30  ;;  %v6783_v25 = vmul.f32 %v16198_v60, %v15923_v29 }
0x1c4d   : > { %v16329_v3 = vmul.f32 %v13019_v35, %v6778_v42  ;;  %13028 = vrcp.f32 %v7016_v8  ;;  %v6785_v35 = vmul.f32 %v16202_v12, %v15931_v27 }
0x1c4e   : > { %13030 = vrcp.f32 %v7011_v18  ;;  %v11266_v15 = vpop.f32.mrb[6].mxu1  ;;  %v6784_v18 = vmul.f32 %v16204_v32, %v15933_v52 }
0x1c4f   : > { %v13021_v11 = vpop.eup %13020  ;;  %v7026_v49 = vadd.f32 1e-06, %v11266_v15  ;;  %v7020_v44 = vpop.f32.mrb[7].mxu1 }
0x1c50   : > { %v13023_v38 = vpop.eup %13022  ;;  %v16335_v48 = vmul.f32 %v13021_v11, %v6781_v10  ;;  %v7021_v19 = vadd.f32 1e-06, %v7020_v44  ;;  %v6786_v44 = vmul.f32 %v16208_v59, %v15941_v55 }
0x1c51   : > { %v16337_v28 = vmul.f32 %v13023_v38, %v6780_v41  ;;  %13032 = vrcp.f32 %v7026_v49  ;;  %v6787_v49 = vmul.f32 %v16206_v0, %v15939_v2 }
0x1c52   : > { %13034 = vrcp.f32 %v7021_v19  ;;  %v11269_v6 = vpop.f32.mrb[8].mxu1 }
0x1c53   : > { %v13025_v40 = vpop.eup %13024  ;;  %v7036_v37 = vadd.f32 1e-06, %v11269_v6  ;;  %v7030_v45 = vpop.f32.mrb[9].mxu1 }
0x1c54   : > { %v13027_v16 = vpop.eup %13026  ;;  %v16343_v42 = vmul.f32 %v13025_v40, %v6783_v25  ;;  %v7031_v8 = vadd.f32 1e-06, %v7030_v45  ;;  %v6789_v40 = vmul.f32 %v16210_v13, %v15947_v63 }
0x1c55   : > { %v16345_v30 = vmul.f32 %v13027_v16, %v6782_v24  ;;  %13036 = vrcp.f32 %v7036_v37  ;;  %v6788_v24 = vmul.f32 %v16212_v14, %v15949_v50 }
0x1c56   : > { %13038 = vrcp.f32 %v7031_v8  ;;  %v11272_v29 = vpop.f32.mrb[10].mxu1 }
0x1c57   : > { %v13029_v60 = vpop.eup %13028  ;;  %v7046_v10 = vadd.f32 1e-06, %v11272_v29  ;;  %v7040_v17 = vpop.f32.mrb[11].mxu1  ;;  %v6790_v29 = vmul.f32 %v16216_v51, %v15957_v46 }
0x1c58   : > { %v13031_v61 = vpop.eup %13030  ;;  %v16351_v15 = vmul.f32 %v13029_v60, %v6785_v35  ;;  %v7041_v11 = vadd.f32 1e-06, %v7040_v17  ;;  %v6791_v35 = vmul.f32 %v16214_v26, %v15955_v7 }
0x1c59   : > { %v16353_v41 = vmul.f32 %v13031_v61, %v6784_v18  ;;  %13040 = vrcp.f32 %v7046_v10  ;;  %v6793_v61 = vmul.f32 %v16218_v43, %v15963_v47 }
0x1c5a   : > { %13042 = vrcp.f32 %v7041_v11  ;;  %v11275_v27 = vpop.f32.mrb[12].mxu1  ;;  %v17516_v11 = vld [vmem:[#allocation56_spill] sm:$0xff] }
0x1c5b   : > { %v13033_v12 = vpop.eup %13032  ;;  %v7056_v38 = vadd.f32 1e-06, %v11275_v27  ;;  %v7050_v52 = vpop.f32.mrb[13].mxu1 }
0x1c5c   : > { %v13035_v32 = vpop.eup %13034  ;;  %v16359_v19 = vmul.f32 %v13033_v12, %v6787_v49  ;;  %v7051_v25 = vadd.f32 1e-06, %v7050_v52  ;;  %v6792_v49 = vmul.f32 %v17516_v11, %v15965_v56  ;;  %v17517_v52 = vld [vmem:[#allocation57_spill] sm:$0xff] }
0x1c5d   : > { %v16361_v6 = vmul.f32 %v13035_v32, %v6786_v44  ;;  %13044 = vrcp.f32 %v7056_v38  ;;  %v6795_v32 = vmul.f32 %v17517_v52, %v15977_v31  ;;  %v16399_v31 = vpack.c.bf16 %v16319_v22, %v16321_v62 }
0x1c5e   : > { %13046 = vrcp.f32 %v7051_v25  ;;  %v11278_v2 = vpop.f32.mrb[14].mxu1  ;;  %v17518_v25 = vld [vmem:[#allocation58_spill] sm:$0xff] }
0x1c5f   : > { %v13037_v0 = vpop.eup %13036  ;;  %v7066_v37 = vadd.f32 1e-06, %v11278_v2  ;;  %v7060_v55 = vpop.f32.mrb[15].mxu1 }
0x1c60   : > { %v13039_v59 = vpop.eup %13038  ;;  %v16367_v45 = vmul.f32 %v13037_v0, %v6789_v40  ;;  %v7061_v16 = vadd.f32 1e-06, %v7060_v55  ;;  %v6794_v40 = vmul.f32 %v17518_v25, %v15979_v23 }
0x1c61   : > { %v16369_v8 = vmul.f32 %v13039_v59, %v6788_v24  ;;  %13048 = vrcp.f32 %v7066_v37 }
0x1c62   : > { %13050 = vrcp.f32 %v7061_v16  ;;  %v11281_v63 = vpop.f32.mrb[16].mxu1  ;;  %v17519_v16 = vld [vmem:[#allocation59_spill] sm:$0xff] }
0x1c63   : > { %v13041_v13 = vpop.eup %13040  ;;  %v7076_v60 = vadd.f32 1e-06, %v11281_v63  ;;  %v7070_v50 = vpop.f32.mrb[17].mxu1 }
0x1c64   : > { %v13043_v14 = vpop.eup %13042  ;;  %v16375_v18 = vmul.f32 %v13041_v13, %v6791_v35  ;;  %v7071_v10 = vadd.f32 1e-06, %v7070_v50  ;;  %v6797_v35 = vmul.f32 %v17519_v16, %v15991_v34  ;;  %v16419_v34 = vpack.c.bf16 %v16327_v39, %v16329_v3 }
0x1c65   : > { %v16377_v17 = vmul.f32 %v13043_v14, %v6790_v29  ;;  %13052 = vrcp.f32 %v7076_v60  ;;  %v17520_v29 = vld [vmem:[#allocation60_spill] sm:$0xff] }
0x1c66   : > { %13054 = vrcp.f32 %v7071_v10  ;;  %v11284_v7 = vpop.f32.mrb[18].mxu1  ;;  %v6796_v60 = vmul.f32 %v17520_v29, %v15993_v36 }
0x1c67   : > { %v13045_v26 = vpop.eup %13044  ;;  %v7086_v27 = vadd.f32 1e-06, %v11284_v7  ;;  %v7080_v46 = vpop.f32.mrb[19].mxu1 }
0x1c68   : > { %v13047_v51 = vpop.eup %13046  ;;  %v7081_v12 = vadd.f32 1e-06, %v7080_v46  ;;  %v16383_v44 = vmul.f32 %v13045_v26, %v6793_v61 }
0x1c69   : > { %13056 = vrcp.f32 %v7086_v27  ;;  %v16385_v38 = vmul.f32 %v13047_v51, %v6792_v49  ;;  %v17521_v49 = vld [vmem:[#allocation61_spill] sm:$0xff] }
0x1c6a   : > { %13058 = vrcp.f32 %v7081_v12  ;;  %v11287_v47 = vpop.f32.mrb[20].mxu1  ;;  %v12483_v10 = vpack.i.bf16 %v16319_v22, %v16383_v44  ;;  %v6799_v27 = vmul.f32 %v17521_v49, %v16005_v58  ;;  %v17522_v12 = vld [vmem:[#allocation47_spill] sm:$0xff]  ;;  %v16439_v58 = vpack.c.bf16 %v16335_v48, %v16337_v28 }
0x1c6b   : > { %v13049_v43 = vpop.eup %13048  ;;  %v7096_v2 = vadd.f32 1e-06, %v11287_v47  ;;  %v7090_v56 = vpop.f32.mrb[21].mxu1  ;;  %v12481_v0 = vpack.i.bf16 %v16321_v62, %v16385_v38  ;;  %v16395_v24 = vpack.c.bf16 %v16383_v44, %v16385_v38  ;;  %v6798_v52 = vmul.f32 %v17522_v12, %v16007_v54 }
0x1c6c   : > { %v13051_v37 = vpop.eup %13050  ;;  %v7091_v55 = vadd.f32 1e-06, %v7090_v56  ;;  %v16401_v59 = vmul.f32 %v13049_v43, %v6795_v32 }
0x1c6d   : > { %13060 = vrcp.f32 %v7096_v2  ;;  %12482 = vxpose.xlu0.b32.start [1/16] (narrow) %v12481_v0, 64  ;;  %11921 = vmatprep.subr.bf16.mxu0 %v16395_v24  ;;  %v16404_v23 = vmul.f32 %v13051_v37, %v6794_v40  ;;  %v17523_v0 = vld [vmem:[#allocation62_spill] sm:$0xff] }
0x1c6e   : > { %13062 = vrcp.f32 %v7091_v55  ;;  %v11290_v63 = vpop.f32.mrb[22].mxu1  ;;  %11923 = vmatpush3.bf16.msra.mxu0 %v16399_v31  ;;  %v6801_v37 = vmul.f32 %v17523_v0, %v16019_v20  ;;  %v16459_v20 = vpack.c.bf16 %v16343_v42, %v16345_v30  ;;  %v17528_v0 = vld [vmem:[#allocation49_spill] sm:$0xff] }
0x1c6f   : > { %v13053_v13 = vpop.eup %13052  ;;  %v7106_v50 = vadd.f32 1e-06, %v11290_v63  ;;  %v7100_v14 = vpop.f32.mrb[23].mxu1  ;;  %v16415_v61 = vpack.c.bf16 %v16401_v59, %v16404_v23  ;;  %v12485_v43 = vpack.i.bf16 %v16329_v3, %v16404_v23 }
0x1c70   : > { %v13055_v7 = vpop.eup %13054  ;;  %v7101_v26 = vadd.f32 1e-06, %v7100_v14  ;;  %v16421_v11 = vmul.f32 %v13053_v13, %v6797_v35  ;;  %v17524_v35 = vld [vmem:[#allocation50_spill] sm:$0xff] }
0x1c71   : > { %13064 = vrcp.f32 %v7106_v50  ;;  %12484 = vxpose.xlu0.b32.cont [2/16] (narrow) %v12483_v10, 64  ;;  %11925 = vmatprep.subr.bf16.mxu0 %v16415_v61  ;;  %v16424_v36 = vmul.f32 %v13055_v7, %v6796_v60  ;;  %v6800_v63 = vmul.f32 %v17524_v35, %v16021_v1  ;;  %v12487_v60 = vpack.i.bf16 %v16327_v39, %v16401_v59 }
0x1c72   : > { %13066 = vrcp.f32 %v7101_v26  ;;  %v11293_v46 = vpop.f32.mrb[24].mxu1  ;;  %11927 = vmatpush3.bf16.msra.mxu0 %v16419_v34  ;;  %v17525_v26 = vld [vmem:[#allocation48_spill] sm:$0xff] }
0x1c73   : > { %v13057_v51 = vpop.eup %13056  ;;  %v7116_v32 = vadd.f32 1e-06, %v11293_v46  ;;  %v7110_v47 = vpop.f32.mrb[25].mxu1  ;;  %v16435_v25 = vpack.c.bf16 %v16421_v11, %v16424_v36  ;;  %v6803_v49 = vmul.f32 %v17525_v26, %v16033_v4  ;;  %v17526_v46 = vld [vmem:[#allocation51_spill] sm:$0xff]  ;;  %v12489_v12 = vpack.i.bf16 %v16337_v28, %v16424_v36 }
0x1c74   : > { %v13059_v40 = vpop.eup %13058  ;;  %v7111_v2 = vadd.f32 1e-06, %v7110_v47  ;;  %v16441_v56 = vmul.f32 %v13057_v51, %v6799_v27  ;;  %v6802_v51 = vmul.f32 %v17526_v46, %v16035_v5  ;;  %v11938_v47 = vpack.c.bf16 %v16351_v15, %v16353_v41 }
0x1c75   : > { %13068 = vrcp.f32 %v7116_v32  ;;  %12486 = vxpose.xlu0.b32.cont [3/16] (narrow) %v12485_v43, 64  ;;  %11929 = vmatprep.subr.bf16.mxu0 %v16435_v25  ;;  %v16444_v54 = vmul.f32 %v13059_v40, %v6798_v52  ;;  %v17527_v40 = vld [vmem:[#allocation53_spill] sm:$0xff] }
0x1c76   : > { %13070 = vrcp.f32 %v7111_v2  ;;  %v11296_v55 = vpop.f32.mrb[26].mxu1  ;;  %11931 = vmatpush3.bf16.msra.mxu0 %v16439_v58  ;;  %v6805_v2 = vmul.f32 %v17527_v40, %v16047_v33 }
0x1c77   : > { %v13061_v16 = vpop.eup %13060  ;;  %v7126_v13 = vadd.f32 1e-06, %v11296_v55  ;;  %v7120_v29 = vpop.f32.mrb[27].mxu1  ;;  %v16455_v50 = vpack.c.bf16 %v16441_v56, %v16444_v54  ;;  %v12491_v55 = vpack.i.bf16 %v16335_v48, %v16421_v11 }
0x1c78   : > { %v13063_v14 = vpop.eup %13062  ;;  %v7121_v10 = vadd.f32 1e-06, %v7120_v29  ;;  %v16461_v7 = vmul.f32 %v13061_v16, %v6801_v37  ;;  %v6804_v37 = vmul.f32 %v17528_v0, %v16049_v57  ;;  %v17529_v29 = vld [vmem:[#allocation54_spill] sm:$0xff] }
0x1c79   : > { %13072 = vrcp.f32 %v7126_v13  ;;  %12488 = vxpose.xlu0.b32.cont [4/16] (narrow) %v12487_v60, 64  ;;  %11933 = vmatprep.subr.bf16.mxu0 %v16455_v50  ;;  %v16464_v1 = vmul.f32 %v13063_v14, %v6800_v63  ;;  %v11942_v63 = vpack.c.bf16 %v16359_v19, %v16361_v6  ;;  %v6807_v60 = vmul.f32 %v17529_v29, %v16061_v9 }
0x1c7a   : > { %13074 = vrcp.f32 %v7121_v10  ;;  %11935 = vmatpush3.bf16.msra.mxu0 %v16459_v20  ;;  %v6806_v14 = vmul.f32 %v16248_v53, %v16063_v21  ;;  %v12493_v10 = vpack.i.bf16 %v16345_v30, %v16444_v54  ;;  %v12495_v21 = vpack.i.bf16 %v16343_v42, %v16441_v56 }
0x1c7b   : > { %v13065_v27 = vpop.eup %13064  ;;  %v11936_v52 = vpack.c.bf16 %v16461_v7, %v16464_v1  ;;  %v12499_v40 = vpack.i.bf16 %v16351_v15, %v16461_v7 }
0x1c7c   : > { %v13067_v32 = vpop.eup %13066  ;;  %v16477_v43 = vmul.f32 %v13065_v27, %v6803_v49  ;;  %v11946_v27 = vpack.c.bf16 %v16367_v45, %v16369_v8 }
0x1c7d   : > { %12490 = vxpose.xlu0.b32.cont [5/16] (narrow) %v12489_v12, 64  ;;  %11937 = vmatprep.subr.bf16.mxu0 %v11936_v52  ;;  %v16479_v4 = vmul.f32 %v13067_v32, %v6802_v51  ;;  %v11950_v51 = vpack.c.bf16 %v16375_v18, %v16377_v17  ;;  %v12497_v12 = vpack.i.bf16 %v16353_v41, %v16464_v1  ;;  %v17531_v32 = vld [vmem:[#allocation52_spill] sm:$0xff] }
0x1c7e   : > { %11939 = vmatpush3.bf16.msra.mxu0 %v11938_v47 }
0x1c7f   : > { %v13069_v5 = vpop.eup %13068  ;;  %v11940_v16 = vpack.c.bf16 %v16477_v43, %v16479_v4 }
0x1c80   : > { %v13071_v35 = vpop.eup %13070  ;;  %v16491_v13 = vmul.f32 %v13069_v5, %v6805_v2 }
0x1c81   : > { %12492 = vxpose.xlu0.b32.cont [6/16] (narrow) %v12491_v55, 64  ;;  %11941 = vmatprep.subr.bf16.mxu0 %v11940_v16  ;;  %v16493_v33 = vmul.f32 %v13071_v35, %v6804_v37 }
0x1c82   : > { %11943 = vmatpush3.bf16.msra.mxu0 %v11942_v63 }
0x1c83   : > { %v13073_v57 = vpop.eup %13072  ;;  %v11944_v26 = vpack.c.bf16 %v16491_v13, %v16493_v33 }
0x1c84   : > { %v13075_v49 = vpop.eup %13074  ;;  %v16505_v46 = vmul.f32 %v13073_v57, %v6807_v60 }
0x1c85   : > { %12494 = vxpose.xlu0.b32.cont [7/16] (narrow) %v12493_v10, 64  ;;  %11945 = vmatprep.subr.bf16.mxu0 %v11944_v26  ;;  %v16507_v9 = vmul.f32 %v13075_v49, %v6806_v14 }
0x1c86   : > { %11947 = vmatpush3.bf16.msra.mxu0 %v11946_v27 }
0x1c87   : > { %17530 = vst [vmem:[#allocation14_spill] sm:$0xff] %v16507_v9  ;;  %v11948_v53 = vpack.c.bf16 %v16505_v46, %v16507_v9 }
0x1c89   : > { %12496 = vxpose.xlu0.b32.cont [8/16] (narrow) %v12495_v21, 64  ;;  %11949 = vmatprep.subr.bf16.mxu0 %v11948_v53 }
0x1c8a   : > { %11951 = vmatpush3.bf16.msra.mxu0 %v11950_v51 }
0x1c8b   : > { %11953 = vmatprep.subr.bf16.mxu0 %v16395_v24  ;;  %v12501_v24 = vpack.i.bf16 %v16361_v6, %v16479_v4 }
0x1c8d   : > { %12498 = vxpose.xlu0.b32.cont [9/16] (narrow) %v12497_v12, 64  ;;  %7258 = vmatmul.mubr.f32.vlgmr.msra.gmra.mrb[248].mxu0 %v17531_v32 }
0x1c8e   : > { %11955 = vmatpush3.bf16.msra.mxu0 %v16399_v31  ;;  %v12503_v31 = vpack.i.bf16 %v16359_v19, %v16477_v43 }
0x1c8f   : > { %11957 = vmatprep.subr.bf16.mxu0 %v16415_v61  ;;  %v12505_v61 = vpack.i.bf16 %v16369_v8, %v16493_v33 }
0x1c91   : > { %12500 = vxpose.xlu0.b32.cont [10/16] (narrow) %v12499_v40, 64 }
0x1c92   : > { %11959 = vmatpush3.bf16.msra.mxu0 %v16419_v34  ;;  %v12507_v34 = vpack.i.bf16 %v16367_v45, %v16491_v13 }
0x1c93   : > { %11961 = vmatprep.subr.bf16.mxu0 %v16435_v25  ;;  %v12509_v25 = vpack.i.bf16 %v16377_v17, %v16507_v9 }
0x1c95   : > { %12502 = vxpose.xlu0.b32.cont [11/16] (narrow) %v12501_v24, 64 }
0x1c96   : > { %11963 = vmatpush3.bf16.msra.mxu0 %v16439_v58  ;;  %v12511_v58 = vpack.i.bf16 %v16375_v18, %v16505_v46 }
0x1c97   : > { %11965 = vmatprep.subr.bf16.mxu0 %v16455_v50 }
0x1c99   : > { %12504 = vxpose.xlu0.b32.cont [12/16] (narrow) %v12503_v31, 64 }
0x1c9a   : > { %11967 = vmatpush3.bf16.msra.mxu0 %v16459_v20 }
0x1c9b   : > { %11969 = vmatprep.subr.bf16.mxu0 %v11936_v52 }
0x1c9d   : > { %12506 = vxpose.xlu0.b32.cont [13/16] (narrow) %v12505_v61, 64 }
0x1c9e   : > { %11971 = vmatpush3.bf16.msra.mxu0 %v11938_v47 }
0x1c9f   : > { %11973 = vmatprep.subr.bf16.mxu0 %v11940_v16 }
0x1ca1   : > { %12508 = vxpose.xlu0.b32.cont [14/16] (narrow) %v12507_v34, 64 }
0x1ca2   : > { %11975 = vmatpush3.bf16.msra.mxu0 %v11942_v63 }
0x1ca3   : > { %11977 = vmatprep.subr.bf16.mxu0 %v11944_v26 }
0x1ca5   : > { %12510 = vxpose.xlu0.b32.cont [15/16] (narrow) %v12509_v25, 64 }
0x1ca6   : > { %11979 = vmatpush3.bf16.msra.mxu0 %v11946_v27 }
0x1ca7   : > { %11981 = vmatprep.subr.bf16.mxu0 %v11948_v53 }
0x1ca9   : > { %12512 = vxpose.xlu0.b32.end [16/16] (narrow) %v12511_v58, 64 }
0x1caa   : > { %11983 = vmatpush3.bf16.msra.mxu0 %v11950_v51 }
0x1ced   : > { %v12513_v50 = vpop.trf.xlu0 }
0x1cee   : > { %v12517_v20 = vunpack.i.h.bf16 %v12513_v50  ;;  %v12514_v52 = vunpack.i.l.bf16 %v12513_v50 }
0x1cf0   : > { %7391 = vmatprep.mubr.f32.mxu0 %v12514_v52 }
0x1cf1   : > { %v12518_v47 = vpop.trf.xlu0  ;;  %7392 = vmatmul.mubr.f32.vlgmr.msra.gmra.mrb[250].mxu0 %v12517_v20 }
0x1cf2   : > { %v12519_v2 = vunpack.i.l.bf16 %v12518_v47  ;;  %v12522_v5 = vunpack.i.h.bf16 %v12518_v47 }
0x1cf4   : > { %7396 = vmatprep.mubr.f32.mxu0 %v12519_v2 }
0x1cf5   : > { %v12523_v0 = vpop.trf.xlu0  ;;  %7397 = vmatmul.mubr.f32.gmra.mrb[252].mxu0 %v12522_v5  ;;  %v17532_v5 = vmov 0.0|0.0  }
0x1cf6   : > { %v12524_v37 = vunpack.i.l.bf16 %v12523_v0  ;;  %v12527_v55 = vunpack.i.h.bf16 %v12523_v0 }
0x1cf8   : > { %7401 = vmatprep.mubr.f32.mxu0 %v12524_v37 }
0x1cf9   : > { %v12528_v16 = vpop.trf.xlu0  ;;  %7402 = vmatmul.mubr.f32.gmra.mrb[254].mxu0 %v12527_v55 }
0x1cfa   : > { %v12532_v35 = vunpack.i.h.bf16 %v12528_v16  ;;  %v12529_v63 = vunpack.i.l.bf16 %v12528_v16 }
0x1cfc   : > { %7406 = vmatprep.mubr.f32.mxu0 %v12529_v63 }
0x1cfd   : > { %v12533_v29 = vpop.trf.xlu0  ;;  %7407 = vmatmul.mubr.f32.gmra.mrb[0].mxu0 %v12532_v35 }
0x1cfe   : > { %v12537_v60 = vunpack.i.h.bf16 %v12533_v29  ;;  %v12534_v57 = vunpack.i.l.bf16 %v12533_v29 }
0x1d00   : > { %7411 = vmatprep.mubr.f32.mxu0 %v12534_v57 }
0x1d01   : > { %v12538_v14 = vpop.trf.xlu0  ;;  %7412 = vmatmul.mubr.f32.gmra.mrb[2].mxu0 %v12537_v60 }
0x1d02   : > { %v12542_v10 = vunpack.i.h.bf16 %v12538_v14  ;;  %v12539_v26 = vunpack.i.l.bf16 %v12538_v14 }
0x1d04   : > { %7416 = vmatprep.mubr.f32.mxu0 %v12539_v26 }
0x1d05   : > { %v12543_v49 = vpop.trf.xlu0  ;;  %7417 = vmatmul.mubr.f32.gmra.mrb[4].mxu0 %v12542_v10 }
0x1d06   : > { %v12547_v27 = vunpack.i.h.bf16 %v12543_v49  ;;  %v12544_v21 = vunpack.i.l.bf16 %v12543_v49 }
0x1d08   : > { %7421 = vmatprep.mubr.f32.mxu0 %v12544_v21 }
0x1d09   : > { %v12548_v53 = vpop.trf.xlu0  ;;  %7422 = vmatmul.mubr.f32.gmra.mrb[6].mxu0 %v12547_v27 }
0x1d0a   : > { %v12552_v51 = vunpack.i.h.bf16 %v12548_v53  ;;  %v12549_v12 = vunpack.i.l.bf16 %v12548_v53 }
0x1d0c   : > { %7426 = vmatprep.mubr.f32.mxu0 %v12549_v12 }
0x1d0d   : > { %7427 = vmatmul.mubr.f32.gmra.mrb[8].mxu0 %v12552_v51 }
0x1d60   : > { %v10250_v32 = vpop.f32.mrb[248].mxu0 }
0x1d61   : > { %v10251_v40 = vpop.f32.mrb[249].mxu0 }
0x1d62   : > { %v10252_v24 = vadd.f32 %v10251_v40, %v10250_v32  ;;  %v17533_v32 = vld [vmem:[#allocation55_spill] sm:$0xff] }
0x1d63   : > { %v17534_v40 = vld [vmem:[#allocation15_spill] sm:$0xff] }
0x1dc4   : > { %v10285_v31 = vpop.f32.mrb[250].mxu0 }
0x1dc5   : > { %v10286_v61 = vpop.f32.mrb[251].mxu0 }
0x1dc6   : > { %v10287_v34 = vadd.f32 %v10286_v61, %v10285_v31 }
0x1dc8   : > { %v10288_v25 = vpop.f32.mrb[252].mxu0 }
0x1dc9   : > { %v10289_v58 = vpop.f32.mrb[253].mxu0 }
0x1dca   : > { %v10290_v50 = vadd.f32 %v10289_v58, %v10288_v25  ;;  %v7432_v25 = vmul.f32 %v10252_v24, %v17533_v32  ;;  %v17536_v24 = vld [vmem:[#allocation16_spill] sm:$0xff] }
0x1dcc   : > { %v11985_v20 = vpack.c.bf16 %v10290_v50, %v10287_v34  ;;  %v10291_v52 = vpop.f32.mrb[254].mxu0 }
0x1dcd   : > { %v10292_v47 = vpop.f32.mrb[255].mxu0 }
0x1dce   : > { %11986 = vmatpush3.bf16.msra.mxu1 %v11985_v20  ;;  %v10293_v2 = vadd.f32 %v10292_v47, %v10291_v52  ;;  %v17537_v20 = vld [vmem:[#allocation17_spill] sm:$0xff]  ;;  %v17538_v52 = vld [vmem:[#allocation18_spill] sm:$0xff]  ;;  %v17539_v47 = vld [vmem:[#allocation19_spill] sm:$0xff] }
0x1dcf   : > { %11987 = vmatprep.subr.bf16.mxu1 %v17532_v5 }
0x1dd0   : > { %v10294_v0 = vpop.f32.mrb[0].mxu0 }
0x1dd1   : > { %v10295_v37 = vpop.f32.mrb[1].mxu0 }
0x1dd2   : > { %v10296_v55 = vadd.f32 %v10295_v37, %v10294_v0  ;;  %v17542_v0 = vld [vmem:[#allocation22_spill] sm:$0xff]  ;;  %v17543_v37 = vld [vmem:[#allocation23_spill] sm:$0xff] }
0x1dd4   : > { %v11988_v16 = vpack.c.bf16 %v10296_v55, %v10293_v2  ;;  %v10297_v35 = vpop.f32.mrb[2].mxu0  ;;  %v17540_v2 = vld [vmem:[#allocation20_spill] sm:$0xff] }
0x1dd5   : > { %v10298_v63 = vpop.f32.mrb[3].mxu0  ;;  %v17544_v55 = vld [vmem:[#allocation24_spill] sm:$0xff] }
0x1dd6   : > { %11989 = vmatpush3.bf16.msra.mxu1 %v11988_v16  ;;  %v10299_v29 = vadd.f32 %v10298_v63, %v10297_v35  ;;  %v17545_v16 = vld [vmem:[#allocation25_spill] sm:$0xff]  ;;  %v17546_v35 = vld [vmem:[#allocation26_spill] sm:$0xff]  ;;  %v17547_v63 = vld [vmem:[#allocation27_spill] sm:$0xff] }
0x1dd7   : > { %11990 = vmatprep.subr.bf16.mxu1 %v17532_v5 }
0x1dd8   : > { %v10300_v60 = vpop.f32.mrb[4].mxu0 }
0x1dd9   : > { %v10301_v57 = vpop.f32.mrb[5].mxu0 }
0x1dda   : > { %v10302_v14 = vadd.f32 %v10301_v57, %v10300_v60  ;;  %v17549_v60 = vld [vmem:[#allocation29_spill] sm:$0xff]  ;;  %v17550_v57 = vld [vmem:[#allocation30_spill] sm:$0xff] }
0x1ddc   : > { %v11991_v10 = vpack.c.bf16 %v10302_v14, %v10299_v29  ;;  %v10303_v26 = vpop.f32.mrb[6].mxu0  ;;  %v17548_v29 = vld [vmem:[#allocation28_spill] sm:$0xff]  ;;  %v17551_v14 = vld [vmem:[#allocation31_spill] sm:$0xff] }
0x1ddd   : > { %v10304_v49 = vpop.f32.mrb[7].mxu0 }
0x1dde   : > { %v10305_v27 = vadd.f32 %v10304_v49, %v10303_v26  ;;  %11992 = vmatpush3.bf16.msra.mxu1 %v11991_v10  ;;  %v17552_v10 = vld [vmem:[#allocation32_spill] sm:$0xff]  ;;  %v17553_v26 = vld [vmem:[#allocation33_spill] sm:$0xff]  ;;  %v17554_v49 = vld [vmem:[#allocation34_spill] sm:$0xff] }
0x1ddf   : > { %11993 = vmatprep.subr.bf16.mxu1 %v17532_v5  ;;  %v17541_v5 = vld [vmem:[#allocation21_spill] sm:$0xff] }
0x1de0   : > { %v10306_v21 = vpop.f32.mrb[8].mxu0 }
0x1de1   : > { %v10307_v53 = vpop.f32.mrb[9].mxu0 }
0x1de2   : > { %v10308_v51 = vadd.f32 %v10307_v53, %v10306_v21  ;;  %v17556_v21 = vld [vmem:[#allocation36_spill] sm:$0xff]  ;;  %v17557_v53 = vld [vmem:[#allocation37_spill] sm:$0xff] }
0x1de4   : > { %v11994_v12 = vpack.c.bf16 %v10308_v51, %v10305_v27  ;;  %v17555_v27 = vld [vmem:[#allocation35_spill] sm:$0xff]  ;;  %v17558_v51 = vld [vmem:[#allocation38_spill] sm:$0xff] }
0x1de6   : > { %11995 = vmatpush3.bf16.msra.mxu1 %v11994_v12  ;;  %v17559_v12 = vld [vmem:[#allocation39_spill] sm:$0xff] }
0x1de9   : > { %11314 = vmatmul.mubr.msk.f32.vlgmr.msra.gmra.mrb[28].mxu1 %vm662_vm2, %v17533_v32  ;;  %v17560_v32 = vld [vmem:[#allocation40_spill] sm:$0xff] }
0x1dea   : > { %11318 = vmatprep.mubr.msk.f32.mxu1 %vm304_vm1, %v17534_v40  ;;  %v17561_v40 = vld [vmem:[#allocation41_spill] sm:$0xff] }
0x1ebc   : > { %v7501_v31 = vpop.f32.mrb[28].mxu1 }
0x1ebd   : > { %v7502_v61 = vadd.f32 1e-06, %v7501_v31  ;;  %v11315_v34 = vpop.f32.mrb[29].mxu1  ;;  %v17562_v31 = vld [vmem:[#allocation42_spill] sm:$0xff] }
0x1ebe   : > { %v17564_v34 = vld [vmem:[#allocation44_spill] sm:$0xff] }
0x1ebf   : > { %13076 = vrcp.f32 %v7502_v61  ;;  %v17563_v61 = vld [vmem:[#allocation43_spill] sm:$0xff] }
0x1ec9   : > { %v13077_v58 = vpop.eup %13076 }
0x1eca   : > { %v16548_v50 = vmul.f32 %v13077_v58, %v7432_v25  ;;  %v17565_v25 = vld [vmem:[#allocation45_spill] sm:$0xff]  ;;  %v17566_v58 = vld [vmem:[#allocation46_spill] sm:$0xff] }
0x1ecc   : > { %17535 = vst [vmem:[#allocation56_spill] sm:$0xff] %v16548_v50  ;;  %7735 = vxpose.xlu1.b32.start.end [1/1] (short) (narrow) %v16548_v50, 64  ;;  %11316 = vmatprep.subr.msk.mxu1 %vm401_vm0, %v16548_v50  ;;  %8488 = vst.msk [vmem:[%s16555_s23] sm:$0xf] %vm8487_vm4, %v16548_v50 }
0x1ecd   : > { %11366 = vmatprep.subr.msk.mxu0 %vm401_vm0, %v16548_v50  ;;  %11317 = vmatpush3.msk.msra.mxu1 %vm401_vm0, %v16548_v50 }
0x1ece   : > { %11367 = vmatpush3.msk.msra.mxu0 %vm401_vm0, %v16548_v50  ;;  %11319 = vmatmul.mubr.msk.f32.vlgmr.msra.gmra.mrb[30].mxu1 %vm304_vm1, %v17536_v24 }
0x1ecf   : > { %11321 = vmatprep.mubr.msk.f32.mxu1 %vm304_vm1, %v17537_v20 }
0x1ed2   : > { %11322 = vmatmul.mubr.msk.f32.gmra.mrb[32].mxu1 %vm304_vm1, %v17538_v52 }
0x1ed3   : > { %11324 = vmatprep.mubr.msk.f32.mxu1 %vm304_vm1, %v17539_v47 }
0x1ed6   : > { %11325 = vmatmul.mubr.msk.f32.gmra.mrb[34].mxu1 %vm304_vm1, %v17540_v2 }
0x1ed7   : > { %11327 = vmatprep.mubr.msk.f32.mxu1 %vm304_vm1, %v17541_v5 }
0x1eda   : > { %11328 = vmatmul.mubr.msk.f32.gmra.mrb[36].mxu1 %vm304_vm1, %v17542_v0 }
0x1edb   : > { %11330 = vmatprep.mubr.msk.f32.mxu1 %vm304_vm1, %v17543_v37 }
0x1ede   : > { %11331 = vmatmul.mubr.msk.f32.gmra.mrb[38].mxu1 %vm304_vm1, %v17544_v55 }
0x1edf   : > { %11333 = vmatprep.mubr.msk.f32.mxu1 %vm304_vm1, %v17545_v16 }
0x1ee2   : > { %11334 = vmatmul.mubr.msk.f32.gmra.mrb[40].mxu1 %vm304_vm1, %v17546_v35 }
0x1ee3   : > { %11336 = vmatprep.mubr.msk.f32.mxu1 %vm304_vm1, %v17547_v63 }
0x1ee6   : > { %11337 = vmatmul.mubr.msk.f32.gmra.mrb[42].mxu1 %vm304_vm1, %v17548_v29 }
0x1ee7   : > { %11339 = vmatprep.mubr.msk.f32.mxu1 %vm304_vm1, %v17549_v60 }
0x1eea   : > { %11340 = vmatmul.mubr.msk.f32.gmra.mrb[44].mxu1 %vm304_vm1, %v17550_v57 }
0x1eeb   : > { %11342 = vmatprep.mubr.msk.f32.mxu1 %vm304_vm1, %v17551_v14 }
0x1eee   : > { %11343 = vmatmul.mubr.msk.f32.gmra.mrb[46].mxu1 %vm304_vm1, %v17552_v10 }
0x1eef   : > { %11345 = vmatprep.mubr.msk.f32.mxu1 %vm304_vm1, %v17553_v26 }
0x1ef2   : > { %11346 = vmatmul.mubr.msk.f32.gmra.mrb[48].mxu1 %vm304_vm1, %v17554_v49 }
0x1ef3   : > { %11348 = vmatprep.mubr.msk.f32.mxu1 %vm304_vm1, %v17555_v27 }
0x1ef6   : > { %11349 = vmatmul.mubr.msk.f32.gmra.mrb[50].mxu1 %vm304_vm1, %v17556_v21 }
0x1ef7   : > { %11351 = vmatprep.mubr.msk.f32.mxu1 %vm304_vm1, %v17557_v53 }
0x1efa   : > { %11352 = vmatmul.mubr.msk.f32.gmra.mrb[52].mxu1 %vm304_vm1, %v17558_v51 }
0x1efb   : > { %11354 = vmatprep.mubr.msk.f32.mxu1 %vm304_vm1, %v17559_v12 }
0x1efe   : > { %11355 = vmatmul.mubr.msk.f32.gmra.mrb[54].mxu1 %vm304_vm1, %v17560_v32 }
0x1eff   : > { %11357 = vmatprep.mubr.msk.f32.mxu1 %vm304_vm1, %v17561_v40 }
0x1f02   : > { %11358 = vmatmul.mubr.msk.f32.gmra.mrb[56].mxu1 %vm304_vm1, %v17562_v31 }
0x1f03   : > { %11360 = vmatprep.mubr.msk.f32.mxu1 %vm304_vm1, %v17563_v61 }
0x1f06   : > { %11361 = vmatmul.mubr.msk.f32.gmra.mrb[58].mxu1 %vm304_vm1, %v17564_v34 }
0x1f07   : > { %11363 = vmatprep.mubr.msk.f32.mxu1 %vm304_vm1, %v17565_v25 }
0x1f0a   : > { %11364 = vmatmul.mubr.msk.f32.gmra.mrb[60].mxu1 %vm304_vm1, %v17566_v58 }
0x1f0b   : > { %10432 = vmatprep.mubr.msk.f32.mxu1 %vm662_vm2, %v16548_v50 }
0x1f4c   : > { %v7751_v24 = vpop.trf.xlu1 }
0x1f4d   : > { %11368 = vmatprep.mubr.msk.f32.mxu0 %vm304_vm1, %v7751_v24 }
0x1f50   : > { %v7752_v20 = vpop.trf.xlu1 }
0x1f51   : > { %11369 = vmatmul.mubr.msk.f32.vlgmr.msra.gmra.mrb[10].mxu0 %vm304_vm1, %v7752_v20 }
0x1f54   : > { %v7753_v52 = vpop.trf.xlu1 }
0x1f55   : > { %11371 = vmatprep.mubr.msk.f32.mxu0 %vm304_vm1, %v7753_v52 }
0x1f58   : > { %v7754_v47 = vpop.trf.xlu1 }
0x1f59   : > { %11372 = vmatmul.mubr.msk.f32.gmra.mrb[12].mxu0 %vm304_vm1, %v7754_v47 }
0x1f5c   : > { %v7755_v2 = vpop.trf.xlu1 }
0x1f5d   : > { %11374 = vmatprep.mubr.msk.f32.mxu0 %vm304_vm1, %v7755_v2 }
0x1f60   : > { %v7756_v5 = vpop.trf.xlu1 }
0x1f61   : > { %11375 = vmatmul.mubr.msk.f32.gmra.mrb[14].mxu0 %vm304_vm1, %v7756_v5 }
0x1f64   : > { %v7757_v0 = vpop.trf.xlu1 }
0x1f65   : > { %11377 = vmatprep.mubr.msk.f32.mxu0 %vm304_vm1, %v7757_v0 }
0x1f68   : > { %v7758_v37 = vpop.trf.xlu1 }
0x1f69   : > { %11378 = vmatmul.mubr.msk.f32.gmra.mrb[16].mxu0 %vm304_vm1, %v7758_v37 }
0x1f6a   : > { %11396 = vmatprep.mubr.msk.f32.mxu0 %vm662_vm2, %v16321_v62 }
0x1fa1   : > { %v16639_v55 = vpop.f32.mrb[30].mxu1 }
0x1fa2   : > { %v16641_v16 = vpop.f32.mrb[31].mxu1 }
0x1fa5   : > { %v16643_v35 = vpop.f32.mrb[32].mxu1 }
0x1fa6   : > { %v16645_v63 = vpop.f32.mrb[33].mxu1 }
0x1fa9   : > { %v16647_v29 = vpop.f32.mrb[34].mxu1 }
0x1faa   : > { %v16649_v60 = vpop.f32.mrb[35].mxu1 }
0x1fad   : > { %v16651_v57 = vpop.f32.mrb[36].mxu1 }
0x1fae   : > { %v16653_v14 = vpop.f32.mrb[37].mxu1 }
0x1fb1   : > { %v16655_v10 = vpop.f32.mrb[38].mxu1 }
0x1fb2   : > { %v16657_v26 = vpop.f32.mrb[39].mxu1 }
0x1fb5   : > { %v16659_v49 = vpop.f32.mrb[40].mxu1 }
0x1fb6   : > { %v16661_v27 = vpop.f32.mrb[41].mxu1 }
0x1fb9   : > { %v16663_v21 = vpop.f32.mrb[42].mxu1 }
0x1fba   : > { %v16665_v53 = vpop.f32.mrb[43].mxu1 }
0x1fbd   : > { %v16667_v51 = vpop.f32.mrb[44].mxu1 }
0x1fbe   : > { %v16669_v12 = vpop.f32.mrb[45].mxu1 }
0x1fc1   : > { %v16671_v32 = vpop.f32.mrb[46].mxu1 }
0x1fc2   : > { %v16673_v40 = vpop.f32.mrb[47].mxu1 }
0x1fc5   : > { %v16675_v31 = vpop.f32.mrb[48].mxu1 }
0x1fc6   : > { %v16677_v61 = vpop.f32.mrb[49].mxu1 }
0x1fc7   : > { %17567 = vst [vmem:[#allocation57_spill] sm:$0xff] %v16677_v61 }
0x1fc9   : > { %v16679_v34 = vpop.f32.mrb[50].mxu1 }
0x1fca   : > { %17568 = vst [vmem:[#allocation58_spill] sm:$0xff] %v16679_v34  ;;  %v16681_v25 = vpop.f32.mrb[51].mxu1 }
0x1fcb   : > { %17569 = vst [vmem:[#allocation59_spill] sm:$0xff] %v16681_v25 }
0x1fcd   : > { %v16683_v58 = vpop.f32.mrb[52].mxu1 }
0x1fce   : > { %17570 = vst [vmem:[#allocation60_spill] sm:$0xff] %v16683_v58  ;;  %v16685_v24 = vpop.f32.mrb[53].mxu1 }
0x1fcf   : > { %17571 = vst [vmem:[#allocation61_spill] sm:$0xff] %v16685_v24 }
0x1fd1   : > { %v16687_v20 = vpop.f32.mrb[54].mxu1 }
0x1fd2   : > { %17572 = vst [vmem:[#allocation47_spill] sm:$0xff] %v16687_v20  ;;  %v16689_v52 = vpop.f32.mrb[55].mxu1 }
0x1fd3   : > { %17573 = vst [vmem:[#allocation62_spill] sm:$0xff] %v16689_v52 }
0x1fd5   : > { %v16691_v47 = vpop.f32.mrb[56].mxu1 }
0x1fd6   : > { %17574 = vst [vmem:[#allocation50_spill] sm:$0xff] %v16691_v47  ;;  %v16693_v2 = vpop.f32.mrb[57].mxu1 }
0x1fd7   : > { %17575 = vst [vmem:[#allocation48_spill] sm:$0xff] %v16693_v2 }
0x1fd9   : > { %v16695_v5 = vpop.f32.mrb[58].mxu1 }
0x1fda   : > { %17576 = vst [vmem:[#allocation51_spill] sm:$0xff] %v16695_v5  ;;  %v16697_v0 = vpop.f32.mrb[59].mxu1 }
0x1fdb   : > { %17577 = vst [vmem:[#allocation53_spill] sm:$0xff] %v16697_v0 }
0x1fdd   : > { %v16699_v37 = vpop.f32.mrb[60].mxu1 }
0x1fde   : > { %17578 = vst [vmem:[#allocation49_spill] sm:$0xff] %v16699_v37  ;;  %v16701_v50 = vpop.f32.mrb[61].mxu1 }
0x1fdf   : > { %17579 = vst [vmem:[#allocation54_spill] sm:$0xff] %v16701_v50  ;;  %v7897_v50 = vmul.f32 %v16639_v55, %v16319_v22 }
0x2024   : > { %v11370_v25 = vpop.f32.mrb[10].mxu0 }
0x2025   : > { %v7857_v58 = vpop.f32.mrb[11].mxu0 }
0x2026   : > { %v11996_v34 = vpack.c.bf16 %v11370_v25, %v7857_v58 }
0x2028   : > { %11997 = vmatprep.subr.bf16.mxu0 %v11996_v34 }
0x2029   : > { %11999 = vmatpush3.bf16.msra.mxu0 %v11996_v34 }
0x202c   : > { %v11373_v20 = vpop.f32.mrb[12].mxu0 }
0x202d   : > { %v7867_v24 = vpop.f32.mrb[13].mxu0 }
0x202e   : > { %v12000_v52 = vpack.c.bf16 %v11373_v20, %v7867_v24 }
0x2030   : > { %12001 = vmatprep.subr.bf16.mxu0 %v12000_v52 }
0x2031   : > { %12003 = vmatpush3.bf16.msra.mxu0 %v12000_v52 }
0x2034   : > { %v11376_v47 = vpop.f32.mrb[14].mxu0 }
0x2035   : > { %v7877_v2 = vpop.f32.mrb[15].mxu0 }
0x2036   : > { %v12004_v61 = vpack.c.bf16 %v11376_v47, %v7877_v2 }
0x2038   : > { %12005 = vmatprep.subr.bf16.mxu0 %v12004_v61 }
0x2039   : > { %12007 = vmatpush3.bf16.msra.mxu0 %v12004_v61 }
0x203c   : > { %v11379_v0 = vpop.f32.mrb[16].mxu0 }
0x203d   : > { %v7887_v5 = vpop.f32.mrb[17].mxu0 }
0x203e   : > { %v12008_v37 = vpack.c.bf16 %v11379_v0, %v7887_v5 }
0x2040   : > { %12009 = vmatprep.subr.bf16.mxu0 %v12008_v37 }
0x2041   : > { %12011 = vmatpush3.bf16.msra.mxu0 %v12008_v37 }
0x2044   : > { %11397 = vmatmul.mubr.msk.f32.vlgmr.msra.gmra.mrb[18].mxu0 %vm662_vm2, %v16319_v22 }
0x2045   : > { %11399 = vmatprep.mubr.msk.f32.mxu0 %vm662_vm2, %v16329_v3 }
0x2048   : > { %11400 = vmatmul.mubr.msk.f32.gmra.mrb[20].mxu0 %vm662_vm2, %v16327_v39 }
0x2049   : > { %11402 = vmatprep.mubr.msk.f32.mxu0 %vm662_vm2, %v16337_v28 }
0x204c   : > { %11403 = vmatmul.mubr.msk.f32.gmra.mrb[22].mxu0 %vm662_vm2, %v16335_v48 }
0x204d   : > { %11405 = vmatprep.mubr.msk.f32.mxu0 %vm662_vm2, %v16345_v30 }
0x2050   : > { %11406 = vmatmul.mubr.msk.f32.gmra.mrb[24].mxu0 %vm662_vm2, %v16343_v42 }
0x2051   : > { %11408 = vmatprep.mubr.msk.f32.mxu0 %vm662_vm2, %v16353_v41 }
0x2054   : > { %11409 = vmatmul.mubr.msk.f32.gmra.mrb[26].mxu0 %vm662_vm2, %v16351_v15 }
0x2055   : > { %11411 = vmatprep.mubr.msk.f32.mxu0 %vm662_vm2, %v16361_v6 }
0x2058   : > { %11412 = vmatmul.mubr.msk.f32.gmra.mrb[28].mxu0 %vm662_vm2, %v16359_v19 }
0x2059   : > { %11414 = vmatprep.mubr.msk.f32.mxu0 %vm662_vm2, %v16369_v8 }
0x205c   : > { %11415 = vmatmul.mubr.msk.f32.gmra.mrb[30].mxu0 %vm662_vm2, %v16367_v45 }
0x205d   : > { %11417 = vmatprep.mubr.msk.f32.mxu0 %vm662_vm2, %v16377_v17 }
0x2060   : > { %11418 = vmatmul.mubr.msk.f32.gmra.mrb[32].mxu0 %vm662_vm2, %v16375_v18 }
0x2061   : > { %11420 = vmatprep.mubr.msk.f32.mxu0 %vm662_vm2, %v16385_v38 }
0x2064   : > { %11421 = vmatmul.mubr.msk.f32.gmra.mrb[34].mxu0 %vm662_vm2, %v16383_v44 }
0x2065   : > { %11423 = vmatprep.mubr.msk.f32.mxu0 %vm662_vm2, %v16404_v23 }
0x2068   : > { %11424 = vmatmul.mubr.msk.f32.gmra.mrb[36].mxu0 %vm662_vm2, %v16401_v59 }
0x2069   : > { %11426 = vmatprep.mubr.msk.f32.mxu0 %vm662_vm2, %v16424_v36 }
0x206c   : > { %11427 = vmatmul.mubr.msk.f32.gmra.mrb[38].mxu0 %vm662_vm2, %v16421_v11 }
0x206d   : > { %11429 = vmatprep.mubr.msk.f32.mxu0 %vm662_vm2, %v16444_v54 }
0x2070   : > { %11430 = vmatmul.mubr.msk.f32.gmra.mrb[40].mxu0 %vm662_vm2, %v16441_v56 }
0x2071   : > { %11432 = vmatprep.mubr.msk.f32.mxu0 %vm662_vm2, %v16464_v1 }
0x2074   : > { %11433 = vmatmul.mubr.msk.f32.gmra.mrb[42].mxu0 %vm662_vm2, %v16461_v7 }
0x2075   : > { %11435 = vmatprep.mubr.msk.f32.mxu0 %vm662_vm2, %v16479_v4 }
0x2078   : > { %11436 = vmatmul.mubr.msk.f32.gmra.mrb[44].mxu0 %vm662_vm2, %v16477_v43 }
0x2079   : > { %11438 = vmatprep.mubr.msk.f32.mxu0 %vm662_vm2, %v16493_v33 }
0x207c   : > { %11439 = vmatmul.mubr.msk.f32.gmra.mrb[46].mxu0 %vm662_vm2, %v16491_v13 }
0x207d   : > { %11441 = vmatprep.mubr.msk.f32.mxu0 %vm662_vm2, %v16507_v9 }
0x2080   : > { %11442 = vmatmul.mubr.msk.f32.gmra.mrb[48].mxu0 %vm662_vm2, %v16505_v46 }
0x2117   : > { %v11398_v61 = vpop.f32.mrb[18].mxu0 }
0x2118   : > { %v8096_v34 = vadd.f32 1e-06, %v11398_v61  ;;  %v8090_v25 = vpop.f32.mrb[19].mxu0 }
0x2119   : > { %v8091_v58 = vadd.f32 1e-06, %v8090_v25 }
0x211a   : > { %13078 = vrcp.f32 %v8096_v34  ;;  %v7896_v34 = vmul.f32 %v16641_v16, %v16321_v62 }
0x211b   : > { %13080 = vrcp.f32 %v8091_v58  ;;  %v11401_v24 = vpop.f32.mrb[20].mxu0 }
0x211c   : > { %v8106_v20 = vadd.f32 1e-06, %v11401_v24  ;;  %v8100_v52 = vpop.f32.mrb[21].mxu0 }
0x211d   : > { %v8101_v47 = vadd.f32 1e-06, %v8100_v52 }
0x211e   : > { %13082 = vrcp.f32 %v8106_v20 }
0x211f   : > { %13084 = vrcp.f32 %v8101_v47  ;;  %v11404_v2 = vpop.f32.mrb[22].mxu0 }
0x2120   : > { %v8116_v5 = vadd.f32 1e-06, %v11404_v2  ;;  %v8110_v0 = vpop.f32.mrb[23].mxu0  ;;  %v7899_v2 = vmul.f32 %v16643_v35, %v16327_v39  ;;  %v7901_v39 = vmul.f32 %v16647_v29, %v16335_v48  ;;  %v7903_v48 = vmul.f32 %v16651_v57, %v16343_v42 }
0x2121   : > { %v8111_v37 = vadd.f32 1e-06, %v8110_v0  ;;  %v7905_v42 = vmul.f32 %v16655_v10, %v16351_v15  ;;  %v7907_v15 = vmul.f32 %v16659_v49, %v16359_v19  ;;  %v7909_v19 = vmul.f32 %v16663_v21, %v16367_v45 }
0x2122   : > { %13086 = vrcp.f32 %v8116_v5  ;;  %v7898_v5 = vmul.f32 %v16645_v63, %v16329_v3  ;;  %v7900_v3 = vmul.f32 %v16649_v60, %v16337_v28  ;;  %v7902_v28 = vmul.f32 %v16653_v14, %v16345_v30 }
0x2123   : > { %13088 = vrcp.f32 %v8111_v37  ;;  %v11407_v61 = vpop.f32.mrb[24].mxu0  ;;  %v7904_v30 = vmul.f32 %v16657_v26, %v16353_v41  ;;  %v7906_v41 = vmul.f32 %v16661_v27, %v16361_v6  ;;  %v7908_v6 = vmul.f32 %v16665_v53, %v16369_v8 }
0x2124   : > { %v13079_v9 = vpop.eup %13078  ;;  %v8126_v25 = vadd.f32 1e-06, %v11407_v61  ;;  %v8120_v58 = vpop.f32.mrb[25].mxu0  ;;  %v7911_v45 = vmul.f32 %v16667_v51, %v16375_v18  ;;  %v7910_v8 = vmul.f32 %v16669_v12, %v16377_v17  ;;  %v7913_v18 = vmul.f32 %v16671_v32, %v16383_v44 }
0x2125   : > { %v13081_v24 = vpop.eup %13080  ;;  %v16769_v52 = vmul.f32 %v13079_v9, %v7897_v50  ;;  %v8121_v20 = vadd.f32 1e-06, %v8120_v58  ;;  %v7912_v17 = vmul.f32 %v16673_v40, %v16385_v38  ;;  %v17582_v40 = vld [vmem:[#allocation57_spill] sm:$0xff] }
0x2126   : > { %v16771_v47 = vmul.f32 %v13081_v24, %v7896_v34  ;;  %13090 = vrcp.f32 %v8126_v25 }
0x2127   : > { %13092 = vrcp.f32 %v8121_v20  ;;  %v11410_v22 = vpop.f32.mrb[26].mxu0 }
0x2128   : > { %v13083_v55 = vpop.eup %13082  ;;  %v8136_v0 = vadd.f32 1e-06, %v11410_v22  ;;  %v8130_v62 = vpop.f32.mrb[27].mxu0  ;;  %v12015_v16 = vpack.c.bf16 %v16769_v52, %v16771_v47  ;;  %v17585_v52 = vld [vmem:[#allocation60_spill] sm:$0xff] }
0x2129   : > { %v13085_v9 = vpop.eup %13084  ;;  %v16779_v50 = vmul.f32 %v13083_v55, %v7899_v2  ;;  %v8131_v37 = vadd.f32 1e-06, %v8130_v62  ;;  %v7919_v47 = vmul.f32 %v17585_v52, %v16441_v56 }
0x212a   : > { %v16781_v61 = vmul.f32 %v13085_v9, %v7898_v5  ;;  %13094 = vrcp.f32 %v8136_v0 }
0x212b   : > { %13096 = vrcp.f32 %v8131_v37  ;;  %v11413_v35 = vpop.f32.mrb[28].mxu0 }
0x212c   : > { %v13087_v34 = vpop.eup %13086  ;;  %v8146_v63 = vadd.f32 1e-06, %v11413_v35  ;;  %v8140_v25 = vpop.f32.mrb[29].mxu0  ;;  %v12021_v58 = vpack.c.bf16 %v16779_v50, %v16781_v61  ;;  %v17589_v50 = vld [vmem:[#allocation50_spill] sm:$0xff] }
0x212d   : > { %v13089_v24 = vpop.eup %13088  ;;  %v16789_v20 = vmul.f32 %v13087_v34, %v7901_v39  ;;  %v8141_v2 = vadd.f32 1e-06, %v8140_v25  ;;  %v7923_v61 = vmul.f32 %v17589_v50, %v16477_v43  ;;  %v17592_v43 = vld [vmem:[#allocation53_spill] sm:$0xff] }
0x212e   : > { %v16791_v22 = vmul.f32 %v13089_v24, %v7900_v3  ;;  %13098 = vrcp.f32 %v8146_v63 }
0x212f   : > { %13100 = vrcp.f32 %v8141_v2  ;;  %v11416_v29 = vpop.f32.mrb[30].mxu0 }
0x2130   : > { %v13091_v55 = vpop.eup %13090  ;;  %v8156_v60 = vadd.f32 1e-06, %v11416_v29  ;;  %v8150_v5 = vpop.f32.mrb[31].mxu0  ;;  %v12027_v0 = vpack.c.bf16 %v16789_v20, %v16791_v22  ;;  %v17595_v20 = vld [vmem:[#allocation54_spill] sm:$0xff] }
0x2131   : > { %v13093_v62 = vpop.eup %13092  ;;  %v16799_v9 = vmul.f32 %v13091_v55, %v7903_v48  ;;  %v8151_v37 = vadd.f32 1e-06, %v8150_v5 }
0x2132   : > { %v16801_v39 = vmul.f32 %v13093_v62, %v7902_v28  ;;  %13102 = vrcp.f32 %v8156_v60 }
0x2133   : > { %13104 = vrcp.f32 %v8151_v37  ;;  %v11419_v57 = vpop.f32.mrb[32].mxu0 }
0x2134   : > { %v13095_v35 = vpop.eup %13094  ;;  %v8166_v14 = vadd.f32 1e-06, %v11419_v57  ;;  %v8160_v34 = vpop.f32.mrb[33].mxu0  ;;  %v12033_v3 = vpack.c.bf16 %v16799_v9, %v16801_v39  ;;  %v17596_v9 = vld [vmem:[#allocation56_spill] sm:$0xff] }
0x2135   : > { %v13097_v63 = vpop.eup %13096  ;;  %v16809_v25 = vmul.f32 %v13095_v35, %v7905_v42  ;;  %v8161_v24 = vadd.f32 1e-06, %v8160_v34 }
0x2136   : > { %v16811_v2 = vmul.f32 %v13097_v63, %v7904_v30  ;;  %13106 = vrcp.f32 %v8166_v14 }
0x2137   : > { %13108 = vrcp.f32 %v8161_v24  ;;  %v11422_v10 = vpop.f32.mrb[34].mxu0 }
0x2138   : > { %v13099_v48 = vpop.eup %13098  ;;  %v8176_v26 = vadd.f32 1e-06, %v11422_v10  ;;  %v8170_v29 = vpop.f32.mrb[35].mxu0  ;;  %v12039_v55 = vpack.c.bf16 %v16809_v25, %v16811_v2 }
0x2139   : > { %v13101_v28 = vpop.eup %13100  ;;  %v16819_v60 = vmul.f32 %v13099_v48, %v7907_v15  ;;  %v8171_v5 = vadd.f32 1e-06, %v8170_v29 }
0x213a   : > { %v16821_v62 = vmul.f32 %v13101_v28, %v7906_v41  ;;  %13110 = vrcp.f32 %v8176_v26 }
0x213b   : > { %13112 = vrcp.f32 %v8171_v5  ;;  %v11425_v49 = vpop.f32.mrb[36].mxu0 }
0x213c   : > { %v13103_v37 = vpop.eup %13102  ;;  %v8186_v27 = vadd.f32 1e-06, %v11425_v49  ;;  %v8180_v42 = vpop.f32.mrb[37].mxu0  ;;  %v12045_v57 = vpack.c.bf16 %v16819_v60, %v16821_v62 }
0x213d   : > { %v13105_v35 = vpop.eup %13104  ;;  %v16829_v30 = vmul.f32 %v13103_v37, %v7909_v19  ;;  %v8181_v14 = vadd.f32 1e-06, %v8180_v42  ;;  %v7914_v42 = vmul.f32 %v17582_v40, %v16404_v23 }
0x213e   : > { %v16831_v34 = vmul.f32 %v13105_v35, %v7908_v6  ;;  %13114 = vrcp.f32 %v8186_v27  ;;  %v7915_v27 = vmul.f32 %v16675_v31, %v16401_v59  ;;  %v17583_v31 = vld [vmem:[#allocation58_spill] sm:$0xff] }
0x213f   : > { %13116 = vrcp.f32 %v8181_v14  ;;  %v11428_v21 = vpop.f32.mrb[38].mxu0 }
0x2140   : > { %v13107_v63 = vpop.eup %13106  ;;  %v8196_v53 = vadd.f32 1e-06, %v11428_v21  ;;  %v8190_v24 = vpop.f32.mrb[39].mxu0  ;;  %v12051_v15 = vpack.c.bf16 %v16829_v30, %v16831_v34 }
0x2141   : > { %v13109_v10 = vpop.eup %13108  ;;  %v16839_v48 = vmul.f32 %v13107_v63, %v7911_v45  ;;  %v8191_v41 = vadd.f32 1e-06, %v8190_v24 }
0x2142   : > { %v16841_v26 = vmul.f32 %v13109_v10, %v7910_v8  ;;  %13118 = vrcp.f32 %v8196_v53  ;;  %v7917_v53 = vmul.f32 %v17583_v31, %v16421_v11  ;;  %v17584_v10 = vld [vmem:[#allocation59_spill] sm:$0xff] }
0x2143   : > { %13120 = vrcp.f32 %v8191_v41  ;;  %v11431_v51 = vpop.f32.mrb[40].mxu0  ;;  %v7916_v41 = vmul.f32 %v17584_v10, %v16424_v36 }
0x2144   : > { %v13111_v29 = vpop.eup %13110  ;;  %v8206_v12 = vadd.f32 1e-06, %v11431_v51  ;;  %v8200_v28 = vpop.f32.mrb[41].mxu0  ;;  %v12057_v5 = vpack.c.bf16 %v16839_v48, %v16841_v26 }
0x2145   : > { %v13113_v19 = vpop.eup %13112  ;;  %v8201_v49 = vadd.f32 1e-06, %v8200_v28  ;;  %v8284_v37 = vmul.f32 %v13111_v29, %v7913_v18 }
0x2146   : > { %13122 = vrcp.f32 %v8206_v12  ;;  %v8282_v6 = vmul.f32 %v13113_v19, %v7912_v17 }
0x2147   : > { %13124 = vrcp.f32 %v8201_v49  ;;  %v11434_v44 = vpop.f32.mrb[42].mxu0  ;;  %v17586_v49 = vld [vmem:[#allocation61_spill] sm:$0xff] }
0x2148   : > { %v13115_v38 = vpop.eup %13114  ;;  %v8216_v35 = vadd.f32 1e-06, %v11434_v44  ;;  %v8210_v14 = vpop.f32.mrb[43].mxu0  ;;  %v12012_v45 = vpack.c.bf16 %v8284_v37, %v8282_v6  ;;  %v7918_v36 = vmul.f32 %v17586_v49, %v16444_v54  ;;  %v17588_v54 = vld [vmem:[#allocation62_spill] sm:$0xff] }
0x2149   : > { %v13117_v21 = vpop.eup %13116  ;;  %v8211_v63 = vadd.f32 1e-06, %v8210_v14  ;;  %v8288_v8 = vmul.f32 %v13115_v38, %v7915_v27  ;;  %v17594_v49 = vld [vmem:[#allocation14_spill] sm:$0xff] }
0x214a   : > { %13126 = vrcp.f32 %v8216_v35  ;;  %12014 = vmatprep.subr.msk.bf16.mxu1 %vm16853_vm5, %v12012_v45  ;;  %v8286_v59 = vmul.f32 %v13117_v21, %v7914_v42  ;;  %v17587_v35 = vld [vmem:[#allocation47_spill] sm:$0xff]  ;;  %v7920_v21 = vmul.f32 %v17588_v54, %v16464_v1  ;;  %v7926_v22 = vmul.f32 %v17595_v20, %v17594_v49 }
0x214b   : > { %13128 = vrcp.f32 %v8211_v63  ;;  %v11437_v24 = vpop.f32.mrb[44].mxu0  ;;  %12017 = vmatpush3.bf16.xpose.msk.msra.mxu1 %vm16853_vm5, %v12015_v16  ;;  %v7921_v14 = vmul.f32 %v17587_v35, %v16461_v7 }
0x214c   : > { %v13119_v23 = vpop.eup %13118  ;;  %v8226_v18 = vadd.f32 1e-06, %v11437_v24  ;;  %v8220_v51 = vpop.f32.mrb[45].mxu0  ;;  %v12018_v29 = vpack.c.bf16 %v8288_v8, %v8286_v59 }
0x214d   : > { %v13121_v17 = vpop.eup %13120  ;;  %v8221_v12 = vadd.f32 1e-06, %v8220_v51  ;;  %v8292_v28 = vmul.f32 %v13119_v23, %v7917_v53  ;;  %v17590_v23 = vld [vmem:[#allocation48_spill] sm:$0xff] }
0x214e   : > { %13130 = vrcp.f32 %v8226_v18  ;;  %12020 = vmatprep.subr.msk.bf16.mxu1 %vm16853_vm5, %v12018_v29  ;;  %v8290_v11 = vmul.f32 %v13121_v17, %v7916_v41  ;;  %v7922_v10 = vmul.f32 %v17590_v23, %v16479_v4  ;;  %v17591_v29 = vld [vmem:[#allocation51_spill] sm:$0xff] }
0x214f   : > { %13132 = vrcp.f32 %v8221_v12  ;;  %v11440_v16 = vpop.f32.mrb[46].mxu0  ;;  %v7925_v17 = vmul.f32 %v17591_v29, %v16491_v13 }
0x2150   : > { %v13123_v19 = vpop.eup %13122  ;;  %v8236_v37 = vadd.f32 1e-06, %v11440_v16  ;;  %v8230_v6 = vpop.f32.mrb[47].mxu0  ;;  %v12024_v27 = vpack.c.bf16 %v8292_v28, %v8290_v11  ;;  %v7924_v28 = vmul.f32 %v17592_v43, %v16493_v33  ;;  %v17593_v16 = vld [vmem:[#allocation49_spill] sm:$0xff] }
0x2151   : > { %v13125_v44 = vpop.eup %13124  ;;  %v8231_v38 = vadd.f32 1e-06, %v8230_v6  ;;  %v8296_v40 = vmul.f32 %v13123_v19, %v7919_v47  ;;  %v7927_v13 = vmul.f32 %v17593_v16, %v16505_v46 }
0x2152   : > { %13134 = vrcp.f32 %v8236_v37  ;;  %v8294_v42 = vmul.f32 %v13125_v44, %v7918_v36 }
0x2153   : > { %13136 = vrcp.f32 %v8231_v38  ;;  %v11443_v45 = vpop.f32.mrb[48].mxu0  ;;  %12023 = vmatpush3.bf16.xpose.msk.msra.mxu1 %vm16853_vm5, %v12021_v58 }
0x2154   : > { %v13127_v56 = vpop.eup %13126  ;;  %v8246_v63 = vadd.f32 1e-06, %v11443_v45  ;;  %v8240_v8 = vpop.f32.mrb[49].mxu0  ;;  %12026 = vmatprep.subr.msk.bf16.mxu1 %vm16853_vm5, %v12024_v27  ;;  %v12030_v59 = vpack.c.bf16 %v8296_v40, %v8294_v42 }
0x2155   : > { %v13129_v31 = vpop.eup %13128  ;;  %v8241_v7 = vadd.f32 1e-06, %v8240_v8  ;;  %v8300_v53 = vmul.f32 %v13127_v56, %v7921_v14 }
0x2156   : > { %13138 = vrcp.f32 %v8246_v63  ;;  %v8298_v24 = vmul.f32 %v13129_v31, %v7920_v21 }
0x2157   : > { %13140 = vrcp.f32 %v8241_v7 }
0x2158   : > { %v13131_v58 = vpop.eup %13130  ;;  %v12036_v1 = vpack.c.bf16 %v8300_v53, %v8298_v24 }
0x2159   : > { %v13133_v41 = vpop.eup %13132  ;;  %v8304_v18 = vmul.f32 %v13131_v58, %v7923_v61 }
0x215a   : > { %v8302_v51 = vmul.f32 %v13133_v41, %v7922_v10 }
0x215b   : > { %12029 = vmatpush3.bf16.xpose.msk.msra.mxu1 %vm16853_vm5, %v12027_v0 }
0x215c   : > { %v13135_v12 = vpop.eup %13134  ;;  %12032 = vmatprep.subr.msk.bf16.mxu1 %vm16853_vm5, %v12030_v59  ;;  %v12042_v4 = vpack.c.bf16 %v8304_v18, %v8302_v51 }
0x215d   : > { %v13137_v11 = vpop.eup %13136  ;;  %v8308_v52 = vmul.f32 %v13135_v12, %v7925_v17 }
0x215e   : > { %v8306_v47 = vmul.f32 %v13137_v11, %v7924_v28 }
0x2160   : > { %v13139_v19 = vpop.eup %13138  ;;  %v12048_v0 = vpack.c.bf16 %v8308_v52, %v8306_v47 }
0x2161   : > { %v13141_v36 = vpop.eup %13140  ;;  %v8312_v37 = vmul.f32 %v13139_v19, %v7927_v13 }
0x2162   : > { %v8310_v33 = vmul.f32 %v13141_v36, %v7926_v22 }
0x2163   : > { %12035 = vmatpush3.bf16.xpose.msk.msra.mxu1 %vm16853_vm5, %v12033_v3 }
0x2164   : > { %12038 = vmatprep.subr.msk.bf16.mxu1 %vm16853_vm5, %v12036_v1  ;;  %v12054_v46 = vpack.c.bf16 %v8312_v37, %v8310_v33 }
0x216b   : > { %12041 = vmatpush3.bf16.xpose.msk.msra.mxu1 %vm16853_vm5, %v12039_v55 }
0x216c   : > { %12044 = vmatprep.subr.msk.bf16.mxu1 %vm16853_vm5, %v12042_v4 }
0x2173   : > { %12047 = vmatpush3.bf16.xpose.msk.msra.mxu1 %vm16853_vm5, %v12045_v57 }
0x2174   : > { %12050 = vmatprep.subr.msk.bf16.mxu1 %vm16853_vm5, %v12048_v0 }
0x217b   : > { %12053 = vmatpush3.bf16.xpose.msk.msra.mxu1 %vm16853_vm5, %v12051_v15 }
0x217c   : > { %12056 = vmatprep.subr.msk.bf16.mxu1 %vm16853_vm5, %v12054_v46 }
0x2183   : > { %12059 = vmatpush3.bf16.xpose.msk.msra.mxu1 %vm16853_vm5, %v12057_v5 }
0x218a   : > { %10433 = vmatmul.mubr.msk.f32.vlgmr.msra.gmra.mrb[62].mxu1 %vm662_vm2, %v17596_v9 }
0x218b   : > { %13219 = shalt.err (!%p13216_p1)
}
0x218c   : > { %s13220_s6 = scalar_lea.hbm %s16946_s28, 64  ;;  %s13224_s30 = scalar_lea.hbm %s17019_s3, 128 }
0x218d   : > { %p13221_p11 = scmp.ne.s32.totalorder %s16946_s28, %s13220_s6  ;;  %p13225_p4 = scmp.lt.u32.totalorder %s16946_s28, %s17019_s3 }
0x218e   : > { %p13226_p10 = scmp.lt.u32.totalorder %s13224_s30, %s13220_s6  ;;  %p13228_p13 = scmp.lt.u32.totalorder %s13220_s6, %s16946_s28 }
0x218f   : > { %p13222_p12 = pnand %p13221_p11, %p17597_p3 }
0x2190   : > { %p13227_p6 = por %p13226_p10, %p13225_p4 }
0x2191   : > { %p13223_p2 = pneg %p13222_p12 }
0x2192   : > { %p13229_p7 = por %p13228_p13, %p13227_p6 }
0x2194   : > { %p13230_p5 = pnand %p13229_p7, %p13223_p2 }
0x2196   : > { %13233 = shalt.err (!%p13230_p5)
}
0x2197   : > { %12067 = dma.vmem_to_hbm [thread:$0]  (%p17597_p3), %s8523_s4, 64, %s16946_s28, %s8495_s29  }
0x2198   : > { %s9225_s20 = sshll.u32 %s13358_s16, 7  ;;  %s227_s22 = scalar_lea.vmem [#allocation7], %s8656_s19 }
0x2199   : > { %s8509_s27 = sshll.u32 %s227_s22, 4  ;;  %s16972_s9 = scalar_lea.hbm %s17018_s2, %s9225_s20  ;;  %s16974_s27 = int_to_ptr.vmem [resolvable:$true] %s8509_s27 }
0x219a   : > { %s8490_s10 = scalar_lea.sflag [#allocation4], %s13479_s11  ;;  %s13234_s4 = scalar_lea.vmem %s16974_s27, 128 }
0x219b   : > { %p13235_p8 = scmp.ne.s32.totalorder %s16974_s27, %s13234_s4  ;;  %s13316_s16 = smov [#allocation7]  }
0x219c   : > { %s13238_s19 = sshll.u32 %s13316_s16, 4  ;;  %s13239_s19 = int_to_ptr.vmem [resolvable:$false] %s13238_s19 }
0x219d   : > { %p13236_p9 = pnand %p13235_p8, %p17597_p3  ;;  %s13240_s28 = scalar_lea.vmem %s13239_s19, 256 }
0x219e   : > { %p13241_p1 = scmp.lt.s32.totalorder %s16974_s27, %s13239_s19  ;;  %p13242_p11 = scmp.lt.s32.totalorder %s13240_s28, %s13234_s4 }
0x219f   : > { %p13237_p0 = pneg %p13236_p9 }
0x21a0   : > { %p13243_p12 = por %p13242_p11, %p13241_p1 }
0x21a2   : > { %p13244_p2 = pnand %p13243_p12, %p13237_p0 }
0x225d   : > { %v8477_v39 = vpop.f32.mrb[62].mxu1 }
0x225e   : > { %v8479_v3 = vpop.f32.mrb[63].mxu1 }
0x225f   : > { %v8484_v25 = vcombine.low %v8477_v39, %v8479_v3 }
0x2261   : > { %8486 = vst [vmem:[%s227_s22] sm:$0xff] %v8484_v25 }
0x2262   : > { %13247 = shalt.err (!%p13244_p2)
}
0x2263   : > { %s13248_s11 = scalar_lea.hbm %s16972_s9, 128  ;;  %s13252_s8 = scalar_lea.hbm %s17018_s2, 256 }
0x2264   : > { %p13249_p4 = scmp.ne.s32.totalorder %s16972_s9, %s13248_s11  ;;  %p13253_p13 = scmp.lt.u32.totalorder %s16972_s9, %s17018_s2 }
0x2265   : > { %p13254_p7 = scmp.lt.u32.totalorder %s13252_s8, %s13248_s11  ;;  %p13256_p8 = scmp.lt.u32.totalorder %s13248_s11, %s16972_s9 }
0x2266   : > { %p13250_p10 = pnand %p13249_p4, %p17597_p3 }
0x2267   : > { %p13255_p5 = por %p13254_p7, %p13253_p13 }
0x2268   : > { %p13251_p6 = pneg %p13250_p10 }
0x2269   : > { %p13257_p9 = por %p13256_p8, %p13255_p5 }
0x226b   : > { %p13258_p0 = pnand %p13257_p9, %p13251_p6 }
0x226d   : > { %13261 = shalt.err (!%p13258_p0)
}
0x226e   : > { %12066 = dma.vmem_to_hbm [thread:$0]  (%p17597_p3), %s16974_s27, 128, %s16972_s9, %s8490_s10  }
0x226f PF: > { %s8534_s17 = sand.u32 1, %s13296_s12   ;;  %p17598_p1 = scmp.ne.s32.totalorder %s17133_s25, 0 }
0x2270   : > { %p17599_p11 = scmp.ge.s32.totalorder %s13308_s15, 2  ;;  %s8535_s23 = scalar_lea.sflag [#allocation4], %s8534_s17 }
0x2272   : > { %p12078_p12 = pnand %p17599_p11, %p17598_p1 }
0x2274   : > { %13287 = dma.done.wait (!%p12078_p12), %s8535_s23, 128  }
0x2275   : > { %13289 = vsyncadd (!%p12078_p12), %s8535_s23, 4294967168  ;;  %s8544_s20 = scalar_lea.sflag [#allocation9], %s8534_s17 }
0x2276   : > { %13291 = dma.done.wait (!%p12078_p12), %s8544_s20, 64  }
0x2277   : > { %13293 = vsyncadd (!%p12078_p12), %s8544_s20, 4294967232  ;;  %p23_p3 = scmp.ge.s32.totalorder %s13362_s18, 4   ;;  %s17600_s12 = smov %s13300_s13 }
0x2278   : > { %s17601_s13 = smov %s13304_s14  ;;  %s17602_s14 = smov %s13374_s21 }
0x2279   : > { %s17603_s15 = smov %s13362_s18  ;;  %25 = sbr.rel (!%p23_p3) target bundleno = 9 (0x9), region = 103 }
0x2280   :  { %8549 = vsyncpa [#allocation3], 1 }
0x2281   :  { %8551 = vsyncpa [#allocation3 + $0x1], 1 }
0x2282   :  { %8552 = vsyncpa [#allocation6], 1 }
0x2283   :  { %8554 = vsyncpa [#allocation6 + $0x1], 1 }
0x2284   :  { %8555 = vsyncpa [#allocation4], 1 }
0x2285   :  { %8557 = vsyncpa [#allocation4 + $0x1], 1 }
0x2286   :  { %8558 = vsyncpa [#allocation9], 1 }
0x2287   :  { %8560 = vsyncpa [#allocation9 + $0x1], 1 }

</bundles_post_ra>
